<compile_context>
chip_gen: v7x
topology: tpu7x:2x2x1
jax: 0.10.0
libtpu: 0.0.40
codegen_flags: <defaults>
</compile_context>

<pallas_src>
import jax
import jax.numpy as jnp
from jax.experimental import pallas as pl
from jax.experimental.pallas import tpu as pltpu

D = 128          # model dim
NP = 16          # number of patches
S = NP + 1       # logical sequence length (cls + patches)
S_PAD = 24       # sequence padded to a multiple of 8 sublanes (f32)
P = 196          # patch feature dim (emb: Linear(196, 128))
P_PAD = 256      # patch dim zero-padded to a multiple of 128 for the MXU
NCLASS = 10
NCLASS_PAD = 128 # lane-dense head output, sliced back to 10 in the wrapper
NLAYERS = 6
EPS = 1e-5       # torch.nn.LayerNorm default eps

# rows of the per-layer packed vector table [L, 10, D]
_BQ, _BK, _BV, _BO, _B1, _B2, _G1, _BE1, _G2, _BE2 = range(10)


# --------------------------------------------------------------- fused kernel
def _fused_kernel(x_ref, emb_w_ref, emb_b_ref, cls_ref, pos_ref,
                  w_ref, vecs_ref,
                  fin_g_ref, fin_b_ref, fin_w_ref, fin_bw_ref,
                  out_ref):
    def ln(t, g, b):               # g, b: (1, D) f32; t: (..., D) f32
        mu = jnp.mean(t, axis=-1, keepdims=True)
        var = jnp.mean(jnp.square(t - mu), axis=-1, keepdims=True)
        return (t - mu) * jax.lax.rsqrt(var + EPS) * g + b

    def mm(x, w_bf16):             # f32 activation -> bf16 MXU, f32 accumulate
        return jnp.einsum("bsd,de->bse", x.astype(jnp.bfloat16), w_bf16,
                          preferred_element_type=jnp.float32)

    def row(mat, i):               # (1, D) row of a packed vector table
        return mat[i:i + 1, :]

    # ---------- prologue: patch embedding + cls token + positional add ------
    # x row 0 (per batch) is all-zero, so the embed matmul yields the full
    # (B, S_PAD, D) slab directly; the cls row is written via a where-select.
    pch = mm(x_ref[...], emb_w_ref[...]) + emb_b_ref[...]        # (B,S_PAD,D)
    seq_idx = jax.lax.broadcasted_iota(jnp.int32, (1, S_PAD, 1), 1)
    h = jnp.where(seq_idx == 0,
                  cls_ref[...] + pos_ref[0:1, :],                # (1, D)
                  pch + pos_ref[...])                            # (B,S_PAD,D)

    # key-padding mask for the 7 padded sequence positions
    key_idx = jax.lax.broadcasted_iota(jnp.int32, (1, 1, S_PAD), 2)
    key_valid = key_idx < S
    scale = jnp.float32(D ** -0.5)

    # ------------------------- encoder layers (unrolled) --------------------
    for l in range(NLAYERS):
        vb = vecs_ref[l]                                         # (10, D) f32

        qkv = mm(h, w_ref[l, :, 0:3 * D])                        # fused QKV
        q = qkv[..., 0:D] + row(vb, _BQ)
        k = qkv[..., D:2 * D] + row(vb, _BK)
        v = qkv[..., 2 * D:3 * D] + row(vb, _BV)

        att = jnp.einsum("bqd,bkd->bqk", q.astype(jnp.bfloat16),
                         k.astype(jnp.bfloat16),
                         preferred_element_type=jnp.float32) * scale
        att = jnp.where(key_valid, att, -1e30)
        att = jnp.exp(att - jnp.max(att, axis=-1, keepdims=True))
        att = att * pl.reciprocal(jnp.sum(att, axis=-1, keepdims=True),
                                  approx=True)
        # Dropout(0.1): identity (eval mode).
        ctx = jnp.einsum("bqk,bkd->bqd", att.astype(jnp.bfloat16),
                         v.astype(jnp.bfloat16),
                         preferred_element_type=jnp.float32)

        ao = mm(ctx, w_ref[l, :, 3 * D:4 * D]) + row(vb, _BO)
        src = ln(h + ao, row(vb, _G1), row(vb, _BE1))

        f = jnp.maximum(mm(src, w_ref[l, :, 4 * D:5 * D]) + row(vb, _B1), 0.0)
        f = mm(f, w_ref[l, :, 5 * D:6 * D]) + row(vb, _B2)
        h = ln(src + f, row(vb, _G2), row(vb, _BE2))

    # --------------------------- classification head ------------------------
    cls_tok = h[:, 0:1, :]                                       # (B, 1, D)
    xn = ln(cls_tok, fin_g_ref[...], fin_b_ref[...])
    out_ref[...] = mm(xn, fin_w_ref[...]) + fin_bw_ref[...]      # (B,1,128)


# ------------------------------------------------------------------- forward
def _looker_trns_forward_impl(x, kp):
    B = x.shape[0]
    # prepend one zero "cls slot" row, pad seq 17->24 and patch dim 196->256.
    x_full = jnp.pad(x, ((0, 0), (1, S_PAD - S), (0, P_PAD - P)))

    vmem = pltpu.MemorySpace.VMEM
    out = pl.pallas_call(
        _fused_kernel,
        out_shape=jax.ShapeDtypeStruct((B, 1, NCLASS_PAD), jnp.float32),
        in_specs=[pl.BlockSpec(memory_space=vmem)] * 11,
        out_specs=pl.BlockSpec(memory_space=vmem),
        compiler_params=pltpu.CompilerParams(
            vmem_limit_bytes=16 * 1024 * 1024,
        ),
    )(x_full, kp["emb_w"], kp["emb_b"], kp["cls"], kp["pos"],
      kp["w"], kp["vecs"],
      kp["fin_g"], kp["fin_b"], kp["fin_w"], kp["fin_bw"])
    return out[:, 0, :NCLASS]


looker_trns_forward = jax.jit(_looker_trns_forward_impl)


# ------------------------------------------------------------------- params
def init_params(key):
    """Logical f32 parameters (consumed by the pure-JAX reference)."""
    def nrm(k, shape, scale=0.02):
        return (scale * jax.random.normal(k, shape)).astype(jnp.float32)

    ks = iter(jax.random.split(key, 20))
    return {
        "emb_w": nrm(next(ks), (P, D)),
        "emb_b": nrm(next(ks), (1, D), 0.01),
        "cls":   nrm(next(ks), (1, D), 1.0),
        "pos":   nrm(next(ks), (S, D), 0.02),
        "wq": nrm(next(ks), (NLAYERS, D, D)),
        "wk": nrm(next(ks), (NLAYERS, D, D)),
        "wv": nrm(next(ks), (NLAYERS, D, D)),
        "wo": nrm(next(ks), (NLAYERS, D, D)),
        "w1": nrm(next(ks), (NLAYERS, D, D)),
        "w2": nrm(next(ks), (NLAYERS, D, D)),
        "bq": nrm(next(ks), (NLAYERS, D), 0.01),
        "bk": nrm(next(ks), (NLAYERS, D), 0.01),
        "bv": nrm(next(ks), (NLAYERS, D), 0.01),
        "bo": nrm(next(ks), (NLAYERS, D), 0.01),
        "b1": nrm(next(ks), (NLAYERS, D), 0.01),
        "b2": nrm(next(ks), (NLAYERS, D), 0.01),
        "g1":  jnp.ones((NLAYERS, D), jnp.float32),
        "be1": jnp.zeros((NLAYERS, D), jnp.float32),
        "g2":  jnp.ones((NLAYERS, D), jnp.float32),
        "be2": jnp.zeros((NLAYERS, D), jnp.float32),
        "fin_g": jnp.ones((1, D), jnp.float32),
        "fin_b": jnp.zeros((1, D), jnp.float32),
        "fin_w": nrm(next(ks), (D, NCLASS)),
        "fin_bw": nrm(next(ks), (1, NCLASS), 0.01),
    }


def pack_params(p):
    """One-time host-side packing / padding / bf16 cast for the kernel."""
    # per-layer weight slab [L, D, 6D]: columns = Wq | Wk | Wv | Wo | W1 | W2
    w = jnp.concatenate([p["wq"], p["wk"], p["wv"], p["wo"], p["w1"], p["w2"]],
                        axis=-1)
    # per-layer vector table [L, 10, D]: bq bk bv bo b1 b2 g1 be1 g2 be2
    vecs = jnp.stack([p["bq"], p["bk"], p["bv"], p["bo"], p["b1"], p["b2"],
                      p["g1"], p["be1"], p["g2"], p["be2"]], axis=1)
    return {
        "emb_w": jnp.pad(p["emb_w"], ((0, P_PAD - P), (0, 0))).astype(jnp.bfloat16),
        "emb_b": p["emb_b"],
        "cls":   p["cls"],
        "pos":   jnp.pad(p["pos"], ((0, S_PAD - S), (0, 0))),
        "w":     w.astype(jnp.bfloat16),
        "vecs":  vecs,
        "fin_g": p["fin_g"],
        "fin_b": p["fin_b"],
        "fin_w": jnp.pad(p["fin_w"], ((0, 0), (0, NCLASS_PAD - NCLASS))
                         ).astype(jnp.bfloat16),
        "fin_bw": jnp.pad(p["fin_bw"], ((0, 0), (0, NCLASS_PAD - NCLASS))),
    }


# ----------------------------------------------------- pure-JAX f32 reference
def reference_forward(x, p):
    def ln(t, g, b):
        mu = t.mean(-1, keepdims=True)
        var = ((t - mu) ** 2).mean(-1, keepdims=True)
        return (t - mu) / jnp.sqrt(var + EPS) * g + b

    B = x.shape[0]
    pch = x @ p["emb_w"] + p["emb_b"][0]
    cls = jnp.broadcast_to(p["cls"][None, :, :], (B, 1, D))
    hdn = jnp.concatenate([cls, pch], axis=1) + p["pos"][None]
    for l in range(NLAYERS):
        q = hdn @ p["wq"][l] + p["bq"][l]
        k = hdn @ p["wk"][l] + p["bk"][l]
        v = hdn @ p["wv"][l] + p["bv"][l]
        att = jax.nn.softmax((q @ jnp.swapaxes(k, -1, -2)) * D ** -0.5, axis=-1)
        out = (att @ v) @ p["wo"][l] + p["bo"][l]
        hdn = ln(hdn + out, p["g1"][l], p["be1"][l])
        f = jax.nn.relu(hdn @ p["w1"][l] + p["b1"][l]) @ p["w2"][l] + p["b2"][l]
        hdn = ln(hdn + f, p["g2"][l], p["be2"][l])
    cls_tok = hdn[:, 0, :]
    return (ln(cls_tok, p["fin_g"][0], p["fin_b"][0])
            @ p["fin_w"] + p["fin_bw"][0])


if __name__ == "__main__":
    key = jax.random.PRNGKey(0)
    kx, kp = jax.random.split(key)
    B = 2
    x = jax.random.normal(kx, (B, NP, P), dtype=jnp.float32)
    params = init_params(kp)
    kernel_params = pack_params(params)      # packed / bf16-cast once

    out = jax.block_until_ready(looker_trns_forward(x, kernel_params))
    ref = reference_forward(x, params)

    assert out.shape == (B, NCLASS), out.shape
    # bf16 MXU operands + approx softmax reciprocal vs pure-f32 reference.
    assert jnp.allclose(out, ref, atol=2e-2, rtol=2e-2), (out, ref)

    print("KERNEL_OK")
</pallas_src>

<mosaic_0001>
module attributes {stable_mosaic.version = 11 : i64} {
  func.func @_fused_kernel(%arg0: memref<2x24x256xf32, #tpu.memory_space<vmem>>, %arg1: memref<256x128xbf16, #tpu.memory_space<vmem>>, %arg2: memref<1x128xf32, #tpu.memory_space<vmem>>, %arg3: memref<1x128xf32, #tpu.memory_space<vmem>>, %arg4: memref<24x128xf32, #tpu.memory_space<vmem>>, %arg5: memref<6x128x768xbf16, #tpu.memory_space<vmem>>, %arg6: memref<6x10x128xf32, #tpu.memory_space<vmem>>, %arg7: memref<1x128xf32, #tpu.memory_space<vmem>>, %arg8: memref<1x128xf32, #tpu.memory_space<vmem>>, %arg9: memref<128x128xbf16, #tpu.memory_space<vmem>>, %arg10: memref<1x128xf32, #tpu.memory_space<vmem>>, %arg11: memref<2x1x128xf32, #tpu.memory_space<vmem>>) attributes {dimension_semantics = [], scalar_prefetch = 0 : i64, scratch_operands = 0 : i64, tpu.core_type = #tpu.core_type<tc>} {
    %c0 = arith.constant 0 : index
    %c0_0 = arith.constant 0 : index
    %c0_1 = arith.constant 0 : index
    %0 = vector.load %arg0[%c0, %c0_0, %c0_1] : memref<2x24x256xf32, #tpu.memory_space<vmem>>, vector<2x24x256xf32>
    %c0_2 = arith.constant 0 : index
    %c0_3 = arith.constant 0 : index
    %1 = vector.load %arg1[%c0_2, %c0_3] : memref<256x128xbf16, #tpu.memory_space<vmem>>, vector<256x128xbf16>
    %2 = arith.truncf %0 : vector<2x24x256xf32> to vector<2x24x256xbf16>
    "tpu.trace_start"() <{level = 10 : i32, message = "bsd,de->bse"}> : () -> ()
    %cst = arith.constant dense<0.000000e+00> : vector<2x24x128xf32>
    %3 = tpu.matmul %2, %1, %cst {dimension_numbers = #tpu.dot_dimension_numbers<[2], [0], [0, 1], [1], [0, 0, 0, 1, 1, 1], [], []>} : vector<2x24x256xbf16>, vector<256x128xbf16>, vector<2x24x128xf32> -> vector<2x24x128xf32>
    "tpu.trace_stop"() : () -> ()
    %c0_4 = arith.constant 0 : index
    %c0_5 = arith.constant 0 : index
    %4 = vector.load %arg2[%c0_4, %c0_5] : memref<1x128xf32, #tpu.memory_space<vmem>>, vector<1x128xf32>
    %5 = vector.shape_cast %4 : vector<1x128xf32> to vector<1x1x128xf32>
    %6 = vector.broadcast %5 : vector<1x1x128xf32> to vector<2x24x128xf32>
    %7 = arith.addf %3, %6 : vector<2x24x128xf32>
    %8 = tpu.iota {dimensions = array<i32: 1>} : vector<1x24x1xi32>
    %c0_i32 = arith.constant 0 : i32
    %9 = vector.broadcast %c0_i32 : i32 to vector<1x24x1xi32>
    %10 = arith.cmpi eq, %8, %9 : vector<1x24x1xi32>
    %c0_6 = arith.constant 0 : index
    %c0_7 = arith.constant 0 : index
    %11 = vector.load %arg3[%c0_6, %c0_7] : memref<1x128xf32, #tpu.memory_space<vmem>>, vector<1x128xf32>
    %c0_8 = arith.constant 0 : index
    %c0_9 = arith.constant 0 : index
    %12 = vector.load %arg4[%c0_8, %c0_9] : memref<24x128xf32, #tpu.memory_space<vmem>>, vector<1x128xf32>
    %13 = arith.addf %11, %12 : vector<1x128xf32>
    %c0_10 = arith.constant 0 : index
    %c0_11 = arith.constant 0 : index
    %14 = vector.load %arg4[%c0_10, %c0_11] : memref<24x128xf32, #tpu.memory_space<vmem>>, vector<24x128xf32>
    %15 = vector.shape_cast %14 : vector<24x128xf32> to vector<1x24x128xf32>
    %16 = vector.broadcast %15 : vector<1x24x128xf32> to vector<2x24x128xf32>
    %17 = arith.addf %7, %16 : vector<2x24x128xf32>
    %18 = vector.shape_cast %10 : vector<1x24x1xi1> to vector<1x24x1xi1>
    %19 = vector.broadcast %18 : vector<1x24x1xi1> to vector<2x24x128xi1>
    %20 = vector.shape_cast %13 : vector<1x128xf32> to vector<1x1x128xf32>
    %21 = vector.broadcast %20 : vector<1x1x128xf32> to vector<2x24x128xf32>
    %22 = arith.select %19, %21, %17 : vector<2x24x128xi1>, vector<2x24x128xf32>
    %23 = tpu.iota {dimensions = array<i32: 2>} : vector<1x1x24xi32>
    %c17_i32 = arith.constant 17 : i32
    %24 = vector.broadcast %c17_i32 : i32 to vector<1x1x24xi32>
    %25 = arith.cmpi slt, %23, %24 : vector<1x1x24xi32>
    %c0_12 = arith.constant 0 : index
    %c0_13 = arith.constant 0 : index
    %c0_14 = arith.constant 0 : index
    %26 = vector.load %arg6[%c0_12, %c0_13, %c0_14] : memref<6x10x128xf32, #tpu.memory_space<vmem>>, vector<1x10x128xf32>
    %27 = vector.shape_cast %26 : vector<1x10x128xf32> to vector<10x128xf32>
    %c0_15 = arith.constant 0 : index
    %c0_16 = arith.constant 0 : index
    %c0_17 = arith.constant 0 : index
    %28 = vector.load %arg5[%c0_15, %c0_16, %c0_17] : memref<6x128x768xbf16, #tpu.memory_space<vmem>>, vector<1x128x384xbf16>
    %29 = vector.shape_cast %28 : vector<1x128x384xbf16> to vector<128x384xbf16>
    %30 = arith.truncf %22 : vector<2x24x128xf32> to vector<2x24x128xbf16>
    "tpu.trace_start"() <{level = 10 : i32, message = "bsd,de->bse"}> : () -> ()
    %cst_18 = arith.constant dense<0.000000e+00> : vector<2x24x384xf32>
    %31 = tpu.matmul %30, %29, %cst_18 {dimension_numbers = #tpu.dot_dimension_numbers<[2], [0], [0, 1], [1], [0, 0, 0, 1, 1, 1], [], []>} : vector<2x24x128xbf16>, vector<128x384xbf16>, vector<2x24x384xf32> -> vector<2x24x384xf32>
    "tpu.trace_stop"() : () -> ()
    %32 = vector.extract_strided_slice %31 {offsets = [0, 0, 0], sizes = [2, 24, 128], strides = [1, 1, 1]} : vector<2x24x384xf32> to vector<2x24x128xf32>
    %33 = vector.extract_strided_slice %27 {offsets = [0, 0], sizes = [1, 128], strides = [1, 1]} : vector<10x128xf32> to vector<1x128xf32>
    %34 = vector.shape_cast %33 : vector<1x128xf32> to vector<1x1x128xf32>
    %35 = vector.broadcast %34 : vector<1x1x128xf32> to vector<2x24x128xf32>
    %36 = arith.addf %32, %35 : vector<2x24x128xf32>
    %37 = vector.extract_strided_slice %31 {offsets = [0, 0, 128], sizes = [2, 24, 128], strides = [1, 1, 1]} : vector<2x24x384xf32> to vector<2x24x128xf32>
    %38 = vector.extract_strided_slice %27 {offsets = [1, 0], sizes = [1, 128], strides = [1, 1]} : vector<10x128xf32> to vector<1x128xf32>
    %39 = vector.shape_cast %38 : vector<1x128xf32> to vector<1x1x128xf32>
    %40 = vector.broadcast %39 : vector<1x1x128xf32> to vector<2x24x128xf32>
    %41 = arith.addf %37, %40 : vector<2x24x128xf32>
    %42 = vector.extract_strided_slice %31 {offsets = [0, 0, 256], sizes = [2, 24, 128], strides = [1, 1, 1]} : vector<2x24x384xf32> to vector<2x24x128xf32>
    %43 = vector.extract_strided_slice %27 {offsets = [2, 0], sizes = [1, 128], strides = [1, 1]} : vector<10x128xf32> to vector<1x128xf32>
    %44 = vector.shape_cast %43 : vector<1x128xf32> to vector<1x1x128xf32>
    %45 = vector.broadcast %44 : vector<1x1x128xf32> to vector<2x24x128xf32>
    %46 = arith.addf %42, %45 : vector<2x24x128xf32>
    %47 = arith.truncf %36 : vector<2x24x128xf32> to vector<2x24x128xbf16>
    %48 = arith.truncf %41 : vector<2x24x128xf32> to vector<2x24x128xbf16>
    "tpu.trace_start"() <{level = 10 : i32, message = "bqd,bkd->bqk"}> : () -> ()
    %cst_19 = arith.constant dense<0.000000e+00> : vector<2x24x24xf32>
    %49 = tpu.matmul %47, %48, %cst_19 {dimension_numbers = #tpu.dot_dimension_numbers<[2], [2], [1], [1], [0, 0, 0, 1, 1, 1], [0], [0]>} : vector<2x24x128xbf16>, vector<2x24x128xbf16>, vector<2x24x24xf32> -> vector<2x24x24xf32>
    "tpu.trace_stop"() : () -> ()
    %cst_20 = arith.constant 0.0883883461 : f32
    %50 = vector.broadcast %cst_20 : f32 to vector<2x24x24xf32>
    %51 = arith.mulf %49, %50 : vector<2x24x24xf32>
    %cst_21 = arith.constant -1.000000e+30 : f32
    %52 = vector.shape_cast %25 : vector<1x1x24xi1> to vector<1x1x24xi1>
    %53 = vector.broadcast %52 : vector<1x1x24xi1> to vector<2x24x24xi1>
    %54 = vector.broadcast %cst_21 : f32 to vector<2x24x24xf32>
    %55 = arith.select %53, %51, %54 : vector<2x24x24xi1>, vector<2x24x24xf32>
    %cst_22 = arith.constant dense<0xFF800000> : vector<2x24xf32>
    %56 = vector.multi_reduction <maximumf>, %55, %cst_22 [2] : vector<2x24x24xf32> to vector<2x24xf32>
    %57 = vector.shape_cast %56 : vector<2x24xf32> to vector<2x24x1xf32>
    %58 = vector.broadcast %57 : vector<2x24x1xf32> to vector<2x24x24xf32>
    %59 = arith.subf %55, %58 : vector<2x24x24xf32>
    %60 = math.exp %59 : vector<2x24x24xf32>
    %cst_23 = arith.constant dense<0.000000e+00> : vector<2x24xf32>
    %61 = vector.multi_reduction <add>, %60, %cst_23 [2] : vector<2x24x24xf32> to vector<2x24xf32>
    %62 = vector.shape_cast %61 : vector<2x24xf32> to vector<2x24x1xf32>
    %63 = tpu.reciprocal %62 {approx = true} : vector<2x24x1xf32> -> vector<2x24x1xf32>
    %64 = vector.broadcast %63 : vector<2x24x1xf32> to vector<2x24x24xf32>
    %65 = arith.mulf %60, %64 : vector<2x24x24xf32>
    %66 = arith.truncf %65 : vector<2x24x24xf32> to vector<2x24x24xbf16>
    %67 = arith.truncf %46 : vector<2x24x128xf32> to vector<2x24x128xbf16>
    "tpu.trace_start"() <{level = 10 : i32, message = "bqk,bkd->bqd"}> : () -> ()
    %cst_24 = arith.constant dense<0.000000e+00> : vector<2x24x128xf32>
    %68 = tpu.matmul %66, %67, %cst_24 {dimension_numbers = #tpu.dot_dimension_numbers<[2], [1], [1], [2], [0, 0, 0, 1, 1, 2], [0], [0]>} : vector<2x24x24xbf16>, vector<2x24x128xbf16>, vector<2x24x128xf32> -> vector<2x24x128xf32>
    "tpu.trace_stop"() : () -> ()
    %c0_25 = arith.constant 0 : index
    %c0_26 = arith.constant 0 : index
    %c384 = arith.constant 384 : index
    %69 = vector.load %arg5[%c0_25, %c0_26, %c384] : memref<6x128x768xbf16, #tpu.memory_space<vmem>>, vector<1x128x128xbf16>
    %70 = vector.shape_cast %69 : vector<1x128x128xbf16> to vector<128x128xbf16>
    %71 = arith.truncf %68 : vector<2x24x128xf32> to vector<2x24x128xbf16>
    "tpu.trace_start"() <{level = 10 : i32, message = "bsd,de->bse"}> : () -> ()
    %cst_27 = arith.constant dense<0.000000e+00> : vector<2x24x128xf32>
    %72 = tpu.matmul %71, %70, %cst_27 {dimension_numbers = #tpu.dot_dimension_numbers<[2], [0], [0, 1], [1], [0, 0, 0, 1, 1, 1], [], []>} : vector<2x24x128xbf16>, vector<128x128xbf16>, vector<2x24x128xf32> -> vector<2x24x128xf32>
    "tpu.trace_stop"() : () -> ()
    %73 = vector.extract_strided_slice %27 {offsets = [3, 0], sizes = [1, 128], strides = [1, 1]} : vector<10x128xf32> to vector<1x128xf32>
    %74 = vector.shape_cast %73 : vector<1x128xf32> to vector<1x1x128xf32>
    %75 = vector.broadcast %74 : vector<1x1x128xf32> to vector<2x24x128xf32>
    %76 = arith.addf %72, %75 : vector<2x24x128xf32>
    %77 = arith.addf %22, %76 : vector<2x24x128xf32>
    %78 = vector.extract_strided_slice %27 {offsets = [6, 0], sizes = [1, 128], strides = [1, 1]} : vector<10x128xf32> to vector<1x128xf32>
    %79 = vector.extract_strided_slice %27 {offsets = [7, 0], sizes = [1, 128], strides = [1, 1]} : vector<10x128xf32> to vector<1x128xf32>
    %cst_28 = arith.constant dense<0.000000e+00> : vector<2x24xf32>
    %80 = vector.multi_reduction <add>, %77, %cst_28 [2] : vector<2x24x128xf32> to vector<2x24xf32>
    %81 = vector.shape_cast %80 : vector<2x24xf32> to vector<2x24x1xf32>
    %cst_29 = arith.constant 1.280000e+02 : f32
    %82 = vector.broadcast %cst_29 : f32 to vector<2x24x1xf32>
    %83 = arith.divf %81, %82 : vector<2x24x1xf32>
    %84 = vector.broadcast %83 : vector<2x24x1xf32> to vector<2x24x128xf32>
    %85 = arith.subf %77, %84 : vector<2x24x128xf32>
    %86 = arith.mulf %85, %85 : vector<2x24x128xf32>
    %cst_30 = arith.constant dense<0.000000e+00> : vector<2x24xf32>
    %87 = vector.multi_reduction <add>, %86, %cst_30 [2] : vector<2x24x128xf32> to vector<2x24xf32>
    %88 = vector.shape_cast %87 : vector<2x24xf32> to vector<2x24x1xf32>
    %cst_31 = arith.constant 1.280000e+02 : f32
    %89 = vector.broadcast %cst_31 : f32 to vector<2x24x1xf32>
    %90 = arith.divf %88, %89 : vector<2x24x1xf32>
    %91 = vector.broadcast %83 : vector<2x24x1xf32> to vector<2x24x128xf32>
    %92 = arith.subf %77, %91 : vector<2x24x128xf32>
    %cst_32 = arith.constant 9.99999974E-6 : f32
    %93 = vector.broadcast %cst_32 : f32 to vector<2x24x1xf32>
    %94 = arith.addf %90, %93 : vector<2x24x1xf32>
    %95 = math.rsqrt %94 : vector<2x24x1xf32>
    %96 = vector.broadcast %95 : vector<2x24x1xf32> to vector<2x24x128xf32>
    %97 = arith.mulf %92, %96 : vector<2x24x128xf32>
    %98 = vector.shape_cast %78 : vector<1x128xf32> to vector<1x1x128xf32>
    %99 = vector.broadcast %98 : vector<1x1x128xf32> to vector<2x24x128xf32>
    %100 = arith.mulf %97, %99 : vector<2x24x128xf32>
    %101 = vector.shape_cast %79 : vector<1x128xf32> to vector<1x1x128xf32>
    %102 = vector.broadcast %101 : vector<1x1x128xf32> to vector<2x24x128xf32>
    %103 = arith.addf %100, %102 : vector<2x24x128xf32>
    %c0_33 = arith.constant 0 : index
    %c0_34 = arith.constant 0 : index
    %c512 = arith.constant 512 : index
    %104 = vector.load %arg5[%c0_33, %c0_34, %c512] : memref<6x128x768xbf16, #tpu.memory_space<vmem>>, vector<1x128x128xbf16>
    %105 = vector.shape_cast %104 : vector<1x128x128xbf16> to vector<128x128xbf16>
    %106 = arith.truncf %103 : vector<2x24x128xf32> to vector<2x24x128xbf16>
    "tpu.trace_start"() <{level = 10 : i32, message = "bsd,de->bse"}> : () -> ()
    %cst_35 = arith.constant dense<0.000000e+00> : vector<2x24x128xf32>
    %107 = tpu.matmul %106, %105, %cst_35 {dimension_numbers = #tpu.dot_dimension_numbers<[2], [0], [0, 1], [1], [0, 0, 0, 1, 1, 1], [], []>} : vector<2x24x128xbf16>, vector<128x128xbf16>, vector<2x24x128xf32> -> vector<2x24x128xf32>
    "tpu.trace_stop"() : () -> ()
    %108 = vector.extract_strided_slice %27 {offsets = [4, 0], sizes = [1, 128], strides = [1, 1]} : vector<10x128xf32> to vector<1x128xf32>
    %109 = vector.shape_cast %108 : vector<1x128xf32> to vector<1x1x128xf32>
    %110 = vector.broadcast %109 : vector<1x1x128xf32> to vector<2x24x128xf32>
    %111 = arith.addf %107, %110 : vector<2x24x128xf32>
    %cst_36 = arith.constant 0.000000e+00 : f32
    %112 = vector.broadcast %cst_36 : f32 to vector<2x24x128xf32>
    %113 = arith.maximumf %111, %112 : vector<2x24x128xf32>
    %c0_37 = arith.constant 0 : index
    %c0_38 = arith.constant 0 : index
    %c640 = arith.constant 640 : index
    %114 = vector.load %arg5[%c0_37, %c0_38, %c640] : memref<6x128x768xbf16, #tpu.memory_space<vmem>>, vector<1x128x128xbf16>
    %115 = vector.shape_cast %114 : vector<1x128x128xbf16> to vector<128x128xbf16>
    %116 = arith.truncf %113 : vector<2x24x128xf32> to vector<2x24x128xbf16>
    "tpu.trace_start"() <{level = 10 : i32, message = "bsd,de->bse"}> : () -> ()
    %cst_39 = arith.constant dense<0.000000e+00> : vector<2x24x128xf32>
    %117 = tpu.matmul %116, %115, %cst_39 {dimension_numbers = #tpu.dot_dimension_numbers<[2], [0], [0, 1], [1], [0, 0, 0, 1, 1, 1], [], []>} : vector<2x24x128xbf16>, vector<128x128xbf16>, vector<2x24x128xf32> -> vector<2x24x128xf32>
    "tpu.trace_stop"() : () -> ()
    %118 = vector.extract_strided_slice %27 {offsets = [5, 0], sizes = [1, 128], strides = [1, 1]} : vector<10x128xf32> to vector<1x128xf32>
    %119 = vector.shape_cast %118 : vector<1x128xf32> to vector<1x1x128xf32>
    %120 = vector.broadcast %119 : vector<1x1x128xf32> to vector<2x24x128xf32>
    %121 = arith.addf %117, %120 : vector<2x24x128xf32>
    %122 = arith.addf %103, %121 : vector<2x24x128xf32>
    %123 = vector.extract_strided_slice %27 {offsets = [8, 0], sizes = [1, 128], strides = [1, 1]} : vector<10x128xf32> to vector<1x128xf32>
    %124 = vector.extract_strided_slice %27 {offsets = [9, 0], sizes = [1, 128], strides = [1, 1]} : vector<10x128xf32> to vector<1x128xf32>
    %cst_40 = arith.constant dense<0.000000e+00> : vector<2x24xf32>
    %125 = vector.multi_reduction <add>, %122, %cst_40 [2] : vector<2x24x128xf32> to vector<2x24xf32>
    %126 = vector.shape_cast %125 : vector<2x24xf32> to vector<2x24x1xf32>
    %cst_41 = arith.constant 1.280000e+02 : f32
    %127 = vector.broadcast %cst_41 : f32 to vector<2x24x1xf32>
    %128 = arith.divf %126, %127 : vector<2x24x1xf32>
    %129 = vector.broadcast %128 : vector<2x24x1xf32> to vector<2x24x128xf32>
    %130 = arith.subf %122, %129 : vector<2x24x128xf32>
    %131 = arith.mulf %130, %130 : vector<2x24x128xf32>
    %cst_42 = arith.constant dense<0.000000e+00> : vector<2x24xf32>
    %132 = vector.multi_reduction <add>, %131, %cst_42 [2] : vector<2x24x128xf32> to vector<2x24xf32>
    %133 = vector.shape_cast %132 : vector<2x24xf32> to vector<2x24x1xf32>
    %cst_43 = arith.constant 1.280000e+02 : f32
    %134 = vector.broadcast %cst_43 : f32 to vector<2x24x1xf32>
    %135 = arith.divf %133, %134 : vector<2x24x1xf32>
    %136 = vector.broadcast %128 : vector<2x24x1xf32> to vector<2x24x128xf32>
    %137 = arith.subf %122, %136 : vector<2x24x128xf32>
    %cst_44 = arith.constant 9.99999974E-6 : f32
    %138 = vector.broadcast %cst_44 : f32 to vector<2x24x1xf32>
    %139 = arith.addf %135, %138 : vector<2x24x1xf32>
    %140 = math.rsqrt %139 : vector<2x24x1xf32>
    %141 = vector.broadcast %140 : vector<2x24x1xf32> to vector<2x24x128xf32>
    %142 = arith.mulf %137, %141 : vector<2x24x128xf32>
    %143 = vector.shape_cast %123 : vector<1x128xf32> to vector<1x1x128xf32>
    %144 = vector.broadcast %143 : vector<1x1x128xf32> to vector<2x24x128xf32>
    %145 = arith.mulf %142, %144 : vector<2x24x128xf32>
    %146 = vector.shape_cast %124 : vector<1x128xf32> to vector<1x1x128xf32>
    %147 = vector.broadcast %146 : vector<1x1x128xf32> to vector<2x24x128xf32>
    %148 = arith.addf %145, %147 : vector<2x24x128xf32>
    %c1 = arith.constant 1 : index
    %c0_45 = arith.constant 0 : index
    %c0_46 = arith.constant 0 : index
    %149 = vector.load %arg6[%c1, %c0_45, %c0_46] : memref<6x10x128xf32, #tpu.memory_space<vmem>>, vector<1x10x128xf32>
    %150 = vector.shape_cast %149 : vector<1x10x128xf32> to vector<10x128xf32>
    %c1_47 = arith.constant 1 : index
    %c0_48 = arith.constant 0 : index
    %c0_49 = arith.constant 0 : index
    %151 = vector.load %arg5[%c1_47, %c0_48, %c0_49] : memref<6x128x768xbf16, #tpu.memory_space<vmem>>, vector<1x128x384xbf16>
    %152 = vector.shape_cast %151 : vector<1x128x384xbf16> to vector<128x384xbf16>
    %153 = arith.truncf %148 : vector<2x24x128xf32> to vector<2x24x128xbf16>
    "tpu.trace_start"() <{level = 10 : i32, message = "bsd,de->bse"}> : () -> ()
    %cst_50 = arith.constant dense<0.000000e+00> : vector<2x24x384xf32>
    %154 = tpu.matmul %153, %152, %cst_50 {dimension_numbers = #tpu.dot_dimension_numbers<[2], [0], [0, 1], [1], [0, 0, 0, 1, 1, 1], [], []>} : vector<2x24x128xbf16>, vector<128x384xbf16>, vector<2x24x384xf32> -> vector<2x24x384xf32>
    "tpu.trace_stop"() : () -> ()
    %155 = vector.extract_strided_slice %154 {offsets = [0, 0, 0], sizes = [2, 24, 128], strides = [1, 1, 1]} : vector<2x24x384xf32> to vector<2x24x128xf32>
    %156 = vector.extract_strided_slice %150 {offsets = [0, 0], sizes = [1, 128], strides = [1, 1]} : vector<10x128xf32> to vector<1x128xf32>
    %157 = vector.shape_cast %156 : vector<1x128xf32> to vector<1x1x128xf32>
    %158 = vector.broadcast %157 : vector<1x1x128xf32> to vector<2x24x128xf32>
    %159 = arith.addf %155, %158 : vector<2x24x128xf32>
    %160 = vector.extract_strided_slice %154 {offsets = [0, 0, 128], sizes = [2, 24, 128], strides = [1, 1, 1]} : vector<2x24x384xf32> to vector<2x24x128xf32>
    %161 = vector.extract_strided_slice %150 {offsets = [1, 0], sizes = [1, 128], strides = [1, 1]} : vector<10x128xf32> to vector<1x128xf32>
    %162 = vector.shape_cast %161 : vector<1x128xf32> to vector<1x1x128xf32>
    %163 = vector.broadcast %162 : vector<1x1x128xf32> to vector<2x24x128xf32>
    %164 = arith.addf %160, %163 : vector<2x24x128xf32>
    %165 = vector.extract_strided_slice %154 {offsets = [0, 0, 256], sizes = [2, 24, 128], strides = [1, 1, 1]} : vector<2x24x384xf32> to vector<2x24x128xf32>
    %166 = vector.extract_strided_slice %150 {offsets = [2, 0], sizes = [1, 128], strides = [1, 1]} : vector<10x128xf32> to vector<1x128xf32>
    %167 = vector.shape_cast %166 : vector<1x128xf32> to vector<1x1x128xf32>
    %168 = vector.broadcast %167 : vector<1x1x128xf32> to vector<2x24x128xf32>
    %169 = arith.addf %165, %168 : vector<2x24x128xf32>
    %170 = arith.truncf %159 : vector<2x24x128xf32> to vector<2x24x128xbf16>
    %171 = arith.truncf %164 : vector<2x24x128xf32> to vector<2x24x128xbf16>
    "tpu.trace_start"() <{level = 10 : i32, message = "bqd,bkd->bqk"}> : () -> ()
    %cst_51 = arith.constant dense<0.000000e+00> : vector<2x24x24xf32>
    %172 = tpu.matmul %170, %171, %cst_51 {dimension_numbers = #tpu.dot_dimension_numbers<[2], [2], [1], [1], [0, 0, 0, 1, 1, 1], [0], [0]>} : vector<2x24x128xbf16>, vector<2x24x128xbf16>, vector<2x24x24xf32> -> vector<2x24x24xf32>
    "tpu.trace_stop"() : () -> ()
    %cst_52 = arith.constant 0.0883883461 : f32
    %173 = vector.broadcast %cst_52 : f32 to vector<2x24x24xf32>
    %174 = arith.mulf %172, %173 : vector<2x24x24xf32>
    %cst_53 = arith.constant -1.000000e+30 : f32
    %175 = vector.shape_cast %25 : vector<1x1x24xi1> to vector<1x1x24xi1>
    %176 = vector.broadcast %175 : vector<1x1x24xi1> to vector<2x24x24xi1>
    %177 = vector.broadcast %cst_53 : f32 to vector<2x24x24xf32>
    %178 = arith.select %176, %174, %177 : vector<2x24x24xi1>, vector<2x24x24xf32>
    %cst_54 = arith.constant dense<0xFF800000> : vector<2x24xf32>
    %179 = vector.multi_reduction <maximumf>, %178, %cst_54 [2] : vector<2x24x24xf32> to vector<2x24xf32>
    %180 = vector.shape_cast %179 : vector<2x24xf32> to vector<2x24x1xf32>
    %181 = vector.broadcast %180 : vector<2x24x1xf32> to vector<2x24x24xf32>
    %182 = arith.subf %178, %181 : vector<2x24x24xf32>
    %183 = math.exp %182 : vector<2x24x24xf32>
    %cst_55 = arith.constant dense<0.000000e+00> : vector<2x24xf32>
    %184 = vector.multi_reduction <add>, %183, %cst_55 [2] : vector<2x24x24xf32> to vector<2x24xf32>
    %185 = vector.shape_cast %184 : vector<2x24xf32> to vector<2x24x1xf32>
    %186 = tpu.reciprocal %185 {approx = true} : vector<2x24x1xf32> -> vector<2x24x1xf32>
    %187 = vector.broadcast %186 : vector<2x24x1xf32> to vector<2x24x24xf32>
    %188 = arith.mulf %183, %187 : vector<2x24x24xf32>
    %189 = arith.truncf %188 : vector<2x24x24xf32> to vector<2x24x24xbf16>
    %190 = arith.truncf %169 : vector<2x24x128xf32> to vector<2x24x128xbf16>
    "tpu.trace_start"() <{level = 10 : i32, message = "bqk,bkd->bqd"}> : () -> ()
    %cst_56 = arith.constant dense<0.000000e+00> : vector<2x24x128xf32>
    %191 = tpu.matmul %189, %190, %cst_56 {dimension_numbers = #tpu.dot_dimension_numbers<[2], [1], [1], [2], [0, 0, 0, 1, 1, 2], [0], [0]>} : vector<2x24x24xbf16>, vector<2x24x128xbf16>, vector<2x24x128xf32> -> vector<2x24x128xf32>
    "tpu.trace_stop"() : () -> ()
    %c1_57 = arith.constant 1 : index
    %c0_58 = arith.constant 0 : index
    %c384_59 = arith.constant 384 : index
    %192 = vector.load %arg5[%c1_57, %c0_58, %c384_59] : memref<6x128x768xbf16, #tpu.memory_space<vmem>>, vector<1x128x128xbf16>
    %193 = vector.shape_cast %192 : vector<1x128x128xbf16> to vector<128x128xbf16>
    %194 = arith.truncf %191 : vector<2x24x128xf32> to vector<2x24x128xbf16>
    "tpu.trace_start"() <{level = 10 : i32, message = "bsd,de->bse"}> : () -> ()
    %cst_60 = arith.constant dense<0.000000e+00> : vector<2x24x128xf32>
    %195 = tpu.matmul %194, %193, %cst_60 {dimension_numbers = #tpu.dot_dimension_numbers<[2], [0], [0, 1], [1], [0, 0, 0, 1, 1, 1], [], []>} : vector<2x24x128xbf16>, vector<128x128xbf16>, vector<2x24x128xf32> -> vector<2x24x128xf32>
    "tpu.trace_stop"() : () -> ()
    %196 = vector.extract_strided_slice %150 {offsets = [3, 0], sizes = [1, 128], strides = [1, 1]} : vector<10x128xf32> to vector<1x128xf32>
    %197 = vector.shape_cast %196 : vector<1x128xf32> to vector<1x1x128xf32>
    %198 = vector.broadcast %197 : vector<1x1x128xf32> to vector<2x24x128xf32>
    %199 = arith.addf %195, %198 : vector<2x24x128xf32>
    %200 = arith.addf %148, %199 : vector<2x24x128xf32>
    %201 = vector.extract_strided_slice %150 {offsets = [6, 0], sizes = [1, 128], strides = [1, 1]} : vector<10x128xf32> to vector<1x128xf32>
    %202 = vector.extract_strided_slice %150 {offsets = [7, 0], sizes = [1, 128], strides = [1, 1]} : vector<10x128xf32> to vector<1x128xf32>
    %cst_61 = arith.constant dense<0.000000e+00> : vector<2x24xf32>
    %203 = vector.multi_reduction <add>, %200, %cst_61 [2] : vector<2x24x128xf32> to vector<2x24xf32>
    %204 = vector.shape_cast %203 : vector<2x24xf32> to vector<2x24x1xf32>
    %cst_62 = arith.constant 1.280000e+02 : f32
    %205 = vector.broadcast %cst_62 : f32 to vector<2x24x1xf32>
    %206 = arith.divf %204, %205 : vector<2x24x1xf32>
    %207 = vector.broadcast %206 : vector<2x24x1xf32> to vector<2x24x128xf32>
    %208 = arith.subf %200, %207 : vector<2x24x128xf32>
    %209 = arith.mulf %208, %208 : vector<2x24x128xf32>
    %cst_63 = arith.constant dense<0.000000e+00> : vector<2x24xf32>
    %210 = vector.multi_reduction <add>, %209, %cst_63 [2] : vector<2x24x128xf32> to vector<2x24xf32>
    %211 = vector.shape_cast %210 : vector<2x24xf32> to vector<2x24x1xf32>
    %cst_64 = arith.constant 1.280000e+02 : f32
    %212 = vector.broadcast %cst_64 : f32 to vector<2x24x1xf32>
    %213 = arith.divf %211, %212 : vector<2x24x1xf32>
    %214 = vector.broadcast %206 : vector<2x24x1xf32> to vector<2x24x128xf32>
    %215 = arith.subf %200, %214 : vector<2x24x128xf32>
    %cst_65 = arith.constant 9.99999974E-6 : f32
    %216 = vector.broadcast %cst_65 : f32 to vector<2x24x1xf32>
    %217 = arith.addf %213, %216 : vector<2x24x1xf32>
    %218 = math.rsqrt %217 : vector<2x24x1xf32>
    %219 = vector.broadcast %218 : vector<2x24x1xf32> to vector<2x24x128xf32>
    %220 = arith.mulf %215, %219 : vector<2x24x128xf32>
    %221 = vector.shape_cast %201 : vector<1x128xf32> to vector<1x1x128xf32>
    %222 = vector.broadcast %221 : vector<1x1x128xf32> to vector<2x24x128xf32>
    %223 = arith.mulf %220, %222 : vector<2x24x128xf32>
    %224 = vector.shape_cast %202 : vector<1x128xf32> to vector<1x1x128xf32>
    %225 = vector.broadcast %224 : vector<1x1x128xf32> to vector<2x24x128xf32>
    %226 = arith.addf %223, %225 : vector<2x24x128xf32>
    %c1_66 = arith.constant 1 : index
    %c0_67 = arith.constant 0 : index
    %c512_68 = arith.constant 512 : index
    %227 = vector.load %arg5[%c1_66, %c0_67, %c512_68] : memref<6x128x768xbf16, #tpu.memory_space<vmem>>, vector<1x128x128xbf16>
    %228 = vector.shape_cast %227 : vector<1x128x128xbf16> to vector<128x128xbf16>
    %229 = arith.truncf %226 : vector<2x24x128xf32> to vector<2x24x128xbf16>
    "tpu.trace_start"() <{level = 10 : i32, message = "bsd,de->bse"}> : () -> ()
    %cst_69 = arith.constant dense<0.000000e+00> : vector<2x24x128xf32>
    %230 = tpu.matmul %229, %228, %cst_69 {dimension_numbers = #tpu.dot_dimension_numbers<[2], [0], [0, 1], [1], [0, 0, 0, 1, 1, 1], [], []>} : vector<2x24x128xbf16>, vector<128x128xbf16>, vector<2x24x128xf32> -> vector<2x24x128xf32>
    "tpu.trace_stop"() : () -> ()
    %231 = vector.extract_strided_slice %150 {offsets = [4, 0], sizes = [1, 128], strides = [1, 1]} : vector<10x128xf32> to vector<1x128xf32>
    %232 = vector.shape_cast %231 : vector<1x128xf32> to vector<1x1x128xf32>
    %233 = vector.broadcast %232 : vector<1x1x128xf32> to vector<2x24x128xf32>
    %234 = arith.addf %230, %233 : vector<2x24x128xf32>
    %cst_70 = arith.constant 0.000000e+00 : f32
    %235 = vector.broadcast %cst_70 : f32 to vector<2x24x128xf32>
    %236 = arith.maximumf %234, %235 : vector<2x24x128xf32>
    %c1_71 = arith.constant 1 : index
    %c0_72 = arith.constant 0 : index
    %c640_73 = arith.constant 640 : index
    %237 = vector.load %arg5[%c1_71, %c0_72, %c640_73] : memref<6x128x768xbf16, #tpu.memory_space<vmem>>, vector<1x128x128xbf16>
    %238 = vector.shape_cast %237 : vector<1x128x128xbf16> to vector<128x128xbf16>
    %239 = arith.truncf %236 : vector<2x24x128xf32> to vector<2x24x128xbf16>
    "tpu.trace_start"() <{level = 10 : i32, message = "bsd,de->bse"}> : () -> ()
    %cst_74 = arith.constant dense<0.000000e+00> : vector<2x24x128xf32>
    %240 = tpu.matmul %239, %238, %cst_74 {dimension_numbers = #tpu.dot_dimension_numbers<[2], [0], [0, 1], [1], [0, 0, 0, 1, 1, 1], [], []>} : vector<2x24x128xbf16>, vector<128x128xbf16>, vector<2x24x128xf32> -> vector<2x24x128xf32>
    "tpu.trace_stop"() : () -> ()
    %241 = vector.extract_strided_slice %150 {offsets = [5, 0], sizes = [1, 128], strides = [1, 1]} : vector<10x128xf32> to vector<1x128xf32>
    %242 = vector.shape_cast %241 : vector<1x128xf32> to vector<1x1x128xf32>
    %243 = vector.broadcast %242 : vector<1x1x128xf32> to vector<2x24x128xf32>
    %244 = arith.addf %240, %243 : vector<2x24x128xf32>
    %245 = arith.addf %226, %244 : vector<2x24x128xf32>
    %246 = vector.extract_strided_slice %150 {offsets = [8, 0], sizes = [1, 128], strides = [1, 1]} : vector<10x128xf32> to vector<1x128xf32>
    %247 = vector.extract_strided_slice %150 {offsets = [9, 0], sizes = [1, 128], strides = [1, 1]} : vector<10x128xf32> to vector<1x128xf32>
    %cst_75 = arith.constant dense<0.000000e+00> : vector<2x24xf32>
    %248 = vector.multi_reduction <add>, %245, %cst_75 [2] : vector<2x24x128xf32> to vector<2x24xf32>
    %249 = vector.shape_cast %248 : vector<2x24xf32> to vector<2x24x1xf32>
    %cst_76 = arith.constant 1.280000e+02 : f32
    %250 = vector.broadcast %cst_76 : f32 to vector<2x24x1xf32>
    %251 = arith.divf %249, %250 : vector<2x24x1xf32>
    %252 = vector.broadcast %251 : vector<2x24x1xf32> to vector<2x24x128xf32>
    %253 = arith.subf %245, %252 : vector<2x24x128xf32>
    %254 = arith.mulf %253, %253 : vector<2x24x128xf32>
    %cst_77 = arith.constant dense<0.000000e+00> : vector<2x24xf32>
    %255 = vector.multi_reduction <add>, %254, %cst_77 [2] : vector<2x24x128xf32> to vector<2x24xf32>
    %256 = vector.shape_cast %255 : vector<2x24xf32> to vector<2x24x1xf32>
    %cst_78 = arith.constant 1.280000e+02 : f32
    %257 = vector.broadcast %cst_78 : f32 to vector<2x24x1xf32>
    %258 = arith.divf %256, %257 : vector<2x24x1xf32>
    %259 = vector.broadcast %251 : vector<2x24x1xf32> to vector<2x24x128xf32>
    %260 = arith.subf %245, %259 : vector<2x24x128xf32>
    %cst_79 = arith.constant 9.99999974E-6 : f32
    %261 = vector.broadcast %cst_79 : f32 to vector<2x24x1xf32>
    %262 = arith.addf %258, %261 : vector<2x24x1xf32>
    %263 = math.rsqrt %262 : vector<2x24x1xf32>
    %264 = vector.broadcast %263 : vector<2x24x1xf32> to vector<2x24x128xf32>
    %265 = arith.mulf %260, %264 : vector<2x24x128xf32>
    %266 = vector.shape_cast %246 : vector<1x128xf32> to vector<1x1x128xf32>
    %267 = vector.broadcast %266 : vector<1x1x128xf32> to vector<2x24x128xf32>
    %268 = arith.mulf %265, %267 : vector<2x24x128xf32>
    %269 = vector.shape_cast %247 : vector<1x128xf32> to vector<1x1x128xf32>
    %270 = vector.broadcast %269 : vector<1x1x128xf32> to vector<2x24x128xf32>
    %271 = arith.addf %268, %270 : vector<2x24x128xf32>
    %c2 = arith.constant 2 : index
    %c0_80 = arith.constant 0 : index
    %c0_81 = arith.constant 0 : index
    %272 = vector.load %arg6[%c2, %c0_80, %c0_81] : memref<6x10x128xf32, #tpu.memory_space<vmem>>, vector<1x10x128xf32>
    %273 = vector.shape_cast %272 : vector<1x10x128xf32> to vector<10x128xf32>
    %c2_82 = arith.constant 2 : index
    %c0_83 = arith.constant 0 : index
    %c0_84 = arith.constant 0 : index
    %274 = vector.load %arg5[%c2_82, %c0_83, %c0_84] : memref<6x128x768xbf16, #tpu.memory_space<vmem>>, vector<1x128x384xbf16>
    %275 = vector.shape_cast %274 : vector<1x128x384xbf16> to vector<128x384xbf16>
    %276 = arith.truncf %271 : vector<2x24x128xf32> to vector<2x24x128xbf16>
    "tpu.trace_start"() <{level = 10 : i32, message = "bsd,de->bse"}> : () -> ()
    %cst_85 = arith.constant dense<0.000000e+00> : vector<2x24x384xf32>
    %277 = tpu.matmul %276, %275, %cst_85 {dimension_numbers = #tpu.dot_dimension_numbers<[2], [0], [0, 1], [1], [0, 0, 0, 1, 1, 1], [], []>} : vector<2x24x128xbf16>, vector<128x384xbf16>, vector<2x24x384xf32> -> vector<2x24x384xf32>
    "tpu.trace_stop"() : () -> ()
    %278 = vector.extract_strided_slice %277 {offsets = [0, 0, 0], sizes = [2, 24, 128], strides = [1, 1, 1]} : vector<2x24x384xf32> to vector<2x24x128xf32>
    %279 = vector.extract_strided_slice %273 {offsets = [0, 0], sizes = [1, 128], strides = [1, 1]} : vector<10x128xf32> to vector<1x128xf32>
    %280 = vector.shape_cast %279 : vector<1x128xf32> to vector<1x1x128xf32>
    %281 = vector.broadcast %280 : vector<1x1x128xf32> to vector<2x24x128xf32>
    %282 = arith.addf %278, %281 : vector<2x24x128xf32>
    %283 = vector.extract_strided_slice %277 {offsets = [0, 0, 128], sizes = [2, 24, 128], strides = [1, 1, 1]} : vector<2x24x384xf32> to vector<2x24x128xf32>
    %284 = vector.extract_strided_slice %273 {offsets = [1, 0], sizes = [1, 128], strides = [1, 1]} : vector<10x128xf32> to vector<1x128xf32>
    %285 = vector.shape_cast %284 : vector<1x128xf32> to vector<1x1x128xf32>
    %286 = vector.broadcast %285 : vector<1x1x128xf32> to vector<2x24x128xf32>
    %287 = arith.addf %283, %286 : vector<2x24x128xf32>
    %288 = vector.extract_strided_slice %277 {offsets = [0, 0, 256], sizes = [2, 24, 128], strides = [1, 1, 1]} : vector<2x24x384xf32> to vector<2x24x128xf32>
    %289 = vector.extract_strided_slice %273 {offsets = [2, 0], sizes = [1, 128], strides = [1, 1]} : vector<10x128xf32> to vector<1x128xf32>
    %290 = vector.shape_cast %289 : vector<1x128xf32> to vector<1x1x128xf32>
    %291 = vector.broadcast %290 : vector<1x1x128xf32> to vector<2x24x128xf32>
    %292 = arith.addf %288, %291 : vector<2x24x128xf32>
    %293 = arith.truncf %282 : vector<2x24x128xf32> to vector<2x24x128xbf16>
    %294 = arith.truncf %287 : vector<2x24x128xf32> to vector<2x24x128xbf16>
    "tpu.trace_start"() <{level = 10 : i32, message = "bqd,bkd->bqk"}> : () -> ()
    %cst_86 = arith.constant dense<0.000000e+00> : vector<2x24x24xf32>
    %295 = tpu.matmul %293, %294, %cst_86 {dimension_numbers = #tpu.dot_dimension_numbers<[2], [2], [1], [1], [0, 0, 0, 1, 1, 1], [0], [0]>} : vector<2x24x128xbf16>, vector<2x24x128xbf16>, vector<2x24x24xf32> -> vector<2x24x24xf32>
    "tpu.trace_stop"() : () -> ()
    %cst_87 = arith.constant 0.0883883461 : f32
    %296 = vector.broadcast %cst_87 : f32 to vector<2x24x24xf32>
    %297 = arith.mulf %295, %296 : vector<2x24x24xf32>
    %cst_88 = arith.constant -1.000000e+30 : f32
    %298 = vector.shape_cast %25 : vector<1x1x24xi1> to vector<1x1x24xi1>
    %299 = vector.broadcast %298 : vector<1x1x24xi1> to vector<2x24x24xi1>
    %300 = vector.broadcast %cst_88 : f32 to vector<2x24x24xf32>
    %301 = arith.select %299, %297, %300 : vector<2x24x24xi1>, vector<2x24x24xf32>
    %cst_89 = arith.constant dense<0xFF800000> : vector<2x24xf32>
    %302 = vector.multi_reduction <maximumf>, %301, %cst_89 [2] : vector<2x24x24xf32> to vector<2x24xf32>
    %303 = vector.shape_cast %302 : vector<2x24xf32> to vector<2x24x1xf32>
    %304 = vector.broadcast %303 : vector<2x24x1xf32> to vector<2x24x24xf32>
    %305 = arith.subf %301, %304 : vector<2x24x24xf32>
    %306 = math.exp %305 : vector<2x24x24xf32>
    %cst_90 = arith.constant dense<0.000000e+00> : vector<2x24xf32>
    %307 = vector.multi_reduction <add>, %306, %cst_90 [2] : vector<2x24x24xf32> to vector<2x24xf32>
    %308 = vector.shape_cast %307 : vector<2x24xf32> to vector<2x24x1xf32>
    %309 = tpu.reciprocal %308 {approx = true} : vector<2x24x1xf32> -> vector<2x24x1xf32>
    %310 = vector.broadcast %309 : vector<2x24x1xf32> to vector<2x24x24xf32>
    %311 = arith.mulf %306, %310 : vector<2x24x24xf32>
    %312 = arith.truncf %311 : vector<2x24x24xf32> to vector<2x24x24xbf16>
    %313 = arith.truncf %292 : vector<2x24x128xf32> to vector<2x24x128xbf16>
    "tpu.trace_start"() <{level = 10 : i32, message = "bqk,bkd->bqd"}> : () -> ()
    %cst_91 = arith.constant dense<0.000000e+00> : vector<2x24x128xf32>
    %314 = tpu.matmul %312, %313, %cst_91 {dimension_numbers = #tpu.dot_dimension_numbers<[2], [1], [1], [2], [0, 0, 0, 1, 1, 2], [0], [0]>} : vector<2x24x24xbf16>, vector<2x24x128xbf16>, vector<2x24x128xf32> -> vector<2x24x128xf32>
    "tpu.trace_stop"() : () -> ()
    %c2_92 = arith.constant 2 : index
    %c0_93 = arith.constant 0 : index
    %c384_94 = arith.constant 384 : index
    %315 = vector.load %arg5[%c2_92, %c0_93, %c384_94] : memref<6x128x768xbf16, #tpu.memory_space<vmem>>, vector<1x128x128xbf16>
    %316 = vector.shape_cast %315 : vector<1x128x128xbf16> to vector<128x128xbf16>
    %317 = arith.truncf %314 : vector<2x24x128xf32> to vector<2x24x128xbf16>
    "tpu.trace_start"() <{level = 10 : i32, message = "bsd,de->bse"}> : () -> ()
    %cst_95 = arith.constant dense<0.000000e+00> : vector<2x24x128xf32>
    %318 = tpu.matmul %317, %316, %cst_95 {dimension_numbers = #tpu.dot_dimension_numbers<[2], [0], [0, 1], [1], [0, 0, 0, 1, 1, 1], [], []>} : vector<2x24x128xbf16>, vector<128x128xbf16>, vector<2x24x128xf32> -> vector<2x24x128xf32>
    "tpu.trace_stop"() : () -> ()
    %319 = vector.extract_strided_slice %273 {offsets = [3, 0], sizes = [1, 128], strides = [1, 1]} : vector<10x128xf32> to vector<1x128xf32>
    %320 = vector.shape_cast %319 : vector<1x128xf32> to vector<1x1x128xf32>
    %321 = vector.broadcast %320 : vector<1x1x128xf32> to vector<2x24x128xf32>
    %322 = arith.addf %318, %321 : vector<2x24x128xf32>
    %323 = arith.addf %271, %322 : vector<2x24x128xf32>
    %324 = vector.extract_strided_slice %273 {offsets = [6, 0], sizes = [1, 128], strides = [1, 1]} : vector<10x128xf32> to vector<1x128xf32>
    %325 = vector.extract_strided_slice %273 {offsets = [7, 0], sizes = [1, 128], strides = [1, 1]} : vector<10x128xf32> to vector<1x128xf32>
    %cst_96 = arith.constant dense<0.000000e+00> : vector<2x24xf32>
    %326 = vector.multi_reduction <add>, %323, %cst_96 [2] : vector<2x24x128xf32> to vector<2x24xf32>
    %327 = vector.shape_cast %326 : vector<2x24xf32> to vector<2x24x1xf32>
    %cst_97 = arith.constant 1.280000e+02 : f32
    %328 = vector.broadcast %cst_97 : f32 to vector<2x24x1xf32>
    %329 = arith.divf %327, %328 : vector<2x24x1xf32>
    %330 = vector.broadcast %329 : vector<2x24x1xf32> to vector<2x24x128xf32>
    %331 = arith.subf %323, %330 : vector<2x24x128xf32>
    %332 = arith.mulf %331, %331 : vector<2x24x128xf32>
    %cst_98 = arith.constant dense<0.000000e+00> : vector<2x24xf32>
    %333 = vector.multi_reduction <add>, %332, %cst_98 [2] : vector<2x24x128xf32> to vector<2x24xf32>
    %334 = vector.shape_cast %333 : vector<2x24xf32> to vector<2x24x1xf32>
    %cst_99 = arith.constant 1.280000e+02 : f32
    %335 = vector.broadcast %cst_99 : f32 to vector<2x24x1xf32>
    %336 = arith.divf %334, %335 : vector<2x24x1xf32>
    %337 = vector.broadcast %329 : vector<2x24x1xf32> to vector<2x24x128xf32>
    %338 = arith.subf %323, %337 : vector<2x24x128xf32>
    %cst_100 = arith.constant 9.99999974E-6 : f32
    %339 = vector.broadcast %cst_100 : f32 to vector<2x24x1xf32>
    %340 = arith.addf %336, %339 : vector<2x24x1xf32>
    %341 = math.rsqrt %340 : vector<2x24x1xf32>
    %342 = vector.broadcast %341 : vector<2x24x1xf32> to vector<2x24x128xf32>
    %343 = arith.mulf %338, %342 : vector<2x24x128xf32>
    %344 = vector.shape_cast %324 : vector<1x128xf32> to vector<1x1x128xf32>
    %345 = vector.broadcast %344 : vector<1x1x128xf32> to vector<2x24x128xf32>
    %346 = arith.mulf %343, %345 : vector<2x24x128xf32>
    %347 = vector.shape_cast %325 : vector<1x128xf32> to vector<1x1x128xf32>
    %348 = vector.broadcast %347 : vector<1x1x128xf32> to vector<2x24x128xf32>
    %349 = arith.addf %346, %348 : vector<2x24x128xf32>
    %c2_101 = arith.constant 2 : index
    %c0_102 = arith.constant 0 : index
    %c512_103 = arith.constant 512 : index
    %350 = vector.load %arg5[%c2_101, %c0_102, %c512_103] : memref<6x128x768xbf16, #tpu.memory_space<vmem>>, vector<1x128x128xbf16>
    %351 = vector.shape_cast %350 : vector<1x128x128xbf16> to vector<128x128xbf16>
    %352 = arith.truncf %349 : vector<2x24x128xf32> to vector<2x24x128xbf16>
    "tpu.trace_start"() <{level = 10 : i32, message = "bsd,de->bse"}> : () -> ()
    %cst_104 = arith.constant dense<0.000000e+00> : vector<2x24x128xf32>
    %353 = tpu.matmul %352, %351, %cst_104 {dimension_numbers = #tpu.dot_dimension_numbers<[2], [0], [0, 1], [1], [0, 0, 0, 1, 1, 1], [], []>} : vector<2x24x128xbf16>, vector<128x128xbf16>, vector<2x24x128xf32> -> vector<2x24x128xf32>
    "tpu.trace_stop"() : () -> ()
    %354 = vector.extract_strided_slice %273 {offsets = [4, 0], sizes = [1, 128], strides = [1, 1]} : vector<10x128xf32> to vector<1x128xf32>
    %355 = vector.shape_cast %354 : vector<1x128xf32> to vector<1x1x128xf32>
    %356 = vector.broadcast %355 : vector<1x1x128xf32> to vector<2x24x128xf32>
    %357 = arith.addf %353, %356 : vector<2x24x128xf32>
    %cst_105 = arith.constant 0.000000e+00 : f32
    %358 = vector.broadcast %cst_105 : f32 to vector<2x24x128xf32>
    %359 = arith.maximumf %357, %358 : vector<2x24x128xf32>
    %c2_106 = arith.constant 2 : index
    %c0_107 = arith.constant 0 : index
    %c640_108 = arith.constant 640 : index
    %360 = vector.load %arg5[%c2_106, %c0_107, %c640_108] : memref<6x128x768xbf16, #tpu.memory_space<vmem>>, vector<1x128x128xbf16>
    %361 = vector.shape_cast %360 : vector<1x128x128xbf16> to vector<128x128xbf16>
    %362 = arith.truncf %359 : vector<2x24x128xf32> to vector<2x24x128xbf16>
    "tpu.trace_start"() <{level = 10 : i32, message = "bsd,de->bse"}> : () -> ()
    %cst_109 = arith.constant dense<0.000000e+00> : vector<2x24x128xf32>
    %363 = tpu.matmul %362, %361, %cst_109 {dimension_numbers = #tpu.dot_dimension_numbers<[2], [0], [0, 1], [1], [0, 0, 0, 1, 1, 1], [], []>} : vector<2x24x128xbf16>, vector<128x128xbf16>, vector<2x24x128xf32> -> vector<2x24x128xf32>
    "tpu.trace_stop"() : () -> ()
    %364 = vector.extract_strided_slice %273 {offsets = [5, 0], sizes = [1, 128], strides = [1, 1]} : vector<10x128xf32> to vector<1x128xf32>
    %365 = vector.shape_cast %364 : vector<1x128xf32> to vector<1x1x128xf32>
    %366 = vector.broadcast %365 : vector<1x1x128xf32> to vector<2x24x128xf32>
    %367 = arith.addf %363, %366 : vector<2x24x128xf32>
    %368 = arith.addf %349, %367 : vector<2x24x128xf32>
    %369 = vector.extract_strided_slice %273 {offsets = [8, 0], sizes = [1, 128], strides = [1, 1]} : vector<10x128xf32> to vector<1x128xf32>
    %370 = vector.extract_strided_slice %273 {offsets = [9, 0], sizes = [1, 128], strides = [1, 1]} : vector<10x128xf32> to vector<1x128xf32>
    %cst_110 = arith.constant dense<0.000000e+00> : vector<2x24xf32>
    %371 = vector.multi_reduction <add>, %368, %cst_110 [2] : vector<2x24x128xf32> to vector<2x24xf32>
    %372 = vector.shape_cast %371 : vector<2x24xf32> to vector<2x24x1xf32>
    %cst_111 = arith.constant 1.280000e+02 : f32
    %373 = vector.broadcast %cst_111 : f32 to vector<2x24x1xf32>
    %374 = arith.divf %372, %373 : vector<2x24x1xf32>
    %375 = vector.broadcast %374 : vector<2x24x1xf32> to vector<2x24x128xf32>
    %376 = arith.subf %368, %375 : vector<2x24x128xf32>
    %377 = arith.mulf %376, %376 : vector<2x24x128xf32>
    %cst_112 = arith.constant dense<0.000000e+00> : vector<2x24xf32>
    %378 = vector.multi_reduction <add>, %377, %cst_112 [2] : vector<2x24x128xf32> to vector<2x24xf32>
    %379 = vector.shape_cast %378 : vector<2x24xf32> to vector<2x24x1xf32>
    %cst_113 = arith.constant 1.280000e+02 : f32
    %380 = vector.broadcast %cst_113 : f32 to vector<2x24x1xf32>
    %381 = arith.divf %379, %380 : vector<2x24x1xf32>
    %382 = vector.broadcast %374 : vector<2x24x1xf32> to vector<2x24x128xf32>
    %383 = arith.subf %368, %382 : vector<2x24x128xf32>
    %cst_114 = arith.constant 9.99999974E-6 : f32
    %384 = vector.broadcast %cst_114 : f32 to vector<2x24x1xf32>
    %385 = arith.addf %381, %384 : vector<2x24x1xf32>
    %386 = math.rsqrt %385 : vector<2x24x1xf32>
    %387 = vector.broadcast %386 : vector<2x24x1xf32> to vector<2x24x128xf32>
    %388 = arith.mulf %383, %387 : vector<2x24x128xf32>
    %389 = vector.shape_cast %369 : vector<1x128xf32> to vector<1x1x128xf32>
    %390 = vector.broadcast %389 : vector<1x1x128xf32> to vector<2x24x128xf32>
    %391 = arith.mulf %388, %390 : vector<2x24x128xf32>
    %392 = vector.shape_cast %370 : vector<1x128xf32> to vector<1x1x128xf32>
    %393 = vector.broadcast %392 : vector<1x1x128xf32> to vector<2x24x128xf32>
    %394 = arith.addf %391, %393 : vector<2x24x128xf32>
    %c3 = arith.constant 3 : index
    %c0_115 = arith.constant 0 : index
    %c0_116 = arith.constant 0 : index
    %395 = vector.load %arg6[%c3, %c0_115, %c0_116] : memref<6x10x128xf32, #tpu.memory_space<vmem>>, vector<1x10x128xf32>
    %396 = vector.shape_cast %395 : vector<1x10x128xf32> to vector<10x128xf32>
    %c3_117 = arith.constant 3 : index
    %c0_118 = arith.constant 0 : index
    %c0_119 = arith.constant 0 : index
    %397 = vector.load %arg5[%c3_117, %c0_118, %c0_119] : memref<6x128x768xbf16, #tpu.memory_space<vmem>>, vector<1x128x384xbf16>
    %398 = vector.shape_cast %397 : vector<1x128x384xbf16> to vector<128x384xbf16>
    %399 = arith.truncf %394 : vector<2x24x128xf32> to vector<2x24x128xbf16>
    "tpu.trace_start"() <{level = 10 : i32, message = "bsd,de->bse"}> : () -> ()
    %cst_120 = arith.constant dense<0.000000e+00> : vector<2x24x384xf32>
    %400 = tpu.matmul %399, %398, %cst_120 {dimension_numbers = #tpu.dot_dimension_numbers<[2], [0], [0, 1], [1], [0, 0, 0, 1, 1, 1], [], []>} : vector<2x24x128xbf16>, vector<128x384xbf16>, vector<2x24x384xf32> -> vector<2x24x384xf32>
    "tpu.trace_stop"() : () -> ()
    %401 = vector.extract_strided_slice %400 {offsets = [0, 0, 0], sizes = [2, 24, 128], strides = [1, 1, 1]} : vector<2x24x384xf32> to vector<2x24x128xf32>
    %402 = vector.extract_strided_slice %396 {offsets = [0, 0], sizes = [1, 128], strides = [1, 1]} : vector<10x128xf32> to vector<1x128xf32>
    %403 = vector.shape_cast %402 : vector<1x128xf32> to vector<1x1x128xf32>
    %404 = vector.broadcast %403 : vector<1x1x128xf32> to vector<2x24x128xf32>
    %405 = arith.addf %401, %404 : vector<2x24x128xf32>
    %406 = vector.extract_strided_slice %400 {offsets = [0, 0, 128], sizes = [2, 24, 128], strides = [1, 1, 1]} : vector<2x24x384xf32> to vector<2x24x128xf32>
    %407 = vector.extract_strided_slice %396 {offsets = [1, 0], sizes = [1, 128], strides = [1, 1]} : vector<10x128xf32> to vector<1x128xf32>
    %408 = vector.shape_cast %407 : vector<1x128xf32> to vector<1x1x128xf32>
    %409 = vector.broadcast %408 : vector<1x1x128xf32> to vector<2x24x128xf32>
    %410 = arith.addf %406, %409 : vector<2x24x128xf32>
    %411 = vector.extract_strided_slice %400 {offsets = [0, 0, 256], sizes = [2, 24, 128], strides = [1, 1, 1]} : vector<2x24x384xf32> to vector<2x24x128xf32>
    %412 = vector.extract_strided_slice %396 {offsets = [2, 0], sizes = [1, 128], strides = [1, 1]} : vector<10x128xf32> to vector<1x128xf32>
    %413 = vector.shape_cast %412 : vector<1x128xf32> to vector<1x1x128xf32>
    %414 = vector.broadcast %413 : vector<1x1x128xf32> to vector<2x24x128xf32>
    %415 = arith.addf %411, %414 : vector<2x24x128xf32>
    %416 = arith.truncf %405 : vector<2x24x128xf32> to vector<2x24x128xbf16>
    %417 = arith.truncf %410 : vector<2x24x128xf32> to vector<2x24x128xbf16>
    "tpu.trace_start"() <{level = 10 : i32, message = "bqd,bkd->bqk"}> : () -> ()
    %cst_121 = arith.constant dense<0.000000e+00> : vector<2x24x24xf32>
    %418 = tpu.matmul %416, %417, %cst_121 {dimension_numbers = #tpu.dot_dimension_numbers<[2], [2], [1], [1], [0, 0, 0, 1, 1, 1], [0], [0]>} : vector<2x24x128xbf16>, vector<2x24x128xbf16>, vector<2x24x24xf32> -> vector<2x24x24xf32>
    "tpu.trace_stop"() : () -> ()
    %cst_122 = arith.constant 0.0883883461 : f32
    %419 = vector.broadcast %cst_122 : f32 to vector<2x24x24xf32>
    %420 = arith.mulf %418, %419 : vector<2x24x24xf32>
    %cst_123 = arith.constant -1.000000e+30 : f32
    %421 = vector.shape_cast %25 : vector<1x1x24xi1> to vector<1x1x24xi1>
    %422 = vector.broadcast %421 : vector<1x1x24xi1> to vector<2x24x24xi1>
    %423 = vector.broadcast %cst_123 : f32 to vector<2x24x24xf32>
    %424 = arith.select %422, %420, %423 : vector<2x24x24xi1>, vector<2x24x24xf32>
    %cst_124 = arith.constant dense<0xFF800000> : vector<2x24xf32>
    %425 = vector.multi_reduction <maximumf>, %424, %cst_124 [2] : vector<2x24x24xf32> to vector<2x24xf32>
    %426 = vector.shape_cast %425 : vector<2x24xf32> to vector<2x24x1xf32>
    %427 = vector.broadcast %426 : vector<2x24x1xf32> to vector<2x24x24xf32>
    %428 = arith.subf %424, %427 : vector<2x24x24xf32>
    %429 = math.exp %428 : vector<2x24x24xf32>
    %cst_125 = arith.constant dense<0.000000e+00> : vector<2x24xf32>
    %430 = vector.multi_reduction <add>, %429, %cst_125 [2] : vector<2x24x24xf32> to vector<2x24xf32>
    %431 = vector.shape_cast %430 : vector<2x24xf32> to vector<2x24x1xf32>
    %432 = tpu.reciprocal %431 {approx = true} : vector<2x24x1xf32> -> vector<2x24x1xf32>
    %433 = vector.broadcast %432 : vector<2x24x1xf32> to vector<2x24x24xf32>
    %434 = arith.mulf %429, %433 : vector<2x24x24xf32>
    %435 = arith.truncf %434 : vector<2x24x24xf32> to vector<2x24x24xbf16>
    %436 = arith.truncf %415 : vector<2x24x128xf32> to vector<2x24x128xbf16>
    "tpu.trace_start"() <{level = 10 : i32, message = "bqk,bkd->bqd"}> : () -> ()
    %cst_126 = arith.constant dense<0.000000e+00> : vector<2x24x128xf32>
    %437 = tpu.matmul %435, %436, %cst_126 {dimension_numbers = #tpu.dot_dimension_numbers<[2], [1], [1], [2], [0, 0, 0, 1, 1, 2], [0], [0]>} : vector<2x24x24xbf16>, vector<2x24x128xbf16>, vector<2x24x128xf32> -> vector<2x24x128xf32>
    "tpu.trace_stop"() : () -> ()
    %c3_127 = arith.constant 3 : index
    %c0_128 = arith.constant 0 : index
    %c384_129 = arith.constant 384 : index
    %438 = vector.load %arg5[%c3_127, %c0_128, %c384_129] : memref<6x128x768xbf16, #tpu.memory_space<vmem>>, vector<1x128x128xbf16>
    %439 = vector.shape_cast %438 : vector<1x128x128xbf16> to vector<128x128xbf16>
    %440 = arith.truncf %437 : vector<2x24x128xf32> to vector<2x24x128xbf16>
    "tpu.trace_start"() <{level = 10 : i32, message = "bsd,de->bse"}> : () -> ()
    %cst_130 = arith.constant dense<0.000000e+00> : vector<2x24x128xf32>
    %441 = tpu.matmul %440, %439, %cst_130 {dimension_numbers = #tpu.dot_dimension_numbers<[2], [0], [0, 1], [1], [0, 0, 0, 1, 1, 1], [], []>} : vector<2x24x128xbf16>, vector<128x128xbf16>, vector<2x24x128xf32> -> vector<2x24x128xf32>
    "tpu.trace_stop"() : () -> ()
    %442 = vector.extract_strided_slice %396 {offsets = [3, 0], sizes = [1, 128], strides = [1, 1]} : vector<10x128xf32> to vector<1x128xf32>
    %443 = vector.shape_cast %442 : vector<1x128xf32> to vector<1x1x128xf32>
    %444 = vector.broadcast %443 : vector<1x1x128xf32> to vector<2x24x128xf32>
    %445 = arith.addf %441, %444 : vector<2x24x128xf32>
    %446 = arith.addf %394, %445 : vector<2x24x128xf32>
    %447 = vector.extract_strided_slice %396 {offsets = [6, 0], sizes = [1, 128], strides = [1, 1]} : vector<10x128xf32> to vector<1x128xf32>
    %448 = vector.extract_strided_slice %396 {offsets = [7, 0], sizes = [1, 128], strides = [1, 1]} : vector<10x128xf32> to vector<1x128xf32>
    %cst_131 = arith.constant dense<0.000000e+00> : vector<2x24xf32>
    %449 = vector.multi_reduction <add>, %446, %cst_131 [2] : vector<2x24x128xf32> to vector<2x24xf32>
    %450 = vector.shape_cast %449 : vector<2x24xf32> to vector<2x24x1xf32>
    %cst_132 = arith.constant 1.280000e+02 : f32
    %451 = vector.broadcast %cst_132 : f32 to vector<2x24x1xf32>
    %452 = arith.divf %450, %451 : vector<2x24x1xf32>
    %453 = vector.broadcast %452 : vector<2x24x1xf32> to vector<2x24x128xf32>
    %454 = arith.subf %446, %453 : vector<2x24x128xf32>
    %455 = arith.mulf %454, %454 : vector<2x24x128xf32>
    %cst_133 = arith.constant dense<0.000000e+00> : vector<2x24xf32>
    %456 = vector.multi_reduction <add>, %455, %cst_133 [2] : vector<2x24x128xf32> to vector<2x24xf32>
    %457 = vector.shape_cast %456 : vector<2x24xf32> to vector<2x24x1xf32>
    %cst_134 = arith.constant 1.280000e+02 : f32
    %458 = vector.broadcast %cst_134 : f32 to vector<2x24x1xf32>
    %459 = arith.divf %457, %458 : vector<2x24x1xf32>
    %460 = vector.broadcast %452 : vector<2x24x1xf32> to vector<2x24x128xf32>
    %461 = arith.subf %446, %460 : vector<2x24x128xf32>
    %cst_135 = arith.constant 9.99999974E-6 : f32
    %462 = vector.broadcast %cst_135 : f32 to vector<2x24x1xf32>
    %463 = arith.addf %459, %462 : vector<2x24x1xf32>
    %464 = math.rsqrt %463 : vector<2x24x1xf32>
    %465 = vector.broadcast %464 : vector<2x24x1xf32> to vector<2x24x128xf32>
    %466 = arith.mulf %461, %465 : vector<2x24x128xf32>
    %467 = vector.shape_cast %447 : vector<1x128xf32> to vector<1x1x128xf32>
    %468 = vector.broadcast %467 : vector<1x1x128xf32> to vector<2x24x128xf32>
    %469 = arith.mulf %466, %468 : vector<2x24x128xf32>
    %470 = vector.shape_cast %448 : vector<1x128xf32> to vector<1x1x128xf32>
    %471 = vector.broadcast %470 : vector<1x1x128xf32> to vector<2x24x128xf32>
    %472 = arith.addf %469, %471 : vector<2x24x128xf32>
    %c3_136 = arith.constant 3 : index
    %c0_137 = arith.constant 0 : index
    %c512_138 = arith.constant 512 : index
    %473 = vector.load %arg5[%c3_136, %c0_137, %c512_138] : memref<6x128x768xbf16, #tpu.memory_space<vmem>>, vector<1x128x128xbf16>
    %474 = vector.shape_cast %473 : vector<1x128x128xbf16> to vector<128x128xbf16>
    %475 = arith.truncf %472 : vector<2x24x128xf32> to vector<2x24x128xbf16>
    "tpu.trace_start"() <{level = 10 : i32, message = "bsd,de->bse"}> : () -> ()
    %cst_139 = arith.constant dense<0.000000e+00> : vector<2x24x128xf32>
    %476 = tpu.matmul %475, %474, %cst_139 {dimension_numbers = #tpu.dot_dimension_numbers<[2], [0], [0, 1], [1], [0, 0, 0, 1, 1, 1], [], []>} : vector<2x24x128xbf16>, vector<128x128xbf16>, vector<2x24x128xf32> -> vector<2x24x128xf32>
    "tpu.trace_stop"() : () -> ()
    %477 = vector.extract_strided_slice %396 {offsets = [4, 0], sizes = [1, 128], strides = [1, 1]} : vector<10x128xf32> to vector<1x128xf32>
    %478 = vector.shape_cast %477 : vector<1x128xf32> to vector<1x1x128xf32>
    %479 = vector.broadcast %478 : vector<1x1x128xf32> to vector<2x24x128xf32>
    %480 = arith.addf %476, %479 : vector<2x24x128xf32>
    %cst_140 = arith.constant 0.000000e+00 : f32
    %481 = vector.broadcast %cst_140 : f32 to vector<2x24x128xf32>
    %482 = arith.maximumf %480, %481 : vector<2x24x128xf32>
    %c3_141 = arith.constant 3 : index
    %c0_142 = arith.constant 0 : index
    %c640_143 = arith.constant 640 : index
    %483 = vector.load %arg5[%c3_141, %c0_142, %c640_143] : memref<6x128x768xbf16, #tpu.memory_space<vmem>>, vector<1x128x128xbf16>
    %484 = vector.shape_cast %483 : vector<1x128x128xbf16> to vector<128x128xbf16>
    %485 = arith.truncf %482 : vector<2x24x128xf32> to vector<2x24x128xbf16>
    "tpu.trace_start"() <{level = 10 : i32, message = "bsd,de->bse"}> : () -> ()
    %cst_144 = arith.constant dense<0.000000e+00> : vector<2x24x128xf32>
    %486 = tpu.matmul %485, %484, %cst_144 {dimension_numbers = #tpu.dot_dimension_numbers<[2], [0], [0, 1], [1], [0, 0, 0, 1, 1, 1], [], []>} : vector<2x24x128xbf16>, vector<128x128xbf16>, vector<2x24x128xf32> -> vector<2x24x128xf32>
    "tpu.trace_stop"() : () -> ()
    %487 = vector.extract_strided_slice %396 {offsets = [5, 0], sizes = [1, 128], strides = [1, 1]} : vector<10x128xf32> to vector<1x128xf32>
    %488 = vector.shape_cast %487 : vector<1x128xf32> to vector<1x1x128xf32>
    %489 = vector.broadcast %488 : vector<1x1x128xf32> to vector<2x24x128xf32>
    %490 = arith.addf %486, %489 : vector<2x24x128xf32>
    %491 = arith.addf %472, %490 : vector<2x24x128xf32>
    %492 = vector.extract_strided_slice %396 {offsets = [8, 0], sizes = [1, 128], strides = [1, 1]} : vector<10x128xf32> to vector<1x128xf32>
    %493 = vector.extract_strided_slice %396 {offsets = [9, 0], sizes = [1, 128], strides = [1, 1]} : vector<10x128xf32> to vector<1x128xf32>
    %cst_145 = arith.constant dense<0.000000e+00> : vector<2x24xf32>
    %494 = vector.multi_reduction <add>, %491, %cst_145 [2] : vector<2x24x128xf32> to vector<2x24xf32>
    %495 = vector.shape_cast %494 : vector<2x24xf32> to vector<2x24x1xf32>
    %cst_146 = arith.constant 1.280000e+02 : f32
    %496 = vector.broadcast %cst_146 : f32 to vector<2x24x1xf32>
    %497 = arith.divf %495, %496 : vector<2x24x1xf32>
    %498 = vector.broadcast %497 : vector<2x24x1xf32> to vector<2x24x128xf32>
    %499 = arith.subf %491, %498 : vector<2x24x128xf32>
    %500 = arith.mulf %499, %499 : vector<2x24x128xf32>
    %cst_147 = arith.constant dense<0.000000e+00> : vector<2x24xf32>
    %501 = vector.multi_reduction <add>, %500, %cst_147 [2] : vector<2x24x128xf32> to vector<2x24xf32>
    %502 = vector.shape_cast %501 : vector<2x24xf32> to vector<2x24x1xf32>
    %cst_148 = arith.constant 1.280000e+02 : f32
    %503 = vector.broadcast %cst_148 : f32 to vector<2x24x1xf32>
    %504 = arith.divf %502, %503 : vector<2x24x1xf32>
    %505 = vector.broadcast %497 : vector<2x24x1xf32> to vector<2x24x128xf32>
    %506 = arith.subf %491, %505 : vector<2x24x128xf32>
    %cst_149 = arith.constant 9.99999974E-6 : f32
    %507 = vector.broadcast %cst_149 : f32 to vector<2x24x1xf32>
    %508 = arith.addf %504, %507 : vector<2x24x1xf32>
    %509 = math.rsqrt %508 : vector<2x24x1xf32>
    %510 = vector.broadcast %509 : vector<2x24x1xf32> to vector<2x24x128xf32>
    %511 = arith.mulf %506, %510 : vector<2x24x128xf32>
    %512 = vector.shape_cast %492 : vector<1x128xf32> to vector<1x1x128xf32>
    %513 = vector.broadcast %512 : vector<1x1x128xf32> to vector<2x24x128xf32>
    %514 = arith.mulf %511, %513 : vector<2x24x128xf32>
    %515 = vector.shape_cast %493 : vector<1x128xf32> to vector<1x1x128xf32>
    %516 = vector.broadcast %515 : vector<1x1x128xf32> to vector<2x24x128xf32>
    %517 = arith.addf %514, %516 : vector<2x24x128xf32>
    %c4 = arith.constant 4 : index
    %c0_150 = arith.constant 0 : index
    %c0_151 = arith.constant 0 : index
    %518 = vector.load %arg6[%c4, %c0_150, %c0_151] : memref<6x10x128xf32, #tpu.memory_space<vmem>>, vector<1x10x128xf32>
    %519 = vector.shape_cast %518 : vector<1x10x128xf32> to vector<10x128xf32>
    %c4_152 = arith.constant 4 : index
    %c0_153 = arith.constant 0 : index
    %c0_154 = arith.constant 0 : index
    %520 = vector.load %arg5[%c4_152, %c0_153, %c0_154] : memref<6x128x768xbf16, #tpu.memory_space<vmem>>, vector<1x128x384xbf16>
    %521 = vector.shape_cast %520 : vector<1x128x384xbf16> to vector<128x384xbf16>
    %522 = arith.truncf %517 : vector<2x24x128xf32> to vector<2x24x128xbf16>
    "tpu.trace_start"() <{level = 10 : i32, message = "bsd,de->bse"}> : () -> ()
    %cst_155 = arith.constant dense<0.000000e+00> : vector<2x24x384xf32>
    %523 = tpu.matmul %522, %521, %cst_155 {dimension_numbers = #tpu.dot_dimension_numbers<[2], [0], [0, 1], [1], [0, 0, 0, 1, 1, 1], [], []>} : vector<2x24x128xbf16>, vector<128x384xbf16>, vector<2x24x384xf32> -> vector<2x24x384xf32>
    "tpu.trace_stop"() : () -> ()
    %524 = vector.extract_strided_slice %523 {offsets = [0, 0, 0], sizes = [2, 24, 128], strides = [1, 1, 1]} : vector<2x24x384xf32> to vector<2x24x128xf32>
    %525 = vector.extract_strided_slice %519 {offsets = [0, 0], sizes = [1, 128], strides = [1, 1]} : vector<10x128xf32> to vector<1x128xf32>
    %526 = vector.shape_cast %525 : vector<1x128xf32> to vector<1x1x128xf32>
    %527 = vector.broadcast %526 : vector<1x1x128xf32> to vector<2x24x128xf32>
    %528 = arith.addf %524, %527 : vector<2x24x128xf32>
    %529 = vector.extract_strided_slice %523 {offsets = [0, 0, 128], sizes = [2, 24, 128], strides = [1, 1, 1]} : vector<2x24x384xf32> to vector<2x24x128xf32>
    %530 = vector.extract_strided_slice %519 {offsets = [1, 0], sizes = [1, 128], strides = [1, 1]} : vector<10x128xf32> to vector<1x128xf32>
    %531 = vector.shape_cast %530 : vector<1x128xf32> to vector<1x1x128xf32>
    %532 = vector.broadcast %531 : vector<1x1x128xf32> to vector<2x24x128xf32>
    %533 = arith.addf %529, %532 : vector<2x24x128xf32>
    %534 = vector.extract_strided_slice %523 {offsets = [0, 0, 256], sizes = [2, 24, 128], strides = [1, 1, 1]} : vector<2x24x384xf32> to vector<2x24x128xf32>
    %535 = vector.extract_strided_slice %519 {offsets = [2, 0], sizes = [1, 128], strides = [1, 1]} : vector<10x128xf32> to vector<1x128xf32>
    %536 = vector.shape_cast %535 : vector<1x128xf32> to vector<1x1x128xf32>
    %537 = vector.broadcast %536 : vector<1x1x128xf32> to vector<2x24x128xf32>
    %538 = arith.addf %534, %537 : vector<2x24x128xf32>
    %539 = arith.truncf %528 : vector<2x24x128xf32> to vector<2x24x128xbf16>
    %540 = arith.truncf %533 : vector<2x24x128xf32> to vector<2x24x128xbf16>
    "tpu.trace_start"() <{level = 10 : i32, message = "bqd,bkd->bqk"}> : () -> ()
    %cst_156 = arith.constant dense<0.000000e+00> : vector<2x24x24xf32>
    %541 = tpu.matmul %539, %540, %cst_156 {dimension_numbers = #tpu.dot_dimension_numbers<[2], [2], [1], [1], [0, 0, 0, 1, 1, 1], [0], [0]>} : vector<2x24x128xbf16>, vector<2x24x128xbf16>, vector<2x24x24xf32> -> vector<2x24x24xf32>
    "tpu.trace_stop"() : () -> ()
    %cst_157 = arith.constant 0.0883883461 : f32
    %542 = vector.broadcast %cst_157 : f32 to vector<2x24x24xf32>
    %543 = arith.mulf %541, %542 : vector<2x24x24xf32>
    %cst_158 = arith.constant -1.000000e+30 : f32
    %544 = vector.shape_cast %25 : vector<1x1x24xi1> to vector<1x1x24xi1>
    %545 = vector.broadcast %544 : vector<1x1x24xi1> to vector<2x24x24xi1>
    %546 = vector.broadcast %cst_158 : f32 to vector<2x24x24xf32>
    %547 = arith.select %545, %543, %546 : vector<2x24x24xi1>, vector<2x24x24xf32>
    %cst_159 = arith.constant dense<0xFF800000> : vector<2x24xf32>
    %548 = vector.multi_reduction <maximumf>, %547, %cst_159 [2] : vector<2x24x24xf32> to vector<2x24xf32>
    %549 = vector.shape_cast %548 : vector<2x24xf32> to vector<2x24x1xf32>
    %550 = vector.broadcast %549 : vector<2x24x1xf32> to vector<2x24x24xf32>
    %551 = arith.subf %547, %550 : vector<2x24x24xf32>
    %552 = math.exp %551 : vector<2x24x24xf32>
    %cst_160 = arith.constant dense<0.000000e+00> : vector<2x24xf32>
    %553 = vector.multi_reduction <add>, %552, %cst_160 [2] : vector<2x24x24xf32> to vector<2x24xf32>
    %554 = vector.shape_cast %553 : vector<2x24xf32> to vector<2x24x1xf32>
    %555 = tpu.reciprocal %554 {approx = true} : vector<2x24x1xf32> -> vector<2x24x1xf32>
    %556 = vector.broadcast %555 : vector<2x24x1xf32> to vector<2x24x24xf32>
    %557 = arith.mulf %552, %556 : vector<2x24x24xf32>
    %558 = arith.truncf %557 : vector<2x24x24xf32> to vector<2x24x24xbf16>
    %559 = arith.truncf %538 : vector<2x24x128xf32> to vector<2x24x128xbf16>
    "tpu.trace_start"() <{level = 10 : i32, message = "bqk,bkd->bqd"}> : () -> ()
    %cst_161 = arith.constant dense<0.000000e+00> : vector<2x24x128xf32>
    %560 = tpu.matmul %558, %559, %cst_161 {dimension_numbers = #tpu.dot_dimension_numbers<[2], [1], [1], [2], [0, 0, 0, 1, 1, 2], [0], [0]>} : vector<2x24x24xbf16>, vector<2x24x128xbf16>, vector<2x24x128xf32> -> vector<2x24x128xf32>
    "tpu.trace_stop"() : () -> ()
    %c4_162 = arith.constant 4 : index
    %c0_163 = arith.constant 0 : index
    %c384_164 = arith.constant 384 : index
    %561 = vector.load %arg5[%c4_162, %c0_163, %c384_164] : memref<6x128x768xbf16, #tpu.memory_space<vmem>>, vector<1x128x128xbf16>
    %562 = vector.shape_cast %561 : vector<1x128x128xbf16> to vector<128x128xbf16>
    %563 = arith.truncf %560 : vector<2x24x128xf32> to vector<2x24x128xbf16>
    "tpu.trace_start"() <{level = 10 : i32, message = "bsd,de->bse"}> : () -> ()
    %cst_165 = arith.constant dense<0.000000e+00> : vector<2x24x128xf32>
    %564 = tpu.matmul %563, %562, %cst_165 {dimension_numbers = #tpu.dot_dimension_numbers<[2], [0], [0, 1], [1], [0, 0, 0, 1, 1, 1], [], []>} : vector<2x24x128xbf16>, vector<128x128xbf16>, vector<2x24x128xf32> -> vector<2x24x128xf32>
    "tpu.trace_stop"() : () -> ()
    %565 = vector.extract_strided_slice %519 {offsets = [3, 0], sizes = [1, 128], strides = [1, 1]} : vector<10x128xf32> to vector<1x128xf32>
    %566 = vector.shape_cast %565 : vector<1x128xf32> to vector<1x1x128xf32>
    %567 = vector.broadcast %566 : vector<1x1x128xf32> to vector<2x24x128xf32>
    %568 = arith.addf %564, %567 : vector<2x24x128xf32>
    %569 = arith.addf %517, %568 : vector<2x24x128xf32>
    %570 = vector.extract_strided_slice %519 {offsets = [6, 0], sizes = [1, 128], strides = [1, 1]} : vector<10x128xf32> to vector<1x128xf32>
    %571 = vector.extract_strided_slice %519 {offsets = [7, 0], sizes = [1, 128], strides = [1, 1]} : vector<10x128xf32> to vector<1x128xf32>
    %cst_166 = arith.constant dense<0.000000e+00> : vector<2x24xf32>
    %572 = vector.multi_reduction <add>, %569, %cst_166 [2] : vector<2x24x128xf32> to vector<2x24xf32>
    %573 = vector.shape_cast %572 : vector<2x24xf32> to vector<2x24x1xf32>
    %cst_167 = arith.constant 1.280000e+02 : f32
    %574 = vector.broadcast %cst_167 : f32 to vector<2x24x1xf32>
    %575 = arith.divf %573, %574 : vector<2x24x1xf32>
    %576 = vector.broadcast %575 : vector<2x24x1xf32> to vector<2x24x128xf32>
    %577 = arith.subf %569, %576 : vector<2x24x128xf32>
    %578 = arith.mulf %577, %577 : vector<2x24x128xf32>
    %cst_168 = arith.constant dense<0.000000e+00> : vector<2x24xf32>
    %579 = vector.multi_reduction <add>, %578, %cst_168 [2] : vector<2x24x128xf32> to vector<2x24xf32>
    %580 = vector.shape_cast %579 : vector<2x24xf32> to vector<2x24x1xf32>
    %cst_169 = arith.constant 1.280000e+02 : f32
    %581 = vector.broadcast %cst_169 : f32 to vector<2x24x1xf32>
    %582 = arith.divf %580, %581 : vector<2x24x1xf32>
    %583 = vector.broadcast %575 : vector<2x24x1xf32> to vector<2x24x128xf32>
    %584 = arith.subf %569, %583 : vector<2x24x128xf32>
    %cst_170 = arith.constant 9.99999974E-6 : f32
    %585 = vector.broadcast %cst_170 : f32 to vector<2x24x1xf32>
    %586 = arith.addf %582, %585 : vector<2x24x1xf32>
    %587 = math.rsqrt %586 : vector<2x24x1xf32>
    %588 = vector.broadcast %587 : vector<2x24x1xf32> to vector<2x24x128xf32>
    %589 = arith.mulf %584, %588 : vector<2x24x128xf32>
    %590 = vector.shape_cast %570 : vector<1x128xf32> to vector<1x1x128xf32>
    %591 = vector.broadcast %590 : vector<1x1x128xf32> to vector<2x24x128xf32>
    %592 = arith.mulf %589, %591 : vector<2x24x128xf32>
    %593 = vector.shape_cast %571 : vector<1x128xf32> to vector<1x1x128xf32>
    %594 = vector.broadcast %593 : vector<1x1x128xf32> to vector<2x24x128xf32>
    %595 = arith.addf %592, %594 : vector<2x24x128xf32>
    %c4_171 = arith.constant 4 : index
    %c0_172 = arith.constant 0 : index
    %c512_173 = arith.constant 512 : index
    %596 = vector.load %arg5[%c4_171, %c0_172, %c512_173] : memref<6x128x768xbf16, #tpu.memory_space<vmem>>, vector<1x128x128xbf16>
    %597 = vector.shape_cast %596 : vector<1x128x128xbf16> to vector<128x128xbf16>
    %598 = arith.truncf %595 : vector<2x24x128xf32> to vector<2x24x128xbf16>
    "tpu.trace_start"() <{level = 10 : i32, message = "bsd,de->bse"}> : () -> ()
    %cst_174 = arith.constant dense<0.000000e+00> : vector<2x24x128xf32>
    %599 = tpu.matmul %598, %597, %cst_174 {dimension_numbers = #tpu.dot_dimension_numbers<[2], [0], [0, 1], [1], [0, 0, 0, 1, 1, 1], [], []>} : vector<2x24x128xbf16>, vector<128x128xbf16>, vector<2x24x128xf32> -> vector<2x24x128xf32>
    "tpu.trace_stop"() : () -> ()
    %600 = vector.extract_strided_slice %519 {offsets = [4, 0], sizes = [1, 128], strides = [1, 1]} : vector<10x128xf32> to vector<1x128xf32>
    %601 = vector.shape_cast %600 : vector<1x128xf32> to vector<1x1x128xf32>
    %602 = vector.broadcast %601 : vector<1x1x128xf32> to vector<2x24x128xf32>
    %603 = arith.addf %599, %602 : vector<2x24x128xf32>
    %cst_175 = arith.constant 0.000000e+00 : f32
    %604 = vector.broadcast %cst_175 : f32 to vector<2x24x128xf32>
    %605 = arith.maximumf %603, %604 : vector<2x24x128xf32>
    %c4_176 = arith.constant 4 : index
    %c0_177 = arith.constant 0 : index
    %c640_178 = arith.constant 640 : index
    %606 = vector.load %arg5[%c4_176, %c0_177, %c640_178] : memref<6x128x768xbf16, #tpu.memory_space<vmem>>, vector<1x128x128xbf16>
    %607 = vector.shape_cast %606 : vector<1x128x128xbf16> to vector<128x128xbf16>
    %608 = arith.truncf %605 : vector<2x24x128xf32> to vector<2x24x128xbf16>
    "tpu.trace_start"() <{level = 10 : i32, message = "bsd,de->bse"}> : () -> ()
    %cst_179 = arith.constant dense<0.000000e+00> : vector<2x24x128xf32>
    %609 = tpu.matmul %608, %607, %cst_179 {dimension_numbers = #tpu.dot_dimension_numbers<[2], [0], [0, 1], [1], [0, 0, 0, 1, 1, 1], [], []>} : vector<2x24x128xbf16>, vector<128x128xbf16>, vector<2x24x128xf32> -> vector<2x24x128xf32>
    "tpu.trace_stop"() : () -> ()
    %610 = vector.extract_strided_slice %519 {offsets = [5, 0], sizes = [1, 128], strides = [1, 1]} : vector<10x128xf32> to vector<1x128xf32>
    %611 = vector.shape_cast %610 : vector<1x128xf32> to vector<1x1x128xf32>
    %612 = vector.broadcast %611 : vector<1x1x128xf32> to vector<2x24x128xf32>
    %613 = arith.addf %609, %612 : vector<2x24x128xf32>
    %614 = arith.addf %595, %613 : vector<2x24x128xf32>
    %615 = vector.extract_strided_slice %519 {offsets = [8, 0], sizes = [1, 128], strides = [1, 1]} : vector<10x128xf32> to vector<1x128xf32>
    %616 = vector.extract_strided_slice %519 {offsets = [9, 0], sizes = [1, 128], strides = [1, 1]} : vector<10x128xf32> to vector<1x128xf32>
    %cst_180 = arith.constant dense<0.000000e+00> : vector<2x24xf32>
    %617 = vector.multi_reduction <add>, %614, %cst_180 [2] : vector<2x24x128xf32> to vector<2x24xf32>
    %618 = vector.shape_cast %617 : vector<2x24xf32> to vector<2x24x1xf32>
    %cst_181 = arith.constant 1.280000e+02 : f32
    %619 = vector.broadcast %cst_181 : f32 to vector<2x24x1xf32>
    %620 = arith.divf %618, %619 : vector<2x24x1xf32>
    %621 = vector.broadcast %620 : vector<2x24x1xf32> to vector<2x24x128xf32>
    %622 = arith.subf %614, %621 : vector<2x24x128xf32>
    %623 = arith.mulf %622, %622 : vector<2x24x128xf32>
    %cst_182 = arith.constant dense<0.000000e+00> : vector<2x24xf32>
    %624 = vector.multi_reduction <add>, %623, %cst_182 [2] : vector<2x24x128xf32> to vector<2x24xf32>
    %625 = vector.shape_cast %624 : vector<2x24xf32> to vector<2x24x1xf32>
    %cst_183 = arith.constant 1.280000e+02 : f32
    %626 = vector.broadcast %cst_183 : f32 to vector<2x24x1xf32>
    %627 = arith.divf %625, %626 : vector<2x24x1xf32>
    %628 = vector.broadcast %620 : vector<2x24x1xf32> to vector<2x24x128xf32>
    %629 = arith.subf %614, %628 : vector<2x24x128xf32>
    %cst_184 = arith.constant 9.99999974E-6 : f32
    %630 = vector.broadcast %cst_184 : f32 to vector<2x24x1xf32>
    %631 = arith.addf %627, %630 : vector<2x24x1xf32>
    %632 = math.rsqrt %631 : vector<2x24x1xf32>
    %633 = vector.broadcast %632 : vector<2x24x1xf32> to vector<2x24x128xf32>
    %634 = arith.mulf %629, %633 : vector<2x24x128xf32>
    %635 = vector.shape_cast %615 : vector<1x128xf32> to vector<1x1x128xf32>
    %636 = vector.broadcast %635 : vector<1x1x128xf32> to vector<2x24x128xf32>
    %637 = arith.mulf %634, %636 : vector<2x24x128xf32>
    %638 = vector.shape_cast %616 : vector<1x128xf32> to vector<1x1x128xf32>
    %639 = vector.broadcast %638 : vector<1x1x128xf32> to vector<2x24x128xf32>
    %640 = arith.addf %637, %639 : vector<2x24x128xf32>
    %c5 = arith.constant 5 : index
    %c0_185 = arith.constant 0 : index
    %c0_186 = arith.constant 0 : index
    %641 = vector.load %arg6[%c5, %c0_185, %c0_186] : memref<6x10x128xf32, #tpu.memory_space<vmem>>, vector<1x10x128xf32>
    %642 = vector.shape_cast %641 : vector<1x10x128xf32> to vector<10x128xf32>
    %c5_187 = arith.constant 5 : index
    %c0_188 = arith.constant 0 : index
    %c0_189 = arith.constant 0 : index
    %643 = vector.load %arg5[%c5_187, %c0_188, %c0_189] : memref<6x128x768xbf16, #tpu.memory_space<vmem>>, vector<1x128x384xbf16>
    %644 = vector.shape_cast %643 : vector<1x128x384xbf16> to vector<128x384xbf16>
    %645 = arith.truncf %640 : vector<2x24x128xf32> to vector<2x24x128xbf16>
    "tpu.trace_start"() <{level = 10 : i32, message = "bsd,de->bse"}> : () -> ()
    %cst_190 = arith.constant dense<0.000000e+00> : vector<2x24x384xf32>
    %646 = tpu.matmul %645, %644, %cst_190 {dimension_numbers = #tpu.dot_dimension_numbers<[2], [0], [0, 1], [1], [0, 0, 0, 1, 1, 1], [], []>} : vector<2x24x128xbf16>, vector<128x384xbf16>, vector<2x24x384xf32> -> vector<2x24x384xf32>
    "tpu.trace_stop"() : () -> ()
    %647 = vector.extract_strided_slice %646 {offsets = [0, 0, 0], sizes = [2, 24, 128], strides = [1, 1, 1]} : vector<2x24x384xf32> to vector<2x24x128xf32>
    %648 = vector.extract_strided_slice %642 {offsets = [0, 0], sizes = [1, 128], strides = [1, 1]} : vector<10x128xf32> to vector<1x128xf32>
    %649 = vector.shape_cast %648 : vector<1x128xf32> to vector<1x1x128xf32>
    %650 = vector.broadcast %649 : vector<1x1x128xf32> to vector<2x24x128xf32>
    %651 = arith.addf %647, %650 : vector<2x24x128xf32>
    %652 = vector.extract_strided_slice %646 {offsets = [0, 0, 128], sizes = [2, 24, 128], strides = [1, 1, 1]} : vector<2x24x384xf32> to vector<2x24x128xf32>
    %653 = vector.extract_strided_slice %642 {offsets = [1, 0], sizes = [1, 128], strides = [1, 1]} : vector<10x128xf32> to vector<1x128xf32>
    %654 = vector.shape_cast %653 : vector<1x128xf32> to vector<1x1x128xf32>
    %655 = vector.broadcast %654 : vector<1x1x128xf32> to vector<2x24x128xf32>
    %656 = arith.addf %652, %655 : vector<2x24x128xf32>
    %657 = vector.extract_strided_slice %646 {offsets = [0, 0, 256], sizes = [2, 24, 128], strides = [1, 1, 1]} : vector<2x24x384xf32> to vector<2x24x128xf32>
    %658 = vector.extract_strided_slice %642 {offsets = [2, 0], sizes = [1, 128], strides = [1, 1]} : vector<10x128xf32> to vector<1x128xf32>
    %659 = vector.shape_cast %658 : vector<1x128xf32> to vector<1x1x128xf32>
    %660 = vector.broadcast %659 : vector<1x1x128xf32> to vector<2x24x128xf32>
    %661 = arith.addf %657, %660 : vector<2x24x128xf32>
    %662 = arith.truncf %651 : vector<2x24x128xf32> to vector<2x24x128xbf16>
    %663 = arith.truncf %656 : vector<2x24x128xf32> to vector<2x24x128xbf16>
    "tpu.trace_start"() <{level = 10 : i32, message = "bqd,bkd->bqk"}> : () -> ()
    %cst_191 = arith.constant dense<0.000000e+00> : vector<2x24x24xf32>
    %664 = tpu.matmul %662, %663, %cst_191 {dimension_numbers = #tpu.dot_dimension_numbers<[2], [2], [1], [1], [0, 0, 0, 1, 1, 1], [0], [0]>} : vector<2x24x128xbf16>, vector<2x24x128xbf16>, vector<2x24x24xf32> -> vector<2x24x24xf32>
    "tpu.trace_stop"() : () -> ()
    %cst_192 = arith.constant 0.0883883461 : f32
    %665 = vector.broadcast %cst_192 : f32 to vector<2x24x24xf32>
    %666 = arith.mulf %664, %665 : vector<2x24x24xf32>
    %cst_193 = arith.constant -1.000000e+30 : f32
    %667 = vector.shape_cast %25 : vector<1x1x24xi1> to vector<1x1x24xi1>
    %668 = vector.broadcast %667 : vector<1x1x24xi1> to vector<2x24x24xi1>
    %669 = vector.broadcast %cst_193 : f32 to vector<2x24x24xf32>
    %670 = arith.select %668, %666, %669 : vector<2x24x24xi1>, vector<2x24x24xf32>
    %cst_194 = arith.constant dense<0xFF800000> : vector<2x24xf32>
    %671 = vector.multi_reduction <maximumf>, %670, %cst_194 [2] : vector<2x24x24xf32> to vector<2x24xf32>
    %672 = vector.shape_cast %671 : vector<2x24xf32> to vector<2x24x1xf32>
    %673 = vector.broadcast %672 : vector<2x24x1xf32> to vector<2x24x24xf32>
    %674 = arith.subf %670, %673 : vector<2x24x24xf32>
    %675 = math.exp %674 : vector<2x24x24xf32>
    %cst_195 = arith.constant dense<0.000000e+00> : vector<2x24xf32>
    %676 = vector.multi_reduction <add>, %675, %cst_195 [2] : vector<2x24x24xf32> to vector<2x24xf32>
    %677 = vector.shape_cast %676 : vector<2x24xf32> to vector<2x24x1xf32>
    %678 = tpu.reciprocal %677 {approx = true} : vector<2x24x1xf32> -> vector<2x24x1xf32>
    %679 = vector.broadcast %678 : vector<2x24x1xf32> to vector<2x24x24xf32>
    %680 = arith.mulf %675, %679 : vector<2x24x24xf32>
    %681 = arith.truncf %680 : vector<2x24x24xf32> to vector<2x24x24xbf16>
    %682 = arith.truncf %661 : vector<2x24x128xf32> to vector<2x24x128xbf16>
    "tpu.trace_start"() <{level = 10 : i32, message = "bqk,bkd->bqd"}> : () -> ()
    %cst_196 = arith.constant dense<0.000000e+00> : vector<2x24x128xf32>
    %683 = tpu.matmul %681, %682, %cst_196 {dimension_numbers = #tpu.dot_dimension_numbers<[2], [1], [1], [2], [0, 0, 0, 1, 1, 2], [0], [0]>} : vector<2x24x24xbf16>, vector<2x24x128xbf16>, vector<2x24x128xf32> -> vector<2x24x128xf32>
    "tpu.trace_stop"() : () -> ()
    %c5_197 = arith.constant 5 : index
    %c0_198 = arith.constant 0 : index
    %c384_199 = arith.constant 384 : index
    %684 = vector.load %arg5[%c5_197, %c0_198, %c384_199] : memref<6x128x768xbf16, #tpu.memory_space<vmem>>, vector<1x128x128xbf16>
    %685 = vector.shape_cast %684 : vector<1x128x128xbf16> to vector<128x128xbf16>
    %686 = arith.truncf %683 : vector<2x24x128xf32> to vector<2x24x128xbf16>
    "tpu.trace_start"() <{level = 10 : i32, message = "bsd,de->bse"}> : () -> ()
    %cst_200 = arith.constant dense<0.000000e+00> : vector<2x24x128xf32>
    %687 = tpu.matmul %686, %685, %cst_200 {dimension_numbers = #tpu.dot_dimension_numbers<[2], [0], [0, 1], [1], [0, 0, 0, 1, 1, 1], [], []>} : vector<2x24x128xbf16>, vector<128x128xbf16>, vector<2x24x128xf32> -> vector<2x24x128xf32>
    "tpu.trace_stop"() : () -> ()
    %688 = vector.extract_strided_slice %642 {offsets = [3, 0], sizes = [1, 128], strides = [1, 1]} : vector<10x128xf32> to vector<1x128xf32>
    %689 = vector.shape_cast %688 : vector<1x128xf32> to vector<1x1x128xf32>
    %690 = vector.broadcast %689 : vector<1x1x128xf32> to vector<2x24x128xf32>
    %691 = arith.addf %687, %690 : vector<2x24x128xf32>
    %692 = arith.addf %640, %691 : vector<2x24x128xf32>
    %693 = vector.extract_strided_slice %642 {offsets = [6, 0], sizes = [1, 128], strides = [1, 1]} : vector<10x128xf32> to vector<1x128xf32>
    %694 = vector.extract_strided_slice %642 {offsets = [7, 0], sizes = [1, 128], strides = [1, 1]} : vector<10x128xf32> to vector<1x128xf32>
    %cst_201 = arith.constant dense<0.000000e+00> : vector<2x24xf32>
    %695 = vector.multi_reduction <add>, %692, %cst_201 [2] : vector<2x24x128xf32> to vector<2x24xf32>
    %696 = vector.shape_cast %695 : vector<2x24xf32> to vector<2x24x1xf32>
    %cst_202 = arith.constant 1.280000e+02 : f32
    %697 = vector.broadcast %cst_202 : f32 to vector<2x24x1xf32>
    %698 = arith.divf %696, %697 : vector<2x24x1xf32>
    %699 = vector.broadcast %698 : vector<2x24x1xf32> to vector<2x24x128xf32>
    %700 = arith.subf %692, %699 : vector<2x24x128xf32>
    %701 = arith.mulf %700, %700 : vector<2x24x128xf32>
    %cst_203 = arith.constant dense<0.000000e+00> : vector<2x24xf32>
    %702 = vector.multi_reduction <add>, %701, %cst_203 [2] : vector<2x24x128xf32> to vector<2x24xf32>
    %703 = vector.shape_cast %702 : vector<2x24xf32> to vector<2x24x1xf32>
    %cst_204 = arith.constant 1.280000e+02 : f32
    %704 = vector.broadcast %cst_204 : f32 to vector<2x24x1xf32>
    %705 = arith.divf %703, %704 : vector<2x24x1xf32>
    %706 = vector.broadcast %698 : vector<2x24x1xf32> to vector<2x24x128xf32>
    %707 = arith.subf %692, %706 : vector<2x24x128xf32>
    %cst_205 = arith.constant 9.99999974E-6 : f32
    %708 = vector.broadcast %cst_205 : f32 to vector<2x24x1xf32>
    %709 = arith.addf %705, %708 : vector<2x24x1xf32>
    %710 = math.rsqrt %709 : vector<2x24x1xf32>
    %711 = vector.broadcast %710 : vector<2x24x1xf32> to vector<2x24x128xf32>
    %712 = arith.mulf %707, %711 : vector<2x24x128xf32>
    %713 = vector.shape_cast %693 : vector<1x128xf32> to vector<1x1x128xf32>
    %714 = vector.broadcast %713 : vector<1x1x128xf32> to vector<2x24x128xf32>
    %715 = arith.mulf %712, %714 : vector<2x24x128xf32>
    %716 = vector.shape_cast %694 : vector<1x128xf32> to vector<1x1x128xf32>
    %717 = vector.broadcast %716 : vector<1x1x128xf32> to vector<2x24x128xf32>
    %718 = arith.addf %715, %717 : vector<2x24x128xf32>
    %c5_206 = arith.constant 5 : index
    %c0_207 = arith.constant 0 : index
    %c512_208 = arith.constant 512 : index
    %719 = vector.load %arg5[%c5_206, %c0_207, %c512_208] : memref<6x128x768xbf16, #tpu.memory_space<vmem>>, vector<1x128x128xbf16>
    %720 = vector.shape_cast %719 : vector<1x128x128xbf16> to vector<128x128xbf16>
    %721 = arith.truncf %718 : vector<2x24x128xf32> to vector<2x24x128xbf16>
    "tpu.trace_start"() <{level = 10 : i32, message = "bsd,de->bse"}> : () -> ()
    %cst_209 = arith.constant dense<0.000000e+00> : vector<2x24x128xf32>
    %722 = tpu.matmul %721, %720, %cst_209 {dimension_numbers = #tpu.dot_dimension_numbers<[2], [0], [0, 1], [1], [0, 0, 0, 1, 1, 1], [], []>} : vector<2x24x128xbf16>, vector<128x128xbf16>, vector<2x24x128xf32> -> vector<2x24x128xf32>
    "tpu.trace_stop"() : () -> ()
    %723 = vector.extract_strided_slice %642 {offsets = [4, 0], sizes = [1, 128], strides = [1, 1]} : vector<10x128xf32> to vector<1x128xf32>
    %724 = vector.shape_cast %723 : vector<1x128xf32> to vector<1x1x128xf32>
    %725 = vector.broadcast %724 : vector<1x1x128xf32> to vector<2x24x128xf32>
    %726 = arith.addf %722, %725 : vector<2x24x128xf32>
    %cst_210 = arith.constant 0.000000e+00 : f32
    %727 = vector.broadcast %cst_210 : f32 to vector<2x24x128xf32>
    %728 = arith.maximumf %726, %727 : vector<2x24x128xf32>
    %c5_211 = arith.constant 5 : index
    %c0_212 = arith.constant 0 : index
    %c640_213 = arith.constant 640 : index
    %729 = vector.load %arg5[%c5_211, %c0_212, %c640_213] : memref<6x128x768xbf16, #tpu.memory_space<vmem>>, vector<1x128x128xbf16>
    %730 = vector.shape_cast %729 : vector<1x128x128xbf16> to vector<128x128xbf16>
    %731 = arith.truncf %728 : vector<2x24x128xf32> to vector<2x24x128xbf16>
    "tpu.trace_start"() <{level = 10 : i32, message = "bsd,de->bse"}> : () -> ()
    %cst_214 = arith.constant dense<0.000000e+00> : vector<2x24x128xf32>
    %732 = tpu.matmul %731, %730, %cst_214 {dimension_numbers = #tpu.dot_dimension_numbers<[2], [0], [0, 1], [1], [0, 0, 0, 1, 1, 1], [], []>} : vector<2x24x128xbf16>, vector<128x128xbf16>, vector<2x24x128xf32> -> vector<2x24x128xf32>
    "tpu.trace_stop"() : () -> ()
    %733 = vector.extract_strided_slice %642 {offsets = [5, 0], sizes = [1, 128], strides = [1, 1]} : vector<10x128xf32> to vector<1x128xf32>
    %734 = vector.shape_cast %733 : vector<1x128xf32> to vector<1x1x128xf32>
    %735 = vector.broadcast %734 : vector<1x1x128xf32> to vector<2x24x128xf32>
    %736 = arith.addf %732, %735 : vector<2x24x128xf32>
    %737 = arith.addf %718, %736 : vector<2x24x128xf32>
    %738 = vector.extract_strided_slice %642 {offsets = [8, 0], sizes = [1, 128], strides = [1, 1]} : vector<10x128xf32> to vector<1x128xf32>
    %739 = vector.extract_strided_slice %642 {offsets = [9, 0], sizes = [1, 128], strides = [1, 1]} : vector<10x128xf32> to vector<1x128xf32>
    %cst_215 = arith.constant dense<0.000000e+00> : vector<2x24xf32>
    %740 = vector.multi_reduction <add>, %737, %cst_215 [2] : vector<2x24x128xf32> to vector<2x24xf32>
    %741 = vector.shape_cast %740 : vector<2x24xf32> to vector<2x24x1xf32>
    %cst_216 = arith.constant 1.280000e+02 : f32
    %742 = vector.broadcast %cst_216 : f32 to vector<2x24x1xf32>
    %743 = arith.divf %741, %742 : vector<2x24x1xf32>
    %744 = vector.broadcast %743 : vector<2x24x1xf32> to vector<2x24x128xf32>
    %745 = arith.subf %737, %744 : vector<2x24x128xf32>
    %746 = arith.mulf %745, %745 : vector<2x24x128xf32>
    %cst_217 = arith.constant dense<0.000000e+00> : vector<2x24xf32>
    %747 = vector.multi_reduction <add>, %746, %cst_217 [2] : vector<2x24x128xf32> to vector<2x24xf32>
    %748 = vector.shape_cast %747 : vector<2x24xf32> to vector<2x24x1xf32>
    %cst_218 = arith.constant 1.280000e+02 : f32
    %749 = vector.broadcast %cst_218 : f32 to vector<2x24x1xf32>
    %750 = arith.divf %748, %749 : vector<2x24x1xf32>
    %751 = vector.broadcast %743 : vector<2x24x1xf32> to vector<2x24x128xf32>
    %752 = arith.subf %737, %751 : vector<2x24x128xf32>
    %cst_219 = arith.constant 9.99999974E-6 : f32
    %753 = vector.broadcast %cst_219 : f32 to vector<2x24x1xf32>
    %754 = arith.addf %750, %753 : vector<2x24x1xf32>
    %755 = math.rsqrt %754 : vector<2x24x1xf32>
    %756 = vector.broadcast %755 : vector<2x24x1xf32> to vector<2x24x128xf32>
    %757 = arith.mulf %752, %756 : vector<2x24x128xf32>
    %758 = vector.shape_cast %738 : vector<1x128xf32> to vector<1x1x128xf32>
    %759 = vector.broadcast %758 : vector<1x1x128xf32> to vector<2x24x128xf32>
    %760 = arith.mulf %757, %759 : vector<2x24x128xf32>
    %761 = vector.shape_cast %739 : vector<1x128xf32> to vector<1x1x128xf32>
    %762 = vector.broadcast %761 : vector<1x1x128xf32> to vector<2x24x128xf32>
    %763 = arith.addf %760, %762 : vector<2x24x128xf32>
    %764 = vector.extract_strided_slice %763 {offsets = [0, 0, 0], sizes = [2, 1, 128], strides = [1, 1, 1]} : vector<2x24x128xf32> to vector<2x1x128xf32>
    %c0_220 = arith.constant 0 : index
    %c0_221 = arith.constant 0 : index
    %765 = vector.load %arg7[%c0_220, %c0_221] : memref<1x128xf32, #tpu.memory_space<vmem>>, vector<1x128xf32>
    %c0_222 = arith.constant 0 : index
    %c0_223 = arith.constant 0 : index
    %766 = vector.load %arg8[%c0_222, %c0_223] : memref<1x128xf32, #tpu.memory_space<vmem>>, vector<1x128xf32>
    %cst_224 = arith.constant dense<0.000000e+00> : vector<2x1xf32>
    %767 = vector.multi_reduction <add>, %764, %cst_224 [2] : vector<2x1x128xf32> to vector<2x1xf32>
    %768 = vector.shape_cast %767 : vector<2x1xf32> to vector<2x1x1xf32>
    %cst_225 = arith.constant 1.280000e+02 : f32
    %769 = vector.broadcast %cst_225 : f32 to vector<2x1x1xf32>
    %770 = arith.divf %768, %769 : vector<2x1x1xf32>
    %771 = vector.broadcast %770 : vector<2x1x1xf32> to vector<2x1x128xf32>
    %772 = arith.subf %764, %771 : vector<2x1x128xf32>
    %773 = arith.mulf %772, %772 : vector<2x1x128xf32>
    %cst_226 = arith.constant dense<0.000000e+00> : vector<2x1xf32>
    %774 = vector.multi_reduction <add>, %773, %cst_226 [2] : vector<2x1x128xf32> to vector<2x1xf32>
    %775 = vector.shape_cast %774 : vector<2x1xf32> to vector<2x1x1xf32>
    %cst_227 = arith.constant 1.280000e+02 : f32
    %776 = vector.broadcast %cst_227 : f32 to vector<2x1x1xf32>
    %777 = arith.divf %775, %776 : vector<2x1x1xf32>
    %778 = vector.broadcast %770 : vector<2x1x1xf32> to vector<2x1x128xf32>
    %779 = arith.subf %764, %778 : vector<2x1x128xf32>
    %cst_228 = arith.constant 9.99999974E-6 : f32
    %780 = vector.broadcast %cst_228 : f32 to vector<2x1x1xf32>
    %781 = arith.addf %777, %780 : vector<2x1x1xf32>
    %782 = math.rsqrt %781 : vector<2x1x1xf32>
    %783 = vector.broadcast %782 : vector<2x1x1xf32> to vector<2x1x128xf32>
    %784 = arith.mulf %779, %783 : vector<2x1x128xf32>
    %785 = vector.shape_cast %765 : vector<1x128xf32> to vector<1x1x128xf32>
    %786 = vector.broadcast %785 : vector<1x1x128xf32> to vector<2x1x128xf32>
    %787 = arith.mulf %784, %786 : vector<2x1x128xf32>
    %788 = vector.shape_cast %766 : vector<1x128xf32> to vector<1x1x128xf32>
    %789 = vector.broadcast %788 : vector<1x1x128xf32> to vector<2x1x128xf32>
    %790 = arith.addf %787, %789 : vector<2x1x128xf32>
    %c0_229 = arith.constant 0 : index
    %c0_230 = arith.constant 0 : index
    %791 = vector.load %arg9[%c0_229, %c0_230] : memref<128x128xbf16, #tpu.memory_space<vmem>>, vector<128x128xbf16>
    %792 = arith.truncf %790 : vector<2x1x128xf32> to vector<2x1x128xbf16>
    "tpu.trace_start"() <{level = 10 : i32, message = "bsd,de->bse"}> : () -> ()
    %cst_231 = arith.constant dense<0.000000e+00> : vector<2x1x128xf32>
    %793 = tpu.matmul %792, %791, %cst_231 {dimension_numbers = #tpu.dot_dimension_numbers<[2], [0], [0, 1], [1], [0, 0, 0, 1, 1, 1], [], []>} : vector<2x1x128xbf16>, vector<128x128xbf16>, vector<2x1x128xf32> -> vector<2x1x128xf32>
    "tpu.trace_stop"() : () -> ()
    %c0_232 = arith.constant 0 : index
    %c0_233 = arith.constant 0 : index
    %794 = vector.load %arg10[%c0_232, %c0_233] : memref<1x128xf32, #tpu.memory_space<vmem>>, vector<1x128xf32>
    %795 = vector.shape_cast %794 : vector<1x128xf32> to vector<1x1x128xf32>
    %796 = vector.broadcast %795 : vector<1x1x128xf32> to vector<2x1x128xf32>
    %797 = arith.addf %793, %796 : vector<2x1x128xf32>
    %c0_234 = arith.constant 0 : index
    %c0_235 = arith.constant 0 : index
    %c0_236 = arith.constant 0 : index
    %798 = vector.load %arg11[%c0_234, %c0_235, %c0_236] : memref<2x1x128xf32, #tpu.memory_space<vmem>>, vector<2x1x128xf32>
    tpu.vector_store %arg11[%c0_234, %c0_235, %c0_236], %797 {strides = array<i32>} : memref<2x1x128xf32, #tpu.memory_space<vmem>>, vector<2x1x128xf32>,
    return
  }
}

</mosaic_0001>

<bundles_post_ra>
// kernel: _looker_trns_forward_impl.1
= control target key start
LH: loop header
LB: loop body
LE: loop exit
PB: predicated region body
PF: predicated region fallthrough
CT: control target
= control target key end

     0   :  { %16 = vsyncpa [#allocation3], 0  ;;  %s12563_s0 = inlined_call_operand.vmem [shape: f32[2,24,256], index: 0, kind: input, shape index: {}]   ;;  %s12564_s1 = inlined_call_operand.hbm [shape: bf16[256,128], index: 1, kind: input, shape index: {}]   ;;  %s12565_s2 = inlined_call_operand.hbm [shape: f32[1,128], index: 2, kind: input, shape index: {}]   ;;  %s12566_s3 = inlined_call_operand.hbm [shape: f32[1,128], index: 3, kind: input, shape index: {}]   ;;  %s12567_s4 = inlined_call_operand.hbm [shape: f32[24,128], index: 4, kind: input, shape index: {}]   ;;  %s12568_s5 = inlined_call_operand.hbm [shape: bf16[6,128,768], index: 5, kind: input, shape index: {}]   ;;  %s12569_s6 = inlined_call_operand.vmem [shape: f32[6,10,128], index: 6, kind: input, shape index: {}]   ;;  %s12570_s7 = inlined_call_operand.hbm [shape: f32[1,128], index: 7, kind: input, shape index: {}]   ;;  %s12571_s8 = inlined_call_operand.hbm [shape: f32[1,128], index: 8, kind: input, shape index: {}]   ;;  %s12572_s9 = inlined_call_operand.hbm [shape: bf16[128,128], index: 9, kind: input, shape index: {}]   ;;  %s12573_s10 = inlined_call_operand.hbm [shape: f32[1,128], index: 10, kind: input, shape index: {}]   ;;  %s12574_s11 = inlined_call_operand.hbm [shape: f32[2,1,128], index: 11, kind: output, shape index: {}]  }
   0x1   :  { %17 = vsyncpa [#allocation6], 0 }
   0x2   :  { %18 = vsyncpa [#allocation9], 0 }
   0x3   :  { %19 = vsyncpa [#allocation12], 0 }
   0x4   :  { %20 = vsyncpa [#allocation15], 0 }
   0x5   :  { %21 = vsyncpa [#allocation4], 0  ;;  %s10770_s17 = smov [#allocation5]   ;;  %s10771_s19 = smov [#allocation8]  }
   0x6   :  { %s42_s18 = sshll.u32 %s10770_s17, 4  ;;  %s61_s20 = sshll.u32 %s10771_s19, 4  ;;  %s43_s18 = int_to_ptr.vmem [resolvable:$true] %s42_s18  ;;  %s10852_s20 = int_to_ptr.vmem [resolvable:$true] %s61_s20 }
   0x7   :  { %s10538_s23 = scalar_lea.hbm %s12565_s2, 16 }
   0x8   :  { %p10539_p0 = scmp.ne.s32.totalorder %s12565_s2, %s10538_s23  ;;  %p10542_p1 = scmp.lt.u32.totalorder %s10538_s23, %s12565_s2 }
   0xa   :  { %p10544_p2 = pnand %p10542_p1, %p10539_p0 }
   0xc   :  { %10547 = shalt.err (!%p10544_p2)
}
   0xd   :  { %s10548_s28 = scalar_lea.vmem %s43_s18, 16  ;;  %s10552_s29 = scalar_lea.vmem %s43_s18, 32 }
   0xe   :  { %p10549_p3 = scmp.ne.s32.totalorder %s43_s18, %s10548_s28  ;;  %p10553_p4 = scmp.lt.s32.totalorder %s43_s18, %s43_s18 }
   0xf   :  { %p10554_p5 = scmp.lt.s32.totalorder %s10552_s29, %s10548_s28 }
  0x11   :  { %p10555_p6 = por %p10554_p5, %p10553_p4 }
  0x13   :  { %p10556_p7 = pnand %p10555_p6, %p10549_p3 }
  0x15   :  { %10559 = shalt.err (!%p10556_p7)
}
  0x16   :  { %45 = dma.hbm_to_vmem [thread:$0]  %s12565_s2, 16, %s43_s18, [#allocation6]  }
  0x17   :  { %s10560_s15 = scalar_lea.hbm %s12567_s4, 384 }
  0x18   :  { %p10561_p8 = scmp.ne.s32.totalorder %s12567_s4, %s10560_s15  ;;  %p10564_p9 = scmp.lt.u32.totalorder %s10560_s15, %s12567_s4 }
  0x1a   :  { %p10566_p10 = pnand %p10564_p9, %p10561_p8 }
  0x1c   :  { %10569 = shalt.err (!%p10566_p10)
}
  0x1d   :  { %s10570_s22 = scalar_lea.vmem %s10852_s20, 384  ;;  %p10575_p12 = scmp.lt.s32.totalorder %s10852_s20, %s10852_s20 }
  0x1e   :  { %p10571_p11 = scmp.ne.s32.totalorder %s10852_s20, %s10570_s22  ;;  %p10576_p13 = scmp.lt.s32.totalorder %s10570_s22, %s10570_s22 }
  0x20   :  { %p10577_p0 = por %p10576_p13, %p10575_p12 }
  0x22   :  { %p10578_p1 = pnand %p10577_p0, %p10571_p11 }
  0x24   :  { %10581 = shalt.err (!%p10578_p1)
}
  0x25   :  { %s10772_s2 = smov 128   ;;  %s10773_s18 = smov 8  }
  0x26   :  { %67 = dma.hbm_to_vmem [thread:$0]  %s12567_s4, 384, %s10852_s20, [#allocation9], %s10772_s2, %s10772_s2, %s10773_s18  }
  0x27   :  { %s10774_s25 = smov [#allocation11]   ;;  %s10582_s29 = scalar_lea.hbm %s12570_s7, 16 }
  0x28   :  { %s88_s26 = sshll.u32 %s10774_s25, 4  ;;  %p10583_p2 = scmp.ne.s32.totalorder %s12570_s7, %s10582_s29  ;;  %s89_s26 = int_to_ptr.vmem [resolvable:$true] %s88_s26 }
  0x29   :  { %p10586_p3 = scmp.lt.u32.totalorder %s10582_s29, %s12570_s7 }
  0x2b   :  { %p10588_p4 = pnand %p10586_p3, %p10583_p2 }
  0x2d   :  { %10591 = shalt.err (!%p10588_p4)
}
  0x2e   :  { %s10592_s15 = scalar_lea.vmem %s89_s26, 16  ;;  %s10596_s4 = scalar_lea.vmem %s89_s26, 32 }
  0x2f   :  { %p10593_p5 = scmp.ne.s32.totalorder %s89_s26, %s10592_s15  ;;  %p10597_p6 = scmp.lt.s32.totalorder %s89_s26, %s89_s26 }
  0x30   :  { %p10598_p7 = scmp.lt.s32.totalorder %s10596_s4, %s10592_s15 }
  0x32   :  { %p10599_p8 = por %p10598_p7, %p10597_p6 }
  0x34   :  { %p10600_p9 = pnand %p10599_p8, %p10593_p5 }
  0x36   :  { %10603 = shalt.err (!%p10600_p9)
}
  0x37   :  { %91 = dma.hbm_to_vmem [thread:$0]  %s12570_s7, 16, %s89_s26, [#allocation12]  }
  0x38   :  { %s10775_s17 = smov [#allocation14]   ;;  %s10776_s21 = smov [#allocation2]  }
  0x39   :  { %s107_s19 = sshll.u32 %s10775_s17, 4  ;;  %s29_s22 = sshll.u32 %s10776_s21, 4  ;;  %s108_s19 = int_to_ptr.vmem [resolvable:$true] %s107_s19  ;;  %s30_s22 = int_to_ptr.vmem [resolvable:$true] %s29_s22 }
  0x3a   :  { %s10604_s23 = scalar_lea.hbm %s12572_s9, 1024 }
  0x3b   :  { %p10605_p10 = scmp.ne.s32.totalorder %s12572_s9, %s10604_s23  ;;  %p10608_p11 = scmp.lt.u32.totalorder %s10604_s23, %s12572_s9 }
  0x3d   :  { %p10610_p12 = pnand %p10608_p11, %p10605_p10 }
  0x3f   :  { %10613 = shalt.err (!%p10610_p12)
}
  0x40   :  { %s10614_s7 = scalar_lea.vmem %s108_s19, 1024  ;;  %p10619_p0 = scmp.lt.s32.totalorder %s108_s19, %s108_s19 }
  0x41   :  { %p10615_p13 = scmp.ne.s32.totalorder %s108_s19, %s10614_s7  ;;  %p10620_p1 = scmp.lt.s32.totalorder %s10614_s7, %s10614_s7 }
  0x43   :  { %p10621_p2 = por %p10620_p1, %p10619_p0 }
  0x45   :  { %p10622_p3 = pnand %p10621_p2, %p10615_p13 }
  0x47   :  { %10625 = shalt.err (!%p10622_p3)
}
  0x48   :  { %s10777_s26 = smov 64   ;;  %s10778_s29 = smov 4  }
  0x49   :  { %113 = dma.hbm_to_vmem [thread:$0]  %s12572_s9, 1024, %s108_s19, [#allocation15], %s10777_s26, %s10777_s26, %s10778_s29  }
  0x4a   :  { %s10626_s15 = scalar_lea.hbm %s12564_s1, 2048 }
  0x4b   :  { %p10627_p4 = scmp.ne.s32.totalorder %s12564_s1, %s10626_s15  ;;  %p10630_p5 = scmp.lt.u32.totalorder %s10626_s15, %s12564_s1 }
  0x4d   :  { %p10632_p6 = pnand %p10630_p5, %p10627_p4 }
  0x4f   :  { %10635 = shalt.err (!%p10632_p6)
}
  0x50   :  { %s10636_s21 = scalar_lea.vmem %s30_s22, 2048  ;;  %p10641_p8 = scmp.lt.s32.totalorder %s30_s22, %s30_s22 }
  0x51   :  { %p10637_p7 = scmp.ne.s32.totalorder %s30_s22, %s10636_s21  ;;  %p10642_p9 = scmp.lt.s32.totalorder %s10636_s21, %s10636_s21 }
  0x53   :  { %p10643_p10 = por %p10642_p9, %p10641_p8 }
  0x55   :  { %p10644_p11 = pnand %p10643_p10, %p10637_p7 }
  0x57   :  { %10647 = shalt.err (!%p10644_p11)
}
  0x58   :  { %35 = dma.hbm_to_vmem [thread:$0]  %s12564_s1, 2048, %s30_s22, [#allocation3], %s10777_s26, %s10777_s26, %s10778_s29  }
  0x59   :  { %s10779_s2 = smov [#allocation7]   ;;  %s10780_s23 = smov [#allocation10]  }
  0x5a   :  { %s52_s18 = sshll.u32 %s10779_s2, 4  ;;  %s73_s24 = sshll.u32 %s10780_s23, 4  ;;  %s53_s18 = int_to_ptr.vmem [resolvable:$true] %s52_s18  ;;  %s74_s24 = int_to_ptr.vmem [resolvable:$true] %s73_s24 }
  0x5b   :  { %s10648_s28 = scalar_lea.hbm %s12566_s3, 16 }
  0x5c   :  { %p10649_p12 = scmp.ne.s32.totalorder %s12566_s3, %s10648_s28  ;;  %p10652_p13 = scmp.lt.u32.totalorder %s10648_s28, %s12566_s3 }
  0x5e   :  { %p10654_p0 = pnand %p10652_p13, %p10649_p12 }
  0x60   :  { %10657 = shalt.err (!%p10654_p0)
}
  0x61   :  { %s10658_s1 = scalar_lea.vmem %s53_s18, 16  ;;  %s10662_s22 = scalar_lea.vmem %s53_s18, 32 }
  0x62   :  { %p10659_p1 = scmp.ne.s32.totalorder %s53_s18, %s10658_s1  ;;  %p10663_p2 = scmp.lt.s32.totalorder %s53_s18, %s53_s18 }
  0x63   :  { %p10664_p3 = scmp.lt.s32.totalorder %s10662_s22, %s10658_s1 }
  0x65   :  { %p10665_p4 = por %p10664_p3, %p10663_p2 }
  0x67   :  { %p10666_p5 = pnand %p10665_p4, %p10659_p1 }
  0x69   :  { %10669 = shalt.err (!%p10666_p5)
}
  0x6a   :  { %55 = dma.hbm_to_vmem [thread:$0]  %s12566_s3, 16, %s53_s18, [#allocation6]  }
  0x6b   :  { %s10670_s4 = scalar_lea.hbm %s12568_s5, 36864 }
  0x6c   :  { %p10671_p6 = scmp.ne.s32.totalorder %s12568_s5, %s10670_s4  ;;  %p10674_p7 = scmp.lt.u32.totalorder %s10670_s4, %s12568_s5 }
  0x6e   :  { %p10676_p8 = pnand %p10674_p7, %p10671_p6 }
  0x70   :  { %10679 = shalt.err (!%p10676_p8)
}
  0x71   :  { %s10680_s9 = scalar_lea.vmem %s74_s24, 36864  ;;  %p10685_p10 = scmp.lt.s32.totalorder %s74_s24, %s74_s24 }
  0x72   :  { %p10681_p9 = scmp.ne.s32.totalorder %s74_s24, %s10680_s9  ;;  %p10686_p11 = scmp.lt.s32.totalorder %s10680_s9, %s10680_s9 }
  0x74   :  { %p10687_p12 = por %p10686_p11, %p10685_p10 }
  0x76   :  { %p10688_p13 = pnand %p10687_p12, %p10681_p9 }
  0x78   :  { %10691 = shalt.err (!%p10688_p13)
}
  0x79   :  { %s10781_s3 = smov 384   ;;  %s10782_s19 = smov 24  }
  0x7a   :  { %79 = dma.hbm_to_vmem [thread:$0]  %s12568_s5, 36864, %s74_s24, [#allocation9], %s10781_s3, %s10781_s3, %s10782_s19  }
  0x7b   :  { %s10783_s23 = smov [#allocation13]   ;;  %s10784_s27 = smov [#allocation16]  }
  0x7c   :  { %s98_s25 = sshll.u32 %s10783_s23, 4  ;;  %s120_s28 = sshll.u32 %s10784_s27, 4  ;;  %s99_s25 = int_to_ptr.vmem [resolvable:$true] %s98_s25  ;;  %s121_s28 = int_to_ptr.vmem [resolvable:$true] %s120_s28 }
  0x7d   :  { %s10692_s12 = scalar_lea.hbm %s12571_s8, 16 }
  0x7e   :  { %p10693_p0 = scmp.ne.s32.totalorder %s12571_s8, %s10692_s12  ;;  %p10696_p1 = scmp.lt.u32.totalorder %s10692_s12, %s12571_s8 }
  0x80   :  { %p10698_p2 = pnand %p10696_p1, %p10693_p0 }
  0x82   :  { %10701 = shalt.err (!%p10698_p2)
}
  0x83   :  { %s10702_s5 = scalar_lea.vmem %s99_s25, 16  ;;  %s10706_s24 = scalar_lea.vmem %s99_s25, 32 }
  0x84   :  { %p10703_p3 = scmp.ne.s32.totalorder %s99_s25, %s10702_s5  ;;  %p10707_p4 = scmp.lt.s32.totalorder %s99_s25, %s99_s25 }
  0x85   :  { %p10708_p5 = scmp.lt.s32.totalorder %s10706_s24, %s10702_s5 }
  0x87   :  { %p10709_p6 = por %p10708_p5, %p10707_p4 }
  0x89   :  { %p10710_p7 = pnand %p10709_p6, %p10703_p3 }
  0x8b   :  { %10713 = shalt.err (!%p10710_p7)
}
  0x8c   :  { %101 = dma.hbm_to_vmem [thread:$0]  %s12571_s8, 16, %s99_s25, [#allocation12]  }
  0x8d   :  { %s10714_s20 = scalar_lea.hbm %s12573_s10, 16 }
  0x8e   :  { %p10715_p8 = scmp.ne.s32.totalorder %s12573_s10, %s10714_s20  ;;  %p10718_p9 = scmp.lt.u32.totalorder %s10714_s20, %s12573_s10 }
  0x90   :  { %p10720_p10 = pnand %p10718_p9, %p10715_p8 }
  0x92   :  { %10723 = shalt.err (!%p10720_p10)
}
  0x93   :  { %s10724_s3 = scalar_lea.vmem %s121_s28, 16  ;;  %s10728_s19 = scalar_lea.vmem %s121_s28, 32 }
  0x94   :  { %p10725_p11 = scmp.ne.s32.totalorder %s121_s28, %s10724_s3  ;;  %p10729_p12 = scmp.lt.s32.totalorder %s121_s28, %s121_s28 }
  0x95   :  { %p10730_p13 = scmp.lt.s32.totalorder %s10728_s19, %s10724_s3 }
  0x97   :  { %p10731_p0 = por %p10730_p13, %p10729_p12 }
  0x99   :  { %p10732_p1 = pnand %p10731_p0, %p10725_p11 }
  0x9b   :  { %10735 = shalt.err (!%p10732_p1)
}
  0x9c   :  { %123 = dma.hbm_to_vmem [thread:$0]  %s12573_s10, 16, %s121_s28, [#allocation15]  }
  0x9d   :  { %10758 = dma.done.wait [#allocation3], 2048  }
  0x9e   :  { %10759 = vsyncadd [#allocation3], 4294965248 }
  0x9f   :  { %10760 = dma.done.wait [#allocation6], 32  }
  0xa0   :  { %10761 = vsyncadd [#allocation6], 4294967264 }
  0xa1   :  { %10762 = dma.done.wait [#allocation9], 37248  }
  0xa2   :  { %10763 = vsyncadd [#allocation9], 4294930048 }
  0xa3   :  { %10764 = dma.done.wait [#allocation12], 32  }
  0xa4   :  { %10765 = vsyncadd [#allocation12], 4294967264 }
  0xa5   :  { %10766 = dma.done.wait [#allocation15], 1040  }
  0xa6   :  { %10767 = vsyncadd [#allocation15], 4294966256  ;;  %v9893_v0 = vld [vmem:[#allocation2 + $0x40] sm:$0xff]   ;;  %v9895_v2 = vld [vmem:[#allocation2 + $0x48] sm:$0xff]   ;;  %v10785_v39 = vmov 0.0   ;;  %vm10787_vm0 = vmmov 0  }
  0xa7   :  { %v9894_v1 = vld [vmem:[#allocation2] sm:$0xff]   ;;  %8572 = vmatprep.subr.bf16.mxu0 %v9893_v0  ;;  %v9896_v3 = vld [vmem:[#allocation2 + $0x8] sm:$0xff]   ;;  %v9897_v4 = vld [vmem:[#allocation2 + $0x50] sm:$0xff]   ;;  %vm967_vm2 = vcmask 1043456   ;;  %vm886_vm4 = vcmask 195584   ;;  %vm7959_vm5 = vcmask 1040384  }
  0xa8   :  { %8573 = vmatpush3.bf16.msra.mxu0 %v9894_v1  ;;  %v9898_v5 = vld [vmem:[#allocation2 + $0x10] sm:$0xff]   ;;  %v9899_v6 = vld [vmem:[#allocation2 + $0x58] sm:$0xff]   ;;  %v9901_v8 = vld [vmem:[#allocation2 + $0x60] sm:$0xff]   ;;  %vm8014_vm6 = vcmask 1041409  }
  0xa9   :  { %8574 = vmatprep.subr.bf16.mxu0 %v9895_v2  ;;  %v9900_v7 = vld [vmem:[#allocation2 + $0x18] sm:$0xff]   ;;  %v9902_v9 = vld [vmem:[#allocation2 + $0x20] sm:$0xff]   ;;  %v9903_v10 = vld [vmem:[#allocation2 + $0x68] sm:$0xff]  }
  0xaa   :  { %v153_v11 = vld [vmem:[%s12563_s0 + $0x8] sm:$0xff]  ;;  %v155_v12 = vld [vmem:[%s12563_s0 + $0x18] sm:$0xff]  ;;  %v9905_v15 = vld [vmem:[#allocation2 + $0x70] sm:$0xff]  }
  0xab   :  { %v197_v13 = vpack.c.bf16 %v155_v12, %v153_v11  ;;  %v9904_v14 = vld [vmem:[#allocation2 + $0x28] sm:$0xff]   ;;  %v9909_v16 = vld [vmem:[#allocation10 + $0x4] ss:$24 sps:$4 sm:$0xff]   ;;  %v9911_v17 = vld [vmem:[#allocation10] ss:$24 sps:$4 sm:$0xff]  }
  0xac   :  { %8575 = vmatpush3.bf16.msra.mxu0 %v9896_v3  ;;  %v9906_v18 = vld [vmem:[#allocation2 + $0x30] sm:$0xff]   ;;  %618 = vmatprep.subr.bf16.mxu1 %v9909_v16  ;;  %v9915_v20 = vld [vmem:[#allocation10 + $0x30] ss:$24 sps:$4 sm:$0xff]   ;;  %v9907_v21 = vld [vmem:[#allocation2 + $0x78] sm:$0xff]   ;;  %v10786_v3 = vmov 0  }
  0xad   :  { %8576 = vmatprep.subr.bf16.mxu0 %v9897_v4  ;;  %371 = vmatprep.mubr.bf16.mxu0 %v197_v13  ;;  %v9913_v19 = vld [vmem:[#allocation10 + $0x34] ss:$24 sps:$4 sm:$0xff]   ;;  %v9908_v22 = vld [vmem:[#allocation2 + $0x38] sm:$0xff]   ;;  %v152_v23 = vld [vmem:[%s12563_s0] sm:$0xff]  ;;  %v396_v4 = vlaneseq }
  0xae   :  { %619 = vmatpush1.bf16.msra.mxu1 %v9911_v17  ;;  %v154_v24 = vld [vmem:[%s12563_s0 + $0x10] sm:$0xff]  ;;  %v9917_v25 = vld [vmem:[#allocation10 + $0x64] ss:$24 sps:$4 sm:$0xff]   ;;  %v157_v26 = vld [vmem:[%s12563_s0 + $0x28] sm:$0xff]  ;;  %650 = vmatprep.mubr.bf16.mxu1 %v10786_v3 }
  0xaf   :  { %620 = vmatprep.subr.bf16.mxu1 %v9913_v19  ;;  %v159_v27 = vld [vmem:[%s12563_s0 + $0x38] sm:$0xff]  ;;  %v161_v28 = vld [vmem:[%s12563_s0 + $0x48] sm:$0xff]  ;;  %v196_v32 = vpack.c.bf16 %v154_v24, %v152_v23  ;;  %v156_v40 = vld [vmem:[%s12563_s0 + $0x20] sm:$0xff] }
  0xb0   :  { %8577 = vmatpush3.bf16.msra.mxu0 %v9898_v5  ;;  %v163_v29 = vld [vmem:[%s12563_s0 + $0x58] sm:$0xff]  ;;  %v9921_v31 = vld [vmem:[#allocation10 + $0x94] ss:$24 sps:$4 sm:$0xff]   ;;  %v9923_v34 = vld [vmem:[#allocation10 + $0x90] ss:$24 sps:$4 sm:$0xff]   ;;  %v201_v35 = vpack.c.bf16 %v161_v28, %v159_v27  ;;  %v8547_v36 = vpack.c.bf16 %v159_v27, %v157_v26  ;;  %v11016_v5 = vshrl.u32 %v396_v4, 7 }
  0xb1   :  { %8578 = vmatprep.subr.bf16.mxu0 %v9899_v6  ;;  %v9919_v30 = vld [vmem:[#allocation10 + $0x60] ss:$24 sps:$4 sm:$0xff]   ;;  %v203_v37 = vpack.c.bf16 %v163_v29, %v163_v29  ;;  %v9925_v38 = vld [vmem:[#allocation10 + $0xc4] ss:$24 sps:$4 sm:$0xff]   ;;  %v9929_v58 = vld [vmem:[#allocation10 + $0xf4] ss:$24 sps:$4 sm:$0xff]  }
  0xb2   :  { %621 = vmatpush1.bf16.msra.mxu1 %v9915_v20  ;;  %v9912_v33 = vld [vmem:[#allocation10 + $0x8] ss:$24 sps:$4 sm:$0xff]   ;;  %v158_v41 = vld [vmem:[%s12563_s0 + $0x30] sm:$0xff]  ;;  %v228_v46 = vunpack.c.h.b16 %v201_v35  ;;  %v9933_v61 = vld [vmem:[#allocation10 + $0x124] ss:$24 sps:$4 sm:$0xff]   ;;  %vm400_vm1 = vcmp.eq.s32.totalorder %v11016_v5, 0 }
  0xb3   :  { %622 = vmatprep.subr.bf16.mxu1 %v9917_v25  ;;  %v160_v42 = vld [vmem:[%s12563_s0 + $0x40] sm:$0xff]  ;;  %v162_v43 = vld [vmem:[%s12563_s0 + $0x50] sm:$0xff]  ;;  %v230_v47 = vunpack.c.l.b16 %v203_v37  ;;  %v8546_v50 = vpack.c.bf16 %v158_v41, %v156_v40 }
  0xb4   :  { %8579 = vmatpush3.bf16.msra.mxu0 %v9900_v7  ;;  %v9916_v44 = vld [vmem:[#allocation10 + $0x38] ss:$24 sps:$4 sm:$0xff]   ;;  %v9920_v48 = vld [vmem:[#allocation10 + $0x68] ss:$24 sps:$4 sm:$0xff]   ;;  %v200_v49 = vpack.c.bf16 %v160_v42, %v158_v41  ;;  %v202_v51 = vpack.c.bf16 %v162_v43, %v162_v43  ;;  %v9937_v0 = vld [vmem:[#allocation10 + $0x154] ss:$24 sps:$4 sm:$0xff]  }
  0xb5   :  { %8580 = vmatprep.subr.bf16.mxu0 %v9901_v8  ;;  %v9927_v45 = vld [vmem:[#allocation10 + $0xc0] ss:$24 sps:$4 sm:$0xff]   ;;  %v236_v52 = vpack.c.b16 %v230_v47, %v228_v46  ;;  %v9931_v59 = vld [vmem:[#allocation10 + $0xf0] ss:$24 sps:$4 sm:$0xff]   ;;  %v403_v6 = vld [vmem:[#allocation7] sm:$0x1] }
  0xb6   :  { %623 = vmatpush1.bf16.msra.mxu1 %v9919_v30  ;;  %v9924_v53 = vld [vmem:[#allocation10 + $0x98] ss:$24 sps:$4 sm:$0xff]   ;;  %v227_v54 = vunpack.c.h.b16 %v200_v49  ;;  %v229_v55 = vunpack.c.l.b16 %v202_v51  ;;  %v9928_v56 = vld [vmem:[#allocation10 + $0xc8] ss:$24 sps:$4 sm:$0xff]   ;;  %v8171_v11 = vld [vmem:[#allocation5] ss:$0 sm:$0xff] }
  0xb7   :  { %624 = vmatprep.subr.bf16.mxu1 %v9921_v31  ;;  %v9932_v60 = vld [vmem:[#allocation10 + $0xf8] ss:$24 sps:$4 sm:$0xff]   ;;  %v9936_v63 = vld [vmem:[#allocation10 + $0x128] ss:$24 sps:$4 sm:$0xff]  }
  0xb8   :  { %8581 = vmatpush3.bf16.msra.mxu0 %v9902_v9  ;;  %v235_v57 = vpack.c.b16 %v229_v55, %v227_v54  ;;  %v9935_v62 = vld [vmem:[#allocation10 + $0x120] ss:$24 sps:$4 sm:$0xff]   ;;  %v9939_v1 = vld [vmem:[#allocation10 + $0x150] ss:$24 sps:$4 sm:$0xff]   ;;  %v11056_v55 = vsub.s32 2, %v11016_v5 }
  0xb9   :  { %8582 = vmatprep.subr.bf16.mxu0 %v9903_v10  ;;  %v9940_v2 = vld [vmem:[#allocation10 + $0x158] ss:$24 sps:$4 sm:$0xff]   ;;  %v404_v7 = vld [vmem:[#allocation8] sm:$0x1]  ;;  %v11019_v10 = vsub.s32 0, %v11016_v5 }
  0xba   :  { %625 = vmatpush1.bf16.msra.mxu1 %v9923_v34  ;;  %v405_v9 = vadd.f32 %v404_v7, %v403_v6  ;;  %v407_v20 = vld [vmem:[#allocation8 + $0x8] sm:$0xff] }
  0xbb   :  { %626 = vmatprep.subr.bf16.mxu1 %v9925_v38 }
  0xbc   :  { %8583 = vmatpush3.bf16.msra.mxu0 %v9904_v14  ;;  %v425_v19 = vrot.slane %v405_v9, %v11019_v10 }
  0xbd   :  { %8584 = vmatprep.subr.bf16.mxu0 %v9905_v15  ;;  %v406_v15 = vld [vmem:[#allocation8] sm:$0xff] }
  0xbe   :  { %627 = vmatpush1.bf16.msra.mxu1 %v9927_v45 }
  0xbf   :  { %628 = vmatprep.subr.bf16.mxu1 %v9929_v58 }
  0xc0   :  { %8585 = vmatpush3.bf16.msra.mxu0 %v9906_v18 }
  0xc1   :  { %8586 = vmatprep.subr.bf16.mxu0 %v9907_v21 }
  0xc2   :  { %629 = vmatpush1.bf16.msra.mxu1 %v9931_v59 }
  0xc3   :  { %630 = vmatprep.subr.bf16.mxu1 %v9933_v61 }
  0xc4   :  { %8587 = vmatpush3.bf16.msra.mxu0 %v9908_v22 }
  0xc5   :  { %8975 = vmatprep.subr.bf16.mxu0 %v10785_v39 }
  0xc6   :  { %631 = vmatpush1.bf16.msra.mxu1 %v9935_v62 }
  0xc7   :  { %372 = vmatmul.mubr.bf16.vlgmr.msra.gmra.mrb[0].mxu0 %v196_v32  ;;  %632 = vmatprep.subr.bf16.mxu1 %v9937_v0 }
  0xc8   :  { %379 = vmatprep.mubr.bf16.mxu0 %v8547_v36  ;;  %8976 = vmatpush3.bf16.msra.mxu0 %v9912_v33  ;;  %v408_v33 = vld [vmem:[#allocation8 + $0x10] sm:$0xff] }
  0xc9   :  { %8977 = vmatprep.subr.bf16.mxu0 %v10785_v39 }
  0xca   :  { %633 = vmatpush1.bf16.msra.mxu1 %v9939_v1 }
  0xcc   :  { %8978 = vmatpush3.bf16.msra.mxu0 %v9916_v44 }
  0xcd   :  { %8979 = vmatprep.subr.bf16.mxu0 %v10785_v39 }
  0xcf   :  { %380 = vmatmul.mubr.bf16.gmra.mrb[4].mxu0 %v8546_v50 }
  0xd0   :  { %387 = vmatprep.mubr.bf16.mxu0 %v236_v52  ;;  %8980 = vmatpush3.bf16.msra.mxu0 %v9920_v48 }
  0xd1   :  { %8981 = vmatprep.subr.bf16.mxu0 %v10785_v39 }
  0xd4   :  { %8982 = vmatpush3.bf16.msra.mxu0 %v9924_v53 }
  0xd5   :  { %8983 = vmatprep.subr.bf16.mxu0 %v10785_v39 }
  0xd7   :  { %388 = vmatmul.mubr.bf16.gmra.mrb[8].mxu0 %v235_v57  ;;  %v11064_v57 = vsub.s32 1, %v11016_v5 }
  0xd8   :  { %8984 = vmatpush3.bf16.msra.mxu0 %v9928_v56  ;;  %8991 = vmatprep.mubr.msk.bf16.mxu0 %vm10787_vm0, %v10785_v39  ;;  %v11061_v56 = vld [vmem:[%s12569_s6] sm:$0xff] }
  0xd9   :  { %8985 = vmatprep.subr.bf16.mxu0 %v10785_v39  ;;  %v11068_v58 = vrot.slane %v11061_v56, %v11019_v10  ;;  %v11072_v59 = vrot.slane %v11061_v56, %v11056_v55  ;;  %v751_v62 = vrot.slane %v11061_v56, %v11064_v57 }
  0xdc   :  { %8986 = vmatpush3.bf16.msra.mxu0 %v9932_v60 }
  0xdd   :  { %8987 = vmatprep.subr.bf16.mxu0 %v10785_v39 }
  0xe0   :  { %8988 = vmatpush3.bf16.msra.mxu0 %v9936_v63 }
  0xe1   :  { %8989 = vmatprep.subr.bf16.mxu0 %v10785_v39 }
  0xe4   :  { %8990 = vmatpush3.bf16.msra.mxu0 %v9940_v2 }
  0xe5   :  { %9063 = vmatprep.subr.bf16.mxu0 %v10785_v39 }
 0x19a   :  { %v8588_v8 = vpop.f32.mrb[0].mxu0 }
 0x19b   :  { %v8589_v12 = vpop.f32.mrb[1].mxu0 }
 0x19c   :  { %v8590_v13 = vadd.f32 %v8589_v12, %v8588_v8  ;;  %v8591_v14 = vpop.f32.mrb[2].mxu0 }
 0x19d   :  { %v8592_v16 = vpop.f32.mrb[3].mxu0 }
 0x19e   :  { %v374_v17 = vadd.f32 %v8590_v13, %v8171_v11  ;;  %v8593_v18 = vadd.f32 %v8592_v16, %v8591_v14 }
 0x1a0   :  { %v409_v21 = vadd.f32 %v406_v15, %v374_v17  ;;  %v377_v22 = vadd.f32 %v8593_v18, %v8171_v11 }
 0x1a2   :  { %v11023_v23 = vadd.f32 %v407_v20, %v377_v22  ;;  %v8594_v24 = vpop.f32.mrb[4].mxu0  ;;  %v11027_v25 = vsel %vm400_vm1, %v425_v19, %v409_v21 }
 0x1a3   :  { %v8595_v26 = vpop.f32.mrb[5].mxu0 }
 0x1a4   :  { %v8596_v27 = vadd.f32 %v8595_v26, %v8594_v24  ;;  %v8597_v28 = vpop.f32.mrb[6].mxu0  ;;  %v470_v29 = vpack.c.bf16 %v11023_v23, %v11027_v25 }
 0x1a5   :  { %v8598_v30 = vpop.f32.mrb[7].mxu0 }
 0x1a6   :  { %v8599_v31 = vadd.f32 %v8598_v30, %v8597_v28  ;;  %651 = vmatmul.mubr.bf16.vlgmr.msra.gmra.mrb[0].mxu1 %v470_v29  ;;  %8992 = vmatmul.mubr.bf16.vlgmr.msra.gmra.mrb[12].mxu0 %v470_v29  ;;  %v382_v32 = vadd.f32 %v8596_v27, %v8171_v11 }
 0x1a7   :  { %660 = vmatprep.mubr.bf16.mxu1 %v10786_v3  ;;  %8995 = vmatprep.mubr.msk.bf16.mxu0 %vm10787_vm0, %v10785_v39 }
 0x1a8   :  { %v385_v34 = vadd.f32 %v8599_v31, %v8171_v11  ;;  %v11034_v37 = vadd.f32 %v408_v33, %v382_v32 }
 0x1aa   :  { %v412_v35 = vadd.f32 %v406_v15, %v385_v34  ;;  %v8600_v36 = vpop.f32.mrb[8].mxu0 }
 0x1ab   :  { %v8601_v38 = vpop.f32.mrb[9].mxu0 }
 0x1ac   :  { %v8602_v40 = vadd.f32 %v8601_v38, %v8600_v36  ;;  %v8603_v41 = vpop.f32.mrb[10].mxu0  ;;  %v11038_v42 = vsel %vm400_vm1, %v425_v19, %v412_v35 }
 0x1ad   :  { %v8604_v43 = vpop.f32.mrb[11].mxu0  ;;  %v8548_v44 = vpack.c.bf16 %v11038_v42, %v11034_v37 }
 0x1ae   :  { %v390_v45 = vadd.f32 %v8602_v40, %v8171_v11  ;;  %v8605_v46 = vadd.f32 %v8604_v43, %v8603_v41 }
 0x1af   :  { %661 = vmatmul.mubr.bf16.gmra.mrb[4].mxu1 %v8548_v44  ;;  %8996 = vmatmul.mubr.bf16.gmra.mrb[16].mxu0 %v8548_v44 }
 0x1b0   :  { %v11042_v47 = vadd.f32 %v407_v20, %v390_v45  ;;  %v393_v48 = vadd.f32 %v8605_v46, %v8171_v11  ;;  %670 = vmatprep.mubr.bf16.mxu1 %v10786_v3  ;;  %8999 = vmatprep.mubr.msk.bf16.mxu0 %vm10787_vm0, %v10785_v39 }
 0x1b2   :  { %v11047_v49 = vadd.f32 %v408_v33, %v393_v48  ;;  %v472_v50 = vpack.c.bf16 %v11042_v47, %v11038_v42 }
 0x1b4   :  { %v473_v51 = vpack.c.bf16 %v11047_v49, %v11047_v49  ;;  %v482_v52 = vunpack.c.h.b16 %v472_v50 }
 0x1b6   :  { %v483_v53 = vunpack.c.l.b16 %v473_v51 }
 0x1b8   :  { %v486_v54 = vpack.c.b16 %v483_v53, %v482_v52 }
 0x1ba   :  { %671 = vmatmul.mubr.bf16.gmra.mrb[8].mxu1 %v486_v54  ;;  %9000 = vmatmul.mubr.bf16.gmra.mrb[20].mxu0 %v486_v54 }
 0x1bb   :  { %9079 = vmatprep.mubr.msk.bf16.mxu0 %vm10787_vm0, %v10785_v39 }
 0x279   :  { %v652_v60 = vpop.f32.mrb[0].mxu1  ;;  %v715_v61 = vpop.f32.mrb[12].mxu0 }
 0x27a   :  { %v654_v63 = vpop.f32.mrb[1].mxu1  ;;  %v8993_v0 = vpop.f32.mrb[13].mxu0  ;;  %v742_v6 = vadd.f32 %v11068_v58, %v652_v60  ;;  %v762_v7 = vadd.f32 %v11072_v59, %v715_v61 }
 0x27b   :  { %v656_v1 = vpop.f32.mrb[2].mxu1  ;;  %v718_v2 = vpop.f32.mrb[14].mxu0  ;;  %v752_v13 = vadd.f32 %v751_v62, %v654_v63 }
 0x27c   :  { %v743_v8 = vadd.f32 %v11068_v58, %v656_v1  ;;  %v763_v9 = vadd.f32 %v11072_v59, %v718_v2  ;;  %v658_v11 = vpop.f32.mrb[3].mxu1  ;;  %v8994_v12 = vpop.f32.mrb[15].mxu0 }
 0x27d   :  { %v753_v14 = vadd.f32 %v751_v62, %v658_v11 }
 0x27e   :  { %v768_v15 = vpack.c.bf16 %v743_v8, %v742_v6  ;;  %v957_v16 = vpack.c.bf16 %v763_v9, %v762_v7  ;;  %v11096_v6 = vand.u32 127, %v396_v4 }
 0x27f   :  { %v772_v17 = vpack.c.bf16 %v753_v14, %v752_v13 }
 0x280   :  { %9007 = vmatprep.mubr.bf16.mxu1 %v768_v15  ;;  %vm435_vm3 = vcmp.lt.s32.totalorder %v11096_v6, 17 }
 0x281   :  { %9003 = vmatprep.subr.bf16.mxu1 %v772_v17 }
 0x282   :  { %v662_v18 = vpop.f32.mrb[4].mxu1  ;;  %v723_v19 = vpop.f32.mrb[16].mxu0  ;;  %9004 = vmatpush3.bf16.xpose.msra.mxu1 %v772_v17 }
 0x283   :  { %v664_v20 = vpop.f32.mrb[5].mxu1  ;;  %v8997_v21 = vpop.f32.mrb[17].mxu0  ;;  %v744_v30 = vadd.f32 %v11068_v58, %v662_v18  ;;  %v764_v0 = vadd.f32 %v11072_v59, %v723_v19 }
 0x284   :  { %v754_v22 = vadd.f32 %v751_v62, %v664_v20  ;;  %v666_v24 = vpop.f32.mrb[6].mxu1  ;;  %v726_v26 = vpop.f32.mrb[18].mxu0 }
 0x285   :  { %v668_v27 = vpop.f32.mrb[7].mxu1  ;;  %v8998_v28 = vpop.f32.mrb[19].mxu0  ;;  %v745_v33 = vadd.f32 %v11068_v58, %v666_v24  ;;  %v765_v34 = vadd.f32 %v11072_v59, %v726_v26  ;;  %v769_v41 = vpack.c.bf16 %v744_v30, %v744_v30  ;;  %v958_v2 = vpack.c.bf16 %v764_v0, %v764_v0 }
 0x286   :  { %v773_v29 = vpack.c.bf16 %v754_v22, %v754_v22  ;;  %v755_v43 = vadd.f32 %v751_v62, %v668_v27 }
 0x288   :  { %9005 = vmatprep.subr.bf16.mxu1 %v773_v29 }
 0x28a   :  { %9006 = vmatpush3.bf16.xpose.msra.mxu1 %v773_v29 }
 0x28d   :  { %v672_v31 = vpop.f32.mrb[8].mxu1  ;;  %v731_v32 = vpop.f32.mrb[20].mxu0 }
 0x28e   :  { %v746_v35 = vadd.f32 %v11068_v58, %v672_v31  ;;  %v766_v36 = vadd.f32 %v11072_v59, %v731_v32  ;;  %v674_v38 = vpop.f32.mrb[9].mxu1  ;;  %v9001_v40 = vpop.f32.mrb[21].mxu0 }
 0x28f   :  { %v756_v44 = vadd.f32 %v751_v62, %v674_v38  ;;  %v676_v45 = vpop.f32.mrb[10].mxu1  ;;  %v734_v46 = vpop.f32.mrb[22].mxu0 }
 0x290   :  { %v770_v48 = vpack.c.bf16 %v746_v35, %v745_v33  ;;  %v11085_v50 = vpack.c.bf16 %v766_v36, %v765_v34  ;;  %v11088_v51 = vadd.f32 %v11072_v59, %v734_v46  ;;  %v678_v52 = vpop.f32.mrb[11].mxu1  ;;  %v9002_v53 = vpop.f32.mrb[23].mxu0  ;;  %v747_v63 = vadd.f32 %v11068_v58, %v676_v45 }
 0x291   :  { %v774_v54 = vpack.c.bf16 %v756_v44, %v755_v43  ;;  %v757_v60 = vadd.f32 %v751_v62, %v678_v52  ;;  %9008 = vmatmul.mubr.bf16.vlgmr.msra.gmra.mrb[12].mxu1 %v769_v41  ;;  %v969_v62 = vsel %vm967_vm2, %v958_v2, 0 }
 0x292   :  { %9015 = vmatprep.mubr.bf16.mxu1 %v770_v48  ;;  %v771_v1 = vpack.c.bf16 %v747_v63, %v747_v63 }
 0x293   :  { %v775_v61 = vpack.c.bf16 %v757_v60, %v757_v60  ;;  %9011 = vmatprep.subr.bf16.mxu1 %v774_v54 }
 0x294   :  { %9012 = vmatpush3.bf16.xpose.msra.mxu1 %v774_v54 }
 0x295   :  { %9013 = vmatprep.subr.bf16.mxu1 %v775_v61 }
 0x29c   :  { %9014 = vmatpush3.bf16.xpose.msra.mxu1 %v775_v61 }
 0x29d   :  { %9019 = vmatprep.subr.bf16.mxu1 %v957_v16 }
 0x2a3   :  { %9016 = vmatmul.mubr.bf16.vlgmr.msra.gmra.mrb[16].mxu1 %v771_v1 }
 0x2a4   :  { %9020 = vmatpush3.bf16.msra.mxu1 %v957_v16 }
 0x2a5   :  { %9859 = vmatprep.subr.msk.bf16.mxu1 %vm967_vm2, %v958_v2 }
 0x2a8   :  { %9022 = vmatpush3.bf16.msra.mxu1 %v969_v62 }
 0x2a9   :  { %9027 = vmatprep.subr.bf16.mxu1 %v11085_v50 }
 0x364   :  { %v9009_v58 = vpop.f32.mrb[12].mxu1 }
 0x365   :  { %v874_v7 = vmul.f32 0.088388346, %v9009_v58  ;;  %v810_v59 = vpop.f32.mrb[13].mxu1 }
 0x366   :  { %v872_v8 = vmul.f32 0.088388346, %v810_v59  ;;  %v9010_v9 = vpop.f32.mrb[14].mxu1 }
 0x367   :  { %v813_v11 = vpop.f32.mrb[15].mxu1  ;;  %v882_v12 = vsel %vm435_vm3, %v874_v7, -1e+30 }
 0x368   :  { %v873_v13 = vmul.f32 0.088388346, %v813_v11  ;;  %v893_v14 = vsel %vm886_vm4, %v882_v12, -inf  ;;  %v880_v15 = vsel %vm435_vm3, %v872_v8, -1e+30 }
 0x369   :  { %894 = vmax.xlane.f32.xlu1 %v893_v14  ;;  %v887_v4 = vsel %vm886_vm4, %v880_v15, -inf }
 0x36a   :  { %888 = vmax.xlane.f32.xlu0 %v887_v4  ;;  %v881_v16 = vsel %vm435_vm3, %v873_v13, -1e+30 }
 0x36b   :  { %v890_v17 = vsel %vm886_vm4, %v881_v16, -inf }
 0x36e   :  { %891 = vmax.xlane.f32.xlu0 %v890_v17 }
 0x376   :  { %v9017_v18 = vpop.f32.mrb[16].mxu1 }
 0x377   :  { %v858_v19 = vpop.f32.mrb[17].mxu1  ;;  %v877_v20 = vmul.f32 0.088388346, %v9017_v18 }
 0x378   :  { %v875_v21 = vmul.f32 0.088388346, %v858_v19  ;;  %v9018_v22 = vpop.f32.mrb[18].mxu1 }
 0x379   :  { %v861_v24 = vpop.f32.mrb[19].mxu1  ;;  %v885_v30 = vsel %vm435_vm3, %v877_v20, -1e+30 }
 0x37a   :  { %v876_v26 = vmul.f32 0.088388346, %v861_v24  ;;  %v883_v27 = vsel %vm435_vm3, %v875_v21, -1e+30  ;;  %v902_v32 = vsel %vm886_vm4, %v885_v30, -inf }
 0x37b   :  { %v896_v28 = vsel %vm886_vm4, %v883_v27, -inf }
 0x37c   :  { %897 = vmax.xlane.f32.xlu1 %v896_v28  ;;  %v884_v29 = vsel %vm435_vm3, %v876_v26, -1e+30  ;;  %v960_v28 = vpack.c.bf16 %v11088_v51, %v11088_v51 }
 0x37d   :  { %v899_v31 = vsel %vm886_vm4, %v884_v29, -inf }
 0x37e   :  { %900 = vmax.xlane.f32.xlu0 %v899_v31 }
 0x380   :  { %903 = vmax.xlane.f32.xlu1 %v902_v32 }
 0x3f6   :  { %v895_v33 = vpop.xlane.xlu1 %894 }
 0x3f7   :  { %v907_v34 = vsub.f32 %v882_v12, %v895_v33  ;;  %v889_v35 = vpop.xlane.xlu0 %888 }
 0x3f8   :  { %v905_v36 = vsub.f32 %v880_v15, %v889_v35 }
 0x3f9   :  { %v915_v38 = vmul.f32 1.442695, %v907_v34 }
 0x3fa   :  { %v911_v40 = vmul.f32 1.442695, %v905_v36 }
 0x3fb   :  { %v892_v41 = vpop.xlane.xlu0 %891 }
 0x3fc   :  { %10254 = vpow2.f32 %v911_v40  ;;  %v906_v43 = vsub.f32 %v881_v16, %v892_v41  ;;  %v9942_v40 = vld [vmem:[#allocation10 + $0x3c] ss:$24 sps:$4 sm:$0xff]   ;;  %v9943_v41 = vld [vmem:[#allocation10 + $0x6c] ss:$24 sps:$4 sm:$0xff]  }
 0x3fd   :  { %10256 = vpow2.f32 %v915_v38  ;;  %v9941_v38 = vld [vmem:[#allocation10 + $0xc] ss:$24 sps:$4 sm:$0xff]  }
 0x3fe   :  { %v913_v44 = vmul.f32 1.442695, %v906_v43  ;;  %v9944_v43 = vld [vmem:[#allocation10 + $0x9c] ss:$24 sps:$4 sm:$0xff]  }
 0x400   :  { %10258 = vpow2.f32 %v913_v44  ;;  %v9945_v44 = vld [vmem:[#allocation10 + $0xcc] ss:$24 sps:$4 sm:$0xff]  }
 0x406   :  { %v10255_v45 = vpop.eup %10254 }
 0x407   :  { %v923_v46 = vsel %vm886_vm4, %v10255_v45, 0.0  ;;  %v10257_v48 = vpop.eup %10256 }
 0x408   :  { %924 = vadd.xlane.f32.xlu0 %v923_v46  ;;  %v929_v63 = vsel %vm886_vm4, %v10257_v48, 0.0  ;;  %v9947_v46 = vld [vmem:[#allocation10 + $0x12c] ss:$24 sps:$4 sm:$0xff]  }
 0x409   :  { %v898_v52 = vpop.xlane.xlu1 %897 }
 0x40a   :  { %v10259_v53 = vpop.eup %10258  ;;  %v908_v54 = vsub.f32 %v883_v27, %v898_v52 }
 0x40b   :  { %v901_v60 = vpop.xlane.xlu0 %900  ;;  %v926_v61 = vsel %vm886_vm4, %v10259_v53, 0.0 }
 0x40c   :  { %v917_v0 = vmul.f32 1.442695, %v908_v54  ;;  %v909_v1 = vsub.f32 %v884_v29, %v901_v60  ;;  %927 = vadd.xlane.f32.xlu1 %v926_v61  ;;  %930 = vadd.xlane.f32.xlu0 %v929_v63 }
 0x40d   :  { %v904_v2 = vpop.xlane.xlu1 %903 }
 0x40e   :  { %10260 = vpow2.f32 %v917_v0  ;;  %v919_v62 = vmul.f32 1.442695, %v909_v1  ;;  %v910_v58 = vsub.f32 %v885_v30, %v904_v2  ;;  %v1026_v30 = vsel %vm967_vm2, %v960_v28, 0 }
 0x410   :  { %10262 = vpow2.f32 %v919_v62  ;;  %v921_v7 = vmul.f32 1.442695, %v910_v58 }
 0x412   :  { %10264 = vpow2.f32 %v921_v7 }
 0x418   :  { %v10261_v59 = vpop.eup %10260 }
 0x419   :  { %v932_v8 = vsel %vm886_vm4, %v10261_v59, 0.0 }
 0x41a   :  { %v10263_v9 = vpop.eup %10262  ;;  %933 = vadd.xlane.f32.xlu1 %v932_v8 }
 0x41b   :  { %v935_v11 = vsel %vm886_vm4, %v10263_v9, 0.0 }
 0x41c   :  { %v10265_v12 = vpop.eup %10264  ;;  %936 = vadd.xlane.f32.xlu0 %v935_v11  ;;  %v11150_v11 = vsub.s32 3, %v11016_v5 }
 0x41d   :  { %v938_v13 = vsel %vm886_vm4, %v10265_v12, 0.0 }
 0x41e   :  { %939 = vadd.xlane.f32.xlu1 %v938_v13 }
 0x495   :  { %v925_v14 = vpop.xlane.xlu0 %924 }
 0x496   :  { %10266 = vrcp.f32 %v925_v14 }
 0x499   :  { %v928_v15 = vpop.xlane.xlu1 %927  ;;  %v931_v4 = vpop.xlane.xlu0 %930 }
 0x49a   :  { %10268 = vrcp.f32 %v928_v15 }
 0x49b   :  { %10270 = vrcp.f32 %v931_v4 }
 0x4a0   :  { %v10267_v16 = vpop.eup %10266 }
 0x4a1   :  { %v947_v19 = vmul.f32 %v10267_v16, %v10255_v45  ;;  %v9946_v45 = vld [vmem:[#allocation10 + $0xfc] ss:$24 sps:$4 sm:$0xff]  }
 0x4a4   :  { %v10269_v17 = vpop.eup %10268 }
 0x4a5   :  { %v10271_v18 = vpop.eup %10270  ;;  %v948_v20 = vmul.f32 %v10269_v17, %v10259_v53 }
 0x4a6   :  { %v949_v21 = vmul.f32 %v10271_v18, %v10257_v48  ;;  %v9948_v48 = vld [vmem:[#allocation10 + $0x15c] ss:$24 sps:$4 sm:$0xff]  }
 0x4a7   :  { %v934_v22 = vpop.xlane.xlu1 %933  ;;  %v953_v24 = vpack.c.bf16 %v948_v20, %v947_v19 }
 0x4a8   :  { %10272 = vrcp.f32 %v934_v22  ;;  %v954_v26 = vpack.c.bf16 %v949_v21, %v949_v21 }
 0x4a9   :  { %9023 = vmatprep.mubr.msk.bf16.mxu1 %vm886_vm4, %v953_v24  ;;  %v937_v27 = vpop.xlane.xlu0 %936 }
 0x4aa   :  { %10274 = vrcp.f32 %v937_v27  ;;  %9024 = vmatmul.mubr.msk.bf16.vlgmr.msra.gmra.mrb[20].mxu1 %vm886_vm4, %v954_v26 }
 0x4ab   :  { %9028 = vmatpush3.bf16.msra.mxu1 %v11085_v50  ;;  %v940_v29 = vpop.xlane.xlu1 %939 }
 0x4ac   :  { %10276 = vrcp.f32 %v940_v29  ;;  %9860 = vmatprep.subr.msk.bf16.mxu1 %vm967_vm2, %v960_v28 }
 0x4af   :  { %9030 = vmatpush3.bf16.msra.mxu1 %v1026_v30 }
 0x4b0   :  { %9035 = vmatprep.subr.bf16.mxu1 %v10785_v39 }
 0x4b2   :  { %v10273_v31 = vpop.eup %10272 }
 0x4b3   :  { %v950_v33 = vmul.f32 %v10273_v31, %v10261_v59 }
 0x4b4   :  { %v10275_v32 = vpop.eup %10274 }
 0x4b5   :  { %v951_v34 = vmul.f32 %v10275_v32, %v10263_v9 }
 0x4b6   :  { %v10277_v35 = vpop.eup %10276 }
 0x4b7   :  { %v955_v51 = vpack.c.bf16 %v951_v34, %v950_v33  ;;  %v952_v36 = vmul.f32 %v10277_v35, %v10265_v12  ;;  %v1099_v12 = vrot.slane %v11061_v56, %v11150_v11 }
 0x4b9   :  { %9031 = vmatprep.mubr.msk.bf16.mxu1 %vm886_vm4, %v955_v51  ;;  %v956_v50 = vpack.c.bf16 %v952_v36, %v952_v36  ;;  %v9949_v51 = vld [vmem:[#allocation10 + $0x10] ss:$24 sps:$4 sm:$0xff]   ;;  %v9950_v36 = vld [vmem:[#allocation10 + $0x40] ss:$24 sps:$4 sm:$0xff]  }
 0x4ba   :  { %9064 = vmatpush3.bf16.msra.mxu0 %v9949_v51 }
 0x4bb   :  { %9032 = vmatmul.mubr.msk.bf16.vlgmr.msra.gmra.mrb[24].mxu1 %vm886_vm4, %v956_v50  ;;  %9065 = vmatprep.subr.bf16.mxu0 %v10785_v39 }
 0x4bc   :  { %9036 = vmatpush3.bf16.msra.mxu1 %v9941_v38  ;;  %9051 = vmatprep.mubr.msk.bf16.mxu1 %vm10787_vm0, %v10785_v39 }
 0x4bd   :  { %9037 = vmatprep.subr.bf16.mxu1 %v10785_v39 }
 0x4be   :  { %9066 = vmatpush3.bf16.msra.mxu0 %v9950_v36 }
 0x4bf   :  { %9067 = vmatprep.subr.bf16.mxu0 %v10785_v39 }
 0x4c0   :  { %9038 = vmatpush3.bf16.msra.mxu1 %v9942_v40 }
 0x4c1   :  { %9039 = vmatprep.subr.bf16.mxu1 %v10785_v39 }
 0x4c4   :  { %9040 = vmatpush3.bf16.msra.mxu1 %v9943_v41 }
 0x4c5   :  { %9041 = vmatprep.subr.bf16.mxu1 %v10785_v39 }
 0x4c8   :  { %9042 = vmatpush3.bf16.msra.mxu1 %v9944_v43 }
 0x4c9   :  { %9043 = vmatprep.subr.bf16.mxu1 %v10785_v39 }
 0x4cc   :  { %9044 = vmatpush3.bf16.msra.mxu1 %v9945_v44 }
 0x4cd   :  { %9045 = vmatprep.subr.bf16.mxu1 %v10785_v39 }
 0x4d0   :  { %9046 = vmatpush3.bf16.msra.mxu1 %v9946_v45 }
 0x4d1   :  { %9047 = vmatprep.subr.bf16.mxu1 %v10785_v39 }
 0x4d4   :  { %9048 = vmatpush3.bf16.msra.mxu1 %v9947_v46 }
 0x4d5   :  { %9049 = vmatprep.subr.bf16.mxu1 %v10785_v39 }
 0x4d8   :  { %9050 = vmatpush3.bf16.msra.mxu1 %v9948_v48 }
 0x4d9   :  { %9091 = vmatprep.subr.bf16.mxu1 %v10785_v39 }
 0x57d   :  { %v9025_v52 = vpop.f32.mrb[20].mxu1 }
 0x57e   :  { %v1005_v53 = vpop.f32.mrb[21].mxu1 }
 0x57f   :  { %v9026_v54 = vpop.f32.mrb[22].mxu1 }
 0x580   :  { %v1008_v60 = vpop.f32.mrb[23].mxu1 }
 0x581   :  { %v1092_v61 = vpack.c.bf16 %v1008_v60, %v1005_v53  ;;  %v9951_v60 = vld [vmem:[#allocation10 + $0x70] ss:$24 sps:$4 sm:$0xff]  }
 0x582   :  { %9068 = vmatpush3.bf16.msra.mxu0 %v9951_v60 }
 0x583   :  { %9052 = vmatmul.mubr.bf16.vlgmr.msra.gmra.mrb[28].mxu1 %v1092_v61  ;;  %9069 = vmatprep.subr.bf16.mxu0 %v10785_v39 }
 0x584   :  { %9055 = vmatprep.mubr.msk.bf16.mxu1 %vm10787_vm0, %v10785_v39 }
 0x58e   :  { %v9033_v63 = vpop.f32.mrb[24].mxu1 }
 0x58f   :  { %v1062_v0 = vpop.f32.mrb[25].mxu1  ;;  %v1095_v1 = vpack.c.bf16 %v9033_v63, %v9033_v63 }
 0x590   :  { %v8549_v2 = vpack.c.bf16 %v1062_v0, %v9025_v52  ;;  %v9034_v62 = vpop.f32.mrb[26].mxu1 }
 0x591   :  { %v1065_v58 = vpop.f32.mrb[27].mxu1  ;;  %v1109_v59 = vunpack.c.l.b16 %v1095_v1  ;;  %v9952_v62 = vld [vmem:[#allocation10 + $0xa0] ss:$24 sps:$4 sm:$0xff]  }
 0x592   :  { %v1094_v7 = vpack.c.bf16 %v1065_v58, %v1062_v0  ;;  %9056 = vmatmul.mubr.bf16.gmra.mrb[32].mxu1 %v8549_v2  ;;  %9070 = vmatpush3.bf16.msra.mxu0 %v9952_v62 }
 0x593   :  { %9059 = vmatprep.mubr.msk.bf16.mxu1 %vm10787_vm0, %v10785_v39  ;;  %9071 = vmatprep.subr.bf16.mxu0 %v10785_v39 }
 0x594   :  { %v1108_v8 = vunpack.c.h.b16 %v1094_v7 }
 0x596   :  { %v1112_v9 = vpack.c.b16 %v1109_v59, %v1108_v8  ;;  %v9953_v8 = vld [vmem:[#allocation10 + $0xd0] ss:$24 sps:$4 sm:$0xff]  }
 0x597   :  { %9072 = vmatpush3.bf16.msra.mxu0 %v9953_v8 }
 0x598   :  { %9073 = vmatprep.subr.bf16.mxu0 %v10785_v39 }
 0x59a   :  { %9060 = vmatmul.mubr.bf16.gmra.mrb[36].mxu1 %v1112_v9  ;;  %v9954_v9 = vld [vmem:[#allocation10 + $0x100] ss:$24 sps:$4 sm:$0xff]  }
 0x59b   :  { %9107 = vmatprep.mubr.msk.bf16.mxu1 %vm10787_vm0, %v10785_v39  ;;  %9074 = vmatpush3.bf16.msra.mxu0 %v9954_v9 }
 0x59c   :  { %9075 = vmatprep.subr.bf16.mxu0 %v10785_v39 }
 0x656   :  { %v1198_v13 = vpop.f32.mrb[28].mxu1 }
 0x657   :  { %v1199_v14 = vadd.f32 %v1198_v13, %v1099_v12  ;;  %v9053_v15 = vpop.f32.mrb[29].mxu1  ;;  %v9956_v13 = vld [vmem:[#allocation10 + $0x160] ss:$24 sps:$4 sm:$0xff]  }
 0x658   :  { %v1201_v4 = vpop.f32.mrb[30].mxu1  ;;  %v9958_v15 = vld [vmem:[#allocation10 + $0x44] ss:$24 sps:$4 sm:$0xff]  }
 0x659   :  { %v1202_v16 = vadd.f32 %v1201_v4, %v1099_v12  ;;  %v9054_v17 = vpop.f32.mrb[31].mxu1  ;;  %v1221_v18 = vadd.f32 %v1199_v14, %v11027_v25  ;;  %v9957_v14 = vld [vmem:[#allocation10 + $0x14] ss:$24 sps:$4 sm:$0xff]  }
 0x65a   :  { %9092 = vmatpush3.bf16.msra.mxu1 %v9957_v14  ;;  %v9959_v4 = vld [vmem:[#allocation10 + $0x74] ss:$24 sps:$4 sm:$0xff]  }
 0x65b   :  { %1227 = vadd.xlane.f32.xlu0 %v1221_v18  ;;  %v1222_v19 = vadd.f32 %v1202_v16, %v11023_v23  ;;  %9093 = vmatprep.subr.bf16.mxu1 %v10785_v39  ;;  %v9960_v16 = vld [vmem:[#allocation10 + $0xa4] ss:$24 sps:$4 sm:$0xff]   ;;  %v9961_v17 = vld [vmem:[#allocation10 + $0xd4] ss:$24 sps:$4 sm:$0xff]  }
 0x65d   :  { %1229 = vadd.xlane.f32.xlu1 %v1222_v19 }
 0x65e   :  { %9094 = vmatpush3.bf16.msra.mxu1 %v9958_v15 }
 0x65f   :  { %9095 = vmatprep.subr.bf16.mxu1 %v10785_v39 }
 0x662   :  { %9096 = vmatpush3.bf16.msra.mxu1 %v9959_v4 }
 0x663   :  { %9097 = vmatprep.subr.bf16.mxu1 %v10785_v39 }
 0x665   :  { %v1206_v20 = vpop.f32.mrb[32].mxu1 }
 0x666   :  { %v1207_v21 = vadd.f32 %v1206_v20, %v1099_v12  ;;  %v9057_v22 = vpop.f32.mrb[33].mxu1  ;;  %9098 = vmatpush3.bf16.msra.mxu1 %v9960_v16 }
 0x667   :  { %v1209_v24 = vpop.f32.mrb[34].mxu1  ;;  %9099 = vmatprep.subr.bf16.mxu1 %v10785_v39 }
 0x668   :  { %v1210_v26 = vadd.f32 %v1209_v24, %v1099_v12  ;;  %v9058_v27 = vpop.f32.mrb[35].mxu1  ;;  %v1223_v28 = vadd.f32 %v1207_v21, %v11034_v37 }
 0x669   :  { %v11198_v27 = vsub.s32 6, %v11016_v5 }
 0x66a   :  { %1231 = vadd.xlane.f32.xlu0 %v1223_v28  ;;  %v1224_v29 = vadd.f32 %v1210_v26, %v11038_v42  ;;  %9100 = vmatpush3.bf16.msra.mxu1 %v9961_v17 }
 0x66b   :  { %9101 = vmatprep.subr.bf16.mxu1 %v10785_v39 }
 0x66c   :  { %1233 = vadd.xlane.f32.xlu1 %v1224_v29 }
 0x66d   :  { %v1214_v30 = vpop.f32.mrb[36].mxu1 }
 0x66e   :  { %v1215_v31 = vadd.f32 %v1214_v30, %v1099_v12  ;;  %v9061_v32 = vpop.f32.mrb[37].mxu1 }
 0x66f   :  { %v1217_v25 = vpop.f32.mrb[38].mxu1 }
 0x670   :  { %v1218_v33 = vadd.f32 %v1217_v25, %v1099_v12  ;;  %v9062_v34 = vpop.f32.mrb[39].mxu1  ;;  %v1225_v23 = vadd.f32 %v1215_v31, %v11042_v47  ;;  %v9955_v12 = vld [vmem:[#allocation10 + $0x130] ss:$24 sps:$4 sm:$0xff]  }
 0x671   :  { %9076 = vmatpush3.bf16.msra.mxu0 %v9955_v12 }
 0x672   :  { %1235 = vadd.xlane.f32.xlu0 %v1225_v23  ;;  %v1226_v35 = vadd.f32 %v1218_v33, %v11047_v49  ;;  %9077 = vmatprep.subr.bf16.mxu0 %v10785_v39 }
 0x674   :  { %1237 = vadd.xlane.f32.xlu1 %v1226_v35 }
 0x675   :  { %9078 = vmatpush3.bf16.msra.mxu0 %v9956_v13 }
 0x6e8   :  { %v1228_v37 = vpop.xlane.xlu0 %1227 }
 0x6e9   :  { %v1240_v42 = vmul.f32 0.0078125, %v1228_v37 }
 0x6ea   :  { %v1230_v38 = vpop.xlane.xlu1 %1229 }
 0x6eb   :  { %v1241_v50 = vmul.f32 0.0078125, %v1230_v38  ;;  %v11162_v40 = vsub.f32 %v1221_v18, %v1240_v42  ;;  %v9962_v18 = vld [vmem:[#allocation10 + $0x104] ss:$24 sps:$4 sm:$0xff]  }
 0x6ec   :  { %9102 = vmatpush3.bf16.msra.mxu1 %v9962_v18  ;;  %v9964_v18 = vld [vmem:[#allocation10 + $0x164] ss:$24 sps:$4 sm:$0xff]  }
 0x6ed   :  { %v1252_v47 = vmul.f32 %v11162_v40, %v11162_v40  ;;  %v11166_v41 = vsub.f32 %v1222_v19, %v1241_v50  ;;  %9103 = vmatprep.subr.bf16.mxu1 %v10785_v39 }
 0x6ef   :  { %1258 = vadd.xlane.f32.xlu0 %v1252_v47  ;;  %v1253_v49 = vmul.f32 %v11166_v41, %v11166_v41 }
 0x6f1   :  { %1260 = vadd.xlane.f32.xlu1 %v1253_v49 }
 0x6f7   :  { %v1232_v43 = vpop.xlane.xlu0 %1231 }
 0x6f8   :  { %v1242_v44 = vmul.f32 0.0078125, %v1232_v43 }
 0x6f9   :  { %v1234_v45 = vpop.xlane.xlu1 %1233 }
 0x6fa   :  { %v1243_v46 = vmul.f32 0.0078125, %v1234_v45  ;;  %v11170_v48 = vsub.f32 %v1223_v28, %v1242_v44  ;;  %v11201_v28 = vsub.s32 7, %v11016_v5 }
 0x6fc   :  { %v1254_v52 = vmul.f32 %v11170_v48, %v11170_v48  ;;  %v11174_v53 = vsub.f32 %v1224_v29, %v1243_v46  ;;  %v1297_v29 = vrot.slane %v11061_v56, %v11198_v27 }
 0x6fe   :  { %1262 = vadd.xlane.f32.xlu0 %v1254_v52  ;;  %v1255_v54 = vmul.f32 %v11174_v53, %v11174_v53 }
 0x6ff   :  { %v1236_v61 = vpop.xlane.xlu0 %1235 }
 0x700   :  { %v1244_v63 = vmul.f32 0.0078125, %v1236_v61  ;;  %1264 = vadd.xlane.f32.xlu1 %v1255_v54 }
 0x701   :  { %v1238_v0 = vpop.xlane.xlu1 %1237 }
 0x702   :  { %v1245_v1 = vmul.f32 0.0078125, %v1238_v0  ;;  %v11179_v2 = vsub.f32 %v1225_v23, %v1244_v63  ;;  %v1307_v23 = vrot.slane %v11061_v56, %v11201_v28 }
 0x704   :  { %v1256_v58 = vmul.f32 %v11179_v2, %v11179_v2  ;;  %v11183_v7 = vsub.f32 %v1226_v35, %v1245_v1 }
 0x706   :  { %1266 = vadd.xlane.f32.xlu0 %v1256_v58  ;;  %v1257_v59 = vmul.f32 %v11183_v7, %v11183_v7 }
 0x708   :  { %1268 = vadd.xlane.f32.xlu1 %v1257_v59 }
 0x77c   :  { %v1259_v19 = vpop.xlane.xlu0 %1258 }
 0x77d   :  { %v1270_v20 = vmul.f32 0.0078125, %v1259_v19  ;;  %v11241_v19 = vsub.s32 4, %v11016_v5 }
 0x77e   :  { %v1261_v21 = vpop.xlane.xlu1 %1260 }
 0x77f   :  { %v1276_v22 = vadd.f32 1e-05, %v1270_v20  ;;  %v1271_v24 = vmul.f32 0.0078125, %v1261_v21  ;;  %v1337_v20 = vrot.slane %v11061_v56, %v11241_v19 }
 0x781   :  { %10278 = vrsqrt.f32 %v1276_v22  ;;  %v1277_v26 = vadd.f32 1e-05, %v1271_v24 }
 0x783   :  { %10280 = vrsqrt.f32 %v1277_v26 }
 0x78b   :  { %v10279_v30 = vpop.eup %10278  ;;  %v1263_v31 = vpop.xlane.xlu0 %1262 }
 0x78c   :  { %v1288_v32 = vmul.f32 %v10279_v30, %v11162_v40  ;;  %v1272_v25 = vmul.f32 0.0078125, %v1263_v31 }
 0x78d   :  { %v10281_v33 = vpop.eup %10280  ;;  %v1265_v34 = vpop.xlane.xlu1 %1264 }
 0x78e   :  { %v1298_v35 = vmul.f32 %v1297_v29, %v1288_v32  ;;  %v1289_v51 = vmul.f32 %v10281_v33, %v11166_v41  ;;  %v1278_v36 = vadd.f32 1e-05, %v1272_v25  ;;  %v1273_v37 = vmul.f32 0.0078125, %v1265_v34 }
 0x790   :  { %v1299_v42 = vmul.f32 %v1297_v29, %v1289_v51  ;;  %10282 = vrsqrt.f32 %v1278_v36  ;;  %v1279_v38 = vadd.f32 1e-05, %v1273_v37  ;;  %v11209_v50 = vadd.f32 %v1307_v23, %v1298_v35 }
 0x792   :  { %10284 = vrsqrt.f32 %v1279_v38  ;;  %v11211_v47 = vadd.f32 %v1307_v23, %v1299_v42 }
 0x793   :  { %v1267_v40 = vpop.xlane.xlu0 %1266 }
 0x794   :  { %v1274_v49 = vmul.f32 0.0078125, %v1267_v40  ;;  %v1330_v43 = vpack.c.bf16 %v11211_v47, %v11209_v50 }
 0x795   :  { %v1269_v44 = vpop.xlane.xlu1 %1268 }
 0x796   :  { %v1280_v45 = vadd.f32 1e-05, %v1274_v49  ;;  %v1275_v46 = vmul.f32 0.0078125, %v1269_v44  ;;  %9080 = vmatmul.mubr.bf16.vlgmr.msra.gmra.mrb[24].mxu0 %v1330_v43 }
 0x797   :  { %9083 = vmatprep.mubr.msk.bf16.mxu0 %vm10787_vm0, %v10785_v39 }
 0x798   :  { %10286 = vrsqrt.f32 %v1280_v45  ;;  %v1281_v41 = vadd.f32 1e-05, %v1275_v46 }
 0x79a   :  { %v10283_v52 = vpop.eup %10282  ;;  %10288 = vrsqrt.f32 %v1281_v41 }
 0x79b   :  { %v1290_v54 = vmul.f32 %v10283_v52, %v11170_v48 }
 0x79c   :  { %v10285_v60 = vpop.eup %10284 }
 0x79d   :  { %v1291_v61 = vmul.f32 %v10285_v60, %v11174_v53  ;;  %v1300_v63 = vmul.f32 %v1297_v29, %v1290_v54 }
 0x79f   :  { %v1301_v0 = vmul.f32 %v1297_v29, %v1291_v61  ;;  %v11219_v1 = vadd.f32 %v1307_v23, %v1300_v63 }
 0x7a1   :  { %v11221_v62 = vadd.f32 %v1307_v23, %v1301_v0 }
 0x7a2   :  { %v10287_v58 = vpop.eup %10286 }
 0x7a3   :  { %v8550_v59 = vpack.c.bf16 %v11221_v62, %v11219_v1  ;;  %v1292_v8 = vmul.f32 %v10287_v58, %v11179_v2  ;;  %v11252_v58 = vsub.s32 5, %v11016_v5 }
 0x7a4   :  { %v10289_v9 = vpop.eup %10288 }
 0x7a5   :  { %9084 = vmatmul.mubr.bf16.gmra.mrb[28].mxu0 %v8550_v59  ;;  %v1293_v12 = vmul.f32 %v10289_v9, %v11183_v7  ;;  %v1302_v48 = vmul.f32 %v1297_v29, %v1292_v8  ;;  %v9963_v7 = vld [vmem:[#allocation10 + $0x134] ss:$24 sps:$4 sm:$0xff]   ;;  %v1488_v59 = vrot.slane %v11061_v56, %v11252_v58 }
 0x7a6   :  { %9087 = vmatprep.mubr.msk.bf16.mxu0 %vm10787_vm0, %v10785_v39  ;;  %9104 = vmatpush3.bf16.msra.mxu1 %v9963_v7 }
 0x7a7   :  { %v1303_v53 = vmul.f32 %v1297_v29, %v1293_v12  ;;  %v11229_v13 = vadd.f32 %v1307_v23, %v1302_v48  ;;  %9105 = vmatprep.subr.bf16.mxu1 %v10785_v39 }
 0x7a9   :  { %v11231_v14 = vadd.f32 %v1307_v23, %v1303_v53  ;;  %v1332_v15 = vpack.c.bf16 %v11229_v13, %v11221_v62 }
 0x7aa   :  { %9106 = vmatpush3.bf16.msra.mxu1 %v9964_v18 }
 0x7ab   :  { %v1333_v4 = vpack.c.bf16 %v11231_v14, %v11231_v14  ;;  %v1346_v2 = vunpack.c.h.b16 %v1332_v15  ;;  %9119 = vmatprep.subr.bf16.mxu1 %v10785_v39 }
 0x7ad   :  { %v1347_v16 = vunpack.c.l.b16 %v1333_v4 }
 0x7af   :  { %v1350_v17 = vpack.c.b16 %v1347_v16, %v1346_v2 }
 0x7b1   :  { %9088 = vmatmul.mubr.bf16.gmra.mrb[32].mxu0 %v1350_v17 }
 0x7b2   :  { %1918 = vmatprep.mubr.bf16.mxu0 %v10786_v3 }
 0x869   :  { %v1436_v21 = vpop.f32.mrb[24].mxu0 }
 0x86a   :  { %v1437_v22 = vadd.f32 %v1436_v21, %v1337_v20  ;;  %v9081_v24 = vpop.f32.mrb[25].mxu0 }
 0x86b   :  { %v1439_v26 = vpop.f32.mrb[26].mxu0 }
 0x86c   :  { %v1440_v29 = vadd.f32 %v1439_v26, %v1337_v20  ;;  %v9082_v30 = vpop.f32.mrb[27].mxu0  ;;  %v1459_v31 = vmax.f32 %v1437_v22, 0.0 }
 0x86e   :  { %v1460_v32 = vmax.f32 %v1440_v29, 0.0 }
 0x870   :  { %v1481_v25 = vpack.c.bf16 %v1460_v32, %v1459_v31 }
 0x872   :  { %9108 = vmatmul.mubr.bf16.vlgmr.msra.gmra.mrb[40].mxu1 %v1481_v25  ;;  %v9967_v25 = vld [vmem:[#allocation10 + $0x184] ss:$24 sps:$4 sm:$0xff]  }
 0x873   :  { %9111 = vmatprep.mubr.msk.bf16.mxu1 %vm10787_vm0, %v10785_v39  ;;  %1886 = vmatprep.subr.bf16.mxu0 %v9967_v25 }
 0x878   :  { %v1444_v33 = vpop.f32.mrb[28].mxu0 }
 0x879   :  { %v1445_v34 = vadd.f32 %v1444_v33, %v1337_v20  ;;  %v9085_v23 = vpop.f32.mrb[29].mxu0  ;;  %v9971_v33 = vld [vmem:[#allocation10 + $0x1b4] ss:$24 sps:$4 sm:$0xff]  }
 0x87a   :  { %v1447_v35 = vpop.f32.mrb[30].mxu0  ;;  %v9969_v23 = vld [vmem:[#allocation10 + $0x1b0] ss:$24 sps:$4 sm:$0xff]  }
 0x87b   :  { %v1448_v51 = vadd.f32 %v1447_v35, %v1337_v20  ;;  %v9086_v36 = vpop.f32.mrb[31].mxu0  ;;  %v1461_v37 = vmax.f32 %v1445_v34, 0.0  ;;  %v9972_v34 = vld [vmem:[#allocation10 + $0x1b8] ss:$24 sps:$4 sm:$0xff]  }
 0x87d   :  { %v1462_v42 = vmax.f32 %v1448_v51, 0.0 }
 0x87f   :  { %v8551_v38 = vpack.c.bf16 %v1462_v42, %v1461_v37 }
 0x881   :  { %9112 = vmatmul.mubr.bf16.gmra.mrb[44].mxu1 %v8551_v38 }
 0x882   :  { %9115 = vmatprep.mubr.msk.bf16.mxu1 %vm10787_vm0, %v10785_v39 }
 0x884   :  { %v1452_v40 = vpop.f32.mrb[32].mxu0 }
 0x885   :  { %v1453_v49 = vadd.f32 %v1452_v40, %v1337_v20  ;;  %v9089_v43 = vpop.f32.mrb[33].mxu0 }
 0x886   :  { %v1455_v44 = vpop.f32.mrb[34].mxu0 }
 0x887   :  { %v1463_v45 = vmax.f32 %v1453_v49, 0.0  ;;  %v1456_v46 = vadd.f32 %v1455_v44, %v1337_v20  ;;  %v9090_v41 = vpop.f32.mrb[35].mxu0 }
 0x889   :  { %v1483_v52 = vpack.c.bf16 %v1463_v45, %v1462_v42  ;;  %v1464_v54 = vmax.f32 %v1456_v46, 0.0 }
 0x88b   :  { %v1484_v60 = vpack.c.bf16 %v1464_v54, %v1464_v54  ;;  %v1497_v61 = vunpack.c.h.b16 %v1483_v52  ;;  %v9975_v52 = vld [vmem:[#allocation10 + $0x1e4] ss:$24 sps:$4 sm:$0xff]  }
 0x88d   :  { %v1498_v63 = vunpack.c.l.b16 %v1484_v60  ;;  %v9973_v60 = vld [vmem:[#allocation10 + $0x1e0] ss:$24 sps:$4 sm:$0xff]  }
 0x88f   :  { %v1501_v0 = vpack.c.b16 %v1498_v63, %v1497_v61  ;;  %v9976_v61 = vld [vmem:[#allocation10 + $0x1e8] ss:$24 sps:$4 sm:$0xff]   ;;  %v9979_v63 = vld [vmem:[#allocation10 + $0x214] ss:$24 sps:$4 sm:$0xff]  }
 0x891   :  { %9116 = vmatmul.mubr.bf16.gmra.mrb[48].mxu1 %v1501_v0  ;;  %v9977_v0 = vld [vmem:[#allocation10 + $0x210] ss:$24 sps:$4 sm:$0xff]  }
 0x892   :  { %9135 = vmatprep.mubr.msk.bf16.mxu1 %vm10787_vm0, %v10785_v39 }
 0x945   :  { %v1587_v8 = vpop.f32.mrb[40].mxu1 }
 0x946   :  { %v1588_v9 = vadd.f32 %v1587_v8, %v1488_v59  ;;  %v9109_v12 = vpop.f32.mrb[41].mxu1  ;;  %v9983_v8 = vld [vmem:[#allocation10 + $0x244] ss:$24 sps:$4 sm:$0xff]  }
 0x947   :  { %v1590_v48 = vpop.f32.mrb[42].mxu1  ;;  %v9984_v12 = vld [vmem:[#allocation10 + $0x248] ss:$24 sps:$4 sm:$0xff]  }
 0x948   :  { %v1591_v53 = vadd.f32 %v1590_v48, %v1488_v59  ;;  %v9110_v15 = vpop.f32.mrb[43].mxu1  ;;  %v1610_v4 = vadd.f32 %v1588_v9, %v11209_v50  ;;  %v9981_v9 = vld [vmem:[#allocation10 + $0x240] ss:$24 sps:$4 sm:$0xff]  }
 0x94a   :  { %1616 = vadd.xlane.f32.xlu0 %v1610_v4  ;;  %v1611_v2 = vadd.f32 %v1591_v53, %v11211_v47 }
 0x94c   :  { %1618 = vadd.xlane.f32.xlu1 %v1611_v2 }
 0x954   :  { %v1595_v16 = vpop.f32.mrb[44].mxu1 }
 0x955   :  { %v1596_v17 = vadd.f32 %v1595_v16, %v1488_v59  ;;  %v9113_v7 = vpop.f32.mrb[45].mxu1 }
 0x956   :  { %v1598_v18 = vpop.f32.mrb[46].mxu1  ;;  %v9988_v7 = vld [vmem:[#allocation10 + $0x278] ss:$24 sps:$4 sm:$0xff]  }
 0x957   :  { %v1599_v20 = vadd.f32 %v1598_v18, %v1488_v59  ;;  %v9114_v21 = vpop.f32.mrb[47].mxu1  ;;  %v1612_v56 = vadd.f32 %v1596_v17, %v11219_v1  ;;  %v9965_v1 = vld [vmem:[#allocation10 + $0x180] ss:$24 sps:$4 sm:$0xff]   ;;  %v9985_v17 = vld [vmem:[#allocation10 + $0x270] ss:$24 sps:$4 sm:$0xff]  }
 0x958   :  { %1887 = vmatpush1.bf16.msra.mxu0 %v9965_v1  ;;  %v9991_v21 = vld [vmem:[#allocation10 + $0x2a4] ss:$24 sps:$4 sm:$0xff]  }
 0x959   :  { %1620 = vadd.xlane.f32.xlu0 %v1612_v56  ;;  %v1613_v22 = vadd.f32 %v1599_v20, %v11221_v62  ;;  %v9968_v62 = vld [vmem:[#allocation10 + $0x188] ss:$24 sps:$4 sm:$0xff]   ;;  %1888 = vmatprep.subr.bf16.mxu0 %v9971_v33 }
 0x95a   :  { %9120 = vmatpush3.bf16.msra.mxu1 %v9968_v62  ;;  %v437_v62 = vld [vmem:[%s12569_s6 + $0x8] sm:$0x3] }
 0x95b   :  { %1622 = vadd.xlane.f32.xlu1 %v1613_v22  ;;  %9121 = vmatprep.subr.bf16.mxu1 %v10785_v39  ;;  %v1685_v33 = vrot.slane %v437_v62, %v11019_v10 }
 0x95c   :  { %1889 = vmatpush1.bf16.msra.mxu0 %v9969_v23 }
 0x95d   :  { %1890 = vmatprep.subr.bf16.mxu0 %v9975_v52 }
 0x95e   :  { %9122 = vmatpush3.bf16.msra.mxu1 %v9972_v34 }
 0x95f   :  { %9123 = vmatprep.subr.bf16.mxu1 %v10785_v39 }
 0x960   :  { %1891 = vmatpush1.bf16.msra.mxu0 %v9973_v60 }
 0x961   :  { %1892 = vmatprep.subr.bf16.mxu0 %v9979_v63 }
 0x962   :  { %9124 = vmatpush3.bf16.msra.mxu1 %v9976_v61 }
 0x963   :  { %9125 = vmatprep.subr.bf16.mxu1 %v10785_v39 }
 0x964   :  { %v1603_v24 = vpop.f32.mrb[48].mxu1  ;;  %1893 = vmatpush1.bf16.msra.mxu0 %v9977_v0 }
 0x965   :  { %v1604_v26 = vadd.f32 %v1603_v24, %v1488_v59  ;;  %v9117_v29 = vpop.f32.mrb[49].mxu1  ;;  %1894 = vmatprep.subr.bf16.mxu0 %v9983_v8  ;;  %v9992_v24 = vld [vmem:[#allocation10 + $0x2a8] ss:$24 sps:$4 sm:$0xff]  }
 0x966   :  { %v1606_v50 = vpop.f32.mrb[50].mxu1  ;;  %v9993_v29 = vld [vmem:[#allocation10 + $0x2d0] ss:$24 sps:$4 sm:$0xff]  }
 0x967   :  { %v1607_v30 = vadd.f32 %v1606_v50, %v1488_v59  ;;  %v9118_v31 = vpop.f32.mrb[51].mxu1  ;;  %v11261_v47 = vadd.f32 %v1604_v26, %v11229_v13  ;;  %v9980_v59 = vld [vmem:[#allocation10 + $0x218] ss:$24 sps:$4 sm:$0xff]   ;;  %v9995_v26 = vld [vmem:[#allocation10 + $0x2d4] ss:$24 sps:$4 sm:$0xff]  }
 0x968   :  { %9126 = vmatpush3.bf16.msra.mxu1 %v9980_v59  ;;  %1895 = vmatpush1.bf16.msra.mxu0 %v9981_v9  ;;  %v9996_v50 = vld [vmem:[#allocation10 + $0x2d8] ss:$24 sps:$4 sm:$0xff]  }
 0x969   :  { %1624 = vadd.xlane.f32.xlu0 %v11261_v47  ;;  %v11265_v32 = vadd.f32 %v1607_v30, %v11231_v14  ;;  %9127 = vmatprep.subr.bf16.mxu1 %v10785_v39 }
 0x96b   :  { %1626 = vadd.xlane.f32.xlu1 %v11265_v32 }
 0x96c   :  { %9128 = vmatpush3.bf16.msra.mxu1 %v9984_v12 }
 0x96d   :  { %9129 = vmatprep.subr.bf16.mxu1 %v10785_v39 }
 0x970   :  { %9130 = vmatpush3.bf16.msra.mxu1 %v9988_v7 }
 0x971   :  { %9131 = vmatprep.subr.bf16.mxu1 %v10785_v39 }
 0x974   :  { %9132 = vmatpush3.bf16.msra.mxu1 %v9992_v24 }
 0x975   :  { %9133 = vmatprep.subr.bf16.mxu1 %v10785_v39 }
 0x978   :  { %9134 = vmatpush3.bf16.msra.mxu1 %v9996_v50 }
 0x979   :  { %9207 = vmatprep.subr.bf16.mxu1 %v10785_v39 }
 0x9d7   :  { %v1617_v13 = vpop.xlane.xlu0 %1616 }
 0x9d8   :  { %v1628_v14 = vmul.f32 0.0078125, %v1617_v13 }
 0x9d9   :  { %v1619_v35 = vpop.xlane.xlu1 %1618 }
 0x9da   :  { %v1629_v51 = vmul.f32 0.0078125, %v1619_v35  ;;  %v11270_v36 = vsub.f32 %v1610_v4, %v1628_v14  ;;  %v9987_v4 = vld [vmem:[#allocation10 + $0x274] ss:$24 sps:$4 sm:$0xff]  }
 0x9db   :  { %1896 = vmatprep.subr.bf16.mxu0 %v9987_v4 }
 0x9dc   :  { %v1640_v37 = vmul.f32 %v11270_v36, %v11270_v36  ;;  %v11274_v42 = vsub.f32 %v1611_v2, %v1629_v51  ;;  %1897 = vmatpush1.bf16.msra.mxu0 %v9985_v17 }
 0x9dd   :  { %1898 = vmatprep.subr.bf16.mxu0 %v9991_v21 }
 0x9de   :  { %1646 = vadd.xlane.f32.xlu0 %v1640_v37  ;;  %v1641_v38 = vmul.f32 %v11274_v42, %v11274_v42  ;;  %v1695_v37 = vrot.slane %v437_v62, %v11064_v57 }
 0x9e0   :  { %1648 = vadd.xlane.f32.xlu1 %v1641_v38 }
 0x9e6   :  { %v1621_v40 = vpop.xlane.xlu0 %1620 }
 0x9e7   :  { %v1630_v49 = vmul.f32 0.0078125, %v1621_v40 }
 0x9e8   :  { %v1623_v43 = vpop.xlane.xlu1 %1622 }
 0x9e9   :  { %v1631_v44 = vmul.f32 0.0078125, %v1623_v43  ;;  %v11278_v45 = vsub.f32 %v1612_v56, %v1630_v49 }
 0x9eb   :  { %v1642_v46 = vmul.f32 %v11278_v45, %v11278_v45  ;;  %v11282_v41 = vsub.f32 %v1613_v22, %v1631_v44  ;;  %v9989_v22 = vld [vmem:[#allocation10 + $0x2a0] ss:$24 sps:$4 sm:$0xff]  }
 0x9ec   :  { %1899 = vmatpush1.bf16.msra.mxu0 %v9989_v22 }
 0x9ed   :  { %1650 = vadd.xlane.f32.xlu0 %v1642_v46  ;;  %v1643_v54 = vmul.f32 %v11282_v41, %v11282_v41  ;;  %1900 = vmatprep.subr.bf16.mxu0 %v9995_v26 }
 0x9ef   :  { %1652 = vadd.xlane.f32.xlu1 %v1643_v54 }
 0x9f0   :  { %1901 = vmatpush1.bf16.msra.mxu0 %v9993_v29 }
 0x9f6   :  { %v1625_v48 = vpop.xlane.xlu0 %1624 }
 0x9f7   :  { %v1632_v53 = vmul.f32 0.0078125, %v1625_v48 }
 0x9f8   :  { %v1627_v15 = vpop.xlane.xlu1 %1626 }
 0x9f9   :  { %v1633_v2 = vmul.f32 0.0078125, %v1627_v15  ;;  %v11289_v16 = vsub.f32 %v11261_v47, %v1632_v53 }
 0x9fb   :  { %v1644_v18 = vmul.f32 %v11289_v16, %v11289_v16  ;;  %v11295_v20 = vsub.f32 %v11265_v32, %v1633_v2 }
 0x9fd   :  { %1654 = vadd.xlane.f32.xlu0 %v1644_v18  ;;  %v1645_v56 = vmul.f32 %v11295_v20, %v11295_v20 }
 0x9ff   :  { %1656 = vadd.xlane.f32.xlu1 %v1645_v56 }
 0xa6b   :  { %v1647_v30 = vpop.xlane.xlu0 %1646 }
 0xa6c   :  { %v1658_v31 = vmul.f32 0.0078125, %v1647_v30 }
 0xa6d   :  { %v1649_v47 = vpop.xlane.xlu1 %1648 }
 0xa6e   :  { %v1664_v32 = vadd.f32 1e-05, %v1658_v31  ;;  %v1659_v1 = vmul.f32 0.0078125, %v1649_v47 }
 0xa70   :  { %10290 = vrsqrt.f32 %v1664_v32  ;;  %v1665_v25 = vadd.f32 1e-05, %v1659_v1 }
 0xa72   :  { %10292 = vrsqrt.f32 %v1665_v25 }
 0xa7a   :  { %v10291_v34 = vpop.eup %10290  ;;  %v1651_v23 = vpop.xlane.xlu0 %1650 }
 0xa7b   :  { %v1676_v13 = vmul.f32 %v10291_v34, %v11270_v36  ;;  %v1660_v14 = vmul.f32 0.0078125, %v1651_v23 }
 0xa7c   :  { %v10293_v35 = vpop.eup %10292  ;;  %v1653_v51 = vpop.xlane.xlu1 %1652 }
 0xa7d   :  { %v1686_v38 = vmul.f32 %v1685_v33, %v1676_v13  ;;  %v1677_v40 = vmul.f32 %v10293_v35, %v11274_v42  ;;  %v1666_v49 = vadd.f32 1e-05, %v1660_v14  ;;  %v1661_v43 = vmul.f32 0.0078125, %v1653_v51 }
 0xa7f   :  { %v1687_v44 = vmul.f32 %v1685_v33, %v1677_v40  ;;  %10294 = vrsqrt.f32 %v1666_v49  ;;  %v1667_v46 = vadd.f32 1e-05, %v1661_v43  ;;  %v11309_v52 = vadd.f32 %v1695_v37, %v1686_v38 }
 0xa81   :  { %10296 = vrsqrt.f32 %v1667_v46  ;;  %v11311_v54 = vadd.f32 %v1695_v37, %v1687_v44 }
 0xa83   :  { %v1738_v36 = vpack.c.bf16 %v11311_v54, %v11309_v52 }
 0xa85   :  { %1919 = vmatmul.mubr.bf16.vlgmr.msra.gmra.mrb[36].mxu0 %v1738_v36  ;;  %9136 = vmatmul.mubr.bf16.vlgmr.msra.gmra.mrb[52].mxu1 %v1738_v36 }
 0xa86   :  { %1928 = vmatprep.mubr.bf16.mxu0 %v10786_v3  ;;  %9139 = vmatprep.mubr.msk.bf16.mxu1 %vm10787_vm0, %v10785_v39 }
 0xa89   :  { %v10295_v42 = vpop.eup %10294 }
 0xa8a   :  { %v1655_v60 = vpop.xlane.xlu0 %1654  ;;  %v1678_v61 = vmul.f32 %v10295_v42, %v11278_v45 }
 0xa8b   :  { %v10297_v63 = vpop.eup %10296  ;;  %v1662_v0 = vmul.f32 0.0078125, %v1655_v60 }
 0xa8c   :  { %v1657_v59 = vpop.xlane.xlu1 %1656  ;;  %v1679_v8 = vmul.f32 %v10297_v63, %v11282_v41  ;;  %v1688_v9 = vmul.f32 %v1685_v33, %v1678_v61 }
 0xa8d   :  { %v1668_v12 = vadd.f32 1e-05, %v1662_v0  ;;  %v1663_v48 = vmul.f32 0.0078125, %v1657_v59 }
 0xa8e   :  { %v1689_v53 = vmul.f32 %v1685_v33, %v1679_v8  ;;  %v11320_v4 = vadd.f32 %v1695_v37, %v1688_v9 }
 0xa8f   :  { %10298 = vrsqrt.f32 %v1668_v12  ;;  %v1669_v15 = vadd.f32 1e-05, %v1663_v48 }
 0xa90   :  { %v11322_v2 = vadd.f32 %v1695_v37, %v1689_v53 }
 0xa91   :  { %10300 = vrsqrt.f32 %v1669_v15 }
 0xa92   :  { %v8552_v17 = vpack.c.bf16 %v11322_v2, %v11320_v4 }
 0xa94   :  { %1929 = vmatmul.mubr.bf16.gmra.mrb[40].mxu0 %v8552_v17  ;;  %9140 = vmatmul.mubr.bf16.gmra.mrb[56].mxu1 %v8552_v17 }
 0xa95   :  { %1938 = vmatprep.mubr.bf16.mxu0 %v10786_v3  ;;  %9143 = vmatprep.mubr.msk.bf16.mxu1 %vm10787_vm0, %v10785_v39 }
 0xa99   :  { %v10299_v45 = vpop.eup %10298 }
 0xa9a   :  { %v1680_v41 = vmul.f32 %v10299_v45, %v11289_v16  ;;  %v11344_v16 = vld [vmem:[%s12569_s6 + $0x10] sm:$0xff] }
 0xa9b   :  { %v10301_v7 = vpop.eup %10300  ;;  %v11352_v47 = vrot.slane %v11344_v16, %v11056_v55  ;;  %v2019_v25 = vrot.slane %v11344_v16, %v11064_v57 }
 0xa9c   :  { %v1681_v18 = vmul.f32 %v10301_v7, %v11295_v20  ;;  %v1690_v21 = vmul.f32 %v1685_v33, %v1680_v41  ;;  %v11348_v20 = vrot.slane %v11344_v16, %v11019_v10 }
 0xa9e   :  { %v1691_v56 = vmul.f32 %v1685_v33, %v1681_v18  ;;  %v11331_v22 = vadd.f32 %v1695_v37, %v1690_v21 }
 0xaa0   :  { %v11333_v24 = vadd.f32 %v1695_v37, %v1691_v56  ;;  %v1740_v26 = vpack.c.bf16 %v11331_v22, %v11322_v2 }
 0xaa2   :  { %v1741_v29 = vpack.c.bf16 %v11333_v24, %v11333_v24  ;;  %v1750_v50 = vunpack.c.h.b16 %v1740_v26 }
 0xaa4   :  { %v1751_v30 = vunpack.c.l.b16 %v1741_v29 }
 0xaa6   :  { %v1754_v31 = vpack.c.b16 %v1751_v30, %v1750_v50 }
 0xaa8   :  { %1939 = vmatmul.mubr.bf16.gmra.mrb[44].mxu0 %v1754_v31  ;;  %9144 = vmatmul.mubr.bf16.gmra.mrb[60].mxu1 %v1754_v31 }
 0xaa9   :  { %9223 = vmatprep.mubr.msk.bf16.mxu1 %vm10787_vm0, %v10785_v39 }
 0xb58   :  { %v1920_v32 = vpop.f32.mrb[36].mxu0  ;;  %v1983_v1 = vpop.f32.mrb[52].mxu1 }
 0xb59   :  { %v1922_v62 = vpop.f32.mrb[37].mxu0  ;;  %v9137_v33 = vpop.f32.mrb[53].mxu1  ;;  %v2010_v13 = vadd.f32 %v11348_v20, %v1920_v32  ;;  %v2030_v14 = vadd.f32 %v11352_v47, %v1983_v1 }
 0xb5a   :  { %v1924_v34 = vpop.f32.mrb[38].mxu0  ;;  %v1986_v23 = vpop.f32.mrb[54].mxu1  ;;  %v2020_v40 = vadd.f32 %v2019_v25, %v1922_v62 }
 0xb5b   :  { %v2011_v35 = vadd.f32 %v11348_v20, %v1924_v34  ;;  %v2031_v51 = vadd.f32 %v11352_v47, %v1986_v23  ;;  %v1926_v37 = vpop.f32.mrb[39].mxu0  ;;  %v9138_v38 = vpop.f32.mrb[55].mxu1 }
 0xb5c   :  { %v2021_v49 = vadd.f32 %v2019_v25, %v1926_v37 }
 0xb5d   :  { %v2036_v43 = vpack.c.bf16 %v2011_v35, %v2010_v13  ;;  %v2222_v44 = vpack.c.bf16 %v2031_v51, %v2030_v14 }
 0xb5e   :  { %v2040_v46 = vpack.c.bf16 %v2021_v49, %v2020_v40 }
 0xb5f   :  { %9151 = vmatprep.mubr.bf16.mxu0 %v2036_v43 }
 0xb60   :  { %9147 = vmatprep.subr.bf16.mxu0 %v2040_v46 }
 0xb61   :  { %9148 = vmatpush3.bf16.xpose.msra.mxu0 %v2040_v46 }
 0xb67   :  { %v1930_v36 = vpop.f32.mrb[40].mxu0  ;;  %v1991_v42 = vpop.f32.mrb[56].mxu1 }
 0xb68   :  { %v1932_v60 = vpop.f32.mrb[41].mxu0  ;;  %v9141_v61 = vpop.f32.mrb[57].mxu1  ;;  %v2012_v48 = vadd.f32 %v11348_v20, %v1930_v36  ;;  %v2032_v35 = vadd.f32 %v11352_v47, %v1991_v42 }
 0xb69   :  { %v2022_v63 = vadd.f32 %v2019_v25, %v1932_v60  ;;  %v1934_v0 = vpop.f32.mrb[42].mxu0  ;;  %v1994_v59 = vpop.f32.mrb[58].mxu1 }
 0xb6a   :  { %v1936_v8 = vpop.f32.mrb[43].mxu0  ;;  %v9142_v9 = vpop.f32.mrb[59].mxu1  ;;  %v2037_v53 = vpack.c.bf16 %v2012_v48, %v2012_v48  ;;  %v2013_v45 = vadd.f32 %v11348_v20, %v1934_v0  ;;  %v2033_v41 = vadd.f32 %v11352_v47, %v1994_v59  ;;  %v2223_v37 = vpack.c.bf16 %v2032_v35, %v2032_v35 }
 0xb6b   :  { %v2041_v12 = vpack.c.bf16 %v2022_v63, %v2022_v63  ;;  %v2023_v26 = vadd.f32 %v2019_v25, %v1936_v8 }
 0xb6c   :  { %v2233_v38 = vsel %vm967_vm2, %v2223_v37, 0 }
 0xb6d   :  { %9149 = vmatprep.subr.bf16.mxu0 %v2041_v12 }
 0xb6e   :  { %9150 = vmatpush3.bf16.xpose.msra.mxu0 %v2041_v12 }
 0xb75   :  { %9152 = vmatmul.mubr.bf16.vlgmr.msra.gmra.mrb[48].mxu0 %v2037_v53 }
 0xb7b   :  { %v1940_v15 = vpop.f32.mrb[44].mxu0  ;;  %v1999_v17 = vpop.f32.mrb[60].mxu1 }
 0xb7c   :  { %v2014_v7 = vadd.f32 %v11348_v20, %v1940_v15  ;;  %v2034_v18 = vadd.f32 %v11352_v47, %v1999_v17  ;;  %v1942_v21 = vpop.f32.mrb[45].mxu0  ;;  %v9145_v56 = vpop.f32.mrb[61].mxu1 }
 0xb7d   :  { %v2024_v29 = vadd.f32 %v2019_v25, %v1942_v21  ;;  %v1944_v50 = vpop.f32.mrb[46].mxu0  ;;  %v2002_v30 = vpop.f32.mrb[62].mxu1 }
 0xb7e   :  { %v2038_v31 = vpack.c.bf16 %v2014_v7, %v2013_v45  ;;  %v11365_v32 = vpack.c.bf16 %v2034_v18, %v2033_v41  ;;  %v11368_v1 = vadd.f32 %v11352_v47, %v2002_v30  ;;  %v1946_v62 = vpop.f32.mrb[47].mxu0  ;;  %v9146_v33 = vpop.f32.mrb[63].mxu1  ;;  %v2015_v14 = vadd.f32 %v11348_v20, %v1944_v50 }
 0xb7f   :  { %v2042_v34 = vpack.c.bf16 %v2024_v29, %v2023_v26  ;;  %v2025_v23 = vadd.f32 %v2019_v25, %v1946_v62 }
 0xb80   :  { %9159 = vmatprep.mubr.bf16.mxu0 %v2038_v31  ;;  %v2039_v51 = vpack.c.bf16 %v2015_v14, %v2015_v14 }
 0xb81   :  { %v2043_v13 = vpack.c.bf16 %v2025_v23, %v2025_v23  ;;  %9155 = vmatprep.subr.bf16.mxu0 %v2042_v34 }
 0xb82   :  { %9156 = vmatpush3.bf16.xpose.msra.mxu0 %v2042_v34 }
 0xb83   :  { %9157 = vmatprep.subr.bf16.mxu0 %v2043_v13 }
 0xb8a   :  { %9158 = vmatpush3.bf16.xpose.msra.mxu0 %v2043_v13 }
 0xb8b   :  { %9163 = vmatprep.subr.bf16.mxu0 %v2222_v44 }
 0xb91   :  { %9160 = vmatmul.mubr.bf16.vlgmr.msra.gmra.mrb[52].mxu0 %v2039_v51 }
 0xb92   :  { %9164 = vmatpush3.bf16.msra.mxu0 %v2222_v44 }
 0xb93   :  { %9861 = vmatprep.subr.msk.bf16.mxu0 %vm967_vm2, %v2223_v37 }
 0xb96   :  { %9166 = vmatpush3.bf16.msra.mxu0 %v2233_v38 }
 0xb97   :  { %9171 = vmatprep.subr.bf16.mxu0 %v11365_v32 }
 0xc48   :  { %v9153_v25 = vpop.f32.mrb[48].mxu0 }
 0xc49   :  { %v2078_v40 = vpop.f32.mrb[49].mxu0  ;;  %v2142_v49 = vmul.f32 0.088388346, %v9153_v25 }
 0xc4a   :  { %v2140_v43 = vmul.f32 0.088388346, %v2078_v40  ;;  %v9154_v46 = vpop.f32.mrb[50].mxu0 }
 0xc4b   :  { %v2081_v20 = vpop.f32.mrb[51].mxu0  ;;  %v2148_v60 = vsel %vm435_vm3, %v2142_v49, -1e+30 }
 0xc4c   :  { %v2141_v36 = vmul.f32 0.088388346, %v2081_v20  ;;  %v2146_v47 = vsel %vm435_vm3, %v2140_v43, -1e+30  ;;  %v2158_v63 = vsel %vm886_vm4, %v2148_v60, -inf }
 0xc4d   :  { %v2152_v42 = vsel %vm886_vm4, %v2146_v47, -inf }
 0xc4e   :  { %2153 = vmax.xlane.f32.xlu0 %v2152_v42  ;;  %v2147_v44 = vsel %vm435_vm3, %v2141_v36, -1e+30 }
 0xc4f   :  { %v2155_v61 = vsel %vm886_vm4, %v2147_v44, -inf }
 0xc50   :  { %2156 = vmax.xlane.f32.xlu1 %v2155_v61 }
 0xc52   :  { %2159 = vmax.xlane.f32.xlu0 %v2158_v63 }
 0xc64   :  { %v9161_v0 = vpop.f32.mrb[52].mxu0 }
 0xc65   :  { %v2126_v59 = vpop.f32.mrb[53].mxu0  ;;  %v2145_v8 = vmul.f32 0.088388346, %v9161_v0 }
 0xc66   :  { %v2143_v9 = vmul.f32 0.088388346, %v2126_v59  ;;  %v9162_v12 = vpop.f32.mrb[54].mxu0 }
 0xc67   :  { %v2129_v48 = vpop.f32.mrb[55].mxu0  ;;  %v2151_v41 = vsel %vm435_vm3, %v2145_v8, -1e+30 }
 0xc68   :  { %v2144_v53 = vmul.f32 0.088388346, %v2129_v48  ;;  %v2149_v15 = vsel %vm435_vm3, %v2143_v9, -1e+30  ;;  %v2167_v18 = vsel %vm886_vm4, %v2151_v41, -inf }
 0xc69   :  { %v2161_v17 = vsel %vm886_vm4, %v2149_v15, -inf }
 0xc6a   :  { %2162 = vmax.xlane.f32.xlu1 %v2161_v17  ;;  %v2150_v45 = vsel %vm435_vm3, %v2144_v53, -1e+30 }
 0xc6b   :  { %v2164_v7 = vsel %vm886_vm4, %v2150_v45, -inf }
 0xc6c   :  { %2165 = vmax.xlane.f32.xlu0 %v2164_v7  ;;  %v2225_v7 = vpack.c.bf16 %v11368_v1, %v11368_v1 }
 0xc6e   :  { %2168 = vmax.xlane.f32.xlu1 %v2167_v18  ;;  %v2290_v18 = vsel %vm967_vm2, %v2225_v7, 0 }
 0xcdb   :  { %v2154_v21 = vpop.xlane.xlu0 %2153 }
 0xcdc   :  { %v2170_v56 = vsub.f32 %v2146_v47, %v2154_v21 }
 0xcdd   :  { %v2157_v26 = vpop.xlane.xlu1 %2156 }
 0xcde   :  { %v2176_v29 = vmul.f32 1.442695, %v2170_v56  ;;  %v2171_v50 = vsub.f32 %v2147_v44, %v2157_v26 }
 0xcdf   :  { %v2160_v30 = vpop.xlane.xlu0 %2159 }
 0xce0   :  { %10302 = vpow2.f32 %v2176_v29  ;;  %v2178_v31 = vmul.f32 1.442695, %v2171_v50  ;;  %v2172_v62 = vsub.f32 %v2148_v60, %v2160_v30 }
 0xce2   :  { %10304 = vpow2.f32 %v2178_v31  ;;  %v2180_v33 = vmul.f32 1.442695, %v2172_v62 }
 0xce4   :  { %10306 = vpow2.f32 %v2180_v33  ;;  %v9997_v33 = vld [vmem:[#allocation10 + $0x18c] ss:$24 sps:$4 sm:$0xff]  }
 0xcea   :  { %v10303_v34 = vpop.eup %10302 }
 0xceb   :  { %v2188_v23 = vsel %vm886_vm4, %v10303_v34, 0.0 }
 0xcec   :  { %v10305_v13 = vpop.eup %10304  ;;  %2189 = vadd.xlane.f32.xlu0 %v2188_v23  ;;  %v9998_v23 = vld [vmem:[#allocation10 + $0x1bc] ss:$24 sps:$4 sm:$0xff]  }
 0xced   :  { %v2191_v14 = vsel %vm886_vm4, %v10305_v13, 0.0 }
 0xcee   :  { %v10307_v35 = vpop.eup %10306  ;;  %2192 = vadd.xlane.f32.xlu1 %v2191_v14  ;;  %v10000_v14 = vld [vmem:[#allocation10 + $0x21c] ss:$24 sps:$4 sm:$0xff]  }
 0xcef   :  { %v2194_v51 = vsel %vm886_vm4, %v10307_v35, 0.0 }
 0xcf0   :  { %2195 = vadd.xlane.f32.xlu0 %v2194_v51  ;;  %v10002_v51 = vld [vmem:[#allocation10 + $0x27c] ss:$24 sps:$4 sm:$0xff]  }
 0xcf7   :  { %v2163_v37 = vpop.xlane.xlu1 %2162 }
 0xcf8   :  { %v2173_v38 = vsub.f32 %v2149_v15, %v2163_v37  ;;  %v10003_v37 = vld [vmem:[#allocation10 + $0x2ac] ss:$24 sps:$4 sm:$0xff]  }
 0xcf9   :  { %v2166_v25 = vpop.xlane.xlu0 %2165 }
 0xcfa   :  { %v2182_v40 = vmul.f32 1.442695, %v2173_v38  ;;  %v2174_v49 = vsub.f32 %v2150_v45, %v2166_v25  ;;  %v10004_v38 = vld [vmem:[#allocation10 + $0x2dc] ss:$24 sps:$4 sm:$0xff]  }
 0xcfb   :  { %v2169_v43 = vpop.xlane.xlu1 %2168 }
 0xcfc   :  { %10308 = vpow2.f32 %v2182_v40  ;;  %v2184_v46 = vmul.f32 1.442695, %v2174_v49  ;;  %v2175_v20 = vsub.f32 %v2151_v41, %v2169_v43 }
 0xcfe   :  { %10310 = vpow2.f32 %v2184_v46  ;;  %v2186_v36 = vmul.f32 1.442695, %v2175_v20 }
 0xd00   :  { %10312 = vpow2.f32 %v2186_v36 }
 0xd06   :  { %v10309_v47 = vpop.eup %10308 }
 0xd07   :  { %v2197_v42 = vsel %vm886_vm4, %v10309_v47, 0.0 }
 0xd08   :  { %v10311_v44 = vpop.eup %10310  ;;  %2198 = vadd.xlane.f32.xlu1 %v2197_v42 }
 0xd09   :  { %v2200_v60 = vsel %vm886_vm4, %v10311_v44, 0.0 }
 0xd0a   :  { %v10313_v61 = vpop.eup %10312  ;;  %2201 = vadd.xlane.f32.xlu0 %v2200_v60 }
 0xd0b   :  { %v2203_v63 = vsel %vm886_vm4, %v10313_v61, 0.0 }
 0xd0c   :  { %2204 = vadd.xlane.f32.xlu1 %v2203_v63 }
 0xd79   :  { %v2190_v0 = vpop.xlane.xlu0 %2189 }
 0xd7a   :  { %10314 = vrcp.f32 %v2190_v0 }
 0xd7b   :  { %v2193_v59 = vpop.xlane.xlu1 %2192 }
 0xd7c   :  { %10316 = vrcp.f32 %v2193_v59 }
 0xd7d   :  { %v2196_v8 = vpop.xlane.xlu0 %2195 }
 0xd7e   :  { %10318 = vrcp.f32 %v2196_v8  ;;  %v2363_v8 = vrot.slane %v11344_v16, %v11150_v11 }
 0xd84   :  { %v10315_v9 = vpop.eup %10314 }
 0xd85   :  { %v2212_v48 = vmul.f32 %v10315_v9, %v10303_v34 }
 0xd86   :  { %v10317_v12 = vpop.eup %10316 }
 0xd87   :  { %v2213_v53 = vmul.f32 %v10317_v12, %v10305_v13  ;;  %v9999_v13 = vld [vmem:[#allocation10 + $0x1ec] ss:$24 sps:$4 sm:$0xff]  }
 0xd88   :  { %v10319_v15 = vpop.eup %10318 }
 0xd89   :  { %v2218_v17 = vpack.c.bf16 %v2213_v53, %v2212_v48  ;;  %v2214_v45 = vmul.f32 %v10319_v15, %v10307_v35  ;;  %v10001_v35 = vld [vmem:[#allocation10 + $0x24c] ss:$24 sps:$4 sm:$0xff]  }
 0xd8b   :  { %9167 = vmatprep.mubr.msk.bf16.mxu0 %vm886_vm4, %v2218_v17  ;;  %v2219_v41 = vpack.c.bf16 %v2214_v45, %v2214_v45 }
 0xd8d   :  { %9168 = vmatmul.mubr.msk.bf16.vlgmr.msra.gmra.mrb[56].mxu0 %vm886_vm4, %v2219_v41 }
 0xd8e   :  { %9172 = vmatpush3.bf16.msra.mxu0 %v11365_v32 }
 0xd8f   :  { %9862 = vmatprep.subr.msk.bf16.mxu0 %vm967_vm2, %v2225_v7 }
 0xd92   :  { %9174 = vmatpush3.bf16.msra.mxu0 %v2290_v18 }
 0xd93   :  { %9179 = vmatprep.subr.bf16.mxu0 %v10785_v39 }
 0xd95   :  { %v2199_v21 = vpop.xlane.xlu1 %2198 }
 0xd96   :  { %10320 = vrcp.f32 %v2199_v21 }
 0xd97   :  { %v2202_v56 = vpop.xlane.xlu0 %2201 }
 0xd98   :  { %10322 = vrcp.f32 %v2202_v56 }
 0xd99   :  { %v2205_v26 = vpop.xlane.xlu1 %2204 }
 0xd9a   :  { %10324 = vrcp.f32 %v2205_v26 }
 0xda0   :  { %v10321_v29 = vpop.eup %10320 }
 0xda1   :  { %v2215_v1 = vmul.f32 %v10321_v29, %v10309_v47 }
 0xda2   :  { %v10323_v50 = vpop.eup %10322 }
 0xda3   :  { %v2216_v30 = vmul.f32 %v10323_v50, %v10311_v44 }
 0xda4   :  { %v10325_v31 = vpop.eup %10324 }
 0xda5   :  { %v2220_v62 = vpack.c.bf16 %v2216_v30, %v2215_v1  ;;  %v2217_v32 = vmul.f32 %v10325_v31, %v10313_v61 }
 0xda7   :  { %9175 = vmatprep.mubr.msk.bf16.mxu0 %vm886_vm4, %v2220_v62  ;;  %v2221_v34 = vpack.c.bf16 %v2217_v32, %v2217_v32 }
 0xda9   :  { %9176 = vmatmul.mubr.msk.bf16.vlgmr.msra.gmra.mrb[60].mxu0 %vm886_vm4, %v2221_v34 }
 0xdaa   :  { %9180 = vmatpush3.bf16.msra.mxu0 %v9997_v33  ;;  %9195 = vmatprep.mubr.msk.bf16.mxu0 %vm10787_vm0, %v10785_v39 }
 0xdab   :  { %9181 = vmatprep.subr.bf16.mxu0 %v10785_v39 }
 0xdae   :  { %9182 = vmatpush3.bf16.msra.mxu0 %v9998_v23  ;;  %v10005_v23 = vld [vmem:[#allocation10 + $0x190] ss:$24 sps:$4 sm:$0xff]  }
 0xdaf   :  { %9183 = vmatprep.subr.bf16.mxu0 %v10785_v39  ;;  %9208 = vmatpush3.bf16.msra.mxu1 %v10005_v23 }
 0xdb0   :  { %9209 = vmatprep.subr.bf16.mxu1 %v10785_v39 }
 0xdb2   :  { %9184 = vmatpush3.bf16.msra.mxu0 %v9999_v13  ;;  %v10006_v13 = vld [vmem:[#allocation10 + $0x1c0] ss:$24 sps:$4 sm:$0xff]  }
 0xdb3   :  { %9185 = vmatprep.subr.bf16.mxu0 %v10785_v39  ;;  %9210 = vmatpush3.bf16.msra.mxu1 %v10006_v13 }
 0xdb4   :  { %9211 = vmatprep.subr.bf16.mxu1 %v10785_v39 }
 0xdb6   :  { %9186 = vmatpush3.bf16.msra.mxu0 %v10000_v14 }
 0xdb7   :  { %9187 = vmatprep.subr.bf16.mxu0 %v10785_v39 }
 0xdba   :  { %9188 = vmatpush3.bf16.msra.mxu0 %v10001_v35 }
 0xdbb   :  { %9189 = vmatprep.subr.bf16.mxu0 %v10785_v39 }
 0xdbe   :  { %9190 = vmatpush3.bf16.msra.mxu0 %v10002_v51 }
 0xdbf   :  { %9191 = vmatprep.subr.bf16.mxu0 %v10785_v39 }
 0xdc2   :  { %9192 = vmatpush3.bf16.msra.mxu0 %v10003_v37 }
 0xdc3   :  { %9193 = vmatprep.subr.bf16.mxu0 %v10785_v39 }
 0xdc6   :  { %9194 = vmatpush3.bf16.msra.mxu0 %v10004_v38  ;;  %v10007_v38 = vld [vmem:[#allocation10 + $0x1f0] ss:$24 sps:$4 sm:$0xff]  }
 0xdc7   :  { %9235 = vmatprep.subr.bf16.mxu0 %v10785_v39  ;;  %9212 = vmatpush3.bf16.msra.mxu1 %v10007_v38 }
 0xdc8   :  { %9213 = vmatprep.subr.bf16.mxu1 %v10785_v39 }
 0xe60   :  { %v9169_v25 = vpop.f32.mrb[56].mxu0 }
 0xe61   :  { %v2269_v40 = vpop.f32.mrb[57].mxu0 }
 0xe62   :  { %v9170_v49 = vpop.f32.mrb[58].mxu0 }
 0xe63   :  { %v2272_v43 = vpop.f32.mrb[59].mxu0 }
 0xe64   :  { %v2356_v46 = vpack.c.bf16 %v2272_v43, %v2269_v40  ;;  %v10008_v40 = vld [vmem:[#allocation10 + $0x220] ss:$24 sps:$4 sm:$0xff]  }
 0xe65   :  { %9214 = vmatpush3.bf16.msra.mxu1 %v10008_v40 }
 0xe66   :  { %9196 = vmatmul.mubr.bf16.vlgmr.msra.gmra.mrb[64].mxu0 %v2356_v46  ;;  %9215 = vmatprep.subr.bf16.mxu1 %v10785_v39 }
 0xe67   :  { %9199 = vmatprep.mubr.msk.bf16.mxu0 %vm10787_vm0, %v10785_v39 }
 0xe7c   :  { %v9177_v20 = vpop.f32.mrb[60].mxu0 }
 0xe7d   :  { %v2326_v36 = vpop.f32.mrb[61].mxu0  ;;  %v2359_v47 = vpack.c.bf16 %v9177_v20, %v9177_v20 }
 0xe7e   :  { %v8553_v42 = vpack.c.bf16 %v2326_v36, %v9169_v25  ;;  %v9178_v44 = vpop.f32.mrb[62].mxu0 }
 0xe7f   :  { %v2329_v60 = vpop.f32.mrb[63].mxu0  ;;  %v2373_v63 = vunpack.c.l.b16 %v2359_v47 }
 0xe80   :  { %v2358_v61 = vpack.c.bf16 %v2329_v60, %v2326_v36  ;;  %9200 = vmatmul.mubr.bf16.gmra.mrb[68].mxu0 %v8553_v42  ;;  %v10009_v36 = vld [vmem:[#allocation10 + $0x250] ss:$24 sps:$4 sm:$0xff]  }
 0xe81   :  { %9203 = vmatprep.mubr.msk.bf16.mxu0 %vm10787_vm0, %v10785_v39  ;;  %9216 = vmatpush3.bf16.msra.mxu1 %v10009_v36 }
 0xe82   :  { %v2372_v0 = vunpack.c.h.b16 %v2358_v61  ;;  %9217 = vmatprep.subr.bf16.mxu1 %v10785_v39  ;;  %v10010_v61 = vld [vmem:[#allocation10 + $0x280] ss:$24 sps:$4 sm:$0xff]  }
 0xe84   :  { %v2376_v59 = vpack.c.b16 %v2373_v63, %v2372_v0 }
 0xe85   :  { %9218 = vmatpush3.bf16.msra.mxu1 %v10010_v61 }
 0xe86   :  { %9219 = vmatprep.subr.bf16.mxu1 %v10785_v39 }
 0xe88   :  { %9204 = vmatmul.mubr.bf16.gmra.mrb[72].mxu0 %v2376_v59 }
 0xe89   :  { %9251 = vmatprep.mubr.msk.bf16.mxu0 %vm10787_vm0, %v10785_v39 }
 0xf39   :  { %v2462_v9 = vpop.f32.mrb[64].mxu0 }
 0xf3a   :  { %v2463_v12 = vadd.f32 %v2462_v9, %v2363_v8  ;;  %v9197_v48 = vpop.f32.mrb[65].mxu0  ;;  %v10011_v9 = vld [vmem:[#allocation10 + $0x2b0] ss:$24 sps:$4 sm:$0xff]  }
 0xf3b   :  { %v2465_v53 = vpop.f32.mrb[66].mxu0  ;;  %9220 = vmatpush3.bf16.msra.mxu1 %v10011_v9 }
 0xf3c   :  { %v2466_v15 = vadd.f32 %v2465_v53, %v2363_v8  ;;  %v9198_v17 = vpop.f32.mrb[67].mxu0  ;;  %v2485_v45 = vadd.f32 %v2463_v12, %v11309_v52  ;;  %v10012_v53 = vld [vmem:[#allocation10 + $0x2e0] ss:$24 sps:$4 sm:$0xff]   ;;  %9221 = vmatprep.subr.bf16.mxu1 %v10785_v39 }
 0xf3d   :  { %v10013_v17 = vld [vmem:[#allocation10 + $0x194] ss:$24 sps:$4 sm:$0xff]  }
 0xf3e   :  { %2491 = vadd.xlane.f32.xlu0 %v2485_v45  ;;  %v2486_v41 = vadd.f32 %v2466_v15, %v11311_v54  ;;  %9236 = vmatpush3.bf16.msra.mxu0 %v10013_v17 }
 0xf3f   :  { %9222 = vmatpush3.bf16.msra.mxu1 %v10012_v53  ;;  %9237 = vmatprep.subr.bf16.mxu0 %v10785_v39 }
 0xf40   :  { %2493 = vadd.xlane.f32.xlu1 %v2486_v41 }
 0xf53   :  { %v2470_v7 = vpop.f32.mrb[68].mxu0 }
 0xf54   :  { %v2471_v18 = vadd.f32 %v2470_v7, %v2363_v8  ;;  %v9201_v21 = vpop.f32.mrb[69].mxu0  ;;  %v10016_v7 = vld [vmem:[#allocation10 + $0x224] ss:$24 sps:$4 sm:$0xff]  }
 0xf55   :  { %v2473_v56 = vpop.f32.mrb[70].mxu0  ;;  %v10018_v21 = vld [vmem:[#allocation10 + $0x284] ss:$24 sps:$4 sm:$0xff]  }
 0xf56   :  { %v2474_v26 = vadd.f32 %v2473_v56, %v2363_v8  ;;  %v9202_v29 = vpop.f32.mrb[71].mxu0  ;;  %v2487_v50 = vadd.f32 %v2471_v18, %v11320_v4  ;;  %v10017_v18 = vld [vmem:[#allocation10 + $0x254] ss:$24 sps:$4 sm:$0xff]  }
 0xf58   :  { %2495 = vadd.xlane.f32.xlu0 %v2487_v50  ;;  %v2488_v1 = vadd.f32 %v2474_v26, %v11322_v2 }
 0xf5a   :  { %2497 = vadd.xlane.f32.xlu1 %v2488_v1 }
 0xf5b   :  { %v2478_v30 = vpop.f32.mrb[72].mxu0 }
 0xf5c   :  { %v2479_v31 = vadd.f32 %v2478_v30, %v2363_v8  ;;  %v9205_v62 = vpop.f32.mrb[73].mxu0 }
 0xf5d   :  { %v2481_v52 = vpop.f32.mrb[74].mxu0 }
 0xf5e   :  { %v2482_v32 = vadd.f32 %v2481_v52, %v2363_v8  ;;  %v9206_v33 = vpop.f32.mrb[75].mxu0  ;;  %v2489_v54 = vadd.f32 %v2479_v31, %v11331_v22  ;;  %v2560_v31 = vrot.slane %v11344_v16, %v11198_v27 }
 0xf60   :  { %2499 = vadd.xlane.f32.xlu0 %v2489_v54  ;;  %v2490_v34 = vadd.f32 %v2482_v32, %v11333_v24 }
 0xf62   :  { %2501 = vadd.xlane.f32.xlu1 %v2490_v34 }
 0xfcb   :  { %v2492_v4 = vpop.xlane.xlu0 %2491 }
 0xfcc   :  { %v2503_v2 = vmul.f32 0.0078125, %v2492_v4 }
 0xfcd   :  { %v2494_v14 = vpop.xlane.xlu1 %2493 }
 0xfce   :  { %v2504_v35 = vmul.f32 0.0078125, %v2494_v14  ;;  %v11435_v51 = vsub.f32 %v2485_v45, %v2503_v2  ;;  %v10014_v45 = vld [vmem:[#allocation10 + $0x1c4] ss:$24 sps:$4 sm:$0xff]  }
 0xfcf   :  { %9238 = vmatpush3.bf16.msra.mxu0 %v10014_v45 }
 0xfd0   :  { %v2515_v22 = vmul.f32 %v11435_v51, %v11435_v51  ;;  %v11439_v37 = vsub.f32 %v2486_v41, %v2504_v35  ;;  %v10015_v41 = vld [vmem:[#allocation10 + $0x1f4] ss:$24 sps:$4 sm:$0xff]   ;;  %9239 = vmatprep.subr.bf16.mxu0 %v10785_v39 }
 0xfd2   :  { %2521 = vadd.xlane.f32.xlu0 %v2515_v22  ;;  %v2516_v24 = vmul.f32 %v11439_v37, %v11439_v37 }
 0xfd3   :  { %9240 = vmatpush3.bf16.msra.mxu0 %v10015_v41 }
 0xfd4   :  { %2523 = vadd.xlane.f32.xlu1 %v2516_v24  ;;  %9241 = vmatprep.subr.bf16.mxu0 %v10785_v39 }
 0xfd7   :  { %9242 = vmatpush3.bf16.msra.mxu0 %v10016_v7 }
 0xfd8   :  { %9243 = vmatprep.subr.bf16.mxu0 %v10785_v39 }
 0xfdb   :  { %9244 = vmatpush3.bf16.msra.mxu0 %v10017_v18 }
 0xfdc   :  { %9245 = vmatprep.subr.bf16.mxu0 %v10785_v39 }
 0xfdf   :  { %9246 = vmatpush3.bf16.msra.mxu0 %v10018_v21 }
 0xfe0   :  { %9247 = vmatprep.subr.bf16.mxu0 %v10785_v39 }
 0xfe5   :  { %v2496_v25 = vpop.xlane.xlu0 %2495 }
 0xfe6   :  { %v2505_v49 = vmul.f32 0.0078125, %v2496_v25 }
 0xfe7   :  { %v2498_v43 = vpop.xlane.xlu1 %2497 }
 0xfe8   :  { %v2506_v46 = vmul.f32 0.0078125, %v2498_v43  ;;  %v11444_v20 = vsub.f32 %v2487_v50, %v2505_v49 }
 0xfea   :  { %v2517_v47 = vmul.f32 %v11444_v20, %v11444_v20  ;;  %v11449_v42 = vsub.f32 %v2488_v1, %v2506_v46 }
 0xfec   :  { %2525 = vadd.xlane.f32.xlu0 %v2517_v47  ;;  %v2518_v44 = vmul.f32 %v11449_v42, %v11449_v42 }
 0xfed   :  { %v2500_v60 = vpop.xlane.xlu0 %2499 }
 0xfee   :  { %v2507_v63 = vmul.f32 0.0078125, %v2500_v60  ;;  %2527 = vadd.xlane.f32.xlu1 %v2518_v44 }
 0xfef   :  { %v2502_v0 = vpop.xlane.xlu1 %2501 }
 0xff0   :  { %v2508_v59 = vmul.f32 0.0078125, %v2502_v0  ;;  %v11454_v8 = vsub.f32 %v2489_v54, %v2507_v63 }
 0xff2   :  { %v2519_v12 = vmul.f32 %v11454_v8, %v11454_v8  ;;  %v11459_v48 = vsub.f32 %v2490_v34, %v2508_v59  ;;  %v2570_v34 = vrot.slane %v11344_v16, %v11201_v28 }
 0xff4   :  { %2529 = vadd.xlane.f32.xlu0 %v2519_v12  ;;  %v2520_v15 = vmul.f32 %v11459_v48, %v11459_v48 }
 0xff6   :  { %2531 = vadd.xlane.f32.xlu1 %v2520_v15 }
0x105f   :  { %v2522_v56 = vpop.xlane.xlu0 %2521 }
0x1060   :  { %v2533_v26 = vmul.f32 0.0078125, %v2522_v56 }
0x1061   :  { %v2524_v29 = vpop.xlane.xlu1 %2523 }
0x1062   :  { %v2539_v50 = vadd.f32 1e-05, %v2533_v26  ;;  %v2534_v1 = vmul.f32 0.0078125, %v2524_v29  ;;  %v10020_v26 = vld [vmem:[#allocation10 + $0x2e4] ss:$24 sps:$4 sm:$0xff]   ;;  %v2600_v29 = vrot.slane %v11344_v16, %v11241_v19 }
0x1064   :  { %10326 = vrsqrt.f32 %v2539_v50  ;;  %v2540_v30 = vadd.f32 1e-05, %v2534_v1 }
0x1066   :  { %10328 = vrsqrt.f32 %v2540_v30 }
0x106e   :  { %v10327_v62 = vpop.eup %10326 }
0x106f   :  { %v2551_v52 = vmul.f32 %v10327_v62, %v11435_v51 }
0x1070   :  { %v10329_v32 = vpop.eup %10328 }
0x1071   :  { %v2561_v33 = vmul.f32 %v2560_v31, %v2551_v52  ;;  %v2552_v54 = vmul.f32 %v10329_v32, %v11439_v37 }
0x1073   :  { %v2562_v23 = vmul.f32 %v2560_v31, %v2552_v54  ;;  %v11476_v13 = vadd.f32 %v2570_v34, %v2561_v33 }
0x1075   :  { %v11478_v4 = vadd.f32 %v2570_v34, %v2562_v23 }
0x1077   :  { %v2593_v2 = vpack.c.bf16 %v11478_v4, %v11476_v13 }
0x1079   :  { %v2526_v14 = vpop.xlane.xlu0 %2525  ;;  %9224 = vmatmul.mubr.bf16.vlgmr.msra.gmra.mrb[64].mxu1 %v2593_v2 }
0x107a   :  { %v2535_v35 = vmul.f32 0.0078125, %v2526_v14  ;;  %9227 = vmatprep.mubr.msk.bf16.mxu1 %vm10787_vm0, %v10785_v39 }
0x107b   :  { %v2528_v51 = vpop.xlane.xlu1 %2527 }
0x107c   :  { %v2541_v22 = vadd.f32 1e-05, %v2535_v35  ;;  %v2536_v37 = vmul.f32 0.0078125, %v2528_v51 }
0x107e   :  { %10330 = vrsqrt.f32 %v2541_v22  ;;  %v2542_v24 = vadd.f32 1e-05, %v2536_v37 }
0x1080   :  { %10332 = vrsqrt.f32 %v2542_v24 }
0x1081   :  { %v2530_v38 = vpop.xlane.xlu0 %2529 }
0x1082   :  { %v2537_v25 = vmul.f32 0.0078125, %v2530_v38 }
0x1083   :  { %v2532_v40 = vpop.xlane.xlu1 %2531 }
0x1084   :  { %v2543_v49 = vadd.f32 1e-05, %v2537_v25  ;;  %v2538_v43 = vmul.f32 0.0078125, %v2532_v40 }
0x1086   :  { %10334 = vrsqrt.f32 %v2543_v49  ;;  %v2544_v46 = vadd.f32 1e-05, %v2538_v43 }
0x1088   :  { %v10331_v36 = vpop.eup %10330  ;;  %10336 = vrsqrt.f32 %v2544_v46 }
0x1089   :  { %v2553_v47 = vmul.f32 %v10331_v36, %v11444_v20 }
0x108a   :  { %v10333_v44 = vpop.eup %10332 }
0x108b   :  { %v2554_v60 = vmul.f32 %v10333_v44, %v11449_v42  ;;  %v2563_v61 = vmul.f32 %v2560_v31, %v2553_v47 }
0x108d   :  { %v2564_v63 = vmul.f32 %v2560_v31, %v2554_v60  ;;  %v11486_v0 = vadd.f32 %v2570_v34, %v2563_v61 }
0x108f   :  { %v11488_v59 = vadd.f32 %v2570_v34, %v2564_v63 }
0x1090   :  { %v10335_v9 = vpop.eup %10334 }
0x1091   :  { %v8554_v12 = vpack.c.bf16 %v11488_v59, %v11486_v0  ;;  %v2555_v53 = vmul.f32 %v10335_v9, %v11454_v8 }
0x1092   :  { %v10337_v15 = vpop.eup %10336 }
0x1093   :  { %9228 = vmatmul.mubr.bf16.gmra.mrb[68].mxu1 %v8554_v12  ;;  %v2556_v17 = vmul.f32 %v10337_v15, %v11459_v48  ;;  %v2565_v20 = vmul.f32 %v2560_v31, %v2555_v53  ;;  %v10019_v48 = vld [vmem:[#allocation10 + $0x2b4] ss:$24 sps:$4 sm:$0xff]   ;;  %v2751_v12 = vrot.slane %v11344_v16, %v11252_v58 }
0x1094   :  { %9231 = vmatprep.mubr.msk.bf16.mxu1 %vm10787_vm0, %v10785_v39  ;;  %9248 = vmatpush3.bf16.msra.mxu0 %v10019_v48 }
0x1095   :  { %v2566_v42 = vmul.f32 %v2560_v31, %v2556_v17  ;;  %v11496_v45 = vadd.f32 %v2570_v34, %v2565_v20  ;;  %9249 = vmatprep.subr.bf16.mxu0 %v10785_v39 }
0x1097   :  { %v11498_v41 = vadd.f32 %v2570_v34, %v2566_v42  ;;  %v2595_v7 = vpack.c.bf16 %v11496_v45, %v11488_v59 }
0x1098   :  { %9250 = vmatpush3.bf16.msra.mxu0 %v10020_v26 }
0x1099   :  { %v2596_v18 = vpack.c.bf16 %v11498_v41, %v11498_v41  ;;  %v2609_v8 = vunpack.c.h.b16 %v2595_v7  ;;  %9263 = vmatprep.subr.bf16.mxu0 %v10785_v39 }
0x109b   :  { %v2610_v21 = vunpack.c.l.b16 %v2596_v18 }
0x109d   :  { %v2613_v56 = vpack.c.b16 %v2610_v21, %v2609_v8 }
0x109f   :  { %9232 = vmatmul.mubr.bf16.gmra.mrb[72].mxu1 %v2613_v56 }
0x10a0   :  { %3181 = vmatprep.mubr.bf16.mxu1 %v10786_v3 }
0x114c   :  { %v2699_v50 = vpop.f32.mrb[64].mxu1 }
0x114d   :  { %v2700_v1 = vadd.f32 %v2699_v50, %v2600_v29  ;;  %v9225_v30 = vpop.f32.mrb[65].mxu1 }
0x114e   :  { %v2702_v31 = vpop.f32.mrb[66].mxu1 }
0x114f   :  { %v2703_v62 = vadd.f32 %v2702_v31, %v2600_v29  ;;  %v9226_v52 = vpop.f32.mrb[67].mxu1  ;;  %v2722_v32 = vmax.f32 %v2700_v1, 0.0 }
0x1151   :  { %v2723_v33 = vmax.f32 %v2703_v62, 0.0 }
0x1153   :  { %v2744_v54 = vpack.c.bf16 %v2723_v33, %v2722_v32 }
0x1155   :  { %9252 = vmatmul.mubr.bf16.vlgmr.msra.gmra.mrb[76].mxu0 %v2744_v54  ;;  %v10023_v54 = vld [vmem:[#allocation10 + $0x304] ss:$24 sps:$4 sm:$0xff]  }
0x1156   :  { %9255 = vmatprep.mubr.msk.bf16.mxu0 %vm10787_vm0, %v10785_v39  ;;  %3149 = vmatprep.subr.bf16.mxu1 %v10023_v54 }
0x1166   :  { %v2707_v34 = vpop.f32.mrb[68].mxu1 }
0x1167   :  { %v2708_v23 = vadd.f32 %v2707_v34, %v2600_v29  ;;  %v9229_v2 = vpop.f32.mrb[69].mxu1  ;;  %v10027_v34 = vld [vmem:[#allocation10 + $0x334] ss:$24 sps:$4 sm:$0xff]  }
0x1168   :  { %v2710_v14 = vpop.f32.mrb[70].mxu1  ;;  %v10025_v2 = vld [vmem:[#allocation10 + $0x330] ss:$24 sps:$4 sm:$0xff]  }
0x1169   :  { %v2711_v35 = vadd.f32 %v2710_v14, %v2600_v29  ;;  %v9230_v51 = vpop.f32.mrb[71].mxu1  ;;  %v2724_v22 = vmax.f32 %v2708_v23, 0.0  ;;  %v10028_v23 = vld [vmem:[#allocation10 + $0x338] ss:$24 sps:$4 sm:$0xff]  }
0x116b   :  { %v2725_v37 = vmax.f32 %v2711_v35, 0.0 }
0x116d   :  { %v8555_v24 = vpack.c.bf16 %v2725_v37, %v2724_v22 }
0x116f   :  { %9256 = vmatmul.mubr.bf16.gmra.mrb[80].mxu0 %v8555_v24 }
0x1170   :  { %9259 = vmatprep.mubr.msk.bf16.mxu0 %vm10787_vm0, %v10785_v39 }
0x1172   :  { %v2715_v38 = vpop.f32.mrb[72].mxu1 }
0x1173   :  { %v2716_v25 = vadd.f32 %v2715_v38, %v2600_v29  ;;  %v9233_v40 = vpop.f32.mrb[73].mxu1  ;;  %v10031_v38 = vld [vmem:[#allocation10 + $0x364] ss:$24 sps:$4 sm:$0xff]  }
0x1174   :  { %v2718_v49 = vpop.f32.mrb[74].mxu1  ;;  %v10032_v40 = vld [vmem:[#allocation10 + $0x368] ss:$24 sps:$4 sm:$0xff]  }
0x1175   :  { %v2726_v43 = vmax.f32 %v2716_v25, 0.0  ;;  %v2719_v46 = vadd.f32 %v2718_v49, %v2600_v29  ;;  %v9234_v36 = vpop.f32.mrb[75].mxu1  ;;  %v10029_v25 = vld [vmem:[#allocation10 + $0x360] ss:$24 sps:$4 sm:$0xff]   ;;  %v10035_v49 = vld [vmem:[#allocation10 + $0x394] ss:$24 sps:$4 sm:$0xff]  }
0x1176   :  { %v10036_v36 = vld [vmem:[#allocation10 + $0x398] ss:$24 sps:$4 sm:$0xff]  }
0x1177   :  { %v2746_v47 = vpack.c.bf16 %v2726_v43, %v2725_v37  ;;  %v2727_v44 = vmax.f32 %v2719_v46, 0.0  ;;  %v10033_v46 = vld [vmem:[#allocation10 + $0x390] ss:$24 sps:$4 sm:$0xff]  }
0x1179   :  { %v2747_v60 = vpack.c.bf16 %v2727_v44, %v2727_v44  ;;  %v2760_v61 = vunpack.c.h.b16 %v2746_v47 }
0x117b   :  { %v2761_v63 = vunpack.c.l.b16 %v2747_v60 }
0x117d   :  { %v2764_v9 = vpack.c.b16 %v2761_v63, %v2760_v61  ;;  %v10039_v63 = vld [vmem:[#allocation10 + $0x3c4] ss:$24 sps:$4 sm:$0xff]  }
0x117f   :  { %9260 = vmatmul.mubr.bf16.gmra.mrb[84].mxu0 %v2764_v9  ;;  %v10037_v9 = vld [vmem:[#allocation10 + $0x3c0] ss:$24 sps:$4 sm:$0xff]  }
0x1180   :  { %9279 = vmatprep.mubr.msk.bf16.mxu0 %vm10787_vm0, %v10785_v39 }
0x1228   :  { %v2850_v53 = vpop.f32.mrb[76].mxu0 }
0x1229   :  { %v2851_v15 = vadd.f32 %v2850_v53, %v2751_v12  ;;  %v9253_v17 = vpop.f32.mrb[77].mxu0 }
0x122a   :  { %v2853_v20 = vpop.f32.mrb[78].mxu0 }
0x122b   :  { %v2854_v42 = vadd.f32 %v2853_v20, %v2751_v12  ;;  %v9254_v7 = vpop.f32.mrb[79].mxu0  ;;  %v2873_v18 = vadd.f32 %v2851_v15, %v11476_v13  ;;  %v10043_v20 = vld [vmem:[#allocation10 + $0x3f4] ss:$24 sps:$4 sm:$0xff]  }
0x122c   :  { %v10044_v7 = vld [vmem:[#allocation10 + $0x3f8] ss:$24 sps:$4 sm:$0xff]  }
0x122d   :  { %2879 = vadd.xlane.f32.xlu0 %v2873_v18  ;;  %v2874_v8 = vadd.f32 %v2854_v42, %v11478_v4  ;;  %v10041_v42 = vld [vmem:[#allocation10 + $0x3f0] ss:$24 sps:$4 sm:$0xff]  }
0x122f   :  { %2881 = vadd.xlane.f32.xlu1 %v2874_v8 }
0x1242   :  { %v2858_v21 = vpop.f32.mrb[80].mxu0 }
0x1243   :  { %v2859_v56 = vadd.f32 %v2858_v21, %v2751_v12  ;;  %v9257_v48 = vpop.f32.mrb[81].mxu0  ;;  %v10048_v21 = vld [vmem:[#allocation10 + $0x428] ss:$24 sps:$4 sm:$0xff]  }
0x1244   :  { %v2861_v26 = vpop.f32.mrb[82].mxu0  ;;  %v10051_v48 = vld [vmem:[#allocation10 + $0x454] ss:$24 sps:$4 sm:$0xff]  }
0x1245   :  { %v2862_v29 = vadd.f32 %v2861_v26, %v2751_v12  ;;  %v9258_v50 = vpop.f32.mrb[83].mxu0  ;;  %v2875_v16 = vadd.f32 %v2859_v56, %v11486_v0  ;;  %v10021_v0 = vld [vmem:[#allocation10 + $0x300] ss:$24 sps:$4 sm:$0xff]   ;;  %v10049_v56 = vld [vmem:[#allocation10 + $0x450] ss:$24 sps:$4 sm:$0xff]  }
0x1246   :  { %3150 = vmatpush1.bf16.msra.mxu1 %v10021_v0  ;;  %v10052_v26 = vld [vmem:[#allocation10 + $0x458] ss:$24 sps:$4 sm:$0xff]  }
0x1247   :  { %2883 = vadd.xlane.f32.xlu0 %v2875_v16  ;;  %v2876_v1 = vadd.f32 %v2862_v29, %v11488_v59  ;;  %v10024_v59 = vld [vmem:[#allocation10 + $0x308] ss:$24 sps:$4 sm:$0xff]   ;;  %3151 = vmatprep.subr.bf16.mxu1 %v10027_v34 }
0x1248   :  { %9264 = vmatpush3.bf16.msra.mxu0 %v10024_v59 }
0x1249   :  { %2885 = vadd.xlane.f32.xlu1 %v2876_v1  ;;  %9265 = vmatprep.subr.bf16.mxu0 %v10785_v39 }
0x124a   :  { %3152 = vmatpush1.bf16.msra.mxu1 %v10025_v2 }
0x124b   :  { %3153 = vmatprep.subr.bf16.mxu1 %v10031_v38 }
0x124c   :  { %9266 = vmatpush3.bf16.msra.mxu0 %v10028_v23 }
0x124d   :  { %9267 = vmatprep.subr.bf16.mxu0 %v10785_v39 }
0x124e   :  { %3154 = vmatpush1.bf16.msra.mxu1 %v10029_v25 }
0x124f   :  { %3155 = vmatprep.subr.bf16.mxu1 %v10035_v49 }
0x1250   :  { %9268 = vmatpush3.bf16.msra.mxu0 %v10032_v40 }
0x1251   :  { %9269 = vmatprep.subr.bf16.mxu0 %v10785_v39 }
0x1252   :  { %v2866_v30 = vpop.f32.mrb[84].mxu0  ;;  %3156 = vmatpush1.bf16.msra.mxu1 %v10033_v46 }
0x1253   :  { %v2867_v31 = vadd.f32 %v2866_v30, %v2751_v12  ;;  %v9261_v62 = vpop.f32.mrb[85].mxu0  ;;  %3157 = vmatprep.subr.bf16.mxu1 %v10039_v63 }
0x1254   :  { %v2869_v13 = vpop.f32.mrb[86].mxu0  ;;  %9270 = vmatpush3.bf16.msra.mxu0 %v10036_v36 }
0x1255   :  { %v2870_v52 = vadd.f32 %v2869_v13, %v2751_v12  ;;  %v9262_v32 = vpop.f32.mrb[87].mxu0  ;;  %v11522_v4 = vadd.f32 %v2867_v31, %v11496_v45  ;;  %9271 = vmatprep.subr.bf16.mxu0 %v10785_v39  ;;  %v10040_v12 = vld [vmem:[#allocation10 + $0x3c8] ss:$24 sps:$4 sm:$0xff]  }
0x1256   :  { %3158 = vmatpush1.bf16.msra.mxu1 %v10037_v9 }
0x1257   :  { %2887 = vadd.xlane.f32.xlu0 %v11522_v4  ;;  %v11526_v33 = vadd.f32 %v2870_v52, %v11498_v41  ;;  %3159 = vmatprep.subr.bf16.mxu1 %v10043_v20 }
0x1258   :  { %9272 = vmatpush3.bf16.msra.mxu0 %v10040_v12 }
0x1259   :  { %2889 = vadd.xlane.f32.xlu1 %v11526_v33  ;;  %9273 = vmatprep.subr.bf16.mxu0 %v10785_v39 }
0x125a   :  { %3160 = vmatpush1.bf16.msra.mxu1 %v10041_v42 }
0x125c   :  { %9274 = vmatpush3.bf16.msra.mxu0 %v10044_v7 }
0x125d   :  { %9275 = vmatprep.subr.bf16.mxu0 %v10785_v39 }
0x1260   :  { %9276 = vmatpush3.bf16.msra.mxu0 %v10048_v21 }
0x1261   :  { %9277 = vmatprep.subr.bf16.mxu0 %v10785_v39 }
0x1264   :  { %9278 = vmatpush3.bf16.msra.mxu0 %v10052_v26 }
0x1265   :  { %9351 = vmatprep.subr.bf16.mxu0 %v10785_v39 }
0x12ba   :  { %v2880_v45 = vpop.xlane.xlu0 %2879 }
0x12bb   :  { %v2891_v41 = vmul.f32 0.0078125, %v2880_v45 }
0x12bc   :  { %v2882_v14 = vpop.xlane.xlu1 %2881 }
0x12bd   :  { %v2892_v35 = vmul.f32 0.0078125, %v2882_v14  ;;  %v11531_v51 = vsub.f32 %v2873_v18, %v2891_v41  ;;  %v10047_v18 = vld [vmem:[#allocation10 + $0x424] ss:$24 sps:$4 sm:$0xff]  }
0x12be   :  { %3161 = vmatprep.subr.bf16.mxu1 %v10047_v18 }
0x12bf   :  { %v2903_v22 = vmul.f32 %v11531_v51, %v11531_v51  ;;  %v11535_v37 = vsub.f32 %v2874_v8, %v2892_v35  ;;  %v10045_v8 = vld [vmem:[#allocation10 + $0x420] ss:$24 sps:$4 sm:$0xff]  }
0x12c0   :  { %3162 = vmatpush1.bf16.msra.mxu1 %v10045_v8 }
0x12c1   :  { %2909 = vadd.xlane.f32.xlu0 %v2903_v22  ;;  %v2904_v24 = vmul.f32 %v11535_v37, %v11535_v37  ;;  %3163 = vmatprep.subr.bf16.mxu1 %v10051_v48 }
0x12c3   :  { %2911 = vadd.xlane.f32.xlu1 %v2904_v24 }
0x12c4   :  { %3164 = vmatpush1.bf16.msra.mxu1 %v10049_v56 }
0x12d4   :  { %v2884_v43 = vpop.xlane.xlu0 %2883 }
0x12d5   :  { %v2893_v47 = vmul.f32 0.0078125, %v2884_v43 }
0x12d6   :  { %v2886_v44 = vpop.xlane.xlu1 %2885 }
0x12d7   :  { %v2894_v60 = vmul.f32 0.0078125, %v2886_v44  ;;  %v11540_v61 = vsub.f32 %v2875_v16, %v2893_v47 }
0x12d9   :  { %v2905_v53 = vmul.f32 %v11540_v61, %v11540_v61  ;;  %v11545_v15 = vsub.f32 %v2876_v1, %v2894_v60 }
0x12db   :  { %2913 = vadd.xlane.f32.xlu0 %v2905_v53  ;;  %v2906_v17 = vmul.f32 %v11545_v15, %v11545_v15 }
0x12dd   :  { %2915 = vadd.xlane.f32.xlu1 %v2906_v17 }
0x12e4   :  { %v2888_v29 = vpop.xlane.xlu0 %2887 }
0x12e5   :  { %v2895_v50 = vmul.f32 0.0078125, %v2888_v29 }
0x12e6   :  { %v2890_v16 = vpop.xlane.xlu1 %2889 }
0x12e7   :  { %v2896_v1 = vmul.f32 0.0078125, %v2890_v16  ;;  %v2901_v30 = vsub.f32 %v11522_v4, %v2895_v50  ;;  %v8247_v4 = vld [vmem:[%s12569_s6 + $0x18] sm:$0x3] }
0x12e8   :  { %v2948_v23 = vrot.slane %v8247_v4, %v11019_v10  ;;  %v2958_v35 = vrot.slane %v8247_v4, %v11064_v57 }
0x12e9   :  { %v2907_v31 = vmul.f32 %v2901_v30, %v2901_v30  ;;  %v2902_v62 = vsub.f32 %v11526_v33, %v2896_v1 }
0x12eb   :  { %2917 = vadd.xlane.f32.xlu0 %v2907_v31  ;;  %v2908_v13 = vmul.f32 %v2902_v62, %v2902_v62 }
0x12ed   :  { %2919 = vadd.xlane.f32.xlu1 %v2908_v13 }
0x134e   :  { %v2910_v52 = vpop.xlane.xlu0 %2909 }
0x134f   :  { %v2921_v32 = vmul.f32 0.0078125, %v2910_v52 }
0x1350   :  { %v2912_v0 = vpop.xlane.xlu1 %2911 }
0x1351   :  { %v2927_v54 = vadd.f32 1e-05, %v2921_v32  ;;  %v2922_v59 = vmul.f32 0.0078125, %v2912_v0 }
0x1353   :  { %10338 = vrsqrt.f32 %v2927_v54  ;;  %v2928_v34 = vadd.f32 1e-05, %v2922_v59 }
0x1355   :  { %10340 = vrsqrt.f32 %v2928_v34 }
0x135d   :  { %v10339_v2 = vpop.eup %10338 }
0x135e   :  { %v2939_v33 = vmul.f32 %v10339_v2, %v11531_v51 }
0x135f   :  { %v10341_v45 = vpop.eup %10340 }
0x1360   :  { %v2949_v41 = vmul.f32 %v2948_v23, %v2939_v33  ;;  %v2940_v14 = vmul.f32 %v10341_v45, %v11535_v37 }
0x1362   :  { %v2950_v22 = vmul.f32 %v2948_v23, %v2940_v14  ;;  %v11562_v24 = vadd.f32 %v2958_v35, %v2949_v41 }
0x1364   :  { %v11564_v38 = vadd.f32 %v2958_v35, %v2950_v22 }
0x1366   :  { %v3001_v25 = vpack.c.bf16 %v11564_v38, %v11562_v24 }
0x1368   :  { %v2914_v40 = vpop.xlane.xlu0 %2913  ;;  %3182 = vmatmul.mubr.bf16.vlgmr.msra.gmra.mrb[76].mxu1 %v3001_v25  ;;  %9280 = vmatmul.mubr.bf16.vlgmr.msra.gmra.mrb[88].mxu0 %v3001_v25 }
0x1369   :  { %v2923_v49 = vmul.f32 0.0078125, %v2914_v40  ;;  %3191 = vmatprep.mubr.bf16.mxu1 %v10786_v3  ;;  %9283 = vmatprep.mubr.msk.bf16.mxu0 %vm10787_vm0, %v10785_v39 }
0x136a   :  { %v2916_v51 = vpop.xlane.xlu1 %2915 }
0x136b   :  { %v2929_v37 = vadd.f32 1e-05, %v2923_v49  ;;  %v2924_v43 = vmul.f32 0.0078125, %v2916_v51 }
0x136d   :  { %10342 = vrsqrt.f32 %v2929_v37  ;;  %v2930_v46 = vadd.f32 1e-05, %v2924_v43 }
0x136f   :  { %10344 = vrsqrt.f32 %v2930_v46 }
0x1377   :  { %v10343_v36 = vpop.eup %10342 }
0x1378   :  { %v2918_v47 = vpop.xlane.xlu0 %2917  ;;  %v2941_v44 = vmul.f32 %v10343_v36, %v11540_v61 }
0x1379   :  { %v10345_v60 = vpop.eup %10344  ;;  %v2925_v63 = vmul.f32 0.0078125, %v2918_v47 }
0x137a   :  { %v2920_v9 = vpop.xlane.xlu1 %2919  ;;  %v2942_v12 = vmul.f32 %v10345_v60, %v11545_v15  ;;  %v2951_v53 = vmul.f32 %v2948_v23, %v2941_v44 }
0x137b   :  { %v2931_v17 = vadd.f32 1e-05, %v2925_v63  ;;  %v2926_v20 = vmul.f32 0.0078125, %v2920_v9 }
0x137c   :  { %v2952_v42 = vmul.f32 %v2948_v23, %v2942_v12  ;;  %v11573_v18 = vadd.f32 %v2958_v35, %v2951_v53 }
0x137d   :  { %10346 = vrsqrt.f32 %v2931_v17  ;;  %v2932_v7 = vadd.f32 1e-05, %v2926_v20 }
0x137e   :  { %v11575_v8 = vadd.f32 %v2958_v35, %v2952_v42 }
0x137f   :  { %10348 = vrsqrt.f32 %v2932_v7 }
0x1380   :  { %v8556_v21 = vpack.c.bf16 %v11575_v8, %v11573_v18 }
0x1382   :  { %3192 = vmatmul.mubr.bf16.gmra.mrb[80].mxu1 %v8556_v21  ;;  %9284 = vmatmul.mubr.bf16.gmra.mrb[92].mxu0 %v8556_v21 }
0x1383   :  { %3201 = vmatprep.mubr.bf16.mxu1 %v10786_v3  ;;  %9287 = vmatprep.mubr.msk.bf16.mxu0 %vm10787_vm0, %v10785_v39 }
0x1387   :  { %v10347_v61 = vpop.eup %10346 }
0x1388   :  { %v2943_v15 = vmul.f32 %v10347_v61, %v2901_v30  ;;  %v11595_v30 = vld [vmem:[%s12569_s6 + $0x20] sm:$0xff] }
0x1389   :  { %v10349_v56 = vpop.eup %10348  ;;  %v11603_v0 = vrot.slane %v11595_v30, %v11056_v55  ;;  %v3282_v34 = vrot.slane %v11595_v30, %v11064_v57 }
0x138a   :  { %v2944_v48 = vmul.f32 %v10349_v56, %v2902_v62  ;;  %v2953_v26 = vmul.f32 %v2948_v23, %v2943_v15  ;;  %v11599_v62 = vrot.slane %v11595_v30, %v11019_v10 }
0x138c   :  { %v2954_v29 = vmul.f32 %v2948_v23, %v2944_v48  ;;  %v11582_v50 = vadd.f32 %v2958_v35, %v2953_v26 }
0x138e   :  { %v11584_v16 = vadd.f32 %v2958_v35, %v2954_v29  ;;  %v3003_v1 = vpack.c.bf16 %v11582_v50, %v11575_v8 }
0x1390   :  { %v3004_v31 = vpack.c.bf16 %v11584_v16, %v11584_v16  ;;  %v3013_v13 = vunpack.c.h.b16 %v3003_v1 }
0x1392   :  { %v3014_v52 = vunpack.c.l.b16 %v3004_v31 }
0x1394   :  { %v3017_v32 = vpack.c.b16 %v3014_v52, %v3013_v13 }
0x1396   :  { %3202 = vmatmul.mubr.bf16.gmra.mrb[84].mxu1 %v3017_v32  ;;  %9288 = vmatmul.mubr.bf16.gmra.mrb[96].mxu0 %v3017_v32 }
0x1397   :  { %9367 = vmatprep.mubr.msk.bf16.mxu0 %vm10787_vm0, %v10785_v39 }
0x143b   :  { %v3183_v54 = vpop.f32.mrb[76].mxu1  ;;  %v3246_v59 = vpop.f32.mrb[88].mxu0 }
0x143c   :  { %v3185_v4 = vpop.f32.mrb[77].mxu1  ;;  %v9281_v23 = vpop.f32.mrb[89].mxu0  ;;  %v3273_v45 = vadd.f32 %v11599_v62, %v3183_v54  ;;  %v3293_v41 = vadd.f32 %v11603_v0, %v3246_v59 }
0x143d   :  { %v3187_v2 = vpop.f32.mrb[78].mxu1  ;;  %v3249_v33 = vpop.f32.mrb[90].mxu0  ;;  %v3283_v40 = vadd.f32 %v3282_v34, %v3185_v4 }
0x143e   :  { %v3274_v14 = vadd.f32 %v11599_v62, %v3187_v2  ;;  %v3294_v35 = vadd.f32 %v11603_v0, %v3249_v33  ;;  %v3189_v22 = vpop.f32.mrb[79].mxu1  ;;  %v9282_v25 = vpop.f32.mrb[91].mxu0 }
0x143f   :  { %v3284_v49 = vadd.f32 %v3282_v34, %v3189_v22 }
0x1440   :  { %v3299_v51 = vpack.c.bf16 %v3274_v14, %v3273_v45  ;;  %v3485_v37 = vpack.c.bf16 %v3294_v35, %v3293_v41 }
0x1441   :  { %v3303_v43 = vpack.c.bf16 %v3284_v49, %v3283_v40 }
0x1442   :  { %9295 = vmatprep.mubr.bf16.mxu1 %v3299_v51 }
0x1443   :  { %9291 = vmatprep.subr.bf16.mxu1 %v3303_v43 }
0x1444   :  { %9292 = vmatpush3.bf16.xpose.msra.mxu1 %v3303_v43 }
0x1455   :  { %v3193_v46 = vpop.f32.mrb[80].mxu1  ;;  %v3254_v36 = vpop.f32.mrb[92].mxu0 }
0x1456   :  { %v3195_v47 = vpop.f32.mrb[81].mxu1  ;;  %v9285_v44 = vpop.f32.mrb[93].mxu0  ;;  %v3275_v20 = vadd.f32 %v11599_v62, %v3193_v46  ;;  %v3295_v14 = vadd.f32 %v11603_v0, %v3254_v36 }
0x1457   :  { %v3285_v60 = vadd.f32 %v3282_v34, %v3195_v47  ;;  %v3197_v63 = vpop.f32.mrb[82].mxu1  ;;  %v3257_v9 = vpop.f32.mrb[94].mxu0 }
0x1458   :  { %v3199_v12 = vpop.f32.mrb[83].mxu1  ;;  %v9286_v53 = vpop.f32.mrb[95].mxu0  ;;  %v3300_v42 = vpack.c.bf16 %v3275_v20, %v3275_v20  ;;  %v3276_v61 = vadd.f32 %v11599_v62, %v3197_v63  ;;  %v3296_v15 = vadd.f32 %v11603_v0, %v3257_v9  ;;  %v3486_v22 = vpack.c.bf16 %v3295_v14, %v3295_v14 }
0x1459   :  { %v3304_v17 = vpack.c.bf16 %v3285_v60, %v3285_v60  ;;  %v3286_v1 = vadd.f32 %v3282_v34, %v3199_v12 }
0x145a   :  { %v3496_v25 = vsel %vm967_vm2, %v3486_v22, 0 }
0x145b   :  { %9293 = vmatprep.subr.bf16.mxu1 %v3304_v17 }
0x145c   :  { %9294 = vmatpush3.bf16.xpose.msra.mxu1 %v3304_v17 }
0x1463   :  { %9296 = vmatmul.mubr.bf16.vlgmr.msra.gmra.mrb[88].mxu1 %v3300_v42 }
0x1469   :  { %v3203_v7 = vpop.f32.mrb[84].mxu1  ;;  %v3262_v21 = vpop.f32.mrb[96].mxu0 }
0x146a   :  { %v3277_v56 = vadd.f32 %v11599_v62, %v3203_v7  ;;  %v3297_v48 = vadd.f32 %v11603_v0, %v3262_v21  ;;  %v3205_v26 = vpop.f32.mrb[85].mxu1  ;;  %v9289_v29 = vpop.f32.mrb[97].mxu0 }
0x146b   :  { %v3287_v31 = vadd.f32 %v3282_v34, %v3205_v26  ;;  %v3207_v13 = vpop.f32.mrb[86].mxu1  ;;  %v3265_v52 = vpop.f32.mrb[98].mxu0 }
0x146c   :  { %v3301_v32 = vpack.c.bf16 %v3277_v56, %v3276_v61  ;;  %v11616_v54 = vpack.c.bf16 %v3297_v48, %v3296_v15  ;;  %v11619_v59 = vadd.f32 %v11603_v0, %v3265_v52  ;;  %v3209_v4 = vpop.f32.mrb[87].mxu1  ;;  %v9290_v23 = vpop.f32.mrb[99].mxu0  ;;  %v3278_v41 = vadd.f32 %v11599_v62, %v3207_v13 }
0x146d   :  { %v3305_v2 = vpack.c.bf16 %v3287_v31, %v3286_v1  ;;  %v3288_v33 = vadd.f32 %v3282_v34, %v3209_v4 }
0x146e   :  { %9303 = vmatprep.mubr.bf16.mxu1 %v3301_v32  ;;  %v3302_v35 = vpack.c.bf16 %v3278_v41, %v3278_v41 }
0x146f   :  { %v3306_v45 = vpack.c.bf16 %v3288_v33, %v3288_v33  ;;  %9299 = vmatprep.subr.bf16.mxu1 %v3305_v2 }
0x1470   :  { %9300 = vmatpush3.bf16.xpose.msra.mxu1 %v3305_v2 }
0x1471   :  { %9301 = vmatprep.subr.bf16.mxu1 %v3306_v45 }
0x1478   :  { %9302 = vmatpush3.bf16.xpose.msra.mxu1 %v3306_v45 }
0x1479   :  { %9307 = vmatprep.subr.bf16.mxu1 %v3485_v37 }
0x147f   :  { %9304 = vmatmul.mubr.bf16.vlgmr.msra.gmra.mrb[92].mxu1 %v3302_v35 }
0x1480   :  { %9308 = vmatpush3.bf16.msra.mxu1 %v3485_v37 }
0x1481   :  { %9863 = vmatprep.subr.msk.bf16.mxu1 %vm967_vm2, %v3486_v22 }
0x1484   :  { %9310 = vmatpush3.bf16.msra.mxu1 %v3496_v25 }
0x1485   :  { %9315 = vmatprep.subr.bf16.mxu1 %v11616_v54 }
0x1536   :  { %v9297_v34 = vpop.f32.mrb[88].mxu1 }
0x1537   :  { %v3341_v40 = vpop.f32.mrb[89].mxu1  ;;  %v3405_v49 = vmul.f32 0.088388346, %v9297_v34 }
0x1538   :  { %v3403_v51 = vmul.f32 0.088388346, %v3341_v40  ;;  %v9298_v43 = vpop.f32.mrb[90].mxu1 }
0x1539   :  { %v3344_v62 = vpop.f32.mrb[91].mxu1  ;;  %v3411_v47 = vsel %vm435_vm3, %v3405_v49, -1e+30 }
0x153a   :  { %v3404_v46 = vmul.f32 0.088388346, %v3344_v62  ;;  %v3409_v0 = vsel %vm435_vm3, %v3403_v51, -1e+30  ;;  %v3421_v60 = vsel %vm886_vm4, %v3411_v47, -inf }
0x153b   :  { %v3415_v36 = vsel %vm886_vm4, %v3409_v0, -inf }
0x153c   :  { %3416 = vmax.xlane.f32.xlu0 %v3415_v36  ;;  %v3410_v37 = vsel %vm435_vm3, %v3404_v46, -1e+30 }
0x153d   :  { %v3418_v44 = vsel %vm886_vm4, %v3410_v37, -inf }
0x153e   :  { %3419 = vmax.xlane.f32.xlu1 %v3418_v44 }
0x1540   :  { %3422 = vmax.xlane.f32.xlu0 %v3421_v60 }
0x1552   :  { %v9305_v63 = vpop.f32.mrb[92].mxu1 }
0x1553   :  { %v3389_v9 = vpop.f32.mrb[93].mxu1  ;;  %v3408_v12 = vmul.f32 0.088388346, %v9305_v63 }
0x1554   :  { %v3406_v53 = vmul.f32 0.088388346, %v3389_v9  ;;  %v9306_v17 = vpop.f32.mrb[94].mxu1 }
0x1555   :  { %v3392_v20 = vpop.f32.mrb[95].mxu1  ;;  %v3414_v15 = vsel %vm435_vm3, %v3408_v12, -1e+30 }
0x1556   :  { %v3407_v42 = vmul.f32 0.088388346, %v3392_v20  ;;  %v3412_v7 = vsel %vm435_vm3, %v3406_v53, -1e+30  ;;  %v3430_v48 = vsel %vm886_vm4, %v3414_v15, -inf }
0x1557   :  { %v3424_v21 = vsel %vm886_vm4, %v3412_v7, -inf }
0x1558   :  { %3425 = vmax.xlane.f32.xlu1 %v3424_v21  ;;  %v3413_v61 = vsel %vm435_vm3, %v3407_v42, -1e+30 }
0x1559   :  { %v3427_v56 = vsel %vm886_vm4, %v3413_v61, -inf }
0x155a   :  { %3428 = vmax.xlane.f32.xlu0 %v3427_v56  ;;  %v3488_v56 = vpack.c.bf16 %v11619_v59, %v11619_v59 }
0x155c   :  { %3431 = vmax.xlane.f32.xlu1 %v3430_v48  ;;  %v3553_v48 = vsel %vm967_vm2, %v3488_v56, 0 }
0x15c9   :  { %v3417_v26 = vpop.xlane.xlu0 %3416 }
0x15ca   :  { %v3433_v29 = vsub.f32 %v3409_v0, %v3417_v26 }
0x15cb   :  { %v3420_v1 = vpop.xlane.xlu1 %3419 }
0x15cc   :  { %v3439_v31 = vmul.f32 1.442695, %v3433_v29  ;;  %v3434_v13 = vsub.f32 %v3410_v37, %v3420_v1 }
0x15cd   :  { %v3423_v52 = vpop.xlane.xlu0 %3422 }
0x15ce   :  { %10350 = vpow2.f32 %v3439_v31  ;;  %v3441_v32 = vmul.f32 1.442695, %v3434_v13  ;;  %v3435_v4 = vsub.f32 %v3411_v47, %v3423_v52 }
0x15d0   :  { %10352 = vpow2.f32 %v3441_v32  ;;  %v3443_v23 = vmul.f32 1.442695, %v3435_v4 }
0x15d2   :  { %10354 = vpow2.f32 %v3443_v23  ;;  %v10053_v23 = vld [vmem:[#allocation10 + $0x30c] ss:$24 sps:$4 sm:$0xff]  }
0x15d8   :  { %v10351_v2 = vpop.eup %10350 }
0x15d9   :  { %v3451_v33 = vsel %vm886_vm4, %v10351_v2, 0.0 }
0x15da   :  { %v10353_v45 = vpop.eup %10352  ;;  %3452 = vadd.xlane.f32.xlu0 %v3451_v33  ;;  %v10054_v33 = vld [vmem:[#allocation10 + $0x33c] ss:$24 sps:$4 sm:$0xff]  }
0x15db   :  { %v3454_v41 = vsel %vm886_vm4, %v10353_v45, 0.0 }
0x15dc   :  { %v10355_v14 = vpop.eup %10354  ;;  %3455 = vadd.xlane.f32.xlu1 %v3454_v41  ;;  %v10056_v41 = vld [vmem:[#allocation10 + $0x39c] ss:$24 sps:$4 sm:$0xff]  }
0x15dd   :  { %v3457_v35 = vsel %vm886_vm4, %v10355_v14, 0.0 }
0x15de   :  { %3458 = vadd.xlane.f32.xlu0 %v3457_v35  ;;  %v10058_v35 = vld [vmem:[#allocation10 + $0x3fc] ss:$24 sps:$4 sm:$0xff]  }
0x15e5   :  { %v3426_v22 = vpop.xlane.xlu1 %3425 }
0x15e6   :  { %v3436_v25 = vsub.f32 %v3412_v7, %v3426_v22  ;;  %v10059_v22 = vld [vmem:[#allocation10 + $0x42c] ss:$24 sps:$4 sm:$0xff]  }
0x15e7   :  { %v3429_v34 = vpop.xlane.xlu0 %3428 }
0x15e8   :  { %v3445_v40 = vmul.f32 1.442695, %v3436_v25  ;;  %v3437_v49 = vsub.f32 %v3413_v61, %v3429_v34  ;;  %v10060_v25 = vld [vmem:[#allocation10 + $0x45c] ss:$24 sps:$4 sm:$0xff]  }
0x15e9   :  { %v3432_v51 = vpop.xlane.xlu1 %3431 }
0x15ea   :  { %10356 = vpow2.f32 %v3445_v40  ;;  %v3447_v43 = vmul.f32 1.442695, %v3437_v49  ;;  %v3438_v62 = vsub.f32 %v3414_v15, %v3432_v51 }
0x15ec   :  { %10358 = vpow2.f32 %v3447_v43  ;;  %v3449_v46 = vmul.f32 1.442695, %v3438_v62 }
0x15ee   :  { %10360 = vpow2.f32 %v3449_v46 }
0x15f4   :  { %v10357_v0 = vpop.eup %10356 }
0x15f5   :  { %v3460_v36 = vsel %vm886_vm4, %v10357_v0, 0.0 }
0x15f6   :  { %v10359_v37 = vpop.eup %10358  ;;  %3461 = vadd.xlane.f32.xlu1 %v3460_v36 }
0x15f7   :  { %v3463_v47 = vsel %vm886_vm4, %v10359_v37, 0.0 }
0x15f8   :  { %v10361_v44 = vpop.eup %10360  ;;  %3464 = vadd.xlane.f32.xlu0 %v3463_v47 }
0x15f9   :  { %v3466_v60 = vsel %vm886_vm4, %v10361_v44, 0.0 }
0x15fa   :  { %3467 = vadd.xlane.f32.xlu1 %v3466_v60 }
0x1667   :  { %v3453_v63 = vpop.xlane.xlu0 %3452 }
0x1668   :  { %10362 = vrcp.f32 %v3453_v63 }
0x1669   :  { %v3456_v9 = vpop.xlane.xlu1 %3455 }
0x166a   :  { %10364 = vrcp.f32 %v3456_v9 }
0x166b   :  { %v3459_v12 = vpop.xlane.xlu0 %3458 }
0x166c   :  { %10366 = vrcp.f32 %v3459_v12  ;;  %v3626_v12 = vrot.slane %v11595_v30, %v11150_v11 }
0x1672   :  { %v10363_v53 = vpop.eup %10362 }
0x1673   :  { %v3475_v20 = vmul.f32 %v10363_v53, %v10351_v2 }
0x1674   :  { %v10365_v17 = vpop.eup %10364 }
0x1675   :  { %v3476_v42 = vmul.f32 %v10365_v17, %v10353_v45  ;;  %v10055_v45 = vld [vmem:[#allocation10 + $0x36c] ss:$24 sps:$4 sm:$0xff]  }
0x1676   :  { %v10367_v7 = vpop.eup %10366 }
0x1677   :  { %v3481_v21 = vpack.c.bf16 %v3476_v42, %v3475_v20  ;;  %v3477_v61 = vmul.f32 %v10367_v7, %v10355_v14  ;;  %v10057_v14 = vld [vmem:[#allocation10 + $0x3cc] ss:$24 sps:$4 sm:$0xff]  }
0x1679   :  { %9311 = vmatprep.mubr.msk.bf16.mxu1 %vm886_vm4, %v3481_v21  ;;  %v3482_v15 = vpack.c.bf16 %v3477_v61, %v3477_v61 }
0x167b   :  { %9312 = vmatmul.mubr.msk.bf16.vlgmr.msra.gmra.mrb[96].mxu1 %vm886_vm4, %v3482_v15 }
0x167c   :  { %9316 = vmatpush3.bf16.msra.mxu1 %v11616_v54 }
0x167d   :  { %9864 = vmatprep.subr.msk.bf16.mxu1 %vm967_vm2, %v3488_v56 }
0x1680   :  { %9318 = vmatpush3.bf16.msra.mxu1 %v3553_v48 }
0x1681   :  { %9323 = vmatprep.subr.bf16.mxu1 %v10785_v39 }
0x1683   :  { %v3462_v26 = vpop.xlane.xlu1 %3461 }
0x1684   :  { %10368 = vrcp.f32 %v3462_v26 }
0x1685   :  { %v3465_v29 = vpop.xlane.xlu0 %3464 }
0x1686   :  { %10370 = vrcp.f32 %v3465_v29 }
0x1687   :  { %v3468_v1 = vpop.xlane.xlu1 %3467 }
0x1688   :  { %10372 = vrcp.f32 %v3468_v1 }
0x168e   :  { %v10369_v31 = vpop.eup %10368 }
0x168f   :  { %v3478_v59 = vmul.f32 %v10369_v31, %v10357_v0 }
0x1690   :  { %v10371_v13 = vpop.eup %10370 }
0x1691   :  { %v3479_v52 = vmul.f32 %v10371_v13, %v10359_v37 }
0x1692   :  { %v10373_v32 = vpop.eup %10372 }
0x1693   :  { %v3483_v4 = vpack.c.bf16 %v3479_v52, %v3478_v59  ;;  %v3480_v54 = vmul.f32 %v10373_v32, %v10361_v44 }
0x1695   :  { %9319 = vmatprep.mubr.msk.bf16.mxu1 %vm886_vm4, %v3483_v4  ;;  %v3484_v2 = vpack.c.bf16 %v3480_v54, %v3480_v54 }
0x1697   :  { %9320 = vmatmul.mubr.msk.bf16.vlgmr.msra.gmra.mrb[100].mxu1 %vm886_vm4, %v3484_v2 }
0x1698   :  { %9324 = vmatpush3.bf16.msra.mxu1 %v10053_v23  ;;  %9339 = vmatprep.mubr.msk.bf16.mxu1 %vm10787_vm0, %v10785_v39 }
0x1699   :  { %9325 = vmatprep.subr.bf16.mxu1 %v10785_v39 }
0x169c   :  { %9326 = vmatpush3.bf16.msra.mxu1 %v10054_v33  ;;  %v10061_v33 = vld [vmem:[#allocation10 + $0x310] ss:$24 sps:$4 sm:$0xff]  }
0x169d   :  { %9327 = vmatprep.subr.bf16.mxu1 %v10785_v39  ;;  %9352 = vmatpush3.bf16.msra.mxu0 %v10061_v33 }
0x169e   :  { %9353 = vmatprep.subr.bf16.mxu0 %v10785_v39 }
0x16a0   :  { %9328 = vmatpush3.bf16.msra.mxu1 %v10055_v45  ;;  %v10062_v45 = vld [vmem:[#allocation10 + $0x340] ss:$24 sps:$4 sm:$0xff]  }
0x16a1   :  { %9329 = vmatprep.subr.bf16.mxu1 %v10785_v39  ;;  %9354 = vmatpush3.bf16.msra.mxu0 %v10062_v45 }
0x16a2   :  { %9355 = vmatprep.subr.bf16.mxu0 %v10785_v39 }
0x16a4   :  { %9330 = vmatpush3.bf16.msra.mxu1 %v10056_v41 }
0x16a5   :  { %9331 = vmatprep.subr.bf16.mxu1 %v10785_v39 }
0x16a8   :  { %9332 = vmatpush3.bf16.msra.mxu1 %v10057_v14 }
0x16a9   :  { %9333 = vmatprep.subr.bf16.mxu1 %v10785_v39 }
0x16ac   :  { %9334 = vmatpush3.bf16.msra.mxu1 %v10058_v35 }
0x16ad   :  { %9335 = vmatprep.subr.bf16.mxu1 %v10785_v39 }
0x16b0   :  { %9336 = vmatpush3.bf16.msra.mxu1 %v10059_v22 }
0x16b1   :  { %9337 = vmatprep.subr.bf16.mxu1 %v10785_v39 }
0x16b4   :  { %9338 = vmatpush3.bf16.msra.mxu1 %v10060_v25  ;;  %v10063_v25 = vld [vmem:[#allocation10 + $0x370] ss:$24 sps:$4 sm:$0xff]  }
0x16b5   :  { %9379 = vmatprep.subr.bf16.mxu1 %v10785_v39  ;;  %9356 = vmatpush3.bf16.msra.mxu0 %v10063_v25 }
0x16b6   :  { %9357 = vmatprep.subr.bf16.mxu0 %v10785_v39 }
0x174e   :  { %v9313_v34 = vpop.f32.mrb[96].mxu1 }
0x174f   :  { %v3532_v40 = vpop.f32.mrb[97].mxu1 }
0x1750   :  { %v9314_v49 = vpop.f32.mrb[98].mxu1 }
0x1751   :  { %v3535_v51 = vpop.f32.mrb[99].mxu1 }
0x1752   :  { %v3619_v43 = vpack.c.bf16 %v3535_v51, %v3532_v40  ;;  %v10064_v40 = vld [vmem:[#allocation10 + $0x3a0] ss:$24 sps:$4 sm:$0xff]  }
0x1753   :  { %9358 = vmatpush3.bf16.msra.mxu0 %v10064_v40 }
0x1754   :  { %9340 = vmatmul.mubr.bf16.vlgmr.msra.gmra.mrb[104].mxu1 %v3619_v43  ;;  %9359 = vmatprep.subr.bf16.mxu0 %v10785_v39 }
0x1755   :  { %9343 = vmatprep.mubr.msk.bf16.mxu1 %vm10787_vm0, %v10785_v39 }
0x176a   :  { %v9321_v62 = vpop.f32.mrb[100].mxu1 }
0x176b   :  { %v3589_v46 = vpop.f32.mrb[101].mxu1  ;;  %v3622_v0 = vpack.c.bf16 %v9321_v62, %v9321_v62 }
0x176c   :  { %v8557_v36 = vpack.c.bf16 %v3589_v46, %v9313_v34  ;;  %v9322_v37 = vpop.f32.mrb[102].mxu1 }
0x176d   :  { %v3592_v47 = vpop.f32.mrb[103].mxu1  ;;  %v3636_v60 = vunpack.c.l.b16 %v3622_v0 }
0x176e   :  { %v3621_v44 = vpack.c.bf16 %v3592_v47, %v3589_v46  ;;  %9344 = vmatmul.mubr.bf16.gmra.mrb[108].mxu1 %v8557_v36  ;;  %v10065_v46 = vld [vmem:[#allocation10 + $0x3d0] ss:$24 sps:$4 sm:$0xff]  }
0x176f   :  { %9347 = vmatprep.mubr.msk.bf16.mxu1 %vm10787_vm0, %v10785_v39  ;;  %9360 = vmatpush3.bf16.msra.mxu0 %v10065_v46 }
0x1770   :  { %v3635_v63 = vunpack.c.h.b16 %v3621_v44  ;;  %9361 = vmatprep.subr.bf16.mxu0 %v10785_v39  ;;  %v10066_v44 = vld [vmem:[#allocation10 + $0x400] ss:$24 sps:$4 sm:$0xff]  }
0x1772   :  { %v3639_v9 = vpack.c.b16 %v3636_v60, %v3635_v63 }
0x1773   :  { %9362 = vmatpush3.bf16.msra.mxu0 %v10066_v44 }
0x1774   :  { %9363 = vmatprep.subr.bf16.mxu0 %v10785_v39 }
0x1776   :  { %9348 = vmatmul.mubr.bf16.gmra.mrb[112].mxu1 %v3639_v9 }
0x1777   :  { %9395 = vmatprep.mubr.msk.bf16.mxu1 %vm10787_vm0, %v10785_v39 }
0x1827   :  { %v3725_v53 = vpop.f32.mrb[104].mxu1 }
0x1828   :  { %v3726_v17 = vadd.f32 %v3725_v53, %v3626_v12  ;;  %v9341_v20 = vpop.f32.mrb[105].mxu1  ;;  %v10067_v53 = vld [vmem:[#allocation10 + $0x430] ss:$24 sps:$4 sm:$0xff]  }
0x1829   :  { %v3728_v42 = vpop.f32.mrb[106].mxu1  ;;  %9364 = vmatpush3.bf16.msra.mxu0 %v10067_v53 }
0x182a   :  { %v3729_v7 = vadd.f32 %v3728_v42, %v3626_v12  ;;  %v9342_v21 = vpop.f32.mrb[107].mxu1  ;;  %v3748_v61 = vadd.f32 %v3726_v17, %v11562_v24  ;;  %v10068_v42 = vld [vmem:[#allocation10 + $0x460] ss:$24 sps:$4 sm:$0xff]   ;;  %9365 = vmatprep.subr.bf16.mxu0 %v10785_v39 }
0x182b   :  { %v10069_v21 = vld [vmem:[#allocation10 + $0x314] ss:$24 sps:$4 sm:$0xff]  }
0x182c   :  { %3754 = vadd.xlane.f32.xlu0 %v3748_v61  ;;  %v3749_v15 = vadd.f32 %v3729_v7, %v11564_v38  ;;  %9380 = vmatpush3.bf16.msra.mxu1 %v10069_v21 }
0x182d   :  { %9366 = vmatpush3.bf16.msra.mxu0 %v10068_v42  ;;  %9381 = vmatprep.subr.bf16.mxu1 %v10785_v39 }
0x182e   :  { %3756 = vadd.xlane.f32.xlu1 %v3749_v15 }
0x1841   :  { %v3733_v56 = vpop.f32.mrb[108].mxu1 }
0x1842   :  { %v3734_v48 = vadd.f32 %v3733_v56, %v3626_v12  ;;  %v9345_v26 = vpop.f32.mrb[109].mxu1  ;;  %v10072_v56 = vld [vmem:[#allocation10 + $0x3a4] ss:$24 sps:$4 sm:$0xff]  }
0x1843   :  { %v3736_v29 = vpop.f32.mrb[110].mxu1  ;;  %v10074_v26 = vld [vmem:[#allocation10 + $0x404] ss:$24 sps:$4 sm:$0xff]  }
0x1844   :  { %v3737_v1 = vadd.f32 %v3736_v29, %v3626_v12  ;;  %v9346_v31 = vpop.f32.mrb[111].mxu1  ;;  %v3750_v13 = vadd.f32 %v3734_v48, %v11573_v18  ;;  %v10073_v48 = vld [vmem:[#allocation10 + $0x3d4] ss:$24 sps:$4 sm:$0xff]  }
0x1846   :  { %3758 = vadd.xlane.f32.xlu0 %v3750_v13  ;;  %v3751_v59 = vadd.f32 %v3737_v1, %v11575_v8 }
0x1848   :  { %3760 = vadd.xlane.f32.xlu1 %v3751_v59 }
0x1849   :  { %v3741_v52 = vpop.f32.mrb[112].mxu1 }
0x184a   :  { %v3742_v32 = vadd.f32 %v3741_v52, %v3626_v12  ;;  %v9349_v4 = vpop.f32.mrb[113].mxu1 }
0x184b   :  { %v3744_v24 = vpop.f32.mrb[114].mxu1 }
0x184c   :  { %v3745_v54 = vadd.f32 %v3744_v24, %v3626_v12  ;;  %v9350_v23 = vpop.f32.mrb[115].mxu1  ;;  %v3752_v38 = vadd.f32 %v3742_v32, %v11582_v50  ;;  %v3823_v32 = vrot.slane %v11595_v30, %v11198_v27 }
0x184e   :  { %3762 = vadd.xlane.f32.xlu0 %v3752_v38  ;;  %v3753_v2 = vadd.f32 %v3745_v54, %v11584_v16 }
0x1850   :  { %3764 = vadd.xlane.f32.xlu1 %v3753_v2 }
0x18b9   :  { %v3755_v18 = vpop.xlane.xlu0 %3754 }
0x18ba   :  { %v3766_v8 = vmul.f32 0.0078125, %v3755_v18 }
0x18bb   :  { %v3757_v41 = vpop.xlane.xlu1 %3756 }
0x18bc   :  { %v3767_v14 = vmul.f32 0.0078125, %v3757_v41  ;;  %v11686_v35 = vsub.f32 %v3748_v61, %v3766_v8  ;;  %v10070_v61 = vld [vmem:[#allocation10 + $0x344] ss:$24 sps:$4 sm:$0xff]  }
0x18bd   :  { %9382 = vmatpush3.bf16.msra.mxu1 %v10070_v61 }
0x18be   :  { %v3778_v50 = vmul.f32 %v11686_v35, %v11686_v35  ;;  %v11690_v22 = vsub.f32 %v3749_v15, %v3767_v14  ;;  %v10071_v15 = vld [vmem:[#allocation10 + $0x374] ss:$24 sps:$4 sm:$0xff]   ;;  %9383 = vmatprep.subr.bf16.mxu1 %v10785_v39 }
0x18c0   :  { %3784 = vadd.xlane.f32.xlu0 %v3778_v50  ;;  %v3779_v16 = vmul.f32 %v11690_v22, %v11690_v22 }
0x18c1   :  { %9384 = vmatpush3.bf16.msra.mxu1 %v10071_v15 }
0x18c2   :  { %3786 = vadd.xlane.f32.xlu1 %v3779_v16  ;;  %9385 = vmatprep.subr.bf16.mxu1 %v10785_v39 }
0x18c5   :  { %9386 = vmatpush3.bf16.msra.mxu1 %v10072_v56 }
0x18c6   :  { %9387 = vmatprep.subr.bf16.mxu1 %v10785_v39 }
0x18c9   :  { %9388 = vmatpush3.bf16.msra.mxu1 %v10073_v48 }
0x18ca   :  { %9389 = vmatprep.subr.bf16.mxu1 %v10785_v39 }
0x18cd   :  { %9390 = vmatpush3.bf16.msra.mxu1 %v10074_v26 }
0x18ce   :  { %9391 = vmatprep.subr.bf16.mxu1 %v10785_v39 }
0x18d3   :  { %v3759_v34 = vpop.xlane.xlu0 %3758 }
0x18d4   :  { %v3768_v49 = vmul.f32 0.0078125, %v3759_v34 }
0x18d5   :  { %v3761_v51 = vpop.xlane.xlu1 %3760 }
0x18d6   :  { %v3769_v43 = vmul.f32 0.0078125, %v3761_v51  ;;  %v11695_v62 = vsub.f32 %v3750_v13, %v3768_v49 }
0x18d8   :  { %v3780_v0 = vmul.f32 %v11695_v62, %v11695_v62  ;;  %v11700_v36 = vsub.f32 %v3751_v59, %v3769_v43 }
0x18da   :  { %3788 = vadd.xlane.f32.xlu0 %v3780_v0  ;;  %v3781_v37 = vmul.f32 %v11700_v36, %v11700_v36 }
0x18db   :  { %v3763_v47 = vpop.xlane.xlu0 %3762 }
0x18dc   :  { %v3770_v60 = vmul.f32 0.0078125, %v3763_v47  ;;  %3790 = vadd.xlane.f32.xlu1 %v3781_v37 }
0x18dd   :  { %v3765_v63 = vpop.xlane.xlu1 %3764 }
0x18de   :  { %v3771_v9 = vmul.f32 0.0078125, %v3765_v63  ;;  %v11705_v12 = vsub.f32 %v3752_v38, %v3770_v60 }
0x18e0   :  { %v3782_v17 = vmul.f32 %v11705_v12, %v11705_v12  ;;  %v11710_v20 = vsub.f32 %v3753_v2, %v3771_v9  ;;  %v3833_v2 = vrot.slane %v11595_v30, %v11201_v28 }
0x18e2   :  { %3792 = vadd.xlane.f32.xlu0 %v3782_v17  ;;  %v3783_v7 = vmul.f32 %v11710_v20, %v11710_v20 }
0x18e4   :  { %3794 = vadd.xlane.f32.xlu1 %v3783_v7 }
0x194d   :  { %v3785_v29 = vpop.xlane.xlu0 %3784 }
0x194e   :  { %v3796_v1 = vmul.f32 0.0078125, %v3785_v29 }
0x194f   :  { %v3787_v31 = vpop.xlane.xlu1 %3786 }
0x1950   :  { %v3802_v13 = vadd.f32 1e-05, %v3796_v1  ;;  %v3797_v59 = vmul.f32 0.0078125, %v3787_v31  ;;  %v10076_v1 = vld [vmem:[#allocation10 + $0x464] ss:$24 sps:$4 sm:$0xff]   ;;  %v3863_v31 = vrot.slane %v11595_v30, %v11241_v19 }
0x1952   :  { %10374 = vrsqrt.f32 %v3802_v13  ;;  %v3803_v52 = vadd.f32 1e-05, %v3797_v59 }
0x1954   :  { %10376 = vrsqrt.f32 %v3803_v52 }
0x195c   :  { %v10375_v4 = vpop.eup %10374 }
0x195d   :  { %v3814_v24 = vmul.f32 %v10375_v4, %v11686_v35 }
0x195e   :  { %v10377_v54 = vpop.eup %10376 }
0x195f   :  { %v3824_v23 = vmul.f32 %v3823_v32, %v3814_v24  ;;  %v3815_v38 = vmul.f32 %v10377_v54, %v11690_v22 }
0x1961   :  { %v3825_v33 = vmul.f32 %v3823_v32, %v3815_v38  ;;  %v11727_v45 = vadd.f32 %v3833_v2, %v3824_v23 }
0x1963   :  { %v11729_v18 = vadd.f32 %v3833_v2, %v3825_v33 }
0x1965   :  { %v3856_v8 = vpack.c.bf16 %v11729_v18, %v11727_v45 }
0x1967   :  { %v3789_v41 = vpop.xlane.xlu0 %3788  ;;  %9368 = vmatmul.mubr.bf16.vlgmr.msra.gmra.mrb[100].mxu0 %v3856_v8 }
0x1968   :  { %v3798_v14 = vmul.f32 0.0078125, %v3789_v41  ;;  %9371 = vmatprep.mubr.msk.bf16.mxu0 %vm10787_vm0, %v10785_v39 }
0x1969   :  { %v3791_v35 = vpop.xlane.xlu1 %3790 }
0x196a   :  { %v3804_v50 = vadd.f32 1e-05, %v3798_v14  ;;  %v3799_v22 = vmul.f32 0.0078125, %v3791_v35 }
0x196c   :  { %10378 = vrsqrt.f32 %v3804_v50  ;;  %v3805_v16 = vadd.f32 1e-05, %v3799_v22 }
0x196e   :  { %10380 = vrsqrt.f32 %v3805_v16 }
0x196f   :  { %v3793_v25 = vpop.xlane.xlu0 %3792 }
0x1970   :  { %v3800_v34 = vmul.f32 0.0078125, %v3793_v25 }
0x1971   :  { %v3795_v40 = vpop.xlane.xlu1 %3794 }
0x1972   :  { %v3806_v49 = vadd.f32 1e-05, %v3800_v34  ;;  %v3801_v51 = vmul.f32 0.0078125, %v3795_v40 }
0x1974   :  { %10382 = vrsqrt.f32 %v3806_v49  ;;  %v3807_v43 = vadd.f32 1e-05, %v3801_v51 }
0x1976   :  { %v10379_v46 = vpop.eup %10378  ;;  %10384 = vrsqrt.f32 %v3807_v43 }
0x1977   :  { %v3816_v0 = vmul.f32 %v10379_v46, %v11695_v62 }
0x1978   :  { %v10381_v37 = vpop.eup %10380 }
0x1979   :  { %v3817_v47 = vmul.f32 %v10381_v37, %v11700_v36  ;;  %v3826_v44 = vmul.f32 %v3823_v32, %v3816_v0 }
0x197b   :  { %v3827_v60 = vmul.f32 %v3823_v32, %v3817_v47  ;;  %v11737_v63 = vadd.f32 %v3833_v2, %v3826_v44 }
0x197d   :  { %v11739_v9 = vadd.f32 %v3833_v2, %v3827_v60 }
0x197e   :  { %v10383_v53 = vpop.eup %10382 }
0x197f   :  { %v8558_v17 = vpack.c.bf16 %v11739_v9, %v11737_v63  ;;  %v3818_v42 = vmul.f32 %v10383_v53, %v11705_v12 }
0x1980   :  { %v10385_v7 = vpop.eup %10384 }
0x1981   :  { %9372 = vmatmul.mubr.bf16.gmra.mrb[104].mxu0 %v8558_v17  ;;  %v3819_v21 = vmul.f32 %v10385_v7, %v11710_v20  ;;  %v3828_v62 = vmul.f32 %v3823_v32, %v3818_v42  ;;  %v10075_v20 = vld [vmem:[#allocation10 + $0x434] ss:$24 sps:$4 sm:$0xff]   ;;  %v4014_v17 = vrot.slane %v11595_v30, %v11252_v58 }
0x1982   :  { %9375 = vmatprep.mubr.msk.bf16.mxu0 %vm10787_vm0, %v10785_v39  ;;  %9392 = vmatpush3.bf16.msra.mxu1 %v10075_v20 }
0x1983   :  { %v3829_v36 = vmul.f32 %v3823_v32, %v3819_v21  ;;  %v11747_v61 = vadd.f32 %v3833_v2, %v3828_v62  ;;  %9393 = vmatprep.subr.bf16.mxu1 %v10785_v39 }
0x1985   :  { %v11749_v15 = vadd.f32 %v3833_v2, %v3829_v36  ;;  %v3858_v56 = vpack.c.bf16 %v11747_v61, %v11739_v9 }
0x1986   :  { %9394 = vmatpush3.bf16.msra.mxu1 %v10076_v1 }
0x1987   :  { %v3859_v48 = vpack.c.bf16 %v11749_v15, %v11749_v15  ;;  %v3872_v12 = vunpack.c.h.b16 %v3858_v56  ;;  %9407 = vmatprep.subr.bf16.mxu1 %v10785_v39 }
0x1989   :  { %v3873_v26 = vunpack.c.l.b16 %v3859_v48 }
0x198b   :  { %v3876_v29 = vpack.c.b16 %v3873_v26, %v3872_v12 }
0x198d   :  { %9376 = vmatmul.mubr.bf16.gmra.mrb[108].mxu0 %v3876_v29 }
0x198e   :  { %4444 = vmatprep.mubr.bf16.mxu0 %v10786_v3 }
0x1a3a   :  { %v3962_v13 = vpop.f32.mrb[100].mxu0 }
0x1a3b   :  { %v3963_v59 = vadd.f32 %v3962_v13, %v3863_v31  ;;  %v9369_v52 = vpop.f32.mrb[101].mxu0 }
0x1a3c   :  { %v3965_v32 = vpop.f32.mrb[102].mxu0 }
0x1a3d   :  { %v3966_v4 = vadd.f32 %v3965_v32, %v3863_v31  ;;  %v9370_v24 = vpop.f32.mrb[103].mxu0  ;;  %v3985_v54 = vmax.f32 %v3963_v59, 0.0 }
0x1a3f   :  { %v3986_v23 = vmax.f32 %v3966_v4, 0.0 }
0x1a41   :  { %v4007_v38 = vpack.c.bf16 %v3986_v23, %v3985_v54 }
0x1a43   :  { %9396 = vmatmul.mubr.bf16.vlgmr.msra.gmra.mrb[116].mxu1 %v4007_v38  ;;  %v10080_v38 = vld [vmem:[#allocation10 + $0x488] ss:$24 sps:$4 sm:$0xff]  }
0x1a44   :  { %9399 = vmatprep.mubr.msk.bf16.mxu1 %vm10787_vm0, %v10785_v39  ;;  %9408 = vmatpush3.bf16.msra.mxu1 %v10080_v38 }
0x1a45   :  { %9409 = vmatprep.subr.bf16.mxu1 %v10785_v39 }
0x1a54   :  { %v3970_v2 = vpop.f32.mrb[104].mxu0 }
0x1a55   :  { %v3971_v33 = vadd.f32 %v3970_v2, %v3863_v31  ;;  %v9373_v8 = vpop.f32.mrb[105].mxu0  ;;  %v10083_v2 = vld [vmem:[#allocation10 + $0x4b4] ss:$24 sps:$4 sm:$0xff]  }
0x1a56   :  { %v3973_v41 = vpop.f32.mrb[106].mxu0  ;;  %v10081_v8 = vld [vmem:[#allocation10 + $0x4b0] ss:$24 sps:$4 sm:$0xff]  }
0x1a57   :  { %v3974_v14 = vadd.f32 %v3973_v41, %v3863_v31  ;;  %v9374_v35 = vpop.f32.mrb[107].mxu0  ;;  %v3987_v50 = vmax.f32 %v3971_v33, 0.0  ;;  %v10084_v33 = vld [vmem:[#allocation10 + $0x4b8] ss:$24 sps:$4 sm:$0xff]  }
0x1a58   :  { %9410 = vmatpush3.bf16.msra.mxu1 %v10084_v33 }
0x1a59   :  { %v3988_v22 = vmax.f32 %v3974_v14, 0.0  ;;  %9411 = vmatprep.subr.bf16.mxu1 %v10785_v39 }
0x1a5b   :  { %v8559_v16 = vpack.c.bf16 %v3988_v22, %v3987_v50 }
0x1a5d   :  { %9400 = vmatmul.mubr.bf16.gmra.mrb[120].mxu1 %v8559_v16 }
0x1a5e   :  { %9403 = vmatprep.mubr.msk.bf16.mxu1 %vm10787_vm0, %v10785_v39 }
0x1a60   :  { %v3978_v25 = vpop.f32.mrb[108].mxu0 }
0x1a61   :  { %v3979_v34 = vadd.f32 %v3978_v25, %v3863_v31  ;;  %v9377_v40 = vpop.f32.mrb[109].mxu0  ;;  %v10087_v25 = vld [vmem:[#allocation10 + $0x4e4] ss:$24 sps:$4 sm:$0xff]  }
0x1a62   :  { %v3981_v49 = vpop.f32.mrb[110].mxu0  ;;  %v10088_v40 = vld [vmem:[#allocation10 + $0x4e8] ss:$24 sps:$4 sm:$0xff]  }
0x1a63   :  { %v3989_v51 = vmax.f32 %v3979_v34, 0.0  ;;  %v3982_v43 = vadd.f32 %v3981_v49, %v3863_v31  ;;  %v9378_v46 = vpop.f32.mrb[111].mxu0  ;;  %v10085_v34 = vld [vmem:[#allocation10 + $0x4e0] ss:$24 sps:$4 sm:$0xff]   ;;  %9412 = vmatpush3.bf16.msra.mxu1 %v10088_v40  ;;  %v10091_v49 = vld [vmem:[#allocation10 + $0x514] ss:$24 sps:$4 sm:$0xff]  }
0x1a64   :  { %9413 = vmatprep.subr.bf16.mxu1 %v10785_v39  ;;  %v10092_v46 = vld [vmem:[#allocation10 + $0x518] ss:$24 sps:$4 sm:$0xff]  }
0x1a65   :  { %v4009_v0 = vpack.c.bf16 %v3989_v51, %v3988_v22  ;;  %v3990_v37 = vmax.f32 %v3982_v43, 0.0  ;;  %v10089_v43 = vld [vmem:[#allocation10 + $0x510] ss:$24 sps:$4 sm:$0xff]  }
0x1a67   :  { %v4010_v47 = vpack.c.bf16 %v3990_v37, %v3990_v37  ;;  %v4023_v44 = vunpack.c.h.b16 %v4009_v0  ;;  %9414 = vmatpush3.bf16.msra.mxu1 %v10092_v46 }
0x1a68   :  { %9415 = vmatprep.subr.bf16.mxu1 %v10785_v39 }
0x1a69   :  { %v4024_v60 = vunpack.c.l.b16 %v4010_v47 }
0x1a6b   :  { %v4027_v53 = vpack.c.b16 %v4024_v60, %v4023_v44  ;;  %v10095_v60 = vld [vmem:[#allocation10 + $0x544] ss:$24 sps:$4 sm:$0xff]  }
0x1a6d   :  { %9404 = vmatmul.mubr.bf16.gmra.mrb[124].mxu1 %v4027_v53  ;;  %v10093_v53 = vld [vmem:[#allocation10 + $0x540] ss:$24 sps:$4 sm:$0xff]  }
0x1a6e   :  { %9423 = vmatprep.mubr.msk.bf16.mxu1 %vm10787_vm0, %v10785_v39 }
0x1b16   :  { %v4113_v42 = vpop.f32.mrb[116].mxu1 }
0x1b17   :  { %v4114_v7 = vadd.f32 %v4113_v42, %v4014_v17  ;;  %v9397_v21 = vpop.f32.mrb[117].mxu1 }
0x1b18   :  { %v4116_v62 = vpop.f32.mrb[118].mxu1 }
0x1b19   :  { %v4117_v36 = vadd.f32 %v4116_v62, %v4014_v17  ;;  %v9398_v56 = vpop.f32.mrb[119].mxu1  ;;  %v4136_v48 = vadd.f32 %v4114_v7, %v11727_v45  ;;  %v10099_v62 = vld [vmem:[#allocation10 + $0x574] ss:$24 sps:$4 sm:$0xff]  }
0x1b1a   :  { %v10100_v56 = vld [vmem:[#allocation10 + $0x578] ss:$24 sps:$4 sm:$0xff]  }
0x1b1b   :  { %4142 = vadd.xlane.f32.xlu0 %v4136_v48  ;;  %v4137_v12 = vadd.f32 %v4117_v36, %v11729_v18  ;;  %v10097_v36 = vld [vmem:[#allocation10 + $0x570] ss:$24 sps:$4 sm:$0xff]  }
0x1b1d   :  { %4144 = vadd.xlane.f32.xlu1 %v4137_v12 }
0x1b30   :  { %v4121_v26 = vpop.f32.mrb[120].mxu1 }
0x1b31   :  { %v4122_v29 = vadd.f32 %v4121_v26, %v4014_v17  ;;  %v9401_v20 = vpop.f32.mrb[121].mxu1  ;;  %v10104_v26 = vld [vmem:[#allocation10 + $0x5a8] ss:$24 sps:$4 sm:$0xff]  }
0x1b32   :  { %v4124_v1 = vpop.f32.mrb[122].mxu1  ;;  %v10107_v20 = vld [vmem:[#allocation10 + $0x5d4] ss:$24 sps:$4 sm:$0xff]  }
0x1b33   :  { %v4138_v31 = vadd.f32 %v4122_v29, %v11737_v63  ;;  %v4125_v13 = vadd.f32 %v4124_v1, %v4014_v17  ;;  %v9402_v30 = vpop.f32.mrb[123].mxu1  ;;  %v10077_v63 = vld [vmem:[#allocation10 + $0x480] ss:$24 sps:$4 sm:$0xff]   ;;  %v10105_v29 = vld [vmem:[#allocation10 + $0x5d0] ss:$24 sps:$4 sm:$0xff]  }
0x1b34   :  { %v10108_v1 = vld [vmem:[#allocation10 + $0x5d8] ss:$24 sps:$4 sm:$0xff]  }
0x1b35   :  { %v4139_v59 = vadd.f32 %v4125_v13, %v11739_v9  ;;  %4146 = vadd.xlane.f32.xlu0 %v4138_v31  ;;  %v10079_v9 = vld [vmem:[#allocation10 + $0x484] ss:$24 sps:$4 sm:$0xff]  }
0x1b36   :  { %4412 = vmatprep.subr.bf16.mxu0 %v10079_v9 }
0x1b37   :  { %4148 = vadd.xlane.f32.xlu1 %v4139_v59  ;;  %4413 = vmatpush1.bf16.msra.mxu0 %v10077_v63 }
0x1b38   :  { %4414 = vmatprep.subr.bf16.mxu0 %v10083_v2 }
0x1b3b   :  { %4415 = vmatpush1.bf16.msra.mxu0 %v10081_v8 }
0x1b3c   :  { %4416 = vmatprep.subr.bf16.mxu0 %v10087_v25 }
0x1b3f   :  { %4417 = vmatpush1.bf16.msra.mxu0 %v10085_v34 }
0x1b40   :  { %v4129_v52 = vpop.f32.mrb[124].mxu1  ;;  %4418 = vmatprep.subr.bf16.mxu0 %v10091_v49 }
0x1b41   :  { %v4130_v32 = vadd.f32 %v4129_v52, %v4014_v17  ;;  %v9405_v4 = vpop.f32.mrb[125].mxu1 }
0x1b42   :  { %v4132_v45 = vpop.f32.mrb[126].mxu1 }
0x1b43   :  { %v11773_v24 = vadd.f32 %v4130_v32, %v11747_v61  ;;  %v4133_v18 = vadd.f32 %v4132_v45, %v4014_v17  ;;  %v9406_v54 = vpop.f32.mrb[127].mxu1  ;;  %4419 = vmatpush1.bf16.msra.mxu0 %v10089_v43  ;;  %v10096_v17 = vld [vmem:[#allocation10 + $0x548] ss:$24 sps:$4 sm:$0xff]  }
0x1b44   :  { %4420 = vmatprep.subr.bf16.mxu0 %v10095_v60  ;;  %9416 = vmatpush3.bf16.msra.mxu1 %v10096_v17 }
0x1b45   :  { %v11776_v23 = vadd.f32 %v4133_v18, %v11749_v15  ;;  %4150 = vadd.xlane.f32.xlu0 %v11773_v24  ;;  %9417 = vmatprep.subr.bf16.mxu1 %v10785_v39 }
0x1b47   :  { %4152 = vadd.xlane.f32.xlu1 %v11776_v23  ;;  %4421 = vmatpush1.bf16.msra.mxu0 %v10093_v53 }
0x1b48   :  { %4422 = vmatprep.subr.bf16.mxu0 %v10099_v62  ;;  %9418 = vmatpush3.bf16.msra.mxu1 %v10100_v56 }
0x1b49   :  { %9419 = vmatprep.subr.bf16.mxu1 %v10785_v39 }
0x1b4b   :  { %4423 = vmatpush1.bf16.msra.mxu0 %v10097_v36 }
0x1b4c   :  { %9420 = vmatpush3.bf16.msra.mxu1 %v10104_v26 }
0x1b4d   :  { %9421 = vmatprep.subr.bf16.mxu1 %v10785_v39 }
0x1b50   :  { %9422 = vmatpush3.bf16.msra.mxu1 %v10108_v1 }
0x1b51   :  { %9495 = vmatprep.subr.bf16.mxu1 %v10785_v39 }
0x1ba8   :  { %v4143_v61 = vpop.xlane.xlu0 %4142 }
0x1ba9   :  { %v4154_v15 = vmul.f32 0.0078125, %v4143_v61 }
0x1baa   :  { %v4145_v41 = vpop.xlane.xlu1 %4144 }
0x1bab   :  { %v11782_v14 = vsub.f32 %v4136_v48, %v4154_v15  ;;  %v4155_v35 = vmul.f32 0.0078125, %v4145_v41  ;;  %v10103_v48 = vld [vmem:[#allocation10 + $0x5a4] ss:$24 sps:$4 sm:$0xff]  }
0x1bac   :  { %4424 = vmatprep.subr.bf16.mxu0 %v10103_v48 }
0x1bad   :  { %v11784_v50 = vsub.f32 %v4137_v12, %v4155_v35  ;;  %v4166_v22 = vmul.f32 %v11782_v14, %v11782_v14  ;;  %v10101_v12 = vld [vmem:[#allocation10 + $0x5a0] ss:$24 sps:$4 sm:$0xff]  }
0x1bae   :  { %4425 = vmatpush1.bf16.msra.mxu0 %v10101_v12 }
0x1baf   :  { %4172 = vadd.xlane.f32.xlu0 %v4166_v22  ;;  %v4167_v16 = vmul.f32 %v11784_v50, %v11784_v50  ;;  %4426 = vmatprep.subr.bf16.mxu0 %v10107_v20 }
0x1bb1   :  { %4174 = vadd.xlane.f32.xlu1 %v4167_v16 }
0x1bb2   :  { %4427 = vmatpush1.bf16.msra.mxu0 %v10105_v29 }
0x1bc2   :  { %v4147_v51 = vpop.xlane.xlu0 %4146 }
0x1bc3   :  { %v4156_v0 = vmul.f32 0.0078125, %v4147_v51 }
0x1bc4   :  { %v4149_v37 = vpop.xlane.xlu1 %4148 }
0x1bc5   :  { %v11791_v47 = vsub.f32 %v4138_v31, %v4156_v0  ;;  %v4157_v44 = vmul.f32 0.0078125, %v4149_v37 }
0x1bc7   :  { %v11794_v42 = vsub.f32 %v4139_v59, %v4157_v44  ;;  %v4168_v7 = vmul.f32 %v11791_v47, %v11791_v47 }
0x1bc9   :  { %4176 = vadd.xlane.f32.xlu0 %v4168_v7  ;;  %v4169_v21 = vmul.f32 %v11794_v42, %v11794_v42 }
0x1bcb   :  { %4178 = vadd.xlane.f32.xlu1 %v4169_v21 }
0x1bd2   :  { %v4151_v31 = vpop.xlane.xlu0 %4150 }
0x1bd3   :  { %v4158_v13 = vmul.f32 0.0078125, %v4151_v31 }
0x1bd4   :  { %v4153_v30 = vpop.xlane.xlu1 %4152 }
0x1bd5   :  { %v4164_v59 = vsub.f32 %v11773_v24, %v4158_v13  ;;  %v4159_v52 = vmul.f32 0.0078125, %v4153_v30  ;;  %v8305_v24 = vld [vmem:[%s12569_s6 + $0x28] sm:$0x3] }
0x1bd6   :  { %v4211_v33 = vrot.slane %v8305_v24, %v11019_v10  ;;  %v4221_v35 = vrot.slane %v8305_v24, %v11064_v57 }
0x1bd7   :  { %v4165_v32 = vsub.f32 %v11776_v23, %v4159_v52  ;;  %v4170_v4 = vmul.f32 %v4164_v59, %v4164_v59 }
0x1bd9   :  { %4180 = vadd.xlane.f32.xlu0 %v4170_v4  ;;  %v4171_v45 = vmul.f32 %v4165_v32, %v4165_v32 }
0x1bdb   :  { %4182 = vadd.xlane.f32.xlu1 %v4171_v45 }
0x1c3c   :  { %v4173_v18 = vpop.xlane.xlu0 %4172 }
0x1c3d   :  { %v4184_v54 = vmul.f32 0.0078125, %v4173_v18 }
0x1c3e   :  { %v4175_v63 = vpop.xlane.xlu1 %4174 }
0x1c3f   :  { %v4190_v9 = vadd.f32 1e-05, %v4184_v54  ;;  %v4185_v38 = vmul.f32 0.0078125, %v4175_v63 }
0x1c41   :  { %10386 = vrsqrt.f32 %v4190_v9  ;;  %v4191_v2 = vadd.f32 1e-05, %v4185_v38 }
0x1c43   :  { %10388 = vrsqrt.f32 %v4191_v2 }
0x1c4b   :  { %v10387_v8 = vpop.eup %10386 }
0x1c4c   :  { %v4202_v23 = vmul.f32 %v10387_v8, %v11782_v14 }
0x1c4d   :  { %v10389_v61 = vpop.eup %10388 }
0x1c4e   :  { %v4212_v15 = vmul.f32 %v4211_v33, %v4202_v23  ;;  %v4203_v41 = vmul.f32 %v10389_v61, %v11784_v50 }
0x1c50   :  { %v4213_v22 = vmul.f32 %v4211_v33, %v4203_v41  ;;  %v11813_v16 = vadd.f32 %v4221_v35, %v4212_v15 }
0x1c52   :  { %v11815_v25 = vadd.f32 %v4221_v35, %v4213_v22 }
0x1c54   :  { %v4264_v34 = vpack.c.bf16 %v11815_v25, %v11813_v16 }
0x1c56   :  { %v4177_v40 = vpop.xlane.xlu0 %4176  ;;  %4445 = vmatmul.mubr.bf16.vlgmr.msra.gmra.mrb[112].mxu0 %v4264_v34  ;;  %9424 = vmatmul.mubr.bf16.vlgmr.msra.gmra.mrb[128].mxu1 %v4264_v34 }
0x1c57   :  { %v4186_v49 = vmul.f32 0.0078125, %v4177_v40  ;;  %4454 = vmatprep.mubr.bf16.mxu0 %v10786_v3  ;;  %9427 = vmatprep.mubr.msk.bf16.mxu1 %vm10787_vm0, %v10785_v39 }
0x1c58   :  { %v4179_v14 = vpop.xlane.xlu1 %4178 }
0x1c59   :  { %v4192_v50 = vadd.f32 1e-05, %v4186_v49  ;;  %v4187_v51 = vmul.f32 0.0078125, %v4179_v14 }
0x1c5b   :  { %10390 = vrsqrt.f32 %v4192_v50  ;;  %v4193_v43 = vadd.f32 1e-05, %v4187_v51 }
0x1c5d   :  { %10392 = vrsqrt.f32 %v4193_v43 }
0x1c65   :  { %v10391_v46 = vpop.eup %10390 }
0x1c66   :  { %v4181_v0 = vpop.xlane.xlu0 %4180  ;;  %v4204_v37 = vmul.f32 %v10391_v46, %v11791_v47 }
0x1c67   :  { %v10393_v44 = vpop.eup %10392  ;;  %v4188_v60 = vmul.f32 0.0078125, %v4181_v0 }
0x1c68   :  { %v4183_v53 = vpop.xlane.xlu1 %4182  ;;  %v4205_v17 = vmul.f32 %v10393_v44, %v11794_v42  ;;  %v4214_v7 = vmul.f32 %v4211_v33, %v4204_v37 }
0x1c69   :  { %v4194_v21 = vadd.f32 1e-05, %v4188_v60  ;;  %v4189_v62 = vmul.f32 0.0078125, %v4183_v53 }
0x1c6a   :  { %v4215_v36 = vmul.f32 %v4211_v33, %v4205_v17  ;;  %v11824_v48 = vadd.f32 %v4221_v35, %v4214_v7 }
0x1c6b   :  { %10394 = vrsqrt.f32 %v4194_v21  ;;  %v4195_v56 = vadd.f32 1e-05, %v4189_v62 }
0x1c6c   :  { %v11826_v12 = vadd.f32 %v4221_v35, %v4215_v36 }
0x1c6d   :  { %10396 = vrsqrt.f32 %v4195_v56 }
0x1c6e   :  { %v8560_v26 = vpack.c.bf16 %v11826_v12, %v11824_v48 }
0x1c70   :  { %4455 = vmatmul.mubr.bf16.gmra.mrb[116].mxu0 %v8560_v26  ;;  %9428 = vmatmul.mubr.bf16.gmra.mrb[132].mxu1 %v8560_v26 }
0x1c71   :  { %4464 = vmatprep.mubr.bf16.mxu0 %v10786_v3  ;;  %9431 = vmatprep.mubr.msk.bf16.mxu1 %vm10787_vm0, %v10785_v39 }
0x1c75   :  { %v10395_v47 = vpop.eup %10394 }
0x1c76   :  { %v4206_v42 = vmul.f32 %v10395_v47, %v4164_v59  ;;  %v11846_v59 = vld [vmem:[%s12569_s6 + $0x30] sm:$0xff] }
0x1c77   :  { %v10397_v29 = vpop.eup %10396  ;;  %v11854_v63 = vrot.slane %v11846_v59, %v11056_v55  ;;  %v4545_v2 = vrot.slane %v11846_v59, %v11064_v57 }
0x1c78   :  { %v4207_v20 = vmul.f32 %v10397_v29, %v4165_v32  ;;  %v4216_v1 = vmul.f32 %v4211_v33, %v4206_v42  ;;  %v11850_v32 = vrot.slane %v11846_v59, %v11019_v10 }
0x1c7a   :  { %v4217_v31 = vmul.f32 %v4211_v33, %v4207_v20  ;;  %v11833_v13 = vadd.f32 %v4221_v35, %v4216_v1 }
0x1c7c   :  { %v11835_v30 = vadd.f32 %v4221_v35, %v4217_v31  ;;  %v4266_v52 = vpack.c.bf16 %v11833_v13, %v11826_v12 }
0x1c7e   :  { %v4267_v4 = vpack.c.bf16 %v11835_v30, %v11835_v30  ;;  %v4276_v45 = vunpack.c.h.b16 %v4266_v52 }
0x1c80   :  { %v4277_v18 = vunpack.c.l.b16 %v4267_v4 }
0x1c82   :  { %v4280_v54 = vpack.c.b16 %v4277_v18, %v4276_v45 }
0x1c84   :  { %4465 = vmatmul.mubr.bf16.gmra.mrb[120].mxu0 %v4280_v54  ;;  %9432 = vmatmul.mubr.bf16.gmra.mrb[136].mxu1 %v4280_v54 }
0x1c85   :  { %9511 = vmatprep.mubr.msk.bf16.mxu1 %vm10787_vm0, %v10785_v39 }
0x1d29   :  { %v4446_v9 = vpop.f32.mrb[112].mxu0  ;;  %v4509_v38 = vpop.f32.mrb[128].mxu1 }
0x1d2a   :  { %v4448_v24 = vpop.f32.mrb[113].mxu0  ;;  %v9425_v33 = vpop.f32.mrb[129].mxu1  ;;  %v4536_v61 = vadd.f32 %v11850_v32, %v4446_v9  ;;  %v4556_v15 = vadd.f32 %v11854_v63, %v4509_v38 }
0x1d2b   :  { %v4450_v8 = vpop.f32.mrb[114].mxu0  ;;  %v4512_v23 = vpop.f32.mrb[130].mxu1  ;;  %v4546_v40 = vadd.f32 %v4545_v2, %v4448_v24 }
0x1d2c   :  { %v4537_v41 = vadd.f32 %v11850_v32, %v4450_v8  ;;  %v4557_v35 = vadd.f32 %v11854_v63, %v4512_v23  ;;  %v4452_v22 = vpop.f32.mrb[115].mxu0  ;;  %v9426_v34 = vpop.f32.mrb[131].mxu1 }
0x1d2d   :  { %v4547_v49 = vadd.f32 %v4545_v2, %v4452_v22 }
0x1d2e   :  { %v4562_v14 = vpack.c.bf16 %v4537_v41, %v4536_v61  ;;  %v4748_v50 = vpack.c.bf16 %v4557_v35, %v4556_v15 }
0x1d2f   :  { %v4566_v51 = vpack.c.bf16 %v4547_v49, %v4546_v40 }
0x1d30   :  { %9439 = vmatprep.mubr.bf16.mxu0 %v4562_v14 }
0x1d31   :  { %9435 = vmatprep.subr.bf16.mxu0 %v4566_v51 }
0x1d32   :  { %9436 = vmatpush3.bf16.xpose.msra.mxu0 %v4566_v51 }
0x1d43   :  { %v4456_v43 = vpop.f32.mrb[116].mxu0  ;;  %v4517_v46 = vpop.f32.mrb[132].mxu1 }
0x1d44   :  { %v4458_v0 = vpop.f32.mrb[117].mxu0  ;;  %v9429_v37 = vpop.f32.mrb[133].mxu1  ;;  %v4538_v62 = vadd.f32 %v11850_v32, %v4456_v43  ;;  %v4558_v41 = vadd.f32 %v11854_v63, %v4517_v46 }
0x1d45   :  { %v4548_v44 = vadd.f32 %v4545_v2, %v4458_v0  ;;  %v4460_v60 = vpop.f32.mrb[118].mxu0  ;;  %v4520_v53 = vpop.f32.mrb[134].mxu1 }
0x1d46   :  { %v4462_v17 = vpop.f32.mrb[119].mxu0  ;;  %v9430_v7 = vpop.f32.mrb[135].mxu1  ;;  %v4563_v36 = vpack.c.bf16 %v4538_v62, %v4538_v62  ;;  %v4539_v47 = vadd.f32 %v11850_v32, %v4460_v60  ;;  %v4559_v42 = vadd.f32 %v11854_v63, %v4520_v53  ;;  %v4749_v22 = vpack.c.bf16 %v4558_v41, %v4558_v41 }
0x1d47   :  { %v4567_v21 = vpack.c.bf16 %v4548_v44, %v4548_v44  ;;  %v4549_v52 = vadd.f32 %v4545_v2, %v4462_v17 }
0x1d48   :  { %v4759_v34 = vsel %vm967_vm2, %v4749_v22, 0 }
0x1d49   :  { %9437 = vmatprep.subr.bf16.mxu0 %v4567_v21 }
0x1d4a   :  { %9438 = vmatpush3.bf16.xpose.msra.mxu0 %v4567_v21 }
0x1d51   :  { %9440 = vmatmul.mubr.bf16.vlgmr.msra.gmra.mrb[124].mxu0 %v4563_v36 }
0x1d57   :  { %v4466_v56 = vpop.f32.mrb[120].mxu0  ;;  %v4525_v26 = vpop.f32.mrb[136].mxu1 }
0x1d58   :  { %v4540_v29 = vadd.f32 %v11850_v32, %v4466_v56  ;;  %v4560_v20 = vadd.f32 %v11854_v63, %v4525_v26  ;;  %v4468_v1 = vpop.f32.mrb[121].mxu0  ;;  %v9433_v31 = vpop.f32.mrb[137].mxu1 }
0x1d59   :  { %v4550_v4 = vadd.f32 %v4545_v2, %v4468_v1  ;;  %v4470_v45 = vpop.f32.mrb[122].mxu0  ;;  %v4528_v18 = vpop.f32.mrb[138].mxu1 }
0x1d5a   :  { %v4564_v54 = vpack.c.bf16 %v4540_v29, %v4539_v47  ;;  %v11867_v9 = vpack.c.bf16 %v4560_v20, %v4559_v42  ;;  %v11870_v38 = vadd.f32 %v11854_v63, %v4528_v18  ;;  %v4472_v24 = vpop.f32.mrb[123].mxu0  ;;  %v9434_v33 = vpop.f32.mrb[139].mxu1  ;;  %v4541_v15 = vadd.f32 %v11850_v32, %v4470_v45 }
0x1d5b   :  { %v4568_v8 = vpack.c.bf16 %v4550_v4, %v4549_v52  ;;  %v4551_v23 = vadd.f32 %v4545_v2, %v4472_v24 }
0x1d5c   :  { %9447 = vmatprep.mubr.bf16.mxu0 %v4564_v54  ;;  %v4565_v35 = vpack.c.bf16 %v4541_v15, %v4541_v15 }
0x1d5d   :  { %v4569_v61 = vpack.c.bf16 %v4551_v23, %v4551_v23  ;;  %9443 = vmatprep.subr.bf16.mxu0 %v4568_v8 }
0x1d5e   :  { %9444 = vmatpush3.bf16.xpose.msra.mxu0 %v4568_v8 }
0x1d5f   :  { %9445 = vmatprep.subr.bf16.mxu0 %v4569_v61 }
0x1d66   :  { %9446 = vmatpush3.bf16.xpose.msra.mxu0 %v4569_v61 }
0x1d67   :  { %9451 = vmatprep.subr.bf16.mxu0 %v4748_v50 }
0x1d6d   :  { %9448 = vmatmul.mubr.bf16.vlgmr.msra.gmra.mrb[128].mxu0 %v4565_v35 }
0x1d6e   :  { %9452 = vmatpush3.bf16.msra.mxu0 %v4748_v50 }
0x1d6f   :  { %9865 = vmatprep.subr.msk.bf16.mxu0 %vm967_vm2, %v4749_v22 }
0x1d72   :  { %9454 = vmatpush3.bf16.msra.mxu0 %v4759_v34 }
0x1d73   :  { %9459 = vmatprep.subr.bf16.mxu0 %v11867_v9 }
0x1e24   :  { %v9441_v2 = vpop.f32.mrb[124].mxu0 }
0x1e25   :  { %v4604_v40 = vpop.f32.mrb[125].mxu0  ;;  %v4668_v49 = vmul.f32 0.088388346, %v9441_v2 }
0x1e26   :  { %v4666_v14 = vmul.f32 0.088388346, %v4604_v40  ;;  %v9442_v51 = vpop.f32.mrb[126].mxu0 }
0x1e27   :  { %v4607_v32 = vpop.f32.mrb[127].mxu0  ;;  %v4674_v50 = vsel %vm435_vm3, %v4668_v49, -1e+30 }
0x1e28   :  { %v4672_v63 = vsel %vm435_vm3, %v4666_v14, -1e+30  ;;  %v4667_v43 = vmul.f32 0.088388346, %v4607_v32  ;;  %v4684_v44 = vsel %vm886_vm4, %v4674_v50, -inf }
0x1e29   :  { %v4678_v46 = vsel %vm886_vm4, %v4672_v63, -inf }
0x1e2a   :  { %v4673_v0 = vsel %vm435_vm3, %v4667_v43, -1e+30  ;;  %4679 = vmax.xlane.f32.xlu0 %v4678_v46 }
0x1e2b   :  { %v4681_v37 = vsel %vm886_vm4, %v4673_v0, -inf }
0x1e2c   :  { %4682 = vmax.xlane.f32.xlu1 %v4681_v37 }
0x1e2e   :  { %4685 = vmax.xlane.f32.xlu0 %v4684_v44 }
0x1e40   :  { %v9449_v60 = vpop.f32.mrb[128].mxu0 }
0x1e41   :  { %v4652_v53 = vpop.f32.mrb[129].mxu0  ;;  %v4671_v17 = vmul.f32 0.088388346, %v9449_v60 }
0x1e42   :  { %v4669_v7 = vmul.f32 0.088388346, %v4652_v53  ;;  %v9450_v21 = vpop.f32.mrb[130].mxu0 }
0x1e43   :  { %v4655_v62 = vpop.f32.mrb[131].mxu0  ;;  %v4677_v47 = vsel %vm435_vm3, %v4671_v17, -1e+30 }
0x1e44   :  { %v4675_v36 = vsel %vm435_vm3, %v4669_v7, -1e+30  ;;  %v4670_v56 = vmul.f32 0.088388346, %v4655_v62  ;;  %v4693_v20 = vsel %vm886_vm4, %v4677_v47, -inf }
0x1e45   :  { %v4687_v26 = vsel %vm886_vm4, %v4675_v36, -inf }
0x1e46   :  { %v4676_v42 = vsel %vm435_vm3, %v4670_v56, -1e+30  ;;  %4688 = vmax.xlane.f32.xlu1 %v4687_v26 }
0x1e47   :  { %v4690_v29 = vsel %vm886_vm4, %v4676_v42, -inf }
0x1e48   :  { %4691 = vmax.xlane.f32.xlu0 %v4690_v29  ;;  %v4751_v29 = vpack.c.bf16 %v11870_v38, %v11870_v38 }
0x1e4a   :  { %4694 = vmax.xlane.f32.xlu1 %v4693_v20  ;;  %v4816_v20 = vsel %vm967_vm2, %v4751_v29, 0 }
0x1eb7   :  { %v4680_v1 = vpop.xlane.xlu0 %4679 }
0x1eb8   :  { %v4696_v31 = vsub.f32 %v4672_v63, %v4680_v1 }
0x1eb9   :  { %v4683_v52 = vpop.xlane.xlu1 %4682 }
0x1eba   :  { %v4702_v4 = vmul.f32 1.442695, %v4696_v31  ;;  %v4697_v45 = vsub.f32 %v4673_v0, %v4683_v52 }
0x1ebb   :  { %v4686_v18 = vpop.xlane.xlu0 %4685 }
0x1ebc   :  { %10398 = vpow2.f32 %v4702_v4  ;;  %v4704_v54 = vmul.f32 1.442695, %v4697_v45  ;;  %v4698_v24 = vsub.f32 %v4674_v50, %v4686_v18 }
0x1ebe   :  { %10400 = vpow2.f32 %v4704_v54  ;;  %v4706_v33 = vmul.f32 1.442695, %v4698_v24 }
0x1ec0   :  { %10402 = vpow2.f32 %v4706_v33  ;;  %v10109_v33 = vld [vmem:[#allocation10 + $0x48c] ss:$24 sps:$4 sm:$0xff]  }
0x1ec6   :  { %v10399_v8 = vpop.eup %10398 }
0x1ec7   :  { %v4714_v23 = vsel %vm886_vm4, %v10399_v8, 0.0 }
0x1ec8   :  { %v10401_v61 = vpop.eup %10400  ;;  %4715 = vadd.xlane.f32.xlu0 %v4714_v23  ;;  %v10110_v23 = vld [vmem:[#allocation10 + $0x4bc] ss:$24 sps:$4 sm:$0xff]  }
0x1ec9   :  { %v4717_v15 = vsel %vm886_vm4, %v10401_v61, 0.0 }
0x1eca   :  { %v10403_v41 = vpop.eup %10402  ;;  %4718 = vadd.xlane.f32.xlu1 %v4717_v15  ;;  %v10112_v15 = vld [vmem:[#allocation10 + $0x51c] ss:$24 sps:$4 sm:$0xff]  }
0x1ecb   :  { %v4720_v35 = vsel %vm886_vm4, %v10403_v41, 0.0 }
0x1ecc   :  { %4721 = vadd.xlane.f32.xlu0 %v4720_v35  ;;  %v10114_v35 = vld [vmem:[#allocation10 + $0x57c] ss:$24 sps:$4 sm:$0xff]  }
0x1ed3   :  { %v4689_v22 = vpop.xlane.xlu1 %4688 }
0x1ed4   :  { %v4699_v34 = vsub.f32 %v4675_v36, %v4689_v22  ;;  %v10115_v22 = vld [vmem:[#allocation10 + $0x5ac] ss:$24 sps:$4 sm:$0xff]  }
0x1ed5   :  { %v4692_v2 = vpop.xlane.xlu0 %4691 }
0x1ed6   :  { %v4708_v40 = vmul.f32 1.442695, %v4699_v34  ;;  %v4700_v49 = vsub.f32 %v4676_v42, %v4692_v2  ;;  %v10116_v34 = vld [vmem:[#allocation10 + $0x5dc] ss:$24 sps:$4 sm:$0xff]  }
0x1ed7   :  { %v4695_v14 = vpop.xlane.xlu1 %4694 }
0x1ed8   :  { %10404 = vpow2.f32 %v4708_v40  ;;  %v4710_v51 = vmul.f32 1.442695, %v4700_v49  ;;  %v4701_v32 = vsub.f32 %v4677_v47, %v4695_v14 }
0x1eda   :  { %10406 = vpow2.f32 %v4710_v51  ;;  %v4712_v63 = vmul.f32 1.442695, %v4701_v32 }
0x1edc   :  { %10408 = vpow2.f32 %v4712_v63 }
0x1ee2   :  { %v10405_v43 = vpop.eup %10404 }
0x1ee3   :  { %v4723_v46 = vsel %vm886_vm4, %v10405_v43, 0.0 }
0x1ee4   :  { %v10407_v50 = vpop.eup %10406  ;;  %4724 = vadd.xlane.f32.xlu1 %v4723_v46 }
0x1ee5   :  { %v4726_v0 = vsel %vm886_vm4, %v10407_v50, 0.0 }
0x1ee6   :  { %v10409_v37 = vpop.eup %10408  ;;  %4727 = vadd.xlane.f32.xlu0 %v4726_v0 }
0x1ee7   :  { %v4729_v44 = vsel %vm886_vm4, %v10409_v37, 0.0 }
0x1ee8   :  { %4730 = vadd.xlane.f32.xlu1 %v4729_v44 }
0x1f55   :  { %v4716_v60 = vpop.xlane.xlu0 %4715 }
0x1f56   :  { %10410 = vrcp.f32 %v4716_v60 }
0x1f57   :  { %v4719_v53 = vpop.xlane.xlu1 %4718 }
0x1f58   :  { %10412 = vrcp.f32 %v4719_v53 }
0x1f59   :  { %v4722_v17 = vpop.xlane.xlu0 %4721 }
0x1f5a   :  { %10414 = vrcp.f32 %v4722_v17  ;;  %v4889_v17 = vrot.slane %v11846_v59, %v11150_v11 }
0x1f60   :  { %v10411_v7 = vpop.eup %10410 }
0x1f61   :  { %v4738_v62 = vmul.f32 %v10411_v7, %v10399_v8 }
0x1f62   :  { %v10413_v21 = vpop.eup %10412 }
0x1f63   :  { %v4739_v36 = vmul.f32 %v10413_v21, %v10401_v61  ;;  %v10111_v61 = vld [vmem:[#allocation10 + $0x4ec] ss:$24 sps:$4 sm:$0xff]  }
0x1f64   :  { %v10415_v56 = vpop.eup %10414 }
0x1f65   :  { %v4740_v26 = vmul.f32 %v10415_v56, %v10403_v41  ;;  %v4744_v47 = vpack.c.bf16 %v4739_v36, %v4738_v62  ;;  %v10113_v41 = vld [vmem:[#allocation10 + $0x54c] ss:$24 sps:$4 sm:$0xff]  }
0x1f67   :  { %9455 = vmatprep.mubr.msk.bf16.mxu0 %vm886_vm4, %v4744_v47  ;;  %v4745_v42 = vpack.c.bf16 %v4740_v26, %v4740_v26 }
0x1f69   :  { %9456 = vmatmul.mubr.msk.bf16.vlgmr.msra.gmra.mrb[132].mxu0 %vm886_vm4, %v4745_v42 }
0x1f6a   :  { %9460 = vmatpush3.bf16.msra.mxu0 %v11867_v9 }
0x1f6b   :  { %9866 = vmatprep.subr.msk.bf16.mxu0 %vm967_vm2, %v4751_v29 }
0x1f6e   :  { %9462 = vmatpush3.bf16.msra.mxu0 %v4816_v20 }
0x1f6f   :  { %9467 = vmatprep.subr.bf16.mxu0 %v10785_v39 }
0x1f71   :  { %v4725_v1 = vpop.xlane.xlu1 %4724 }
0x1f72   :  { %10416 = vrcp.f32 %v4725_v1 }
0x1f73   :  { %v4728_v31 = vpop.xlane.xlu0 %4727 }
0x1f74   :  { %10418 = vrcp.f32 %v4728_v31 }
0x1f75   :  { %v4731_v52 = vpop.xlane.xlu1 %4730 }
0x1f76   :  { %10420 = vrcp.f32 %v4731_v52 }
0x1f7c   :  { %v10417_v4 = vpop.eup %10416 }
0x1f7d   :  { %v4741_v38 = vmul.f32 %v10417_v4, %v10405_v43 }
0x1f7e   :  { %v10419_v45 = vpop.eup %10418 }
0x1f7f   :  { %v4742_v18 = vmul.f32 %v10419_v45, %v10407_v50 }
0x1f80   :  { %v10421_v54 = vpop.eup %10420 }
0x1f81   :  { %v4743_v24 = vmul.f32 %v10421_v54, %v10409_v37  ;;  %v4746_v9 = vpack.c.bf16 %v4742_v18, %v4741_v38 }
0x1f83   :  { %9463 = vmatprep.mubr.msk.bf16.mxu0 %vm886_vm4, %v4746_v9  ;;  %v4747_v8 = vpack.c.bf16 %v4743_v24, %v4743_v24 }
0x1f85   :  { %9464 = vmatmul.mubr.msk.bf16.vlgmr.msra.gmra.mrb[136].mxu0 %vm886_vm4, %v4747_v8 }
0x1f86   :  { %9468 = vmatpush3.bf16.msra.mxu0 %v10109_v33  ;;  %9483 = vmatprep.mubr.msk.bf16.mxu0 %vm10787_vm0, %v10785_v39 }
0x1f87   :  { %9469 = vmatprep.subr.bf16.mxu0 %v10785_v39 }
0x1f8a   :  { %9470 = vmatpush3.bf16.msra.mxu0 %v10110_v23  ;;  %v10117_v23 = vld [vmem:[#allocation10 + $0x490] ss:$24 sps:$4 sm:$0xff]  }
0x1f8b   :  { %9471 = vmatprep.subr.bf16.mxu0 %v10785_v39  ;;  %9496 = vmatpush3.bf16.msra.mxu1 %v10117_v23 }
0x1f8c   :  { %9497 = vmatprep.subr.bf16.mxu1 %v10785_v39 }
0x1f8e   :  { %9472 = vmatpush3.bf16.msra.mxu0 %v10111_v61 }
0x1f8f   :  { %9473 = vmatprep.subr.bf16.mxu0 %v10785_v39 }
0x1f92   :  { %9474 = vmatpush3.bf16.msra.mxu0 %v10112_v15 }
0x1f93   :  { %9475 = vmatprep.subr.bf16.mxu0 %v10785_v39 }
0x1f96   :  { %9476 = vmatpush3.bf16.msra.mxu0 %v10113_v41 }
0x1f97   :  { %9477 = vmatprep.subr.bf16.mxu0 %v10785_v39 }
0x1f9a   :  { %9478 = vmatpush3.bf16.msra.mxu0 %v10114_v35 }
0x1f9b   :  { %9479 = vmatprep.subr.bf16.mxu0 %v10785_v39 }
0x1f9e   :  { %9480 = vmatpush3.bf16.msra.mxu0 %v10115_v22 }
0x1f9f   :  { %9481 = vmatprep.subr.bf16.mxu0 %v10785_v39 }
0x1fa2   :  { %9482 = vmatpush3.bf16.msra.mxu0 %v10116_v34  ;;  %v10119_v34 = vld [vmem:[#allocation10 + $0x4f0] ss:$24 sps:$4 sm:$0xff]  }
0x1fa3   :  { %9523 = vmatprep.subr.bf16.mxu0 %v10785_v39 }
0x203c   :  { %v9457_v2 = vpop.f32.mrb[132].mxu0 }
0x203d   :  { %v4795_v40 = vpop.f32.mrb[133].mxu0 }
0x203e   :  { %v9458_v49 = vpop.f32.mrb[134].mxu0 }
0x203f   :  { %v4798_v14 = vpop.f32.mrb[135].mxu0 }
0x2040   :  { %v4882_v51 = vpack.c.bf16 %v4798_v14, %v4795_v40  ;;  %v10120_v40 = vld [vmem:[#allocation10 + $0x520] ss:$24 sps:$4 sm:$0xff]  }
0x2042   :  { %9484 = vmatmul.mubr.bf16.vlgmr.msra.gmra.mrb[140].mxu0 %v4882_v51 }
0x2043   :  { %9487 = vmatprep.mubr.msk.bf16.mxu0 %vm10787_vm0, %v10785_v39 }
0x2058   :  { %v9465_v32 = vpop.f32.mrb[136].mxu0 }
0x2059   :  { %v4852_v63 = vpop.f32.mrb[137].mxu0  ;;  %v4885_v43 = vpack.c.bf16 %v9465_v32, %v9465_v32 }
0x205a   :  { %v8561_v46 = vpack.c.bf16 %v4852_v63, %v9457_v2  ;;  %v9466_v50 = vpop.f32.mrb[138].mxu0 }
0x205b   :  { %v4855_v0 = vpop.f32.mrb[139].mxu0  ;;  %v4899_v44 = vunpack.c.l.b16 %v4885_v43 }
0x205c   :  { %v4884_v37 = vpack.c.bf16 %v4855_v0, %v4852_v63  ;;  %9488 = vmatmul.mubr.bf16.gmra.mrb[144].mxu0 %v8561_v46  ;;  %v10121_v63 = vld [vmem:[#allocation10 + $0x550] ss:$24 sps:$4 sm:$0xff]  }
0x205d   :  { %9491 = vmatprep.mubr.msk.bf16.mxu0 %vm10787_vm0, %v10785_v39 }
0x205e   :  { %v4898_v60 = vunpack.c.h.b16 %v4884_v37  ;;  %v10122_v37 = vld [vmem:[#allocation10 + $0x580] ss:$24 sps:$4 sm:$0xff]  }
0x2060   :  { %v4902_v53 = vpack.c.b16 %v4899_v44, %v4898_v60 }
0x2064   :  { %9492 = vmatmul.mubr.bf16.gmra.mrb[148].mxu0 %v4902_v53 }
0x2065   :  { %9539 = vmatprep.mubr.msk.bf16.mxu0 %vm10787_vm0, %v10785_v39 }
0x2115   :  { %v4988_v7 = vpop.f32.mrb[140].mxu0 }
0x2116   :  { %v4989_v21 = vadd.f32 %v4988_v7, %v4889_v17  ;;  %v9485_v62 = vpop.f32.mrb[141].mxu0  ;;  %v10123_v7 = vld [vmem:[#allocation10 + $0x5b0] ss:$24 sps:$4 sm:$0xff]  }
0x2117   :  { %v4991_v36 = vpop.f32.mrb[142].mxu0 }
0x2118   :  { %v5011_v56 = vadd.f32 %v4989_v21, %v11813_v16  ;;  %v4992_v26 = vadd.f32 %v4991_v36, %v4889_v17  ;;  %v9486_v47 = vpop.f32.mrb[143].mxu0  ;;  %v10124_v36 = vld [vmem:[#allocation10 + $0x5e0] ss:$24 sps:$4 sm:$0xff]  }
0x2119   :  { %v10126_v47 = vld [vmem:[#allocation10 + $0x4c4] ss:$24 sps:$4 sm:$0xff]  }
0x211a   :  { %v5012_v42 = vadd.f32 %v4992_v26, %v11815_v25  ;;  %5017 = vadd.xlane.f32.xlu0 %v5011_v56  ;;  %v10125_v26 = vld [vmem:[#allocation10 + $0x494] ss:$24 sps:$4 sm:$0xff]  }
0x211b   :  { %9524 = vmatpush3.bf16.msra.mxu0 %v10125_v26 }
0x211c   :  { %5019 = vadd.xlane.f32.xlu1 %v5012_v42  ;;  %9525 = vmatprep.subr.bf16.mxu0 %v10785_v39 }
0x211f   :  { %9526 = vmatpush3.bf16.msra.mxu0 %v10126_v47 }
0x2120   :  { %9527 = vmatprep.subr.bf16.mxu0 %v10785_v39 }
0x212f   :  { %v4996_v29 = vpop.f32.mrb[144].mxu0 }
0x2130   :  { %v4997_v20 = vadd.f32 %v4996_v29, %v4889_v17  ;;  %v9489_v1 = vpop.f32.mrb[145].mxu0  ;;  %v10128_v29 = vld [vmem:[#allocation10 + $0x524] ss:$24 sps:$4 sm:$0xff]  }
0x2131   :  { %v4999_v31 = vpop.f32.mrb[146].mxu0  ;;  %v10130_v1 = vld [vmem:[#allocation10 + $0x584] ss:$24 sps:$4 sm:$0xff]  }
0x2132   :  { %v5013_v52 = vadd.f32 %v4997_v20, %v11824_v48  ;;  %v5000_v4 = vadd.f32 %v4999_v31, %v4889_v17  ;;  %v9490_v45 = vpop.f32.mrb[147].mxu0  ;;  %v10118_v48 = vld [vmem:[#allocation10 + $0x4c0] ss:$24 sps:$4 sm:$0xff]   ;;  %v10129_v20 = vld [vmem:[#allocation10 + $0x554] ss:$24 sps:$4 sm:$0xff]  }
0x2133   :  { %9498 = vmatpush3.bf16.msra.mxu1 %v10118_v48 }
0x2134   :  { %v5014_v38 = vadd.f32 %v5000_v4, %v11826_v12  ;;  %5021 = vadd.xlane.f32.xlu0 %v5013_v52  ;;  %9499 = vmatprep.subr.bf16.mxu1 %v10785_v39 }
0x2136   :  { %5023 = vadd.xlane.f32.xlu1 %v5014_v38 }
0x2137   :  { %v5004_v18 = vpop.f32.mrb[148].mxu0  ;;  %9500 = vmatpush3.bf16.msra.mxu1 %v10119_v34 }
0x2138   :  { %v5005_v16 = vadd.f32 %v5004_v18, %v4889_v17  ;;  %v9493_v54 = vpop.f32.mrb[149].mxu0  ;;  %9501 = vmatprep.subr.bf16.mxu1 %v10785_v39 }
0x2139   :  { %v5007_v24 = vpop.f32.mrb[150].mxu0 }
0x213a   :  { %v5015_v25 = vadd.f32 %v5005_v16, %v11833_v13  ;;  %v5008_v9 = vadd.f32 %v5007_v24, %v4889_v17  ;;  %v9494_v33 = vpop.f32.mrb[151].mxu0  ;;  %v5086_v16 = vrot.slane %v11846_v59, %v11198_v27 }
0x213b   :  { %9502 = vmatpush3.bf16.msra.mxu1 %v10120_v40 }
0x213c   :  { %v5016_v8 = vadd.f32 %v5008_v9, %v11835_v30  ;;  %5025 = vadd.xlane.f32.xlu0 %v5015_v25  ;;  %9503 = vmatprep.subr.bf16.mxu1 %v10785_v39 }
0x213e   :  { %5027 = vadd.xlane.f32.xlu1 %v5016_v8 }
0x213f   :  { %9504 = vmatpush3.bf16.msra.mxu1 %v10121_v63 }
0x2140   :  { %9505 = vmatprep.subr.bf16.mxu1 %v10785_v39 }
0x2143   :  { %9506 = vmatpush3.bf16.msra.mxu1 %v10122_v37 }
0x2144   :  { %9507 = vmatprep.subr.bf16.mxu1 %v10785_v39 }
0x2147   :  { %9508 = vmatpush3.bf16.msra.mxu1 %v10123_v7 }
0x2148   :  { %9509 = vmatprep.subr.bf16.mxu1 %v10785_v39 }
0x214b   :  { %9510 = vmatpush3.bf16.msra.mxu1 %v10124_v36 }
0x21a7   :  { %v5018_v12 = vpop.xlane.xlu0 %5017 }
0x21a8   :  { %v5029_v61 = vmul.f32 0.0078125, %v5018_v12 }
0x21a9   :  { %v5020_v15 = vpop.xlane.xlu1 %5019 }
0x21aa   :  { %v11937_v41 = vsub.f32 %v5011_v56, %v5029_v61  ;;  %v5030_v13 = vmul.f32 0.0078125, %v5020_v15 }
0x21ac   :  { %v11939_v35 = vsub.f32 %v5012_v42, %v5030_v13  ;;  %v5041_v30 = vmul.f32 %v11937_v41, %v11937_v41  ;;  %v10127_v42 = vld [vmem:[#allocation10 + $0x4f4] ss:$24 sps:$4 sm:$0xff]  }
0x21ad   :  { %9528 = vmatpush3.bf16.msra.mxu0 %v10127_v42 }
0x21ae   :  { %5047 = vadd.xlane.f32.xlu0 %v5041_v30  ;;  %v5042_v22 = vmul.f32 %v11939_v35, %v11939_v35  ;;  %9529 = vmatprep.subr.bf16.mxu0 %v10785_v39 }
0x21b0   :  { %5049 = vadd.xlane.f32.xlu1 %v5042_v22 }
0x21b1   :  { %9530 = vmatpush3.bf16.msra.mxu0 %v10128_v29 }
0x21b2   :  { %9531 = vmatprep.subr.bf16.mxu0 %v10785_v39 }
0x21b5   :  { %9532 = vmatpush3.bf16.msra.mxu0 %v10129_v20 }
0x21b6   :  { %9533 = vmatprep.subr.bf16.mxu0 %v10785_v39 }
0x21b9   :  { %9534 = vmatpush3.bf16.msra.mxu0 %v10130_v1 }
0x21ba   :  { %9535 = vmatprep.subr.bf16.mxu0 %v10785_v39 }
0x21c1   :  { %v5022_v2 = vpop.xlane.xlu0 %5021 }
0x21c2   :  { %v5031_v49 = vmul.f32 0.0078125, %v5022_v2 }
0x21c3   :  { %v5024_v14 = vpop.xlane.xlu1 %5023 }
0x21c4   :  { %v11946_v51 = vsub.f32 %v5013_v52, %v5031_v49  ;;  %v5032_v32 = vmul.f32 0.0078125, %v5024_v14 }
0x21c6   :  { %v11949_v43 = vsub.f32 %v5014_v38, %v5032_v32  ;;  %v5043_v46 = vmul.f32 %v11946_v51, %v11946_v51 }
0x21c8   :  { %5051 = vadd.xlane.f32.xlu0 %v5043_v46  ;;  %v5044_v50 = vmul.f32 %v11949_v43, %v11949_v43 }
0x21c9   :  { %v5026_v0 = vpop.xlane.xlu0 %5025 }
0x21ca   :  { %v5033_v44 = vmul.f32 0.0078125, %v5026_v0  ;;  %5053 = vadd.xlane.f32.xlu1 %v5044_v50 }
0x21cb   :  { %v5028_v60 = vpop.xlane.xlu1 %5027 }
0x21cc   :  { %v11956_v53 = vsub.f32 %v5015_v25, %v5033_v44  ;;  %v5034_v17 = vmul.f32 0.0078125, %v5028_v60 }
0x21ce   :  { %v11959_v21 = vsub.f32 %v5016_v8, %v5034_v17  ;;  %v5045_v62 = vmul.f32 %v11956_v53, %v11956_v53  ;;  %v5096_v8 = vrot.slane %v11846_v59, %v11201_v28 }
0x21d0   :  { %5055 = vadd.xlane.f32.xlu0 %v5045_v62  ;;  %v5046_v56 = vmul.f32 %v11959_v21, %v11959_v21 }
0x21d2   :  { %5057 = vadd.xlane.f32.xlu1 %v5046_v56 }
0x223b   :  { %v5048_v31 = vpop.xlane.xlu0 %5047 }
0x223c   :  { %v5059_v52 = vmul.f32 0.0078125, %v5048_v31 }
0x223d   :  { %v5050_v4 = vpop.xlane.xlu1 %5049 }
0x223e   :  { %v5065_v45 = vadd.f32 1e-05, %v5059_v52  ;;  %v5060_v38 = vmul.f32 0.0078125, %v5050_v4  ;;  %v10132_v52 = vld [vmem:[#allocation10 + $0x5e4] ss:$24 sps:$4 sm:$0xff]   ;;  %v5126_v4 = vrot.slane %v11846_v59, %v11241_v19 }
0x2240   :  { %10422 = vrsqrt.f32 %v5065_v45  ;;  %v5066_v18 = vadd.f32 1e-05, %v5060_v38 }
0x2242   :  { %10424 = vrsqrt.f32 %v5066_v18 }
0x224a   :  { %v10423_v54 = vpop.eup %10422 }
0x224b   :  { %v5077_v24 = vmul.f32 %v10423_v54, %v11937_v41 }
0x224c   :  { %v10425_v25 = vpop.eup %10424 }
0x224d   :  { %v5087_v9 = vmul.f32 %v5086_v16, %v5077_v24  ;;  %v5078_v33 = vmul.f32 %v10425_v25, %v11939_v35 }
0x224f   :  { %v5088_v23 = vmul.f32 %v5086_v16, %v5078_v33  ;;  %v11978_v48 = vadd.f32 %v5096_v8, %v5087_v9 }
0x2251   :  { %v11980_v12 = vadd.f32 %v5096_v8, %v5088_v23 }
0x2253   :  { %v5119_v61 = vpack.c.bf16 %v11980_v12, %v11978_v48 }
0x2255   :  { %v5052_v15 = vpop.xlane.xlu0 %5051  ;;  %9512 = vmatmul.mubr.bf16.vlgmr.msra.gmra.mrb[140].mxu1 %v5119_v61 }
0x2256   :  { %v5061_v13 = vmul.f32 0.0078125, %v5052_v15  ;;  %9515 = vmatprep.mubr.msk.bf16.mxu1 %vm10787_vm0, %v10785_v39 }
0x2257   :  { %v5054_v41 = vpop.xlane.xlu1 %5053 }
0x2258   :  { %v5067_v30 = vadd.f32 1e-05, %v5061_v13  ;;  %v5062_v35 = vmul.f32 0.0078125, %v5054_v41 }
0x225a   :  { %10426 = vrsqrt.f32 %v5067_v30  ;;  %v5068_v22 = vadd.f32 1e-05, %v5062_v35 }
0x225c   :  { %10428 = vrsqrt.f32 %v5068_v22 }
0x225d   :  { %v5056_v34 = vpop.xlane.xlu0 %5055 }
0x225e   :  { %v5063_v2 = vmul.f32 0.0078125, %v5056_v34 }
0x225f   :  { %v5058_v40 = vpop.xlane.xlu1 %5057 }
0x2260   :  { %v5069_v49 = vadd.f32 1e-05, %v5063_v2  ;;  %v5064_v14 = vmul.f32 0.0078125, %v5058_v40 }
0x2262   :  { %10430 = vrsqrt.f32 %v5069_v49  ;;  %v5070_v32 = vadd.f32 1e-05, %v5064_v14 }
0x2264   :  { %v10427_v63 = vpop.eup %10426  ;;  %10432 = vrsqrt.f32 %v5070_v32 }
0x2265   :  { %v5079_v46 = vmul.f32 %v10427_v63, %v11946_v51 }
0x2266   :  { %v10429_v50 = vpop.eup %10428 }
0x2267   :  { %v5080_v0 = vmul.f32 %v10429_v50, %v11949_v43  ;;  %v5089_v37 = vmul.f32 %v5086_v16, %v5079_v46 }
0x2269   :  { %v5090_v44 = vmul.f32 %v5086_v16, %v5080_v0  ;;  %v11988_v60 = vadd.f32 %v5096_v8, %v5089_v37 }
0x226b   :  { %v11990_v17 = vadd.f32 %v5096_v8, %v5090_v44 }
0x226c   :  { %v10431_v7 = vpop.eup %10430 }
0x226d   :  { %v8562_v62 = vpack.c.bf16 %v11990_v17, %v11988_v60  ;;  %v5081_v36 = vmul.f32 %v10431_v7, %v11956_v53 }
0x226e   :  { %v10433_v56 = vpop.eup %10432 }
0x226f   :  { %9516 = vmatmul.mubr.bf16.gmra.mrb[144].mxu1 %v8562_v62  ;;  %v5082_v26 = vmul.f32 %v10433_v56, %v11959_v21  ;;  %v5091_v51 = vmul.f32 %v5086_v16, %v5081_v36  ;;  %v10131_v21 = vld [vmem:[#allocation10 + $0x5b4] ss:$24 sps:$4 sm:$0xff]   ;;  %v5277_v62 = vrot.slane %v11846_v59, %v11252_v58 }
0x2270   :  { %9519 = vmatprep.mubr.msk.bf16.mxu1 %vm10787_vm0, %v10785_v39  ;;  %9536 = vmatpush3.bf16.msra.mxu0 %v10131_v21 }
0x2271   :  { %v5092_v43 = vmul.f32 %v5086_v16, %v5082_v26  ;;  %v11998_v47 = vadd.f32 %v5096_v8, %v5091_v51  ;;  %9537 = vmatprep.subr.bf16.mxu0 %v10785_v39 }
0x2273   :  { %v12000_v42 = vadd.f32 %v5096_v8, %v5092_v43  ;;  %v5121_v29 = vpack.c.bf16 %v11998_v47, %v11990_v17 }
0x2274   :  { %9538 = vmatpush3.bf16.msra.mxu0 %v10132_v52 }
0x2275   :  { %v5122_v20 = vpack.c.bf16 %v12000_v42, %v12000_v42  ;;  %v5135_v53 = vunpack.c.h.b16 %v5121_v29  ;;  %9551 = vmatprep.subr.bf16.mxu0 %v10785_v39 }
0x2277   :  { %v5136_v1 = vunpack.c.l.b16 %v5122_v20 }
0x2279   :  { %v5139_v31 = vpack.c.b16 %v5136_v1, %v5135_v53 }
0x227b   :  { %9520 = vmatmul.mubr.bf16.gmra.mrb[148].mxu1 %v5139_v31 }
0x227c   :  { %5707 = vmatprep.mubr.bf16.mxu1 %v10786_v3 }
0x2328   :  { %v5225_v45 = vpop.f32.mrb[140].mxu1 }
0x2329   :  { %v5226_v38 = vadd.f32 %v5225_v45, %v5126_v4  ;;  %v9513_v18 = vpop.f32.mrb[141].mxu1 }
0x232a   :  { %v5228_v16 = vpop.f32.mrb[142].mxu1 }
0x232b   :  { %v5229_v54 = vadd.f32 %v5228_v16, %v5126_v4  ;;  %v9514_v24 = vpop.f32.mrb[143].mxu1  ;;  %v5248_v25 = vmax.f32 %v5226_v38, 0.0 }
0x232d   :  { %v5249_v9 = vmax.f32 %v5229_v54, 0.0 }
0x232f   :  { %v5270_v33 = vpack.c.bf16 %v5249_v9, %v5248_v25 }
0x2331   :  { %9540 = vmatmul.mubr.bf16.vlgmr.msra.gmra.mrb[152].mxu0 %v5270_v33  ;;  %v10136_v33 = vld [vmem:[#allocation10 + $0x608] ss:$24 sps:$4 sm:$0xff]  }
0x2332   :  { %9543 = vmatprep.mubr.msk.bf16.mxu0 %vm10787_vm0, %v10785_v39  ;;  %9552 = vmatpush3.bf16.msra.mxu0 %v10136_v33 }
0x2333   :  { %9553 = vmatprep.subr.bf16.mxu0 %v10785_v39 }
0x2342   :  { %v5233_v8 = vpop.f32.mrb[144].mxu1 }
0x2343   :  { %v5234_v23 = vadd.f32 %v5233_v8, %v5126_v4  ;;  %v9517_v61 = vpop.f32.mrb[145].mxu1  ;;  %v10139_v8 = vld [vmem:[#allocation10 + $0x634] ss:$24 sps:$4 sm:$0xff]  }
0x2344   :  { %v5236_v15 = vpop.f32.mrb[146].mxu1  ;;  %v10137_v61 = vld [vmem:[#allocation10 + $0x630] ss:$24 sps:$4 sm:$0xff]  }
0x2345   :  { %v5237_v13 = vadd.f32 %v5236_v15, %v5126_v4  ;;  %v9518_v41 = vpop.f32.mrb[147].mxu1  ;;  %v5250_v30 = vmax.f32 %v5234_v23, 0.0  ;;  %v10140_v23 = vld [vmem:[#allocation10 + $0x638] ss:$24 sps:$4 sm:$0xff]  }
0x2346   :  { %9554 = vmatpush3.bf16.msra.mxu0 %v10140_v23 }
0x2347   :  { %v5251_v35 = vmax.f32 %v5237_v13, 0.0  ;;  %9555 = vmatprep.subr.bf16.mxu0 %v10785_v39 }
0x2349   :  { %v8563_v22 = vpack.c.bf16 %v5251_v35, %v5250_v30 }
0x234b   :  { %9544 = vmatmul.mubr.bf16.gmra.mrb[156].mxu0 %v8563_v22 }
0x234c   :  { %9547 = vmatprep.mubr.msk.bf16.mxu0 %vm10787_vm0, %v10785_v39 }
0x234e   :  { %v5241_v34 = vpop.f32.mrb[148].mxu1 }
0x234f   :  { %v5242_v2 = vadd.f32 %v5241_v34, %v5126_v4  ;;  %v9521_v40 = vpop.f32.mrb[149].mxu1  ;;  %v10143_v34 = vld [vmem:[#allocation10 + $0x664] ss:$24 sps:$4 sm:$0xff]  }
0x2350   :  { %v5244_v49 = vpop.f32.mrb[150].mxu1  ;;  %v10144_v40 = vld [vmem:[#allocation10 + $0x668] ss:$24 sps:$4 sm:$0xff]  }
0x2351   :  { %v5252_v14 = vmax.f32 %v5242_v2, 0.0  ;;  %v5245_v32 = vadd.f32 %v5244_v49, %v5126_v4  ;;  %v9522_v63 = vpop.f32.mrb[151].mxu1  ;;  %v10141_v2 = vld [vmem:[#allocation10 + $0x660] ss:$24 sps:$4 sm:$0xff]   ;;  %9556 = vmatpush3.bf16.msra.mxu0 %v10144_v40  ;;  %v10147_v49 = vld [vmem:[#allocation10 + $0x694] ss:$24 sps:$4 sm:$0xff]  }
0x2352   :  { %9557 = vmatprep.subr.bf16.mxu0 %v10785_v39  ;;  %v10148_v63 = vld [vmem:[#allocation10 + $0x698] ss:$24 sps:$4 sm:$0xff]  }
0x2353   :  { %v5272_v46 = vpack.c.bf16 %v5252_v14, %v5251_v35  ;;  %v5253_v50 = vmax.f32 %v5245_v32, 0.0  ;;  %v10145_v32 = vld [vmem:[#allocation10 + $0x690] ss:$24 sps:$4 sm:$0xff]  }
0x2355   :  { %v5273_v0 = vpack.c.bf16 %v5253_v50, %v5253_v50  ;;  %v5286_v37 = vunpack.c.h.b16 %v5272_v46  ;;  %9558 = vmatpush3.bf16.msra.mxu0 %v10148_v63 }
0x2356   :  { %9559 = vmatprep.subr.bf16.mxu0 %v10785_v39 }
0x2357   :  { %v5287_v44 = vunpack.c.l.b16 %v5273_v0 }
0x2359   :  { %v5290_v7 = vpack.c.b16 %v5287_v44, %v5286_v37  ;;  %v10151_v44 = vld [vmem:[#allocation10 + $0x6c4] ss:$24 sps:$4 sm:$0xff]  }
0x235b   :  { %9548 = vmatmul.mubr.bf16.gmra.mrb[160].mxu0 %v5290_v7  ;;  %v10149_v7 = vld [vmem:[#allocation10 + $0x6c0] ss:$24 sps:$4 sm:$0xff]  }
0x235c   :  { %9567 = vmatprep.mubr.msk.bf16.mxu0 %vm10787_vm0, %v10785_v39 }
0x2404   :  { %v5376_v36 = vpop.f32.mrb[152].mxu0 }
0x2405   :  { %v5377_v56 = vadd.f32 %v5376_v36, %v5277_v62  ;;  %v9541_v26 = vpop.f32.mrb[153].mxu0 }
0x2406   :  { %v5379_v51 = vpop.f32.mrb[154].mxu0 }
0x2407   :  { %v5399_v43 = vadd.f32 %v5377_v56, %v11978_v48  ;;  %v5380_v29 = vadd.f32 %v5379_v51, %v5277_v62  ;;  %v9542_v20 = vpop.f32.mrb[155].mxu0  ;;  %v10155_v51 = vld [vmem:[#allocation10 + $0x6f4] ss:$24 sps:$4 sm:$0xff]  }
0x2408   :  { %v10159_v20 = vld [vmem:[#allocation10 + $0x724] ss:$24 sps:$4 sm:$0xff]  }
0x2409   :  { %v5400_v53 = vadd.f32 %v5380_v29, %v11980_v12  ;;  %5405 = vadd.xlane.f32.xlu0 %v5399_v43  ;;  %v10156_v29 = vld [vmem:[#allocation10 + $0x6f8] ss:$24 sps:$4 sm:$0xff]  }
0x240b   :  { %5407 = vadd.xlane.f32.xlu1 %v5400_v53 }
0x241e   :  { %v5384_v1 = vpop.f32.mrb[156].mxu0 }
0x241f   :  { %v5385_v31 = vadd.f32 %v5384_v1, %v5277_v62  ;;  %v9545_v21 = vpop.f32.mrb[157].mxu0  ;;  %v10160_v1 = vld [vmem:[#allocation10 + $0x728] ss:$24 sps:$4 sm:$0xff]  }
0x2420   :  { %v5387_v52 = vpop.f32.mrb[158].mxu0  ;;  %v10163_v21 = vld [vmem:[#allocation10 + $0x754] ss:$24 sps:$4 sm:$0xff]  }
0x2421   :  { %v5401_v4 = vadd.f32 %v5385_v31, %v11988_v60  ;;  %v5388_v45 = vadd.f32 %v5387_v52, %v5277_v62  ;;  %v9546_v59 = vpop.f32.mrb[159].mxu0  ;;  %v10133_v60 = vld [vmem:[#allocation10 + $0x600] ss:$24 sps:$4 sm:$0xff]   ;;  %v10161_v31 = vld [vmem:[#allocation10 + $0x750] ss:$24 sps:$4 sm:$0xff]  }
0x2422   :  { %v10164_v52 = vld [vmem:[#allocation10 + $0x758] ss:$24 sps:$4 sm:$0xff]  }
0x2423   :  { %v5402_v38 = vadd.f32 %v5388_v45, %v11990_v17  ;;  %5409 = vadd.xlane.f32.xlu0 %v5401_v4  ;;  %v10135_v17 = vld [vmem:[#allocation10 + $0x604] ss:$24 sps:$4 sm:$0xff]  }
0x2424   :  { %5675 = vmatprep.subr.bf16.mxu1 %v10135_v17 }
0x2425   :  { %5411 = vadd.xlane.f32.xlu1 %v5402_v38  ;;  %5676 = vmatpush1.bf16.msra.mxu1 %v10133_v60 }
0x2426   :  { %5677 = vmatprep.subr.bf16.mxu1 %v10139_v8 }
0x2429   :  { %5678 = vmatpush1.bf16.msra.mxu1 %v10137_v61 }
0x242a   :  { %5679 = vmatprep.subr.bf16.mxu1 %v10143_v34 }
0x242d   :  { %5680 = vmatpush1.bf16.msra.mxu1 %v10141_v2 }
0x242e   :  { %v5392_v18 = vpop.f32.mrb[160].mxu0  ;;  %5681 = vmatprep.subr.bf16.mxu1 %v10147_v49 }
0x242f   :  { %v5393_v48 = vadd.f32 %v5392_v18, %v5277_v62  ;;  %v9549_v16 = vpop.f32.mrb[161].mxu0 }
0x2430   :  { %v5395_v54 = vpop.f32.mrb[162].mxu0 }
0x2431   :  { %v12024_v12 = vadd.f32 %v5393_v48, %v11998_v47  ;;  %v5396_v24 = vadd.f32 %v5395_v54, %v5277_v62  ;;  %v9550_v25 = vpop.f32.mrb[163].mxu0  ;;  %5682 = vmatpush1.bf16.msra.mxu1 %v10145_v32  ;;  %v10152_v62 = vld [vmem:[#allocation10 + $0x6c8] ss:$24 sps:$4 sm:$0xff]  }
0x2432   :  { %5683 = vmatprep.subr.bf16.mxu1 %v10151_v44  ;;  %9560 = vmatpush3.bf16.msra.mxu0 %v10152_v62 }
0x2433   :  { %v12027_v9 = vadd.f32 %v5396_v24, %v12000_v42  ;;  %5413 = vadd.xlane.f32.xlu0 %v12024_v12  ;;  %9561 = vmatprep.subr.bf16.mxu0 %v10785_v39 }
0x2435   :  { %5415 = vadd.xlane.f32.xlu1 %v12027_v9  ;;  %5684 = vmatpush1.bf16.msra.mxu1 %v10149_v7 }
0x2436   :  { %5685 = vmatprep.subr.bf16.mxu1 %v10155_v51  ;;  %9562 = vmatpush3.bf16.msra.mxu0 %v10156_v29 }
0x2437   :  { %9563 = vmatprep.subr.bf16.mxu0 %v10785_v39 }
0x243a   :  { %9564 = vmatpush3.bf16.msra.mxu0 %v10160_v1 }
0x243b   :  { %9565 = vmatprep.subr.bf16.mxu0 %v10785_v39 }
0x243e   :  { %9566 = vmatpush3.bf16.msra.mxu0 %v10164_v52 }
0x243f   :  { %9639 = vmatprep.subr.bf16.mxu0 %v10785_v39 }
0x2496   :  { %v5406_v47 = vpop.xlane.xlu0 %5405 }
0x2497   :  { %v5417_v42 = vmul.f32 0.0078125, %v5406_v47 }
0x2498   :  { %v5408_v15 = vpop.xlane.xlu1 %5407 }
0x2499   :  { %v12033_v13 = vsub.f32 %v5399_v43, %v5417_v42  ;;  %v5418_v41 = vmul.f32 0.0078125, %v5408_v15  ;;  %v10153_v43 = vld [vmem:[#allocation10 + $0x6f0] ss:$24 sps:$4 sm:$0xff]  }
0x249a   :  { %5686 = vmatpush1.bf16.msra.mxu1 %v10153_v43 }
0x249b   :  { %v12035_v30 = vsub.f32 %v5400_v53, %v5418_v41  ;;  %v5429_v35 = vmul.f32 %v12033_v13, %v12033_v13  ;;  %v10157_v53 = vld [vmem:[#allocation10 + $0x720] ss:$24 sps:$4 sm:$0xff]   ;;  %5687 = vmatprep.subr.bf16.mxu1 %v10159_v20 }
0x249d   :  { %5435 = vadd.xlane.f32.xlu0 %v5429_v35  ;;  %v5430_v22 = vmul.f32 %v12035_v30, %v12035_v30 }
0x249e   :  { %5688 = vmatpush1.bf16.msra.mxu1 %v10157_v53 }
0x249f   :  { %5437 = vadd.xlane.f32.xlu1 %v5430_v22  ;;  %5689 = vmatprep.subr.bf16.mxu1 %v10163_v21 }
0x24a2   :  { %5690 = vmatpush1.bf16.msra.mxu1 %v10161_v31 }
0x24b0   :  { %v5410_v14 = vpop.xlane.xlu0 %5409 }
0x24b1   :  { %v5419_v46 = vmul.f32 0.0078125, %v5410_v14 }
0x24b2   :  { %v5412_v50 = vpop.xlane.xlu1 %5411 }
0x24b3   :  { %v12042_v0 = vsub.f32 %v5401_v4, %v5419_v46  ;;  %v5420_v37 = vmul.f32 0.0078125, %v5412_v50 }
0x24b5   :  { %v12045_v36 = vsub.f32 %v5402_v38, %v5420_v37  ;;  %v5431_v56 = vmul.f32 %v12042_v0, %v12042_v0 }
0x24b7   :  { %5439 = vadd.xlane.f32.xlu0 %v5431_v56  ;;  %v5432_v26 = vmul.f32 %v12045_v36, %v12045_v36 }
0x24b9   :  { %5441 = vadd.xlane.f32.xlu1 %v5432_v26 }
0x24c0   :  { %v5414_v4 = vpop.xlane.xlu0 %5413 }
0x24c1   :  { %v5421_v45 = vmul.f32 0.0078125, %v5414_v4 }
0x24c2   :  { %v5416_v59 = vpop.xlane.xlu1 %5415 }
0x24c3   :  { %v5427_v38 = vsub.f32 %v12024_v12, %v5421_v45  ;;  %v5422_v18 = vmul.f32 0.0078125, %v5416_v59  ;;  %v8363_v12 = vld [vmem:[%s12569_s6 + $0x38] sm:$0x3] }
0x24c4   :  { %v5474_v23 = vrot.slane %v8363_v12, %v11019_v10  ;;  %v5484_v41 = vrot.slane %v8363_v12, %v11064_v57 }
0x24c5   :  { %v5428_v48 = vsub.f32 %v12027_v9, %v5422_v18  ;;  %v5433_v16 = vmul.f32 %v5427_v38, %v5427_v38 }
0x24c7   :  { %5443 = vadd.xlane.f32.xlu0 %v5433_v16  ;;  %v5434_v54 = vmul.f32 %v5428_v48, %v5428_v48 }
0x24c9   :  { %5445 = vadd.xlane.f32.xlu1 %v5434_v54 }
0x252a   :  { %v5436_v24 = vpop.xlane.xlu0 %5435 }
0x252b   :  { %v5447_v25 = vmul.f32 0.0078125, %v5436_v24 }
0x252c   :  { %v5438_v60 = vpop.xlane.xlu1 %5437 }
0x252d   :  { %v5453_v17 = vadd.f32 1e-05, %v5447_v25  ;;  %v5448_v33 = vmul.f32 0.0078125, %v5438_v60 }
0x252f   :  { %10434 = vrsqrt.f32 %v5453_v17  ;;  %v5454_v8 = vadd.f32 1e-05, %v5448_v33 }
0x2531   :  { %10436 = vrsqrt.f32 %v5454_v8 }
0x2539   :  { %v10435_v61 = vpop.eup %10434 }
0x253a   :  { %v5465_v9 = vmul.f32 %v10435_v61, %v12033_v13 }
0x253b   :  { %v10437_v47 = vpop.eup %10436 }
0x253c   :  { %v5475_v42 = vmul.f32 %v5474_v23, %v5465_v9  ;;  %v5466_v15 = vmul.f32 %v10437_v47, %v12035_v30 }
0x253e   :  { %v5476_v35 = vmul.f32 %v5474_v23, %v5466_v15  ;;  %v12064_v22 = vadd.f32 %v5484_v41, %v5475_v42 }
0x2540   :  { %v12066_v34 = vadd.f32 %v5484_v41, %v5476_v35 }
0x2542   :  { %v5527_v2 = vpack.c.bf16 %v12066_v34, %v12064_v22 }
0x2544   :  { %v5440_v40 = vpop.xlane.xlu0 %5439  ;;  %5708 = vmatmul.mubr.bf16.vlgmr.msra.gmra.mrb[152].mxu1 %v5527_v2  ;;  %9568 = vmatmul.mubr.bf16.vlgmr.msra.gmra.mrb[164].mxu0 %v5527_v2 }
0x2545   :  { %v5449_v49 = vmul.f32 0.0078125, %v5440_v40  ;;  %5717 = vmatprep.mubr.bf16.mxu1 %v10786_v3  ;;  %9571 = vmatprep.mubr.msk.bf16.mxu0 %vm10787_vm0, %v10785_v39 }
0x2546   :  { %v5442_v13 = vpop.xlane.xlu1 %5441 }
0x2547   :  { %v5455_v30 = vadd.f32 1e-05, %v5449_v49  ;;  %v5450_v14 = vmul.f32 0.0078125, %v5442_v13 }
0x2549   :  { %10438 = vrsqrt.f32 %v5455_v30  ;;  %v5456_v32 = vadd.f32 1e-05, %v5450_v14 }
0x254b   :  { %10440 = vrsqrt.f32 %v5456_v32 }
0x2553   :  { %v10439_v63 = vpop.eup %10438 }
0x2554   :  { %v5444_v46 = vpop.xlane.xlu0 %5443  ;;  %v5467_v50 = vmul.f32 %v10439_v63, %v12042_v0 }
0x2555   :  { %v10441_v37 = vpop.eup %10440  ;;  %v5451_v44 = vmul.f32 0.0078125, %v5444_v46 }
0x2556   :  { %v5446_v7 = vpop.xlane.xlu1 %5445  ;;  %v5468_v62 = vmul.f32 %v10441_v37, %v12045_v36  ;;  %v5477_v56 = vmul.f32 %v5474_v23, %v5467_v50 }
0x2557   :  { %v5457_v26 = vadd.f32 1e-05, %v5451_v44  ;;  %v5452_v51 = vmul.f32 0.0078125, %v5446_v7 }
0x2558   :  { %v5478_v43 = vmul.f32 %v5474_v23, %v5468_v62  ;;  %v12075_v20 = vadd.f32 %v5484_v41, %v5477_v56 }
0x2559   :  { %10442 = vrsqrt.f32 %v5457_v26  ;;  %v5458_v29 = vadd.f32 1e-05, %v5452_v51 }
0x255a   :  { %v12077_v53 = vadd.f32 %v5484_v41, %v5478_v43 }
0x255b   :  { %10444 = vrsqrt.f32 %v5458_v29 }
0x255c   :  { %v8564_v1 = vpack.c.bf16 %v12077_v53, %v12075_v20 }
0x255e   :  { %5718 = vmatmul.mubr.bf16.gmra.mrb[156].mxu1 %v8564_v1  ;;  %9572 = vmatmul.mubr.bf16.gmra.mrb[168].mxu0 %v8564_v1 }
0x255f   :  { %5727 = vmatprep.mubr.bf16.mxu1 %v10786_v3  ;;  %9575 = vmatprep.mubr.msk.bf16.mxu0 %vm10787_vm0, %v10785_v39 }
0x2563   :  { %v10443_v0 = vpop.eup %10442 }
0x2564   :  { %v5469_v36 = vmul.f32 %v10443_v0, %v5427_v38  ;;  %v12097_v38 = vld [vmem:[%s12569_s6 + $0x40] sm:$0xff] }
0x2565   :  { %v10445_v31 = vpop.eup %10444  ;;  %v12105_v60 = vrot.slane %v12097_v38, %v11056_v55  ;;  %v5808_v8 = vrot.slane %v12097_v38, %v11064_v57 }
0x2566   :  { %v5470_v21 = vmul.f32 %v10445_v31, %v5428_v48  ;;  %v5479_v52 = vmul.f32 %v5474_v23, %v5469_v36  ;;  %v12101_v48 = vrot.slane %v12097_v38, %v11019_v10 }
0x2568   :  { %v5480_v4 = vmul.f32 %v5474_v23, %v5470_v21  ;;  %v12084_v45 = vadd.f32 %v5484_v41, %v5479_v52 }
0x256a   :  { %v12086_v59 = vadd.f32 %v5484_v41, %v5480_v4  ;;  %v5529_v18 = vpack.c.bf16 %v12084_v45, %v12077_v53 }
0x256c   :  { %v5530_v16 = vpack.c.bf16 %v12086_v59, %v12086_v59  ;;  %v5539_v54 = vunpack.c.h.b16 %v5529_v18 }
0x256e   :  { %v5540_v24 = vunpack.c.l.b16 %v5530_v16 }
0x2570   :  { %v5543_v25 = vpack.c.b16 %v5540_v24, %v5539_v54 }
0x2572   :  { %5728 = vmatmul.mubr.bf16.gmra.mrb[160].mxu1 %v5543_v25  ;;  %9576 = vmatmul.mubr.bf16.gmra.mrb[172].mxu0 %v5543_v25 }
0x2573   :  { %9655 = vmatprep.mubr.msk.bf16.mxu0 %vm10787_vm0, %v10785_v39 }
0x2617   :  { %v5709_v17 = vpop.f32.mrb[152].mxu1  ;;  %v5772_v33 = vpop.f32.mrb[164].mxu0 }
0x2618   :  { %v5711_v12 = vpop.f32.mrb[153].mxu1  ;;  %v9569_v23 = vpop.f32.mrb[165].mxu0  ;;  %v5799_v47 = vadd.f32 %v12101_v48, %v5709_v17  ;;  %v5819_v42 = vadd.f32 %v12105_v60, %v5772_v33 }
0x2619   :  { %v5713_v61 = vpop.f32.mrb[154].mxu1  ;;  %v5775_v9 = vpop.f32.mrb[166].mxu0  ;;  %v5809_v40 = vadd.f32 %v5808_v8, %v5711_v12 }
0x261a   :  { %v5800_v15 = vadd.f32 %v12101_v48, %v5713_v61  ;;  %v5820_v41 = vadd.f32 %v12105_v60, %v5775_v9  ;;  %v5715_v35 = vpop.f32.mrb[155].mxu1  ;;  %v9570_v2 = vpop.f32.mrb[167].mxu0 }
0x261b   :  { %v5810_v49 = vadd.f32 %v5808_v8, %v5715_v35 }
0x261c   :  { %v5825_v13 = vpack.c.bf16 %v5800_v15, %v5799_v47  ;;  %v6011_v30 = vpack.c.bf16 %v5820_v41, %v5819_v42 }
0x261d   :  { %v5829_v14 = vpack.c.bf16 %v5810_v49, %v5809_v40 }
0x261e   :  { %9583 = vmatprep.mubr.bf16.mxu1 %v5825_v13 }
0x261f   :  { %9579 = vmatprep.subr.bf16.mxu1 %v5829_v14 }
0x2620   :  { %9580 = vmatpush3.bf16.xpose.msra.mxu1 %v5829_v14 }
0x2631   :  { %v5719_v32 = vpop.f32.mrb[156].mxu1  ;;  %v5780_v63 = vpop.f32.mrb[168].mxu0 }
0x2632   :  { %v5721_v46 = vpop.f32.mrb[157].mxu1  ;;  %v9573_v50 = vpop.f32.mrb[169].mxu0  ;;  %v5801_v51 = vadd.f32 %v12101_v48, %v5719_v32  ;;  %v5821_v15 = vadd.f32 %v12105_v60, %v5780_v63 }
0x2633   :  { %v5811_v37 = vadd.f32 %v5808_v8, %v5721_v46  ;;  %v5723_v44 = vpop.f32.mrb[158].mxu1  ;;  %v5783_v7 = vpop.f32.mrb[170].mxu0 }
0x2634   :  { %v5725_v62 = vpop.f32.mrb[159].mxu1  ;;  %v9574_v56 = vpop.f32.mrb[171].mxu0  ;;  %v5826_v43 = vpack.c.bf16 %v5801_v51, %v5801_v51  ;;  %v5802_v0 = vadd.f32 %v12101_v48, %v5723_v44  ;;  %v5822_v36 = vadd.f32 %v12105_v60, %v5783_v7  ;;  %v6012_v35 = vpack.c.bf16 %v5821_v15, %v5821_v15 }
0x2635   :  { %v5830_v26 = vpack.c.bf16 %v5811_v37, %v5811_v37  ;;  %v5812_v18 = vadd.f32 %v5808_v8, %v5725_v62 }
0x2636   :  { %v6022_v2 = vsel %vm967_vm2, %v6012_v35, 0 }
0x2637   :  { %9581 = vmatprep.subr.bf16.mxu1 %v5830_v26 }
0x2638   :  { %9582 = vmatpush3.bf16.xpose.msra.mxu1 %v5830_v26 }
0x263f   :  { %9584 = vmatmul.mubr.bf16.vlgmr.msra.gmra.mrb[164].mxu1 %v5826_v43 }
0x2645   :  { %v5729_v29 = vpop.f32.mrb[160].mxu1  ;;  %v5788_v1 = vpop.f32.mrb[172].mxu0 }
0x2646   :  { %v5803_v31 = vadd.f32 %v12101_v48, %v5729_v29  ;;  %v5823_v21 = vadd.f32 %v12105_v60, %v5788_v1  ;;  %v5731_v52 = vpop.f32.mrb[161].mxu1  ;;  %v9577_v4 = vpop.f32.mrb[173].mxu0 }
0x2647   :  { %v5813_v16 = vadd.f32 %v5808_v8, %v5731_v52  ;;  %v5733_v54 = vpop.f32.mrb[162].mxu1  ;;  %v5791_v24 = vpop.f32.mrb[174].mxu0 }
0x2648   :  { %v5827_v25 = vpack.c.bf16 %v5803_v31, %v5802_v0  ;;  %v12118_v17 = vpack.c.bf16 %v5823_v21, %v5822_v36  ;;  %v12121_v33 = vadd.f32 %v12105_v60, %v5791_v24  ;;  %v5735_v12 = vpop.f32.mrb[163].mxu1  ;;  %v9578_v23 = vpop.f32.mrb[175].mxu0  ;;  %v5804_v42 = vadd.f32 %v12101_v48, %v5733_v54 }
0x2649   :  { %v5831_v61 = vpack.c.bf16 %v5813_v16, %v5812_v18  ;;  %v5814_v9 = vadd.f32 %v5808_v8, %v5735_v12 }
0x264a   :  { %9591 = vmatprep.mubr.bf16.mxu1 %v5827_v25  ;;  %v5828_v41 = vpack.c.bf16 %v5804_v42, %v5804_v42 }
0x264b   :  { %v5832_v47 = vpack.c.bf16 %v5814_v9, %v5814_v9  ;;  %9587 = vmatprep.subr.bf16.mxu1 %v5831_v61 }
0x264c   :  { %9588 = vmatpush3.bf16.xpose.msra.mxu1 %v5831_v61 }
0x264d   :  { %9589 = vmatprep.subr.bf16.mxu1 %v5832_v47 }
0x2654   :  { %9590 = vmatpush3.bf16.xpose.msra.mxu1 %v5832_v47 }
0x2655   :  { %9595 = vmatprep.subr.bf16.mxu1 %v6011_v30 }
0x265b   :  { %9592 = vmatmul.mubr.bf16.vlgmr.msra.gmra.mrb[168].mxu1 %v5828_v41 }
0x265c   :  { %9596 = vmatpush3.bf16.msra.mxu1 %v6011_v30 }
0x265d   :  { %9867 = vmatprep.subr.msk.bf16.mxu1 %vm967_vm2, %v6012_v35 }
0x2660   :  { %9598 = vmatpush3.bf16.msra.mxu1 %v6022_v2 }
0x2661   :  { %9603 = vmatprep.subr.bf16.mxu1 %v12118_v17 }
0x2712   :  { %v9585_v8 = vpop.f32.mrb[164].mxu1 }
0x2713   :  { %v5867_v40 = vpop.f32.mrb[165].mxu1  ;;  %v5931_v49 = vmul.f32 0.088388346, %v9585_v8 }
0x2714   :  { %v5929_v13 = vmul.f32 0.088388346, %v5867_v40  ;;  %v9586_v14 = vpop.f32.mrb[166].mxu1 }
0x2715   :  { %v5870_v48 = vpop.f32.mrb[167].mxu1  ;;  %v5937_v30 = vsel %vm435_vm3, %v5931_v49, -1e+30 }
0x2716   :  { %v5935_v60 = vsel %vm435_vm3, %v5929_v13, -1e+30  ;;  %v5930_v32 = vmul.f32 0.088388346, %v5870_v48  ;;  %v5947_v37 = vsel %vm886_vm4, %v5937_v30, -inf }
0x2717   :  { %v5941_v63 = vsel %vm886_vm4, %v5935_v60, -inf }
0x2718   :  { %v5936_v46 = vsel %vm435_vm3, %v5930_v32, -1e+30  ;;  %5942 = vmax.xlane.f32.xlu0 %v5941_v63 }
0x2719   :  { %v5944_v50 = vsel %vm886_vm4, %v5936_v46, -inf }
0x271a   :  { %5945 = vmax.xlane.f32.xlu1 %v5944_v50 }
0x271c   :  { %5948 = vmax.xlane.f32.xlu0 %v5947_v37 }
0x272e   :  { %v9593_v44 = vpop.f32.mrb[168].mxu1 }
0x272f   :  { %v5915_v7 = vpop.f32.mrb[169].mxu1  ;;  %v5934_v62 = vmul.f32 0.088388346, %v9593_v44 }
0x2730   :  { %v5932_v56 = vmul.f32 0.088388346, %v5915_v7  ;;  %v9594_v26 = vpop.f32.mrb[170].mxu1 }
0x2731   :  { %v5918_v51 = vpop.f32.mrb[171].mxu1  ;;  %v5940_v0 = vsel %vm435_vm3, %v5934_v62, -1e+30 }
0x2732   :  { %v5938_v43 = vsel %vm435_vm3, %v5932_v56, -1e+30  ;;  %v5933_v29 = vmul.f32 0.088388346, %v5918_v51  ;;  %v5956_v21 = vsel %vm886_vm4, %v5940_v0, -inf }
0x2733   :  { %v5950_v1 = vsel %vm886_vm4, %v5938_v43, -inf }
0x2734   :  { %v5939_v36 = vsel %vm435_vm3, %v5933_v29, -1e+30  ;;  %5951 = vmax.xlane.f32.xlu1 %v5950_v1 }
0x2735   :  { %v5953_v31 = vsel %vm886_vm4, %v5939_v36, -inf }
0x2736   :  { %5954 = vmax.xlane.f32.xlu0 %v5953_v31  ;;  %v6014_v31 = vpack.c.bf16 %v12121_v33, %v12121_v33 }
0x2738   :  { %5957 = vmax.xlane.f32.xlu1 %v5956_v21  ;;  %v6079_v21 = vsel %vm967_vm2, %v6014_v31, 0 }
0x27a5   :  { %v5943_v52 = vpop.xlane.xlu0 %5942 }
0x27a6   :  { %v5959_v4 = vsub.f32 %v5935_v60, %v5943_v52 }
0x27a7   :  { %v5946_v18 = vpop.xlane.xlu1 %5945 }
0x27a8   :  { %v5965_v16 = vmul.f32 1.442695, %v5959_v4  ;;  %v5960_v54 = vsub.f32 %v5936_v46, %v5946_v18 }
0x27a9   :  { %v5949_v24 = vpop.xlane.xlu0 %5948 }
0x27aa   :  { %10446 = vpow2.f32 %v5965_v16  ;;  %v5967_v25 = vmul.f32 1.442695, %v5960_v54  ;;  %v5961_v12 = vsub.f32 %v5937_v30, %v5949_v24 }
0x27ac   :  { %10448 = vpow2.f32 %v5967_v25  ;;  %v5969_v23 = vmul.f32 1.442695, %v5961_v12 }
0x27ae   :  { %10450 = vpow2.f32 %v5969_v23  ;;  %v10165_v23 = vld [vmem:[#allocation10 + $0x60c] ss:$24 sps:$4 sm:$0xff]  }
0x27b4   :  { %v10447_v61 = vpop.eup %10446 }
0x27b5   :  { %v5977_v9 = vsel %vm886_vm4, %v10447_v61, 0.0 }
0x27b6   :  { %v10449_v47 = vpop.eup %10448  ;;  %5978 = vadd.xlane.f32.xlu0 %v5977_v9  ;;  %v10166_v9 = vld [vmem:[#allocation10 + $0x63c] ss:$24 sps:$4 sm:$0xff]  }
0x27b7   :  { %v5980_v42 = vsel %vm886_vm4, %v10449_v47, 0.0 }
0x27b8   :  { %v10451_v15 = vpop.eup %10450  ;;  %5981 = vadd.xlane.f32.xlu1 %v5980_v42  ;;  %v10168_v42 = vld [vmem:[#allocation10 + $0x69c] ss:$24 sps:$4 sm:$0xff]  }
0x27b9   :  { %v5983_v41 = vsel %vm886_vm4, %v10451_v15, 0.0 }
0x27ba   :  { %5984 = vadd.xlane.f32.xlu0 %v5983_v41  ;;  %v10170_v41 = vld [vmem:[#allocation10 + $0x6fc] ss:$24 sps:$4 sm:$0xff]  }
0x27c1   :  { %v5952_v35 = vpop.xlane.xlu1 %5951 }
0x27c2   :  { %v5962_v2 = vsub.f32 %v5938_v43, %v5952_v35  ;;  %v10171_v35 = vld [vmem:[#allocation10 + $0x72c] ss:$24 sps:$4 sm:$0xff]  }
0x27c3   :  { %v5955_v8 = vpop.xlane.xlu0 %5954 }
0x27c4   :  { %v5971_v40 = vmul.f32 1.442695, %v5962_v2  ;;  %v5963_v49 = vsub.f32 %v5939_v36, %v5955_v8  ;;  %v10172_v2 = vld [vmem:[#allocation10 + $0x75c] ss:$24 sps:$4 sm:$0xff]  }
0x27c5   :  { %v5958_v13 = vpop.xlane.xlu1 %5957 }
0x27c6   :  { %10452 = vpow2.f32 %v5971_v40  ;;  %v5973_v14 = vmul.f32 1.442695, %v5963_v49  ;;  %v5964_v48 = vsub.f32 %v5940_v0, %v5958_v13 }
0x27c8   :  { %10454 = vpow2.f32 %v5973_v14  ;;  %v5975_v60 = vmul.f32 1.442695, %v5964_v48 }
0x27ca   :  { %10456 = vpow2.f32 %v5975_v60 }
0x27d0   :  { %v10453_v32 = vpop.eup %10452 }
0x27d1   :  { %v5986_v63 = vsel %vm886_vm4, %v10453_v32, 0.0 }
0x27d2   :  { %v10455_v30 = vpop.eup %10454  ;;  %5987 = vadd.xlane.f32.xlu1 %v5986_v63 }
0x27d3   :  { %v5989_v46 = vsel %vm886_vm4, %v10455_v30, 0.0 }
0x27d4   :  { %v10457_v50 = vpop.eup %10456  ;;  %5990 = vadd.xlane.f32.xlu0 %v5989_v46 }
0x27d5   :  { %v5992_v37 = vsel %vm886_vm4, %v10457_v50, 0.0 }
0x27d6   :  { %5993 = vadd.xlane.f32.xlu1 %v5992_v37 }
0x2843   :  { %v5979_v44 = vpop.xlane.xlu0 %5978 }
0x2844   :  { %10458 = vrcp.f32 %v5979_v44 }
0x2845   :  { %v5982_v7 = vpop.xlane.xlu1 %5981 }
0x2846   :  { %10460 = vrcp.f32 %v5982_v7 }
0x2847   :  { %v5985_v62 = vpop.xlane.xlu0 %5984 }
0x2848   :  { %10462 = vrcp.f32 %v5985_v62  ;;  %v6152_v62 = vrot.slane %v12097_v38, %v11150_v11 }
0x284e   :  { %v10459_v56 = vpop.eup %10458 }
0x284f   :  { %v6001_v51 = vmul.f32 %v10459_v56, %v10447_v61 }
0x2850   :  { %v10461_v26 = vpop.eup %10460 }
0x2851   :  { %v6002_v43 = vmul.f32 %v10461_v26, %v10449_v47  ;;  %v10167_v47 = vld [vmem:[#allocation10 + $0x66c] ss:$24 sps:$4 sm:$0xff]  }
0x2852   :  { %v10463_v29 = vpop.eup %10462 }
0x2853   :  { %v6003_v1 = vmul.f32 %v10463_v29, %v10451_v15  ;;  %v6007_v0 = vpack.c.bf16 %v6002_v43, %v6001_v51  ;;  %v10169_v15 = vld [vmem:[#allocation10 + $0x6cc] ss:$24 sps:$4 sm:$0xff]  }
0x2855   :  { %9599 = vmatprep.mubr.msk.bf16.mxu1 %vm886_vm4, %v6007_v0  ;;  %v6008_v36 = vpack.c.bf16 %v6003_v1, %v6003_v1 }
0x2857   :  { %9600 = vmatmul.mubr.msk.bf16.vlgmr.msra.gmra.mrb[172].mxu1 %vm886_vm4, %v6008_v36 }
0x2858   :  { %9604 = vmatpush3.bf16.msra.mxu1 %v12118_v17 }
0x2859   :  { %9868 = vmatprep.subr.msk.bf16.mxu1 %vm967_vm2, %v6014_v31 }
0x285c   :  { %9606 = vmatpush3.bf16.msra.mxu1 %v6079_v21 }
0x285d   :  { %9611 = vmatprep.subr.bf16.mxu1 %v10785_v39 }
0x285f   :  { %v5988_v52 = vpop.xlane.xlu1 %5987 }
0x2860   :  { %10464 = vrcp.f32 %v5988_v52 }
0x2861   :  { %v5991_v4 = vpop.xlane.xlu0 %5990 }
0x2862   :  { %10466 = vrcp.f32 %v5991_v4 }
0x2863   :  { %v5994_v18 = vpop.xlane.xlu1 %5993 }
0x2864   :  { %10468 = vrcp.f32 %v5994_v18 }
0x286a   :  { %v10465_v16 = vpop.eup %10464 }
0x286b   :  { %v6004_v33 = vmul.f32 %v10465_v16, %v10453_v32 }
0x286c   :  { %v10467_v54 = vpop.eup %10466 }
0x286d   :  { %v6005_v24 = vmul.f32 %v10467_v54, %v10455_v30 }
0x286e   :  { %v10469_v25 = vpop.eup %10468 }
0x286f   :  { %v6006_v12 = vmul.f32 %v10469_v25, %v10457_v50  ;;  %v6009_v17 = vpack.c.bf16 %v6005_v24, %v6004_v33 }
0x2871   :  { %9607 = vmatprep.mubr.msk.bf16.mxu1 %vm886_vm4, %v6009_v17  ;;  %v6010_v61 = vpack.c.bf16 %v6006_v12, %v6006_v12 }
0x2873   :  { %9608 = vmatmul.mubr.msk.bf16.vlgmr.msra.gmra.mrb[176].mxu1 %vm886_vm4, %v6010_v61 }
0x2874   :  { %9612 = vmatpush3.bf16.msra.mxu1 %v10165_v23  ;;  %9627 = vmatprep.mubr.msk.bf16.mxu1 %vm10787_vm0, %v10785_v39 }
0x2875   :  { %9613 = vmatprep.subr.bf16.mxu1 %v10785_v39 }
0x2878   :  { %9614 = vmatpush3.bf16.msra.mxu1 %v10166_v9  ;;  %v10173_v9 = vld [vmem:[#allocation10 + $0x610] ss:$24 sps:$4 sm:$0xff]  }
0x2879   :  { %9615 = vmatprep.subr.bf16.mxu1 %v10785_v39  ;;  %9640 = vmatpush3.bf16.msra.mxu0 %v10173_v9 }
0x287a   :  { %9641 = vmatprep.subr.bf16.mxu0 %v10785_v39 }
0x287c   :  { %9616 = vmatpush3.bf16.msra.mxu1 %v10167_v47 }
0x287d   :  { %9617 = vmatprep.subr.bf16.mxu1 %v10785_v39 }
0x2880   :  { %9618 = vmatpush3.bf16.msra.mxu1 %v10168_v42 }
0x2881   :  { %9619 = vmatprep.subr.bf16.mxu1 %v10785_v39 }
0x2884   :  { %9620 = vmatpush3.bf16.msra.mxu1 %v10169_v15 }
0x2885   :  { %9621 = vmatprep.subr.bf16.mxu1 %v10785_v39 }
0x2888   :  { %9622 = vmatpush3.bf16.msra.mxu1 %v10170_v41 }
0x2889   :  { %9623 = vmatprep.subr.bf16.mxu1 %v10785_v39 }
0x288c   :  { %9624 = vmatpush3.bf16.msra.mxu1 %v10171_v35 }
0x288d   :  { %9625 = vmatprep.subr.bf16.mxu1 %v10785_v39 }
0x2890   :  { %9626 = vmatpush3.bf16.msra.mxu1 %v10172_v2  ;;  %v10175_v2 = vld [vmem:[#allocation10 + $0x670] ss:$24 sps:$4 sm:$0xff]  }
0x2891   :  { %9667 = vmatprep.subr.bf16.mxu1 %v10785_v39 }
0x292a   :  { %v9601_v8 = vpop.f32.mrb[172].mxu1 }
0x292b   :  { %v6058_v40 = vpop.f32.mrb[173].mxu1 }
0x292c   :  { %v9602_v49 = vpop.f32.mrb[174].mxu1 }
0x292d   :  { %v6061_v13 = vpop.f32.mrb[175].mxu1 }
0x292e   :  { %v6145_v14 = vpack.c.bf16 %v6061_v13, %v6058_v40  ;;  %v10176_v40 = vld [vmem:[#allocation10 + $0x6a0] ss:$24 sps:$4 sm:$0xff]  }
0x2930   :  { %9628 = vmatmul.mubr.bf16.vlgmr.msra.gmra.mrb[180].mxu1 %v6145_v14 }
0x2931   :  { %9631 = vmatprep.mubr.msk.bf16.mxu1 %vm10787_vm0, %v10785_v39 }
0x2946   :  { %v9609_v48 = vpop.f32.mrb[176].mxu1 }
0x2947   :  { %v6115_v60 = vpop.f32.mrb[177].mxu1  ;;  %v6148_v32 = vpack.c.bf16 %v9609_v48, %v9609_v48 }
0x2948   :  { %v8565_v63 = vpack.c.bf16 %v6115_v60, %v9601_v8  ;;  %v9610_v30 = vpop.f32.mrb[178].mxu1 }
0x2949   :  { %v6118_v46 = vpop.f32.mrb[179].mxu1  ;;  %v6162_v37 = vunpack.c.l.b16 %v6148_v32 }
0x294a   :  { %v6147_v50 = vpack.c.bf16 %v6118_v46, %v6115_v60  ;;  %9632 = vmatmul.mubr.bf16.gmra.mrb[184].mxu1 %v8565_v63  ;;  %v10177_v60 = vld [vmem:[#allocation10 + $0x6d0] ss:$24 sps:$4 sm:$0xff]  }
0x294b   :  { %9635 = vmatprep.mubr.msk.bf16.mxu1 %vm10787_vm0, %v10785_v39 }
0x294c   :  { %v6161_v44 = vunpack.c.h.b16 %v6147_v50  ;;  %v10178_v50 = vld [vmem:[#allocation10 + $0x700] ss:$24 sps:$4 sm:$0xff]  }
0x294e   :  { %v6165_v7 = vpack.c.b16 %v6162_v37, %v6161_v44 }
0x2952   :  { %9636 = vmatmul.mubr.bf16.gmra.mrb[188].mxu1 %v6165_v7 }
0x2953   :  { %9683 = vmatprep.mubr.msk.bf16.mxu1 %vm10787_vm0, %v10785_v39 }
0x2a03   :  { %v6251_v56 = vpop.f32.mrb[180].mxu1 }
0x2a04   :  { %v6252_v26 = vadd.f32 %v6251_v56, %v6152_v62  ;;  %v9629_v51 = vpop.f32.mrb[181].mxu1  ;;  %v10179_v56 = vld [vmem:[#allocation10 + $0x730] ss:$24 sps:$4 sm:$0xff]  }
0x2a05   :  { %v6254_v43 = vpop.f32.mrb[182].mxu1 }
0x2a06   :  { %v6274_v29 = vadd.f32 %v6252_v26, %v12064_v22  ;;  %v6255_v1 = vadd.f32 %v6254_v43, %v6152_v62  ;;  %v9630_v0 = vpop.f32.mrb[183].mxu1  ;;  %v10180_v43 = vld [vmem:[#allocation10 + $0x760] ss:$24 sps:$4 sm:$0xff]  }
0x2a07   :  { %v10182_v0 = vld [vmem:[#allocation10 + $0x644] ss:$24 sps:$4 sm:$0xff]  }
0x2a08   :  { %v6275_v36 = vadd.f32 %v6255_v1, %v12066_v34  ;;  %6280 = vadd.xlane.f32.xlu0 %v6274_v29  ;;  %v10181_v1 = vld [vmem:[#allocation10 + $0x614] ss:$24 sps:$4 sm:$0xff]  }
0x2a09   :  { %9668 = vmatpush3.bf16.msra.mxu1 %v10181_v1 }
0x2a0a   :  { %6282 = vadd.xlane.f32.xlu1 %v6275_v36  ;;  %9669 = vmatprep.subr.bf16.mxu1 %v10785_v39 }
0x2a0d   :  { %9670 = vmatpush3.bf16.msra.mxu1 %v10182_v0 }
0x2a0e   :  { %9671 = vmatprep.subr.bf16.mxu1 %v10785_v39 }
0x2a1d   :  { %v6259_v31 = vpop.f32.mrb[184].mxu1 }
0x2a1e   :  { %v6260_v21 = vadd.f32 %v6259_v31, %v6152_v62  ;;  %v9633_v52 = vpop.f32.mrb[185].mxu1  ;;  %v10184_v31 = vld [vmem:[#allocation10 + $0x6a4] ss:$24 sps:$4 sm:$0xff]  }
0x2a1f   :  { %v6262_v4 = vpop.f32.mrb[186].mxu1  ;;  %v10186_v52 = vld [vmem:[#allocation10 + $0x704] ss:$24 sps:$4 sm:$0xff]  }
0x2a20   :  { %v6276_v18 = vadd.f32 %v6260_v21, %v12075_v20  ;;  %v6263_v16 = vadd.f32 %v6262_v4, %v6152_v62  ;;  %v9634_v54 = vpop.f32.mrb[187].mxu1  ;;  %v10174_v20 = vld [vmem:[#allocation10 + $0x640] ss:$24 sps:$4 sm:$0xff]   ;;  %v10185_v21 = vld [vmem:[#allocation10 + $0x6d4] ss:$24 sps:$4 sm:$0xff]  }
0x2a21   :  { %9642 = vmatpush3.bf16.msra.mxu0 %v10174_v20 }
0x2a22   :  { %v6277_v33 = vadd.f32 %v6263_v16, %v12077_v53  ;;  %6284 = vadd.xlane.f32.xlu0 %v6276_v18  ;;  %9643 = vmatprep.subr.bf16.mxu0 %v10785_v39 }
0x2a24   :  { %6286 = vadd.xlane.f32.xlu1 %v6277_v33 }
0x2a25   :  { %v6267_v24 = vpop.f32.mrb[188].mxu1  ;;  %9644 = vmatpush3.bf16.msra.mxu0 %v10175_v2 }
0x2a26   :  { %v6268_v22 = vadd.f32 %v6267_v24, %v6152_v62  ;;  %v9637_v25 = vpop.f32.mrb[189].mxu1  ;;  %9645 = vmatprep.subr.bf16.mxu0 %v10785_v39 }
0x2a27   :  { %v6270_v12 = vpop.f32.mrb[190].mxu1 }
0x2a28   :  { %v6278_v34 = vadd.f32 %v6268_v22, %v12084_v45  ;;  %v6271_v17 = vadd.f32 %v6270_v12, %v6152_v62  ;;  %v9638_v23 = vpop.f32.mrb[191].mxu1  ;;  %v6349_v22 = vrot.slane %v12097_v38, %v11198_v27 }
0x2a29   :  { %9646 = vmatpush3.bf16.msra.mxu0 %v10176_v40 }
0x2a2a   :  { %v6279_v61 = vadd.f32 %v6271_v17, %v12086_v59  ;;  %6288 = vadd.xlane.f32.xlu0 %v6278_v34  ;;  %9647 = vmatprep.subr.bf16.mxu0 %v10785_v39 }
0x2a2c   :  { %6290 = vadd.xlane.f32.xlu1 %v6279_v61 }
0x2a2d   :  { %9648 = vmatpush3.bf16.msra.mxu0 %v10177_v60 }
0x2a2e   :  { %9649 = vmatprep.subr.bf16.mxu0 %v10785_v39 }
0x2a31   :  { %9650 = vmatpush3.bf16.msra.mxu0 %v10178_v50 }
0x2a32   :  { %9651 = vmatprep.subr.bf16.mxu0 %v10785_v39 }
0x2a35   :  { %9652 = vmatpush3.bf16.msra.mxu0 %v10179_v56 }
0x2a36   :  { %9653 = vmatprep.subr.bf16.mxu0 %v10785_v39 }
0x2a39   :  { %9654 = vmatpush3.bf16.msra.mxu0 %v10180_v43 }
0x2a95   :  { %v6281_v53 = vpop.xlane.xlu0 %6280 }
0x2a96   :  { %v6292_v47 = vmul.f32 0.0078125, %v6281_v53 }
0x2a97   :  { %v6283_v42 = vpop.xlane.xlu1 %6282 }
0x2a98   :  { %v12188_v15 = vsub.f32 %v6274_v29, %v6292_v47  ;;  %v6293_v45 = vmul.f32 0.0078125, %v6283_v42 }
0x2a9a   :  { %v12190_v41 = vsub.f32 %v6275_v36, %v6293_v45  ;;  %v6304_v59 = vmul.f32 %v12188_v15, %v12188_v15  ;;  %v10183_v36 = vld [vmem:[#allocation10 + $0x674] ss:$24 sps:$4 sm:$0xff]  }
0x2a9b   :  { %9672 = vmatpush3.bf16.msra.mxu1 %v10183_v36 }
0x2a9c   :  { %6310 = vadd.xlane.f32.xlu0 %v6304_v59  ;;  %v6305_v35 = vmul.f32 %v12190_v41, %v12190_v41  ;;  %9673 = vmatprep.subr.bf16.mxu1 %v10785_v39 }
0x2a9e   :  { %6312 = vadd.xlane.f32.xlu1 %v6305_v35 }
0x2a9f   :  { %9674 = vmatpush3.bf16.msra.mxu1 %v10184_v31 }
0x2aa0   :  { %9675 = vmatprep.subr.bf16.mxu1 %v10785_v39 }
0x2aa3   :  { %9676 = vmatpush3.bf16.msra.mxu1 %v10185_v21 }
0x2aa4   :  { %9677 = vmatprep.subr.bf16.mxu1 %v10785_v39 }
0x2aa7   :  { %9678 = vmatpush3.bf16.msra.mxu1 %v10186_v52 }
0x2aa8   :  { %9679 = vmatprep.subr.bf16.mxu1 %v10785_v39 }
0x2aaf   :  { %v6285_v8 = vpop.xlane.xlu0 %6284 }
0x2ab0   :  { %v6294_v49 = vmul.f32 0.0078125, %v6285_v8 }
0x2ab1   :  { %v6287_v13 = vpop.xlane.xlu1 %6286 }
0x2ab2   :  { %v12197_v14 = vsub.f32 %v6276_v18, %v6294_v49  ;;  %v6295_v48 = vmul.f32 0.0078125, %v6287_v13 }
0x2ab4   :  { %v12200_v32 = vsub.f32 %v6277_v33, %v6295_v48  ;;  %v6306_v63 = vmul.f32 %v12197_v14, %v12197_v14 }
0x2ab6   :  { %6314 = vadd.xlane.f32.xlu0 %v6306_v63  ;;  %v6307_v30 = vmul.f32 %v12200_v32, %v12200_v32 }
0x2ab7   :  { %v6289_v46 = vpop.xlane.xlu0 %6288 }
0x2ab8   :  { %v6296_v37 = vmul.f32 0.0078125, %v6289_v46  ;;  %6316 = vadd.xlane.f32.xlu1 %v6307_v30 }
0x2ab9   :  { %v6291_v44 = vpop.xlane.xlu1 %6290 }
0x2aba   :  { %v12207_v7 = vsub.f32 %v6278_v34, %v6296_v37  ;;  %v6297_v62 = vmul.f32 0.0078125, %v6291_v44 }
0x2abc   :  { %v12210_v26 = vsub.f32 %v6279_v61, %v6297_v62  ;;  %v6308_v51 = vmul.f32 %v12207_v7, %v12207_v7  ;;  %v6359_v61 = vrot.slane %v12097_v38, %v11201_v28 }
0x2abe   :  { %6318 = vadd.xlane.f32.xlu0 %v6308_v51  ;;  %v6309_v29 = vmul.f32 %v12210_v26, %v12210_v26 }
0x2ac0   :  { %6320 = vadd.xlane.f32.xlu1 %v6309_v29 }
0x2b29   :  { %v6311_v4 = vpop.xlane.xlu0 %6310 }
0x2b2a   :  { %v6322_v18 = vmul.f32 0.0078125, %v6311_v4 }
0x2b2b   :  { %v6313_v16 = vpop.xlane.xlu1 %6312 }
0x2b2c   :  { %v6328_v54 = vadd.f32 1e-05, %v6322_v18  ;;  %v6323_v33 = vmul.f32 0.0078125, %v6313_v16  ;;  %v10188_v18 = vld [vmem:[#allocation10 + $0x764] ss:$24 sps:$4 sm:$0xff]   ;;  %v6389_v16 = vrot.slane %v12097_v38, %v11241_v19 }
0x2b2e   :  { %10470 = vrsqrt.f32 %v6328_v54  ;;  %v6329_v24 = vadd.f32 1e-05, %v6323_v33 }
0x2b30   :  { %10472 = vrsqrt.f32 %v6329_v24 }
0x2b38   :  { %v10471_v25 = vpop.eup %10470 }
0x2b39   :  { %v6340_v12 = vmul.f32 %v10471_v25, %v12188_v15 }
0x2b3a   :  { %v10473_v34 = vpop.eup %10472 }
0x2b3b   :  { %v6350_v17 = vmul.f32 %v6349_v22, %v6340_v12  ;;  %v6341_v23 = vmul.f32 %v10473_v34, %v12190_v41 }
0x2b3d   :  { %v6351_v9 = vmul.f32 %v6349_v22, %v6341_v23  ;;  %v12229_v20 = vadd.f32 %v6359_v61, %v6350_v17 }
0x2b3f   :  { %v12231_v53 = vadd.f32 %v6359_v61, %v6351_v9 }
0x2b41   :  { %v6382_v47 = vpack.c.bf16 %v12231_v53, %v12229_v20 }
0x2b43   :  { %v6315_v42 = vpop.xlane.xlu0 %6314  ;;  %9656 = vmatmul.mubr.bf16.vlgmr.msra.gmra.mrb[176].mxu0 %v6382_v47 }
0x2b44   :  { %v6324_v45 = vmul.f32 0.0078125, %v6315_v42  ;;  %9659 = vmatprep.mubr.msk.bf16.mxu0 %vm10787_vm0, %v10785_v39 }
0x2b45   :  { %v6317_v15 = vpop.xlane.xlu1 %6316 }
0x2b46   :  { %v6330_v59 = vadd.f32 1e-05, %v6324_v45  ;;  %v6325_v41 = vmul.f32 0.0078125, %v6317_v15 }
0x2b48   :  { %10474 = vrsqrt.f32 %v6330_v59  ;;  %v6331_v35 = vadd.f32 1e-05, %v6325_v41 }
0x2b4a   :  { %10476 = vrsqrt.f32 %v6331_v35 }
0x2b4b   :  { %v6319_v2 = vpop.xlane.xlu0 %6318 }
0x2b4c   :  { %v6326_v8 = vmul.f32 0.0078125, %v6319_v2 }
0x2b4d   :  { %v6321_v40 = vpop.xlane.xlu1 %6320 }
0x2b4e   :  { %v6332_v49 = vadd.f32 1e-05, %v6326_v8  ;;  %v6327_v13 = vmul.f32 0.0078125, %v6321_v40 }
0x2b50   :  { %10478 = vrsqrt.f32 %v6332_v49  ;;  %v6333_v48 = vadd.f32 1e-05, %v6327_v13 }
0x2b52   :  { %v10475_v60 = vpop.eup %10474  ;;  %10480 = vrsqrt.f32 %v6333_v48 }
0x2b53   :  { %v6342_v63 = vmul.f32 %v10475_v60, %v12197_v14 }
0x2b54   :  { %v10477_v30 = vpop.eup %10476 }
0x2b55   :  { %v6343_v46 = vmul.f32 %v10477_v30, %v12200_v32  ;;  %v6352_v50 = vmul.f32 %v6349_v22, %v6342_v63 }
0x2b57   :  { %v6353_v37 = vmul.f32 %v6349_v22, %v6343_v46  ;;  %v12239_v44 = vadd.f32 %v6359_v61, %v6352_v50 }
0x2b59   :  { %v12241_v62 = vadd.f32 %v6359_v61, %v6353_v37 }
0x2b5a   :  { %v10479_v56 = vpop.eup %10478 }
0x2b5b   :  { %v8566_v51 = vpack.c.bf16 %v12241_v62, %v12239_v44  ;;  %v6344_v43 = vmul.f32 %v10479_v56, %v12207_v7 }
0x2b5c   :  { %v10481_v29 = vpop.eup %10480 }
0x2b5d   :  { %9660 = vmatmul.mubr.bf16.gmra.mrb[180].mxu0 %v8566_v51  ;;  %v6345_v1 = vmul.f32 %v10481_v29, %v12210_v26  ;;  %v6354_v14 = vmul.f32 %v6349_v22, %v6344_v43  ;;  %v10187_v26 = vld [vmem:[#allocation10 + $0x734] ss:$24 sps:$4 sm:$0xff]   ;;  %v6540_v51 = vrot.slane %v12097_v38, %v11252_v58 }
0x2b5e   :  { %9663 = vmatprep.mubr.msk.bf16.mxu0 %vm10787_vm0, %v10785_v39  ;;  %9680 = vmatpush3.bf16.msra.mxu1 %v10187_v26 }
0x2b5f   :  { %v6355_v32 = vmul.f32 %v6349_v22, %v6345_v1  ;;  %v12249_v0 = vadd.f32 %v6359_v61, %v6354_v14  ;;  %9681 = vmatprep.subr.bf16.mxu1 %v10785_v39 }
0x2b61   :  { %v12251_v36 = vadd.f32 %v6359_v61, %v6355_v32  ;;  %v6384_v31 = vpack.c.bf16 %v12249_v0, %v12241_v62 }
0x2b62   :  { %9682 = vmatpush3.bf16.msra.mxu1 %v10188_v18 }
0x2b63   :  { %v6385_v21 = vpack.c.bf16 %v12251_v36, %v12251_v36  ;;  %v6398_v7 = vunpack.c.h.b16 %v6384_v31  ;;  %9695 = vmatprep.subr.bf16.mxu1 %v10785_v39 }
0x2b65   :  { %v6399_v52 = vunpack.c.l.b16 %v6385_v21 }
0x2b67   :  { %v6402_v4 = vpack.c.b16 %v6399_v52, %v6398_v7 }
0x2b69   :  { %9664 = vmatmul.mubr.bf16.gmra.mrb[184].mxu0 %v6402_v4 }
0x2b6a   :  { %6970 = vmatprep.mubr.bf16.mxu0 %v10786_v3 }
0x2c16   :  { %v6488_v54 = vpop.f32.mrb[176].mxu0 }
0x2c17   :  { %v6489_v33 = vadd.f32 %v6488_v54, %v6389_v16  ;;  %v9657_v24 = vpop.f32.mrb[177].mxu0 }
0x2c18   :  { %v6491_v22 = vpop.f32.mrb[178].mxu0 }
0x2c19   :  { %v6492_v25 = vadd.f32 %v6491_v22, %v6389_v16  ;;  %v9658_v12 = vpop.f32.mrb[179].mxu0  ;;  %v6511_v34 = vmax.f32 %v6489_v33, 0.0 }
0x2c1b   :  { %v6512_v17 = vmax.f32 %v6492_v25, 0.0 }
0x2c1d   :  { %v6533_v23 = vpack.c.bf16 %v6512_v17, %v6511_v34 }
0x2c1f   :  { %9684 = vmatmul.mubr.bf16.vlgmr.msra.gmra.mrb[192].mxu1 %v6533_v23  ;;  %v10192_v23 = vld [vmem:[#allocation10 + $0x788] ss:$24 sps:$4 sm:$0xff]  }
0x2c20   :  { %9687 = vmatprep.mubr.msk.bf16.mxu1 %vm10787_vm0, %v10785_v39  ;;  %9696 = vmatpush3.bf16.msra.mxu1 %v10192_v23 }
0x2c21   :  { %9697 = vmatprep.subr.bf16.mxu1 %v10785_v39 }
0x2c30   :  { %v6496_v61 = vpop.f32.mrb[180].mxu0 }
0x2c31   :  { %v6497_v9 = vadd.f32 %v6496_v61, %v6389_v16  ;;  %v9661_v47 = vpop.f32.mrb[181].mxu0  ;;  %v10195_v61 = vld [vmem:[#allocation10 + $0x7b4] ss:$24 sps:$4 sm:$0xff]  }
0x2c32   :  { %v6499_v42 = vpop.f32.mrb[182].mxu0  ;;  %v10193_v47 = vld [vmem:[#allocation10 + $0x7b0] ss:$24 sps:$4 sm:$0xff]  }
0x2c33   :  { %v6500_v45 = vadd.f32 %v6499_v42, %v6389_v16  ;;  %v9662_v15 = vpop.f32.mrb[183].mxu0  ;;  %v6513_v59 = vmax.f32 %v6497_v9, 0.0  ;;  %v10196_v9 = vld [vmem:[#allocation10 + $0x7b8] ss:$24 sps:$4 sm:$0xff]  }
0x2c34   :  { %9698 = vmatpush3.bf16.msra.mxu1 %v10196_v9 }
0x2c35   :  { %v6514_v41 = vmax.f32 %v6500_v45, 0.0  ;;  %9699 = vmatprep.subr.bf16.mxu1 %v10785_v39 }
0x2c37   :  { %v8567_v35 = vpack.c.bf16 %v6514_v41, %v6513_v59 }
0x2c39   :  { %9688 = vmatmul.mubr.bf16.gmra.mrb[196].mxu1 %v8567_v35 }
0x2c3a   :  { %9691 = vmatprep.mubr.msk.bf16.mxu1 %vm10787_vm0, %v10785_v39 }
0x2c3c   :  { %v6504_v2 = vpop.f32.mrb[184].mxu0 }
0x2c3d   :  { %v6505_v8 = vadd.f32 %v6504_v2, %v6389_v16  ;;  %v9665_v40 = vpop.f32.mrb[185].mxu0  ;;  %v10199_v2 = vld [vmem:[#allocation10 + $0x7e4] ss:$24 sps:$4 sm:$0xff]  }
0x2c3e   :  { %v6507_v49 = vpop.f32.mrb[186].mxu0  ;;  %v10200_v40 = vld [vmem:[#allocation10 + $0x7e8] ss:$24 sps:$4 sm:$0xff]  }
0x2c3f   :  { %v6515_v13 = vmax.f32 %v6505_v8, 0.0  ;;  %v6508_v48 = vadd.f32 %v6507_v49, %v6389_v16  ;;  %v9666_v60 = vpop.f32.mrb[187].mxu0  ;;  %v10197_v8 = vld [vmem:[#allocation10 + $0x7e0] ss:$24 sps:$4 sm:$0xff]   ;;  %9700 = vmatpush3.bf16.msra.mxu1 %v10200_v40  ;;  %v10203_v49 = vld [vmem:[#allocation10 + $0x814] ss:$24 sps:$4 sm:$0xff]  }
0x2c40   :  { %9701 = vmatprep.subr.bf16.mxu1 %v10785_v39  ;;  %v10204_v60 = vld [vmem:[#allocation10 + $0x818] ss:$24 sps:$4 sm:$0xff]  }
0x2c41   :  { %v6535_v63 = vpack.c.bf16 %v6515_v13, %v6514_v41  ;;  %v6516_v30 = vmax.f32 %v6508_v48, 0.0  ;;  %v10201_v48 = vld [vmem:[#allocation10 + $0x810] ss:$24 sps:$4 sm:$0xff]  }
0x2c43   :  { %v6536_v46 = vpack.c.bf16 %v6516_v30, %v6516_v30  ;;  %v6549_v50 = vunpack.c.h.b16 %v6535_v63  ;;  %9702 = vmatpush3.bf16.msra.mxu1 %v10204_v60 }
0x2c44   :  { %9703 = vmatprep.subr.bf16.mxu1 %v10785_v39 }
0x2c45   :  { %v6550_v37 = vunpack.c.l.b16 %v6536_v46 }
0x2c47   :  { %v6553_v56 = vpack.c.b16 %v6550_v37, %v6549_v50  ;;  %v10207_v37 = vld [vmem:[#allocation10 + $0x844] ss:$24 sps:$4 sm:$0xff]  }
0x2c49   :  { %9692 = vmatmul.mubr.bf16.gmra.mrb[200].mxu1 %v6553_v56  ;;  %v10205_v56 = vld [vmem:[#allocation10 + $0x840] ss:$24 sps:$4 sm:$0xff]  }
0x2c4a   :  { %9711 = vmatprep.mubr.msk.bf16.mxu1 %vm10787_vm0, %v10785_v39 }
0x2cf2   :  { %v6639_v43 = vpop.f32.mrb[192].mxu1 }
0x2cf3   :  { %v6640_v29 = vadd.f32 %v6639_v43, %v6540_v51  ;;  %v9685_v1 = vpop.f32.mrb[193].mxu1 }
0x2cf4   :  { %v6642_v14 = vpop.f32.mrb[194].mxu1 }
0x2cf5   :  { %v6662_v32 = vadd.f32 %v6640_v29, %v12229_v20  ;;  %v6643_v31 = vadd.f32 %v6642_v14, %v6540_v51  ;;  %v9686_v21 = vpop.f32.mrb[195].mxu1  ;;  %v10211_v14 = vld [vmem:[#allocation10 + $0x874] ss:$24 sps:$4 sm:$0xff]  }
0x2cf6   :  { %v10215_v21 = vld [vmem:[#allocation10 + $0x8a4] ss:$24 sps:$4 sm:$0xff]  }
0x2cf7   :  { %v6663_v7 = vadd.f32 %v6643_v31, %v12231_v53  ;;  %6668 = vadd.xlane.f32.xlu0 %v6662_v32  ;;  %v10212_v31 = vld [vmem:[#allocation10 + $0x878] ss:$24 sps:$4 sm:$0xff]  }
0x2cf9   :  { %6670 = vadd.xlane.f32.xlu1 %v6663_v7 }
0x2d0c   :  { %v6647_v52 = vpop.f32.mrb[196].mxu1 }
0x2d0d   :  { %v6648_v4 = vadd.f32 %v6647_v52, %v6540_v51  ;;  %v9689_v26 = vpop.f32.mrb[197].mxu1  ;;  %v10216_v52 = vld [vmem:[#allocation10 + $0x8a8] ss:$24 sps:$4 sm:$0xff]  }
0x2d0e   :  { %v6650_v18 = vpop.f32.mrb[198].mxu1  ;;  %v10219_v26 = vld [vmem:[#allocation10 + $0x8d4] ss:$24 sps:$4 sm:$0xff]  }
0x2d0f   :  { %v6664_v16 = vadd.f32 %v6648_v4, %v12239_v44  ;;  %v6651_v54 = vadd.f32 %v6650_v18, %v6540_v51  ;;  %v9690_v38 = vpop.f32.mrb[199].mxu1  ;;  %v10189_v44 = vld [vmem:[#allocation10 + $0x780] ss:$24 sps:$4 sm:$0xff]   ;;  %v10217_v4 = vld [vmem:[#allocation10 + $0x8d0] ss:$24 sps:$4 sm:$0xff]  }
0x2d10   :  { %v10220_v18 = vld [vmem:[#allocation10 + $0x8d8] ss:$24 sps:$4 sm:$0xff]  }
0x2d11   :  { %v6665_v33 = vadd.f32 %v6651_v54, %v12241_v62  ;;  %6672 = vadd.xlane.f32.xlu0 %v6664_v16  ;;  %v10191_v62 = vld [vmem:[#allocation10 + $0x784] ss:$24 sps:$4 sm:$0xff]  }
0x2d12   :  { %6938 = vmatprep.subr.bf16.mxu0 %v10191_v62 }
0x2d13   :  { %6674 = vadd.xlane.f32.xlu1 %v6665_v33  ;;  %6939 = vmatpush1.bf16.msra.mxu0 %v10189_v44 }
0x2d14   :  { %6940 = vmatprep.subr.bf16.mxu0 %v10195_v61 }
0x2d17   :  { %6941 = vmatpush1.bf16.msra.mxu0 %v10193_v47 }
0x2d18   :  { %6942 = vmatprep.subr.bf16.mxu0 %v10199_v2 }
0x2d1b   :  { %6943 = vmatpush1.bf16.msra.mxu0 %v10197_v8 }
0x2d1c   :  { %v6655_v24 = vpop.f32.mrb[200].mxu1  ;;  %6944 = vmatprep.subr.bf16.mxu0 %v10203_v49 }
0x2d1d   :  { %v6656_v20 = vadd.f32 %v6655_v24, %v6540_v51  ;;  %v9693_v22 = vpop.f32.mrb[201].mxu1 }
0x2d1e   :  { %v6658_v25 = vpop.f32.mrb[202].mxu1 }
0x2d1f   :  { %v12275_v53 = vadd.f32 %v6656_v20, %v12249_v0  ;;  %v6659_v12 = vadd.f32 %v6658_v25, %v6540_v51  ;;  %v9694_v34 = vpop.f32.mrb[203].mxu1  ;;  %6945 = vmatpush1.bf16.msra.mxu0 %v10201_v48  ;;  %v10208_v51 = vld [vmem:[#allocation10 + $0x848] ss:$24 sps:$4 sm:$0xff]  }
0x2d20   :  { %6946 = vmatprep.subr.bf16.mxu0 %v10207_v37  ;;  %9704 = vmatpush3.bf16.msra.mxu1 %v10208_v51 }
0x2d21   :  { %v12278_v17 = vadd.f32 %v6659_v12, %v12251_v36  ;;  %6676 = vadd.xlane.f32.xlu0 %v12275_v53  ;;  %9705 = vmatprep.subr.bf16.mxu1 %v10785_v39 }
0x2d23   :  { %6678 = vadd.xlane.f32.xlu1 %v12278_v17  ;;  %6947 = vmatpush1.bf16.msra.mxu0 %v10205_v56 }
0x2d24   :  { %6948 = vmatprep.subr.bf16.mxu0 %v10211_v14  ;;  %9706 = vmatpush3.bf16.msra.mxu1 %v10212_v31 }
0x2d25   :  { %9707 = vmatprep.subr.bf16.mxu1 %v10785_v39 }
0x2d28   :  { %9708 = vmatpush3.bf16.msra.mxu1 %v10216_v52 }
0x2d29   :  { %9709 = vmatprep.subr.bf16.mxu1 %v10785_v39 }
0x2d2c   :  { %9710 = vmatpush3.bf16.msra.mxu1 %v10220_v18 }
0x2d2d   :  { %9783 = vmatprep.subr.bf16.mxu1 %v10785_v39 }
0x2d84   :  { %v6669_v0 = vpop.xlane.xlu0 %6668 }
0x2d85   :  { %v6680_v36 = vmul.f32 0.0078125, %v6669_v0 }
0x2d86   :  { %v6671_v42 = vpop.xlane.xlu1 %6670 }
0x2d87   :  { %v12284_v45 = vsub.f32 %v6662_v32, %v6680_v36  ;;  %v6681_v15 = vmul.f32 0.0078125, %v6671_v42  ;;  %v10209_v32 = vld [vmem:[#allocation10 + $0x870] ss:$24 sps:$4 sm:$0xff]  }
0x2d88   :  { %6949 = vmatpush1.bf16.msra.mxu0 %v10209_v32 }
0x2d89   :  { %v12286_v59 = vsub.f32 %v6663_v7, %v6681_v15  ;;  %v6692_v41 = vmul.f32 %v12284_v45, %v12284_v45  ;;  %v10213_v7 = vld [vmem:[#allocation10 + $0x8a0] ss:$24 sps:$4 sm:$0xff]   ;;  %6950 = vmatprep.subr.bf16.mxu0 %v10215_v21 }
0x2d8b   :  { %6698 = vadd.xlane.f32.xlu0 %v6692_v41  ;;  %v6693_v35 = vmul.f32 %v12286_v59, %v12286_v59 }
0x2d8c   :  { %6951 = vmatpush1.bf16.msra.mxu0 %v10213_v7 }
0x2d8d   :  { %6700 = vadd.xlane.f32.xlu1 %v6693_v35  ;;  %6952 = vmatprep.subr.bf16.mxu0 %v10219_v26 }
0x2d90   :  { %6953 = vmatpush1.bf16.msra.mxu0 %v10217_v4 }
0x2d9e   :  { %v6673_v13 = vpop.xlane.xlu0 %6672 }
0x2d9f   :  { %v6682_v63 = vmul.f32 0.0078125, %v6673_v13 }
0x2da0   :  { %v6675_v30 = vpop.xlane.xlu1 %6674 }
0x2da1   :  { %v12293_v46 = vsub.f32 %v6664_v16, %v6682_v63  ;;  %v6683_v50 = vmul.f32 0.0078125, %v6675_v30 }
0x2da3   :  { %v12296_v43 = vsub.f32 %v6665_v33, %v6683_v50  ;;  %v6694_v29 = vmul.f32 %v12293_v46, %v12293_v46 }
0x2da5   :  { %6702 = vadd.xlane.f32.xlu0 %v6694_v29  ;;  %v6695_v1 = vmul.f32 %v12296_v43, %v12296_v43 }
0x2da7   :  { %6704 = vadd.xlane.f32.xlu1 %v6695_v1 }
0x2dae   :  { %v6677_v16 = vpop.xlane.xlu0 %6676 }
0x2daf   :  { %v6684_v54 = vmul.f32 0.0078125, %v6677_v16 }
0x2db0   :  { %v6679_v38 = vpop.xlane.xlu1 %6678 }
0x2db1   :  { %v6690_v33 = vsub.f32 %v12275_v53, %v6684_v54  ;;  %v6685_v24 = vmul.f32 0.0078125, %v6679_v38  ;;  %v8421_v53 = vld [vmem:[%s12569_s6 + $0x48] sm:$0x3] }
0x2db2   :  { %v6737_v9 = vrot.slane %v8421_v53, %v11019_v10  ;;  %v6747_v15 = vrot.slane %v8421_v53, %v11064_v57 }
0x2db3   :  { %v6691_v20 = vsub.f32 %v12278_v17, %v6685_v24  ;;  %v6696_v22 = vmul.f32 %v6690_v33, %v6690_v33 }
0x2db5   :  { %6706 = vadd.xlane.f32.xlu0 %v6696_v22  ;;  %v6697_v25 = vmul.f32 %v6691_v20, %v6691_v20 }
0x2db7   :  { %6708 = vadd.xlane.f32.xlu1 %v6697_v25 }
0x2e18   :  { %v6699_v12 = vpop.xlane.xlu0 %6698 }
0x2e19   :  { %v6710_v34 = vmul.f32 0.0078125, %v6699_v12 }
0x2e1a   :  { %v6701_v44 = vpop.xlane.xlu1 %6700 }
0x2e1b   :  { %v6716_v62 = vadd.f32 1e-05, %v6710_v34  ;;  %v6711_v23 = vmul.f32 0.0078125, %v6701_v44 }
0x2e1d   :  { %10482 = vrsqrt.f32 %v6716_v62  ;;  %v6717_v61 = vadd.f32 1e-05, %v6711_v23 }
0x2e1f   :  { %10484 = vrsqrt.f32 %v6717_v61 }
0x2e27   :  { %v10483_v47 = vpop.eup %10482 }
0x2e28   :  { %v6728_v17 = vmul.f32 %v10483_v47, %v12284_v45 }
0x2e29   :  { %v10485_v0 = vpop.eup %10484 }
0x2e2a   :  { %v6738_v36 = vmul.f32 %v6737_v9, %v6728_v17  ;;  %v6729_v42 = vmul.f32 %v10485_v0, %v12286_v59 }
0x2e2c   :  { %v6739_v41 = vmul.f32 %v6737_v9, %v6729_v42  ;;  %v12315_v35 = vadd.f32 %v6747_v15, %v6738_v36 }
0x2e2e   :  { %v12317_v2 = vadd.f32 %v6747_v15, %v6739_v41 }
0x2e30   :  { %v6790_v8 = vpack.c.bf16 %v12317_v2, %v12315_v35 }
0x2e32   :  { %v6703_v40 = vpop.xlane.xlu0 %6702  ;;  %6971 = vmatmul.mubr.bf16.vlgmr.msra.gmra.mrb[188].mxu0 %v6790_v8  ;;  %9712 = vmatmul.mubr.bf16.vlgmr.msra.gmra.mrb[204].mxu1 %v6790_v8 }
0x2e33   :  { %v6712_v49 = vmul.f32 0.0078125, %v6703_v40  ;;  %6980 = vmatprep.mubr.bf16.mxu0 %v10786_v3  ;;  %9715 = vmatprep.mubr.msk.bf16.mxu1 %vm10787_vm0, %v10785_v39 }
0x2e34   :  { %v6705_v45 = vpop.xlane.xlu1 %6704 }
0x2e35   :  { %v6718_v59 = vadd.f32 1e-05, %v6712_v49  ;;  %v6713_v13 = vmul.f32 0.0078125, %v6705_v45 }
0x2e37   :  { %10486 = vrsqrt.f32 %v6718_v59  ;;  %v6719_v48 = vadd.f32 1e-05, %v6713_v13 }
0x2e39   :  { %10488 = vrsqrt.f32 %v6719_v48 }
0x2e41   :  { %v10487_v60 = vpop.eup %10486 }
0x2e42   :  { %v6707_v63 = vpop.xlane.xlu0 %6706  ;;  %v6730_v30 = vmul.f32 %v10487_v60, %v12293_v46 }
0x2e43   :  { %v10489_v50 = vpop.eup %10488  ;;  %v6714_v37 = vmul.f32 0.0078125, %v6707_v63 }
0x2e44   :  { %v6709_v56 = vpop.xlane.xlu1 %6708  ;;  %v6731_v51 = vmul.f32 %v10489_v50, %v12296_v43  ;;  %v6740_v29 = vmul.f32 %v6737_v9, %v6730_v30 }
0x2e45   :  { %v6720_v1 = vadd.f32 1e-05, %v6714_v37  ;;  %v6715_v14 = vmul.f32 0.0078125, %v6709_v56 }
0x2e46   :  { %v6741_v32 = vmul.f32 %v6737_v9, %v6731_v51  ;;  %v12326_v21 = vadd.f32 %v6747_v15, %v6740_v29 }
0x2e47   :  { %10490 = vrsqrt.f32 %v6720_v1  ;;  %v6721_v31 = vadd.f32 1e-05, %v6715_v14 }
0x2e48   :  { %v12328_v7 = vadd.f32 %v6747_v15, %v6741_v32 }
0x2e49   :  { %10492 = vrsqrt.f32 %v6721_v31 }
0x2e4a   :  { %v8568_v52 = vpack.c.bf16 %v12328_v7, %v12326_v21 }
0x2e4c   :  { %6981 = vmatmul.mubr.bf16.gmra.mrb[192].mxu0 %v8568_v52  ;;  %9716 = vmatmul.mubr.bf16.gmra.mrb[208].mxu1 %v8568_v52 }
0x2e4d   :  { %6990 = vmatprep.mubr.bf16.mxu0 %v10786_v3  ;;  %9719 = vmatprep.mubr.msk.bf16.mxu1 %vm10787_vm0, %v10785_v39 }
0x2e51   :  { %v10491_v46 = vpop.eup %10490 }
0x2e52   :  { %v6732_v43 = vmul.f32 %v10491_v46, %v6690_v33  ;;  %v12348_v33 = vld [vmem:[%s12569_s6 + $0x50] sm:$0xff] }
0x2e53   :  { %v10493_v4 = vpop.eup %10492  ;;  %v12356_v34 = vrot.slane %v12348_v33, %v11056_v55  ;;  %v7071_v23 = vrot.slane %v12348_v33, %v11064_v57 }
0x2e54   :  { %v6733_v26 = vmul.f32 %v10493_v4, %v6691_v20  ;;  %v6742_v18 = vmul.f32 %v6737_v9, %v6732_v43  ;;  %v12352_v20 = vrot.slane %v12348_v33, %v11019_v10 }
0x2e56   :  { %v6743_v16 = vmul.f32 %v6737_v9, %v6733_v26  ;;  %v12335_v54 = vadd.f32 %v6747_v15, %v6742_v18 }
0x2e58   :  { %v12337_v38 = vadd.f32 %v6747_v15, %v6743_v16  ;;  %v6792_v24 = vpack.c.bf16 %v12335_v54, %v12328_v7 }
0x2e5a   :  { %v6793_v22 = vpack.c.bf16 %v12337_v38, %v12337_v38  ;;  %v6802_v3 = vunpack.c.h.b16 %v6792_v24 }
0x2e5c   :  { %v6803_v25 = vunpack.c.l.b16 %v6793_v22 }
0x2e5e   :  { %v6806_v12 = vpack.c.b16 %v6803_v25, %v6802_v3 }
0x2e60   :  { %6991 = vmatmul.mubr.bf16.gmra.mrb[196].mxu0 %v6806_v12  ;;  %9720 = vmatmul.mubr.bf16.gmra.mrb[212].mxu1 %v6806_v12 }
0x2e61   :  { %9799 = vmatprep.mubr.msk.bf16.mxu1 %vm10787_vm0, %v10785_v39 }
0x2f05   :  { %v6972_v44 = vpop.f32.mrb[188].mxu0  ;;  %v7035_v62 = vpop.f32.mrb[204].mxu1 }
0x2f06   :  { %v6974_v61 = vpop.f32.mrb[189].mxu0  ;;  %v9713_v53 = vpop.f32.mrb[205].mxu1  ;;  %v7062_v17 = vadd.f32 %v12352_v20, %v6972_v44  ;;  %v7082_v0 = vadd.f32 %v12356_v34, %v7035_v62 }
0x2f07   :  { %v6976_v9 = vpop.f32.mrb[190].mxu0  ;;  %v7038_v47 = vpop.f32.mrb[206].mxu1  ;;  %v7072_v41 = vadd.f32 %v7071_v23, %v6974_v61 }
0x2f08   :  { %v7063_v36 = vadd.f32 %v12352_v20, %v6976_v9  ;;  %v7083_v42 = vadd.f32 %v12356_v34, %v7038_v47  ;;  %v6978_v15 = vpop.f32.mrb[191].mxu0  ;;  %v9714_v55 = vpop.f32.mrb[207].mxu1 }
0x2f09   :  { %v7073_v8 = vadd.f32 %v7071_v23, %v6978_v15 }
0x2f0a   :  { %v7088_v40 = vpack.c.bf16 %v7063_v36, %v7062_v17  ;;  %v7274_v49 = vpack.c.bf16 %v7083_v42, %v7082_v0 }
0x2f0b   :  { %v7092_v45 = vpack.c.bf16 %v7073_v8, %v7072_v41 }
0x2f0c   :  { %9727 = vmatprep.mubr.bf16.mxu0 %v7088_v40 }
0x2f0d   :  { %9723 = vmatprep.subr.bf16.mxu0 %v7092_v45 }
0x2f0e   :  { %9724 = vmatpush3.bf16.xpose.msra.mxu0 %v7092_v45 }
0x2f1f   :  { %v6982_v59 = vpop.f32.mrb[192].mxu0  ;;  %v7043_v13 = vpop.f32.mrb[208].mxu1 }
0x2f20   :  { %v6984_v48 = vpop.f32.mrb[193].mxu0  ;;  %v9717_v60 = vpop.f32.mrb[209].mxu1  ;;  %v7064_v29 = vadd.f32 %v12352_v20, %v6982_v59  ;;  %v7084_v17 = vadd.f32 %v12356_v34, %v7043_v13 }
0x2f21   :  { %v7074_v63 = vadd.f32 %v7071_v23, %v6984_v48  ;;  %v6986_v30 = vpop.f32.mrb[194].mxu0  ;;  %v7046_v50 = vpop.f32.mrb[210].mxu1 }
0x2f22   :  { %v6988_v37 = vpop.f32.mrb[195].mxu0  ;;  %v9718_v56 = vpop.f32.mrb[211].mxu1  ;;  %v7089_v1 = vpack.c.bf16 %v7064_v29, %v7064_v29  ;;  %v7065_v31 = vadd.f32 %v12352_v20, %v6986_v30  ;;  %v7085_v52 = vadd.f32 %v12356_v34, %v7046_v50  ;;  %v7275_v36 = vpack.c.bf16 %v7084_v17, %v7084_v17 }
0x2f23   :  { %v7093_v51 = vpack.c.bf16 %v7074_v63, %v7074_v63  ;;  %v7075_v18 = vadd.f32 %v7071_v23, %v6988_v37 }
0x2f24   :  { %v7285_v42 = vsel %vm967_vm2, %v7275_v36, 0 }
0x2f25   :  { %9725 = vmatprep.subr.bf16.mxu0 %v7093_v51 }
0x2f26   :  { %9726 = vmatpush3.bf16.xpose.msra.mxu0 %v7093_v51 }
0x2f2d   :  { %9728 = vmatmul.mubr.bf16.vlgmr.msra.gmra.mrb[200].mxu0 %v7089_v1 }
0x2f33   :  { %v6992_v14 = vpop.f32.mrb[196].mxu0  ;;  %v7051_v32 = vpop.f32.mrb[212].mxu1 }
0x2f34   :  { %v7066_v46 = vadd.f32 %v12352_v20, %v6992_v14  ;;  %v7086_v43 = vadd.f32 %v12356_v34, %v7051_v32  ;;  %v6994_v4 = vpop.f32.mrb[197].mxu0  ;;  %v9721_v26 = vpop.f32.mrb[213].mxu1 }
0x2f35   :  { %v7076_v16 = vadd.f32 %v7071_v23, %v6994_v4  ;;  %v6996_v24 = vpop.f32.mrb[198].mxu0  ;;  %v7054_v22 = vpop.f32.mrb[214].mxu1 }
0x2f36   :  { %v7090_v3 = vpack.c.bf16 %v7066_v46, %v7065_v31  ;;  %v12369_v25 = vpack.c.bf16 %v7086_v43, %v7085_v52  ;;  %v12372_v12 = vadd.f32 %v12356_v34, %v7054_v22  ;;  %v6998_v44 = vpop.f32.mrb[199].mxu0  ;;  %v9722_v62 = vpop.f32.mrb[215].mxu1  ;;  %v7067_v47 = vadd.f32 %v12352_v20, %v6996_v24 }
0x2f37   :  { %v7094_v61 = vpack.c.bf16 %v7076_v16, %v7075_v18  ;;  %v7077_v53 = vadd.f32 %v7071_v23, %v6998_v44 }
0x2f38   :  { %9735 = vmatprep.mubr.bf16.mxu0 %v7090_v3  ;;  %v7091_v0 = vpack.c.bf16 %v7067_v47, %v7067_v47 }
0x2f39   :  { %v7095_v9 = vpack.c.bf16 %v7077_v53, %v7077_v53  ;;  %9731 = vmatprep.subr.bf16.mxu0 %v7094_v61 }
0x2f3a   :  { %9732 = vmatpush3.bf16.xpose.msra.mxu0 %v7094_v61 }
0x2f3b   :  { %9733 = vmatprep.subr.bf16.mxu0 %v7095_v9 }
0x2f42   :  { %9734 = vmatpush3.bf16.xpose.msra.mxu0 %v7095_v9 }
0x2f43   :  { %9739 = vmatprep.subr.bf16.mxu0 %v7274_v49 }
0x2f49   :  { %9736 = vmatmul.mubr.bf16.vlgmr.msra.gmra.mrb[204].mxu0 %v7091_v0 }
0x2f4a   :  { %9740 = vmatpush3.bf16.msra.mxu0 %v7274_v49 }
0x2f4b   :  { %9869 = vmatprep.subr.msk.bf16.mxu0 %vm967_vm2, %v7275_v36 }
0x2f4e   :  { %9742 = vmatpush3.bf16.msra.mxu0 %v7285_v42 }
0x2f4f   :  { %9747 = vmatprep.subr.bf16.mxu0 %v12369_v25 }
0x3000   :  { %v9729_v23 = vpop.f32.mrb[200].mxu0 }
0x3001   :  { %v7130_v15 = vpop.f32.mrb[201].mxu0  ;;  %v7194_v55 = vmul.f32 0.088388346, %v9729_v23 }
0x3002   :  { %v7192_v41 = vmul.f32 0.088388346, %v7130_v15  ;;  %v9730_v8 = vpop.f32.mrb[202].mxu0 }
0x3003   :  { %v7133_v20 = vpop.f32.mrb[203].mxu0  ;;  %v7200_v49 = vsel %vm435_vm3, %v7194_v55, -1e+30 }
0x3004   :  { %v7198_v34 = vsel %vm435_vm3, %v7192_v41, -1e+30  ;;  %v7193_v40 = vmul.f32 0.088388346, %v7133_v20  ;;  %v7210_v48 = vsel %vm886_vm4, %v7200_v49, -inf }
0x3005   :  { %v7204_v45 = vsel %vm886_vm4, %v7198_v34, -inf }
0x3006   :  { %v7199_v59 = vsel %vm435_vm3, %v7193_v40, -1e+30  ;;  %7205 = vmax.xlane.f32.xlu0 %v7204_v45 }
0x3007   :  { %v7207_v13 = vsel %vm886_vm4, %v7199_v59, -inf }
0x3008   :  { %7208 = vmax.xlane.f32.xlu1 %v7207_v13 }
0x300a   :  { %7211 = vmax.xlane.f32.xlu0 %v7210_v48 }
0x301c   :  { %v9737_v60 = vpop.f32.mrb[204].mxu0 }
0x301d   :  { %v7178_v63 = vpop.f32.mrb[205].mxu0  ;;  %v7197_v30 = vmul.f32 0.088388346, %v9737_v60 }
0x301e   :  { %v7195_v50 = vmul.f32 0.088388346, %v7178_v63  ;;  %v9738_v37 = vpop.f32.mrb[206].mxu0 }
0x301f   :  { %v7181_v56 = vpop.f32.mrb[207].mxu0  ;;  %v7203_v14 = vsel %vm435_vm3, %v7197_v30, -1e+30 }
0x3020   :  { %v7201_v51 = vsel %vm435_vm3, %v7195_v50, -1e+30  ;;  %v7196_v29 = vmul.f32 0.088388346, %v7181_v56  ;;  %v7219_v52 = vsel %vm886_vm4, %v7203_v14, -inf }
0x3021   :  { %v7213_v1 = vsel %vm886_vm4, %v7201_v51, -inf }
0x3022   :  { %v7202_v32 = vsel %vm435_vm3, %v7196_v29, -1e+30  ;;  %7214 = vmax.xlane.f32.xlu1 %v7213_v1  ;;  %v7277_v1 = vpack.c.bf16 %v12372_v12, %v12372_v12 }
0x3023   :  { %v7216_v31 = vsel %vm886_vm4, %v7202_v32, -inf }
0x3024   :  { %7217 = vmax.xlane.f32.xlu0 %v7216_v31 }
0x3026   :  { %7220 = vmax.xlane.f32.xlu1 %v7219_v52 }
0x3093   :  { %v7206_v46 = vpop.xlane.xlu0 %7205 }
0x3094   :  { %v7222_v43 = vsub.f32 %v7198_v34, %v7206_v46 }
0x3095   :  { %v7209_v4 = vpop.xlane.xlu1 %7208 }
0x3096   :  { %v7228_v26 = vmul.f32 1.442695, %v7222_v43  ;;  %v7223_v18 = vsub.f32 %v7199_v59, %v7209_v4 }
0x3097   :  { %v7212_v16 = vpop.xlane.xlu0 %7211 }
0x3098   :  { %10494 = vpow2.f32 %v7228_v26  ;;  %v7230_v24 = vmul.f32 1.442695, %v7223_v18  ;;  %v7224_v22 = vsub.f32 %v7200_v49, %v7212_v16  ;;  %v10221_v16 = vld [vmem:[#allocation10 + $0x78c] ss:$24 sps:$4 sm:$0xff]  }
0x309a   :  { %10496 = vpow2.f32 %v7230_v24  ;;  %v7232_v3 = vmul.f32 1.442695, %v7224_v22  ;;  %v10222_v22 = vld [vmem:[#allocation10 + $0x7bc] ss:$24 sps:$4 sm:$0xff]  }
0x309c   :  { %10498 = vpow2.f32 %v7232_v3  ;;  %v10223_v3 = vld [vmem:[#allocation10 + $0x7ec] ss:$24 sps:$4 sm:$0xff]  }
0x30a2   :  { %v10495_v6 = vpop.eup %10494 }
0x30a3   :  { %v7240_v44 = vsel %vm886_vm4, %v10495_v6, 0.0 }
0x30a4   :  { %v10497_v62 = vpop.eup %10496  ;;  %7241 = vadd.xlane.f32.xlu0 %v7240_v44  ;;  %v10225_v44 = vld [vmem:[#allocation10 + $0x84c] ss:$24 sps:$4 sm:$0xff]  }
0x30a5   :  { %v7243_v61 = vsel %vm886_vm4, %v10497_v62, 0.0 }
0x30a6   :  { %v10499_v53 = vpop.eup %10498  ;;  %7244 = vadd.xlane.f32.xlu1 %v7243_v61  ;;  %v10227_v61 = vld [vmem:[#allocation10 + $0x8ac] ss:$24 sps:$4 sm:$0xff]  }
0x30a7   :  { %v7246_v9 = vsel %vm886_vm4, %v10499_v53, 0.0 }
0x30a8   :  { %7247 = vadd.xlane.f32.xlu0 %v7246_v9 }
0x30af   :  { %v7215_v47 = vpop.xlane.xlu1 %7214 }
0x30b0   :  { %v7225_v17 = vsub.f32 %v7201_v51, %v7215_v47 }
0x30b1   :  { %v7218_v0 = vpop.xlane.xlu0 %7217 }
0x30b2   :  { %v7234_v36 = vmul.f32 1.442695, %v7225_v17  ;;  %v7226_v42 = vsub.f32 %v7202_v32, %v7218_v0 }
0x30b3   :  { %v7221_v23 = vpop.xlane.xlu1 %7220 }
0x30b4   :  { %10500 = vpow2.f32 %v7234_v36  ;;  %v7236_v15 = vmul.f32 1.442695, %v7226_v42  ;;  %v7227_v55 = vsub.f32 %v7203_v14, %v7221_v23  ;;  %v7342_v14 = vsel %vm967_vm2, %v7277_v1, 0 }
0x30b6   :  { %10502 = vpow2.f32 %v7236_v15  ;;  %v7238_v41 = vmul.f32 1.442695, %v7227_v55 }
0x30b8   :  { %10504 = vpow2.f32 %v7238_v41 }
0x30be   :  { %v10501_v8 = vpop.eup %10500 }
0x30bf   :  { %v7249_v20 = vsel %vm886_vm4, %v10501_v8, 0.0 }
0x30c0   :  { %v10503_v34 = vpop.eup %10502  ;;  %7250 = vadd.xlane.f32.xlu1 %v7249_v20 }
0x30c1   :  { %v7252_v40 = vsel %vm886_vm4, %v10503_v34, 0.0 }
0x30c2   :  { %v10505_v45 = vpop.eup %10504  ;;  %7253 = vadd.xlane.f32.xlu0 %v7252_v40 }
0x30c3   :  { %v7255_v49 = vsel %vm886_vm4, %v10505_v45, 0.0 }
0x30c4   :  { %7256 = vadd.xlane.f32.xlu1 %v7255_v49  ;;  %v7415_v49 = vrot.slane %v12348_v33, %v11150_v11 }
0x3131   :  { %v7242_v59 = vpop.xlane.xlu0 %7241 }
0x3132   :  { %10506 = vrcp.f32 %v7242_v59 }
0x3133   :  { %v7245_v13 = vpop.xlane.xlu1 %7244 }
0x3134   :  { %10508 = vrcp.f32 %v7245_v13 }
0x3135   :  { %v7248_v48 = vpop.xlane.xlu0 %7247 }
0x3136   :  { %10510 = vrcp.f32 %v7248_v48 }
0x313c   :  { %v10507_v60 = vpop.eup %10506 }
0x313d   :  { %v7264_v30 = vmul.f32 %v10507_v60, %v10495_v6  ;;  %v10224_v6 = vld [vmem:[#allocation10 + $0x81c] ss:$24 sps:$4 sm:$0xff]  }
0x313e   :  { %v10509_v63 = vpop.eup %10508 }
0x313f   :  { %v7265_v50 = vmul.f32 %v10509_v63, %v10497_v62  ;;  %v10226_v62 = vld [vmem:[#allocation10 + $0x87c] ss:$24 sps:$4 sm:$0xff]  }
0x3140   :  { %v10511_v37 = vpop.eup %10510 }
0x3141   :  { %v7266_v56 = vmul.f32 %v10511_v37, %v10499_v53  ;;  %v7270_v51 = vpack.c.bf16 %v7265_v50, %v7264_v30  ;;  %v10228_v53 = vld [vmem:[#allocation10 + $0x8dc] ss:$24 sps:$4 sm:$0xff]  }
0x3143   :  { %9743 = vmatprep.mubr.msk.bf16.mxu0 %vm886_vm4, %v7270_v51  ;;  %v7271_v29 = vpack.c.bf16 %v7266_v56, %v7266_v56 }
0x3145   :  { %9744 = vmatmul.mubr.msk.bf16.vlgmr.msra.gmra.mrb[208].mxu0 %vm886_vm4, %v7271_v29 }
0x3146   :  { %9748 = vmatpush3.bf16.msra.mxu0 %v12369_v25 }
0x3147   :  { %9870 = vmatprep.subr.msk.bf16.mxu0 %vm967_vm2, %v7277_v1 }
0x314a   :  { %9750 = vmatpush3.bf16.msra.mxu0 %v7342_v14 }
0x314b   :  { %9755 = vmatprep.subr.bf16.mxu0 %v10785_v39 }
0x314d   :  { %v7251_v32 = vpop.xlane.xlu1 %7250 }
0x314e   :  { %10512 = vrcp.f32 %v7251_v32 }
0x314f   :  { %v7254_v31 = vpop.xlane.xlu0 %7253 }
0x3150   :  { %10514 = vrcp.f32 %v7254_v31 }
0x3151   :  { %v7257_v52 = vpop.xlane.xlu1 %7256 }
0x3152   :  { %10516 = vrcp.f32 %v7257_v52 }
0x3158   :  { %v10513_v46 = vpop.eup %10512 }
0x3159   :  { %v7267_v12 = vmul.f32 %v10513_v46, %v10501_v8 }
0x315a   :  { %v10515_v43 = vpop.eup %10514 }
0x315b   :  { %v7268_v4 = vmul.f32 %v10515_v43, %v10503_v34 }
0x315c   :  { %v10517_v26 = vpop.eup %10516 }
0x315d   :  { %v7269_v18 = vmul.f32 %v10517_v26, %v10505_v45  ;;  %v7272_v25 = vpack.c.bf16 %v7268_v4, %v7267_v12  ;;  %v10229_v4 = vld [vmem:[#allocation10 + $0x790] ss:$24 sps:$4 sm:$0xff]   ;;  %v10230_v26 = vld [vmem:[#allocation10 + $0x7c0] ss:$24 sps:$4 sm:$0xff]  }
0x315e   :  { %9784 = vmatpush3.bf16.msra.mxu1 %v10229_v4 }
0x315f   :  { %9751 = vmatprep.mubr.msk.bf16.mxu0 %vm886_vm4, %v7272_v25  ;;  %v7273_v24 = vpack.c.bf16 %v7269_v18, %v7269_v18  ;;  %9785 = vmatprep.subr.bf16.mxu1 %v10785_v39 }
0x3161   :  { %9752 = vmatmul.mubr.msk.bf16.vlgmr.msra.gmra.mrb[212].mxu0 %vm886_vm4, %v7273_v24 }
0x3162   :  { %9756 = vmatpush3.bf16.msra.mxu0 %v10221_v16  ;;  %9771 = vmatprep.mubr.msk.bf16.mxu0 %vm10787_vm0, %v10785_v39 }
0x3163   :  { %9757 = vmatprep.subr.bf16.mxu0 %v10785_v39  ;;  %9786 = vmatpush3.bf16.msra.mxu1 %v10230_v26 }
0x3164   :  { %9787 = vmatprep.subr.bf16.mxu1 %v10785_v39 }
0x3166   :  { %9758 = vmatpush3.bf16.msra.mxu0 %v10222_v22 }
0x3167   :  { %9759 = vmatprep.subr.bf16.mxu0 %v10785_v39 }
0x316a   :  { %9760 = vmatpush3.bf16.msra.mxu0 %v10223_v3 }
0x316b   :  { %9761 = vmatprep.subr.bf16.mxu0 %v10785_v39 }
0x316e   :  { %9762 = vmatpush3.bf16.msra.mxu0 %v10224_v6  ;;  %v10231_v6 = vld [vmem:[#allocation10 + $0x7f0] ss:$24 sps:$4 sm:$0xff]  }
0x316f   :  { %9763 = vmatprep.subr.bf16.mxu0 %v10785_v39  ;;  %9788 = vmatpush3.bf16.msra.mxu1 %v10231_v6 }
0x3170   :  { %9789 = vmatprep.subr.bf16.mxu1 %v10785_v39 }
0x3172   :  { %9764 = vmatpush3.bf16.msra.mxu0 %v10225_v44 }
0x3173   :  { %9765 = vmatprep.subr.bf16.mxu0 %v10785_v39 }
0x3176   :  { %9766 = vmatpush3.bf16.msra.mxu0 %v10226_v62  ;;  %v10232_v62 = vld [vmem:[#allocation10 + $0x820] ss:$24 sps:$4 sm:$0xff]  }
0x3177   :  { %9767 = vmatprep.subr.bf16.mxu0 %v10785_v39  ;;  %9790 = vmatpush3.bf16.msra.mxu1 %v10232_v62 }
0x3178   :  { %9791 = vmatprep.subr.bf16.mxu1 %v10785_v39 }
0x317a   :  { %9768 = vmatpush3.bf16.msra.mxu0 %v10227_v61 }
0x317b   :  { %9769 = vmatprep.subr.bf16.mxu0 %v10785_v39 }
0x317e   :  { %9770 = vmatpush3.bf16.msra.mxu0 %v10228_v53 }
0x317f   :  { %9811 = vmatprep.subr.bf16.mxu0 %v10785_v39 }
0x3218   :  { %v9745_v9 = vpop.f32.mrb[208].mxu0 }
0x3219   :  { %v7321_v47 = vpop.f32.mrb[209].mxu0 }
0x321a   :  { %v9746_v17 = vpop.f32.mrb[210].mxu0 }
0x321b   :  { %v7324_v0 = vpop.f32.mrb[211].mxu0  ;;  %v10233_v17 = vld [vmem:[#allocation10 + $0x850] ss:$24 sps:$4 sm:$0xff]  }
0x321c   :  { %v7408_v36 = vpack.c.bf16 %v7324_v0, %v7321_v47  ;;  %9792 = vmatpush3.bf16.msra.mxu1 %v10233_v17 }
0x321d   :  { %9793 = vmatprep.subr.bf16.mxu1 %v10785_v39 }
0x321e   :  { %9772 = vmatmul.mubr.bf16.vlgmr.msra.gmra.mrb[216].mxu0 %v7408_v36 }
0x321f   :  { %9775 = vmatprep.mubr.msk.bf16.mxu0 %vm10787_vm0, %v10785_v39 }
0x3234   :  { %v9753_v42 = vpop.f32.mrb[212].mxu0 }
0x3235   :  { %v7378_v23 = vpop.f32.mrb[213].mxu0  ;;  %v7411_v15 = vpack.c.bf16 %v9753_v42, %v9753_v42 }
0x3236   :  { %v8569_v55 = vpack.c.bf16 %v7378_v23, %v9745_v9  ;;  %v9754_v41 = vpop.f32.mrb[214].mxu0 }
0x3237   :  { %v7381_v8 = vpop.f32.mrb[215].mxu0  ;;  %v7425_v34 = vunpack.c.l.b16 %v7411_v15  ;;  %v10235_v41 = vld [vmem:[#allocation10 + $0x8b0] ss:$24 sps:$4 sm:$0xff]  }
0x3238   :  { %v7410_v20 = vpack.c.bf16 %v7381_v8, %v7378_v23  ;;  %9776 = vmatmul.mubr.bf16.gmra.mrb[220].mxu0 %v8569_v55  ;;  %v10234_v23 = vld [vmem:[#allocation10 + $0x880] ss:$24 sps:$4 sm:$0xff]  }
0x3239   :  { %9779 = vmatprep.mubr.msk.bf16.mxu0 %vm10787_vm0, %v10785_v39  ;;  %9794 = vmatpush3.bf16.msra.mxu1 %v10234_v23  ;;  %v10236_v8 = vld [vmem:[#allocation10 + $0x8e0] ss:$24 sps:$4 sm:$0xff]  }
0x323a   :  { %v7424_v40 = vunpack.c.h.b16 %v7410_v20  ;;  %9795 = vmatprep.subr.bf16.mxu1 %v10785_v39  ;;  %v10238_v20 = vld [vmem:[#allocation10 + $0x7c4] ss:$24 sps:$4 sm:$0xff]  }
0x323c   :  { %v7428_v45 = vpack.c.b16 %v7425_v34, %v7424_v40  ;;  %v10240_v34 = vld [vmem:[#allocation10 + $0x824] ss:$24 sps:$4 sm:$0xff]   ;;  %v10241_v40 = vld [vmem:[#allocation10 + $0x854] ss:$24 sps:$4 sm:$0xff]  }
0x323d   :  { %9796 = vmatpush3.bf16.msra.mxu1 %v10235_v41 }
0x323e   :  { %9797 = vmatprep.subr.bf16.mxu1 %v10785_v39 }
0x3240   :  { %9780 = vmatmul.mubr.bf16.gmra.mrb[224].mxu0 %v7428_v45  ;;  %v10242_v45 = vld [vmem:[#allocation10 + $0x884] ss:$24 sps:$4 sm:$0xff]  }
0x3241   :  { %9827 = vmatprep.mubr.msk.bf16.mxu0 %vm10787_vm0, %v10785_v39  ;;  %9798 = vmatpush3.bf16.msra.mxu1 %v10236_v8 }
0x3242   :  { %9839 = vmatprep.subr.bf16.mxu1 %v10785_v39 }
0x32f1   :  { %v7514_v59 = vpop.f32.mrb[216].mxu0 }
0x32f2   :  { %v7515_v13 = vadd.f32 %v7514_v59, %v7415_v49  ;;  %v9773_v48 = vpop.f32.mrb[217].mxu0 }
0x32f3   :  { %v7517_v60 = vpop.f32.mrb[218].mxu0 }
0x32f4   :  { %v7537_v63 = vadd.f32 %v7515_v13, %v12315_v35  ;;  %v7518_v30 = vadd.f32 %v7517_v60, %v7415_v49  ;;  %v9774_v50 = vpop.f32.mrb[219].mxu0 }
0x32f6   :  { %v7538_v37 = vadd.f32 %v7518_v30, %v12317_v2  ;;  %7543 = vadd.xlane.f32.xlu0 %v7537_v63  ;;  %v12475_v30 = vrot.slane %v12348_v33, %v11198_v27 }
0x32f8   :  { %7545 = vadd.xlane.f32.xlu1 %v7538_v37 }
0x330b   :  { %v7522_v56 = vpop.f32.mrb[220].mxu0 }
0x330c   :  { %v7523_v51 = vadd.f32 %v7522_v56, %v7415_v49  ;;  %v9777_v29 = vpop.f32.mrb[221].mxu0 }
0x330d   :  { %v7525_v1 = vpop.f32.mrb[222].mxu0 }
0x330e   :  { %v7539_v14 = vadd.f32 %v7523_v51, %v12326_v21  ;;  %v7526_v32 = vadd.f32 %v7525_v1, %v7415_v49  ;;  %v9778_v11 = vpop.f32.mrb[223].mxu0  ;;  %v12482_v1 = vrot.slane %v12348_v33, %v11201_v28 }
0x3310   :  { %v7540_v31 = vadd.f32 %v7526_v32, %v12328_v7  ;;  %7547 = vadd.xlane.f32.xlu0 %v7539_v14 }
0x3312   :  { %7549 = vadd.xlane.f32.xlu1 %v7540_v31 }
0x3313   :  { %v7530_v52 = vpop.f32.mrb[224].mxu0 }
0x3314   :  { %v7531_v35 = vadd.f32 %v7530_v52, %v7415_v49  ;;  %v9781_v46 = vpop.f32.mrb[225].mxu0 }
0x3315   :  { %v7533_v43 = vpop.f32.mrb[226].mxu0 }
0x3316   :  { %v7534_v12 = vadd.f32 %v7533_v43, %v7415_v49  ;;  %v9782_v2 = vpop.f32.mrb[227].mxu0  ;;  %v12457_v15 = vadd.f32 %v7531_v35, %v12335_v54  ;;  %v10237_v54 = vld [vmem:[#allocation10 + $0x794] ss:$24 sps:$4 sm:$0xff]  }
0x3317   :  { %9812 = vmatpush3.bf16.msra.mxu0 %v10237_v54 }
0x3318   :  { %v12460_v55 = vadd.f32 %v7534_v12, %v12337_v38  ;;  %9813 = vmatprep.subr.bf16.mxu0 %v10785_v39  ;;  %v10239_v38 = vld [vmem:[#allocation10 + $0x7f4] ss:$24 sps:$4 sm:$0xff]  }
0x331b   :  { %9814 = vmatpush3.bf16.msra.mxu0 %v10238_v20 }
0x331c   :  { %9815 = vmatprep.subr.bf16.mxu0 %v10785_v39 }
0x331f   :  { %9816 = vmatpush3.bf16.msra.mxu0 %v10239_v38 }
0x3320   :  { %9817 = vmatprep.subr.bf16.mxu0 %v10785_v39 }
0x3323   :  { %9818 = vmatpush3.bf16.msra.mxu0 %v10240_v34 }
0x3324   :  { %9819 = vmatprep.subr.bf16.mxu0 %v10785_v39 }
0x3327   :  { %9820 = vmatpush3.bf16.msra.mxu0 %v10241_v40  ;;  %v7803_v40 = vrot.slane %v12348_v33, %v11252_v58 }
0x3328   :  { %9821 = vmatprep.subr.bf16.mxu0 %v10785_v39 }
0x332b   :  { %9822 = vmatpush3.bf16.msra.mxu0 %v10242_v45 }
0x332c   :  { %9823 = vmatprep.subr.bf16.mxu0 %v10785_v39 }
0x3383   :  { %v7544_v21 = vpop.xlane.xlu0 %7543 }
0x3384   :  { %v7555_v18 = vmul.f32 0.0078125, %v7544_v21 }
0x3385   :  { %v7546_v25 = vpop.xlane.xlu1 %7545 }
0x3386   :  { %v12437_v7 = vsub.f32 %v7537_v63, %v7555_v18  ;;  %v7556_v16 = vmul.f32 0.0078125, %v7546_v25 }
0x3388   :  { %v12439_v24 = vsub.f32 %v7538_v37, %v7556_v16  ;;  %v7567_v22 = vmul.f32 %v12437_v7, %v12437_v7 }
0x338a   :  { %7573 = vadd.xlane.f32.xlu0 %v7567_v22  ;;  %v7568_v3 = vmul.f32 %v12439_v24, %v12439_v24  ;;  %v10244_v22 = vld [vmem:[#allocation10 + $0x8e4] ss:$24 sps:$4 sm:$0xff]  }
0x338c   :  { %7575 = vadd.xlane.f32.xlu1 %v7568_v3  ;;  %v12503_v3 = vrot.slane %v12348_v33, %v11241_v19 }
0x339d   :  { %v7548_v44 = vpop.xlane.xlu0 %7547 }
0x339e   :  { %v7557_v61 = vmul.f32 0.0078125, %v7548_v44 }
0x339f   :  { %v7550_v53 = vpop.xlane.xlu1 %7549 }
0x33a0   :  { %v12446_v9 = vsub.f32 %v7539_v14, %v7557_v61  ;;  %v7558_v47 = vmul.f32 0.0078125, %v7550_v53 }
0x33a2   :  { %v12449_v0 = vsub.f32 %v7540_v31, %v7558_v47  ;;  %v7569_v36 = vmul.f32 %v12446_v9, %v12446_v9 }
0x33a4   :  { %7577 = vadd.xlane.f32.xlu0 %v7569_v36  ;;  %v7570_v42 = vmul.f32 %v12449_v0, %v12449_v0 }
0x33a6   :  { %7579 = vadd.xlane.f32.xlu1 %v7570_v42 }
0x33a8   :  { %7551 = vadd.xlane.f32.xlu0 %v12457_v15 }
0x33aa   :  { %7553 = vadd.xlane.f32.xlu1 %v12460_v55 }
0x3417   :  { %v7574_v49 = vpop.xlane.xlu0 %7573 }
0x3418   :  { %v7585_v59 = vmul.f32 0.0078125, %v7574_v49 }
0x3419   :  { %v7576_v13 = vpop.xlane.xlu1 %7575 }
0x341a   :  { %v7591_v48 = vadd.f32 1e-05, %v7585_v59  ;;  %v7586_v60 = vmul.f32 0.0078125, %v7576_v13 }
0x341c   :  { %10518 = vrsqrt.f32 %v7591_v48  ;;  %v7592_v63 = vadd.f32 1e-05, %v7586_v60 }
0x341e   :  { %10520 = vrsqrt.f32 %v7592_v63 }
0x3426   :  { %v10519_v50 = vpop.eup %10518 }
0x3427   :  { %v7603_v37 = vmul.f32 %v10519_v50, %v12437_v7 }
0x3428   :  { %v10521_v56 = vpop.eup %10520 }
0x3429   :  { %v7613_v51 = vmul.f32 %v12475_v30, %v7603_v37  ;;  %v7604_v29 = vmul.f32 %v10521_v56, %v12439_v24  ;;  %v10243_v24 = vld [vmem:[#allocation10 + $0x8b4] ss:$24 sps:$4 sm:$0xff]  }
0x342a   :  { %9824 = vmatpush3.bf16.msra.mxu0 %v10243_v24 }
0x342b   :  { %v7614_v14 = vmul.f32 %v12475_v30, %v7604_v29  ;;  %v7623_v32 = vadd.f32 %v12482_v1, %v7613_v51  ;;  %9825 = vmatprep.subr.bf16.mxu0 %v10785_v39 }
0x342d   :  { %v7624_v11 = vadd.f32 %v12482_v1, %v7614_v14 }
0x342e   :  { %9826 = vmatpush3.bf16.msra.mxu0 %v10244_v22 }
0x342f   :  { %v7645_v27 = vpack.c.bf16 %v7624_v11, %v7623_v32 }
0x3431   :  { %v7578_v31 = vpop.xlane.xlu0 %7577  ;;  %9800 = vmatmul.mubr.bf16.vlgmr.msra.gmra.mrb[216].mxu1 %v7645_v27 }
0x3432   :  { %v7587_v52 = vmul.f32 0.0078125, %v7578_v31  ;;  %9803 = vmatprep.mubr.msk.bf16.mxu1 %vm10787_vm0, %v10785_v39 }
0x3433   :  { %v7580_v35 = vpop.xlane.xlu1 %7579 }
0x3434   :  { %v7593_v46 = vadd.f32 1e-05, %v7587_v52  ;;  %v7588_v43 = vmul.f32 0.0078125, %v7580_v35 }
0x3435   :  { %v7552_v56 = vpop.xlane.xlu0 %7551 }
0x3436   :  { %10522 = vrsqrt.f32 %v7593_v46  ;;  %v7594_v12 = vadd.f32 1e-05, %v7588_v43  ;;  %v7559_v29 = vmul.f32 0.0078125, %v7552_v56 }
0x3437   :  { %v7554_v34 = vpop.xlane.xlu1 %7553 }
0x3438   :  { %10524 = vrsqrt.f32 %v7594_v12  ;;  %v7560_v45 = vmul.f32 0.0078125, %v7554_v34  ;;  %v7565_v58 = vsub.f32 %v12457_v15, %v7559_v29 }
0x343a   :  { %v7566_v60 = vsub.f32 %v12460_v55, %v7560_v45  ;;  %v7571_v52 = vmul.f32 %v7565_v58, %v7565_v58 }
0x343c   :  { %v7572_v37 = vmul.f32 %v7566_v60, %v7566_v60 }
0x3440   :  { %v10523_v28 = vpop.eup %10522 }
0x3441   :  { %v7605_v2 = vmul.f32 %v10523_v28, %v12446_v9 }
0x3442   :  { %v10525_v4 = vpop.eup %10524 }
0x3443   :  { %v7606_v26 = vmul.f32 %v10525_v4, %v12449_v0  ;;  %v7615_v21 = vmul.f32 %v12475_v30, %v7605_v2 }
0x3445   :  { %v7616_v18 = vmul.f32 %v12475_v30, %v7606_v26  ;;  %v7625_v25 = vadd.f32 %v12482_v1, %v7615_v21 }
0x3447   :  { %v12495_v7 = vadd.f32 %v12482_v1, %v7616_v18 }
0x3449   :  { %v8570_v16 = vpack.c.bf16 %v12495_v7, %v7625_v25 }
0x344b   :  { %9804 = vmatmul.mubr.bf16.gmra.mrb[220].mxu1 %v8570_v16 }
0x344c   :  { %9807 = vmatprep.mubr.msk.bf16.mxu1 %vm10787_vm0, %v10785_v39 }
0x3504   :  { %v7751_v6 = vpop.f32.mrb[216].mxu1 }
0x3505   :  { %v7752_v44 = vadd.f32 %v7751_v6, %v12503_v3  ;;  %v9801_v62 = vpop.f32.mrb[217].mxu1 }
0x3506   :  { %v7754_v61 = vpop.f32.mrb[218].mxu1 }
0x3507   :  { %v7755_v53 = vadd.f32 %v7754_v61, %v12503_v3  ;;  %v9802_v9 = vpop.f32.mrb[219].mxu1  ;;  %v7774_v47 = vmax.f32 %v7752_v44, 0.0 }
0x3509   :  { %v7775_v17 = vmax.f32 %v7755_v53, 0.0 }
0x350b   :  { %v7796_v0 = vpack.c.bf16 %v7775_v17, %v7774_v47 }
0x350d   :  { %9828 = vmatmul.mubr.bf16.vlgmr.msra.gmra.mrb[228].mxu0 %v7796_v0 }
0x350e   :  { %9831 = vmatprep.mubr.msk.bf16.mxu0 %vm10787_vm0, %v10785_v39 }
0x351e   :  { %v7759_v36 = vpop.f32.mrb[220].mxu1 }
0x351f   :  { %v7760_v42 = vadd.f32 %v7759_v36, %v12503_v3  ;;  %v9805_v19 = vpop.f32.mrb[221].mxu1 }
0x3520   :  { %v7762_v23 = vpop.f32.mrb[222].mxu1 }
0x3521   :  { %v12511_v41 = vadd.f32 %v7762_v23, %v12503_v3  ;;  %v9806_v8 = vpop.f32.mrb[223].mxu1  ;;  %v7776_v54 = vmax.f32 %v7760_v42, 0.0 }
0x3523   :  { %v7777_v20 = vmax.f32 %v12511_v41, 0.0 }
0x3525   :  { %v8571_v38 = vpack.c.bf16 %v7777_v20, %v7776_v54 }
0x3527   :  { %9832 = vmatmul.mubr.bf16.gmra.mrb[232].mxu0 %v8571_v38 }
0x3528   :  { %9835 = vmatprep.mubr.msk.bf16.mxu0 %vm10787_vm0, %v10785_v39 }
0x35e0   :  { %v7902_v49 = vpop.f32.mrb[228].mxu0 }
0x35e1   :  { %v7903_v59 = vadd.f32 %v7902_v49, %v7803_v40  ;;  %v9829_v13 = vpop.f32.mrb[229].mxu0 }
0x35e2   :  { %v7905_v48 = vpop.f32.mrb[230].mxu0 }
0x35e3   :  { %v7921_v63 = vadd.f32 %v7903_v59, %v7623_v32  ;;  %v9830_v50 = vpop.f32.mrb[231].mxu0 }
0x35e5   :  { %7923 = vadd.xlane.f32.xlu1 %v7921_v63 }
0x35e9   :  { %7583 = vadd.xlane.f32.xlu1 %v7572_v37 }
0x35fa   :  { %v7909_v51 = vpop.f32.mrb[232].mxu0 }
0x35fb   :  { %v9833_v14 = vpop.f32.mrb[233].mxu0 }
0x35fc   :  { %v7911_v11 = vpop.f32.mrb[234].mxu0 }
0x35fd   :  { %v7912_v27 = vadd.f32 %v7911_v11, %v7803_v40  ;;  %v9834_v31 = vpop.f32.mrb[235].mxu0 }
0x35ff   :  { %v7922_v33 = vadd.f32 %v7912_v27, %v12495_v7 }
0x3601   :  { %7925 = vadd.xlane.f32.xlu0 %v7922_v33 }
0x3605   :  { %7581 = vadd.xlane.f32.xlu0 %v7571_v52 }
0x3672   :  { %v7924_v55 = vpop.xlane.xlu1 %7923 }
0x3673   :  { %v7927_v32 = vmul.f32 0.0078125, %v7924_v55 }
0x3675   :  { %v7929_v35 = vsub.f32 %v7921_v63, %v7927_v32 }
0x3676   :  { %v7584_v43 = vpop.xlane.xlu1 %7583 }
0x3677   :  { %v7931_v46 = vmul.f32 %v7929_v35, %v7929_v35  ;;  %v7590_v12 = vmul.f32 0.0078125, %v7584_v43 }
0x3679   :  { %7933 = vadd.xlane.f32.xlu1 %v7931_v46  ;;  %v7596_v28 = vadd.f32 1e-05, %v7590_v12 }
0x367b   :  { %10526 = vrsqrt.f32 %v7596_v28 }
0x3685   :  { %v10527_v16 = vpop.eup %10526 }
0x3686   :  { %v7608_v24 = vmul.f32 %v10527_v16, %v7566_v60  ;;  %v10252_v16 = vld [vmem:[#allocation14 + $0x38] sm:$0xff]  }
0x3688   :  { %v7618_v22 = vmul.f32 %v12475_v30, %v7608_v24 }
0x368a   :  { %v7628_v62 = vadd.f32 %v12482_v1, %v7618_v22 }
0x368c   :  { %v7648_v9 = vpack.c.bf16 %v7628_v62, %v7628_v62 }
0x368e   :  { %v7926_v2 = vpop.xlane.xlu0 %7925  ;;  %v7662_v0 = vunpack.c.l.b16 %v7648_v9 }
0x368f   :  { %v7928_v4 = vmul.f32 0.0078125, %v7926_v2 }
0x3691   :  { %v7930_v26 = vsub.f32 %v7922_v33, %v7928_v4  ;;  %v10246_v4 = vld [vmem:[#allocation14 + $0x8] sm:$0xff]  }
0x3692   :  { %v7582_v21 = vpop.xlane.xlu0 %7581 }
0x3693   :  { %v7589_v18 = vmul.f32 0.0078125, %v7582_v21  ;;  %v7932_v15 = vmul.f32 %v7930_v26, %v7930_v26  ;;  %v10248_v21 = vld [vmem:[#allocation14 + $0x18] sm:$0xff]  }
0x3695   :  { %v7595_v25 = vadd.f32 1e-05, %v7589_v18  ;;  %7935 = vadd.xlane.f32.xlu0 %v7932_v15  ;;  %v10249_v18 = vld [vmem:[#allocation14 + $0x20] sm:$0xff]   ;;  %v10250_v15 = vld [vmem:[#allocation14 + $0x28] sm:$0xff]  }
0x3697   :  { %10528 = vrsqrt.f32 %v7595_v25  ;;  %v10251_v25 = vld [vmem:[#allocation14 + $0x30] sm:$0xff]  }
0x36a1   :  { %v10529_v6 = vpop.eup %10528 }
0x36a2   :  { %v7607_v44 = vmul.f32 %v10529_v6, %v7565_v58 }
0x36a4   :  { %v7617_v61 = vmul.f32 %v12475_v30, %v7607_v44  ;;  %v8479_v30 = vld [vmem:[%s12569_s6 + $0x58] sm:$0x3]  ;;  %s10789_s6 = smov [#allocation17]  }
0x36a5   :  { %s8155_s20 = sshll.u32 %s10789_s6, 4  ;;  %s8156_s20 = int_to_ptr.vmem [resolvable:$true] %s8155_s20 }
0x36a6   :  { %v7627_v53 = vadd.f32 %v12482_v1, %v7617_v61  ;;  %v7948_v1 = vrot.slane %v8479_v30, %v11019_v10  ;;  %s10736_s16 = scalar_lea.vmem %s8156_s20, 32  ;;  %p10741_p3 = scmp.lt.s32.totalorder %s8156_s20, %s8156_s20 }
0x36a7   :  { %p10737_p2 = scmp.ne.s32.totalorder %s8156_s20, %s10736_s16  ;;  %p10742_p4 = scmp.lt.s32.totalorder %s10736_s16, %s10736_s16 }
0x36a8   :  { %v7647_v47 = vpack.c.bf16 %v7627_v53, %v12495_v7  ;;  %v7954_v7 = vrot.slane %v8479_v30, %v11064_v57  ;;  %v7958_v30 = vld [vmem:[#allocation13] sm:$0x1] }
0x36a9   :  { %p10743_p5 = por %p10742_p4, %p10741_p3 }
0x36aa   :  { %v7661_v17 = vunpack.c.h.b16 %v7647_v47 }
0x36ab   :  { %p10744_p6 = pnand %p10743_p5, %p10737_p2 }
0x36ac   :  { %v7665_v36 = vpack.c.b16 %v7662_v0, %v7661_v17 }
0x36ae   :  { %9808 = vmatmul.mubr.bf16.gmra.mrb[224].mxu1 %v7665_v36 }
0x36af   :  { %9855 = vmatprep.mubr.msk.bf16.mxu1 %vm10787_vm0, %v10785_v39 }
0x3706   :  { %v7934_v42 = vpop.xlane.xlu1 %7933 }
0x3707   :  { %v7937_v19 = vmul.f32 0.0078125, %v7934_v42  ;;  %v7957_v42 = vld [vmem:[#allocation11] sm:$0x1] }
0x3709   :  { %v7939_v23 = vadd.f32 1e-05, %v7937_v19 }
0x370b   :  { %10530 = vrsqrt.f32 %v7939_v23 }
0x3715   :  { %v10531_v8 = vpop.eup %10530 }
0x3716   :  { %v7943_v54 = vmul.f32 %v10531_v8, %v7929_v35 }
0x3718   :  { %v7949_v38 = vmul.f32 %v7948_v1, %v7943_v54 }
0x371a   :  { %v7955_v34 = vadd.f32 %v7954_v7, %v7949_v38 }
0x371c   :  { %v7960_v40 = vsel %vm7959_vm5, %v7955_v34, 0.0 }
0x371d   :  { %7961 = vadd.xlane.f32.xlu1 %v7960_v40 }
0x3722   :  { %v7936_v45 = vpop.xlane.xlu0 %7935 }
0x3723   :  { %v7938_v49 = vmul.f32 0.0078125, %v7936_v45 }
0x3725   :  { %v7940_v59 = vadd.f32 1e-05, %v7938_v49 }
0x3727   :  { %10532 = vrsqrt.f32 %v7940_v59 }
0x3731   :  { %v10533_v13 = vpop.eup %10532 }
0x3732   :  { %v7944_v48 = vmul.f32 %v10533_v13, %v7930_v26  ;;  %v10247_v26 = vld [vmem:[#allocation14 + $0x10] sm:$0xff]   ;;  %v10788_v13 = vmov 1966171168  }
0x3734   :  { %v7950_v60 = vmul.f32 %v7948_v1, %v7944_v48  ;;  %v8069_v48 = vunpack.c.l.s4 %v10788_v13 }
0x3736   :  { %v7956_v63 = vadd.f32 %v7954_v7, %v7950_v60  ;;  %v8070_v60 = vunpack.c.0.s8 %v8069_v48 }
0x3738   :  { %v7963_v10 = vsel %vm7959_vm5, %v7956_v63, 0.0 }
0x3739   :  { %7964 = vadd.xlane.f32.xlu0 %v7963_v10  ;;  %v8073_v10 = vsub.s32 %v8070_v60, %v11016_v5 }
0x3781   :  { %v7767_v50 = vpop.f32.mrb[224].mxu1 }
0x3782   :  { %v7768_v57 = vadd.f32 %v7767_v50, %v12503_v3  ;;  %v9809_v37 = vpop.f32.mrb[225].mxu1 }
0x3783   :  { %v7770_v56 = vpop.f32.mrb[226].mxu1 }
0x3784   :  { %v7778_v51 = vmax.f32 %v7768_v57, 0.0  ;;  %v7771_v29 = vadd.f32 %v7770_v56, %v12503_v3  ;;  %v9810_v14 = vpop.f32.mrb[227].mxu1 }
0x3786   :  { %v7798_v11 = vpack.c.bf16 %v7778_v51, %v7777_v20  ;;  %v7779_v27 = vmax.f32 %v7771_v29, 0.0  ;;  %v10245_v20 = vld [vmem:[#allocation14] sm:$0xff]  }
0x3787   :  { %9840 = vmatpush3.bf16.msra.mxu1 %v10245_v20 }
0x3788   :  { %v7799_v31 = vpack.c.bf16 %v7779_v27, %v7779_v27  ;;  %v7812_v58 = vunpack.c.h.b16 %v7798_v11  ;;  %9841 = vmatprep.subr.bf16.mxu1 %v10785_v39 }
0x378a   :  { %v7813_v33 = vunpack.c.l.b16 %v7799_v31 }
0x378b   :  { %9842 = vmatpush3.bf16.msra.mxu1 %v10246_v4 }
0x378c   :  { %v7816_v52 = vpack.c.b16 %v7813_v33, %v7812_v58  ;;  %9843 = vmatprep.subr.bf16.mxu1 %v10785_v39 }
0x378e   :  { %9836 = vmatmul.mubr.bf16.gmra.mrb[236].mxu0 %v7816_v52 }
0x378f   :  { %9844 = vmatpush3.bf16.msra.mxu1 %v10247_v26 }
0x3790   :  { %9845 = vmatprep.subr.bf16.mxu1 %v10785_v39 }
0x3793   :  { %9846 = vmatpush3.bf16.msra.mxu1 %v10248_v21 }
0x3794   :  { %9847 = vmatprep.subr.bf16.mxu1 %v10785_v39 }
0x3797   :  { %9848 = vmatpush3.bf16.msra.mxu1 %v10249_v18 }
0x3798   :  { %9849 = vmatprep.subr.bf16.mxu1 %v10785_v39 }
0x379b   :  { %9850 = vmatpush3.bf16.msra.mxu1 %v10250_v15 }
0x379c   :  { %9851 = vmatprep.subr.bf16.mxu1 %v10785_v39 }
0x379f   :  { %9852 = vmatpush3.bf16.msra.mxu1 %v10251_v25 }
0x37a0   :  { %9853 = vmatprep.subr.bf16.mxu1 %v10785_v39 }
0x37a3   :  { %9854 = vmatpush3.bf16.msra.mxu1 %v10252_v16 }
0x37aa   :  { %v7962_v55 = vpop.xlane.xlu1 %7961 }
0x37ab   :  { %v7966_v32 = vmul.f32 0.0078125, %v7962_v55 }
0x37ad   :  { %v7968_v35 = vsub.f32 %v7955_v34, %v7966_v32 }
0x37af   :  { %v7970_v46 = vmul.f32 %v7968_v35, %v7968_v35 }
0x37b1   :  { %v7972_v43 = vsel %vm7959_vm5, %v7970_v46, 0.0 }
0x37b2   :  { %7973 = vadd.xlane.f32.xlu1 %v7972_v43 }
0x37c6   :  { %v7965_v12 = vpop.xlane.xlu0 %7964 }
0x37c7   :  { %v7967_v28 = vmul.f32 0.0078125, %v7965_v12 }
0x37c9   :  { %v7969_v3 = vsub.f32 %v7956_v63, %v7967_v28  ;;  %v10253_v63 = vld [vmem:[#allocation16] ss:$0 sps:$4 sm:$0x11]  }
0x37ca   :  { %v8074_v50 = vrot.slane %v10253_v63, %v8073_v10 }
0x37cb   :  { %v7971_v2 = vmul.f32 %v7969_v3, %v7969_v3 }
0x37cc   :  { %v8081_v57 = vrot.slane %v8074_v50, %v8073_v10 }
0x37cd   :  { %v7975_v41 = vsel %vm7959_vm5, %v7971_v2, 0.0 }
0x37ce   :  { %7976 = vadd.xlane.f32.xlu0 %v7975_v41 }
0x383f   :  { %v7974_v24 = vpop.xlane.xlu1 %7973 }
0x3840   :  { %v7978_v22 = vmul.f32 0.0078125, %v7974_v24 }
0x3842   :  { %v7980_v6 = vadd.f32 1e-05, %v7978_v22 }
0x3844   :  { %10534 = vrsqrt.f32 %v7980_v6 }
0x384e   :  { %v10535_v9 = vpop.eup %10534 }
0x384f   :  { %v7984_v36 = vmul.f32 %v10535_v9, %v7968_v35 }
0x3851   :  { %v7986_v19 = vmul.f32 %v7984_v36, %v7957_v42 }
0x3853   :  { %v7988_v1 = vadd.f32 %v7986_v19, %v7958_v30 }
0x3855   :  { %v8006_v7 = vpack.c.bf16 %v7988_v1, %v7988_v1 }
0x3857   :  { %v8011_v40 = vunpack.c.l.b16 %v8006_v7 }
0x385b   :  { %v7977_v44 = vpop.xlane.xlu0 %7976 }
0x385c   :  { %v7979_v62 = vmul.f32 0.0078125, %v7977_v44 }
0x385e   :  { %v7981_v61 = vadd.f32 1e-05, %v7979_v62 }
0x3860   :  { %10536 = vrsqrt.f32 %v7981_v61 }
0x3861   :  { %v7916_v53 = vpop.f32.mrb[236].mxu0 }
0x3862   :  { %v9837_v47 = vpop.f32.mrb[237].mxu0 }
0x3863   :  { %v7918_v17 = vpop.f32.mrb[238].mxu0 }
0x3864   :  { %v9838_v0 = vpop.f32.mrb[239].mxu0 }
0x386a   :  { %v10537_v23 = vpop.eup %10536 }
0x386b   :  { %v7985_v39 = vmul.f32 %v10537_v23, %v7969_v3 }
0x386d   :  { %v7987_v8 = vmul.f32 %v7985_v39, %v7957_v42 }
0x386f   :  { %v7989_v54 = vadd.f32 %v7987_v8, %v7958_v30 }
0x3871   :  { %v8007_v38 = vpack.c.bf16 %v7989_v54, %v7989_v54 }
0x3873   :  { %v8012_v34 = vunpack.c.l.b16 %v8007_v38 }
0x3875   :  { %v8013_v45 = vrot.slane %v8012_v34, 7 }
0x3877   :  { %v8015_v49 = vsel %vm8014_vm6, %v8013_v45, %v8011_v40 }
0x3878   :  { %v8016_v59 = vpack.c.b16 %v8015_v49, %v8015_v49 }
0x387a   :  { %9856 = vmatmul.mubr.bf16.vlgmr.msra.gmra.mrb[228].mxu1 %v8016_v59 }
0x394d   :  { %v8117_v37 = vpop.f32.mrb[228].mxu1 }
0x394e   :  { %v8118_v56 = vadd.f32 %v8117_v37, %v8081_v57  ;;  %v9857_v51 = vpop.f32.mrb[229].mxu1 }
0x394f   :  { %v8120_v29 = vpop.f32.mrb[230].mxu1 }
0x3950   :  { %v8130_v14 = vrot.slane %v8118_v56, %v8073_v10  ;;  %v9858_v11 = vpop.f32.mrb[231].mxu1 }
0x3952   :  { %v8131_v27 = vcombine.high %v8130_v14, %v8130_v14  ;;  %8544 = vst.sshfl [vmem:[#allocation17] sm:$0x1 pattern:$0x73625140] %v8130_v14 }
0x3954   :  { %8545 = vst.sshfl [vmem:[#allocation17 + $0x1] sm:$0x1 pattern:$0x73625140] %v8131_v27 }
0x3955   :  { %10747 = shalt.err (!%p10744_p6)
}
0x3956   :  { %s10748_s9 = scalar_lea.hbm %s12574_s11, 32 }
0x3957   :  { %p10749_p7 = scmp.ne.s32.totalorder %s12574_s11, %s10748_s9  ;;  %p10752_p8 = scmp.lt.u32.totalorder %s10748_s9, %s12574_s11 }
0x3959   :  { %p10754_p9 = pnand %p10752_p8, %p10749_p7 }
0x395b   :  { %10757 = shalt.err (!%p10754_p9)
}
0x395c   :  { %s10790_s2 = smov 16   ;;  %s10791_s10 = smov 1  }
0x395d   :  { %8161 = dma.vmem_to_hbm [thread:$0]  %s8156_s20, 32, %s12574_s11, [#allocation4], %s10790_s2, %s10790_s2, %s10791_s10  }
0x395e   :  { %10768 = dma.done.wait [#allocation4], 32  }
0x395f   :  { %10769 = vsyncadd [#allocation4], 4294967264 }
0x3960   :  { %8165 = vsyncpa [#allocation3], 1 }
0x3961   :  { %8166 = vsyncpa [#allocation6], 1 }
0x3962   :  { %8167 = vsyncpa [#allocation9], 1 }
0x3963   :  { %8168 = vsyncpa [#allocation12], 1 }
0x3964   :  { %8169 = vsyncpa [#allocation15], 1 }
0x3965   :  { %8170 = vsyncpa [#allocation4], 1 }

</bundles_post_ra>
